<compile_context>
chip_gen: v7x
topology: tpu7x:2x2x1
jax: 0.10.0
libtpu: 0.0.40
codegen_flags: <defaults>
</compile_context>

<pallas_src>
import functools
from typing import Dict, List

import jax
import jax.numpy as jnp
from jax.experimental import pallas as pl
from jax.experimental.pallas import tpu as pltpu

RESNETLAYERS = ['layer0', 'layer1', 'layer2', 'layer3', 'layer4', 'avgpool']

# Rows (M = N*Ho*Wo) per output tile; multiple of 128, sized so the
# double-buffered tap stream fits every generation's scoped-VMEM default.
_TM_MAX = 512


def _m_tile(M: int) -> int:
    if M <= _TM_MAX:
        return M          # single full block (block dim == full array dim)
    return _TM_MAX        # multiple of 128 -> aligned, pipelined tiles


# ---------------------------------------------------------------------------
# Pallas kernels
# ---------------------------------------------------------------------------
def _conv_gemm_kernel(*refs, n_taps: int, relu: bool, has_residual: bool):
    """Fused conv-as-GEMM + bias (+ residual) (+ ReLU), transposed orientation.

    refs layout:
      w_ref   : (T, Cout, Kt)  bf16   (frozen-BN scale already folded in)
      b_ref   : (Cout, 1)      f32
      [r_ref] : (Cout, TM)     bf16   residual (optional)
      tap_0..tap_{n_taps-1} : (Kt, TM) bf16
      o_ref   : (Cout, TM)     bf16
    """
    w_ref, b_ref = refs[0], refs[1]
    pos = 2
    r_ref = None
    if has_residual:
        r_ref = refs[pos]
        pos += 1
    tap_refs = refs[pos:pos + n_taps]
    o_ref = refs[pos + n_taps]

    # Reduce over the k*k taps with an f32 accumulator (bf16 MXU, f32 acc).
    acc = jnp.dot(w_ref[0], tap_refs[0][...],
                  preferred_element_type=jnp.float32)
    for t in range(1, n_taps):
        acc = acc + jnp.dot(w_ref[t], tap_refs[t][...],
                            preferred_element_type=jnp.float32)

    y = acc + b_ref[...]                       # BN bias (scale folded into w)
    if has_residual:
        y = y + r_ref[...].astype(jnp.float32)
    if relu:
        y = jnp.maximum(y, 0.0)
    o_ref[...] = y.astype(o_ref.dtype)


def _maxpool_kernel(*refs):
    """Max-tree over 9 shifted (C, TM) slabs of a 3x3/2 pool (post-ReLU data)."""
    o_ref = refs[-1]
    m = refs[0][...]
    for r in refs[1:-1]:
        m = jnp.maximum(m, r[...])
    o_ref[...] = m


# ---------------------------------------------------------------------------
# pallas_call wrappers
# ---------------------------------------------------------------------------
def _tap_slabs(x, k, stride, pad):
    """k*k shifted/strided (C, M) slabs of channel-major x (zero padding)."""
    C, N, H, W = x.shape
    xp = jnp.pad(x, ((0, 0), (0, 0), (pad, pad), (pad, pad)))
    Ho = (H + 2 * pad - k) // stride + 1
    Wo = (W + 2 * pad - k) // stride + 1
    slabs = []
    for dy in range(k):
        for dx in range(k):
            s = xp[:, :, dy:dy + stride * (Ho - 1) + 1:stride,
                         dx:dx + stride * (Wo - 1) + 1:stride]
            slabs.append(s.reshape(C, N * Ho * Wo))
    return slabs, Ho, Wo


def conv_bn(x, conv, relu, residual=None):
    """x: (Cin, N, H, W) bf16.  conv: packed dict from _pack_conv."""
    k, stride, pad = conv['k'], conv['stride'], conv['pad']
    slabs, Ho, Wo = _tap_slabs(x, k, stride, pad)
    N = x.shape[1]
    M = N * Ho * Wo

    if conv['preconcat']:
        taps = [jnp.concatenate(slabs, axis=0)]   # stem only: (49*Cin, M)
    else:
        taps = slabs                              # k*k separate (Cin, M) slabs

    wp, bias = conv['w'], conv['b']
    T, Cout, Kt = wp.shape
    r = None if residual is None else residual.reshape(Cout, M)

    TM = _m_tile(M)
    grid = (pl.cdiv(M, TM),)

    in_specs = [
        pl.BlockSpec((T, Cout, Kt), lambda i: (0, 0, 0)),   # weights: resident
        pl.BlockSpec((Cout, 1), lambda i: (0, 0)),          # bias: resident
    ]
    args = [wp, bias]
    if r is not None:
        in_specs.append(pl.BlockSpec((Cout, TM), lambda i: (0, i)))
        args.append(r)
    for _ in taps:
        in_specs.append(pl.BlockSpec((Kt, TM), lambda i: (0, i)))
    args.extend(taps)

    kern = functools.partial(_conv_gemm_kernel, n_taps=len(taps), relu=relu,
                             has_residual=r is not None)
    # TODO(synk): for deeper pipelining on v6e, raise pipeline_mode=pl.Buffered(3)
    # on the tap BlockSpecs; for v5e, additionally pad the stem K (147 -> 256).
    out = pl.pallas_call(
        kern,
        out_shape=jax.ShapeDtypeStruct((Cout, M), jnp.bfloat16),
        grid=grid,
        in_specs=in_specs,
        out_specs=pl.BlockSpec((Cout, TM), lambda i: (0, i)),
        compiler_params=pltpu.CompilerParams(
            dimension_semantics=("parallel",)),   # megacore on v7x
    )(*args)
    return out.reshape(Cout, N, Ho, Wo)


def maxpool_3x3_s2(x):
    """MaxPool2d(kernel_size=3, stride=2, padding=1) on (C, N, H, W) x.

    NOTE: zero padding is exact here only because x is post-ReLU (>= 0) and no
    3x3 window is all-padding with pad=1; do not reuse on pre-activation data.
    """
    C, N, H, W = x.shape
    slabs, Ho, Wo = _tap_slabs(x, 3, 2, 1)
    M = N * Ho * Wo
    TM = _m_tile(M)
    out = pl.pallas_call(
        _maxpool_kernel,
        out_shape=jax.ShapeDtypeStruct((C, M), x.dtype),
        grid=(pl.cdiv(M, TM),),
        in_specs=[pl.BlockSpec((C, TM), lambda i: (0, i)) for _ in slabs],
        out_specs=pl.BlockSpec((C, TM), lambda i: (0, i)),
        compiler_params=pltpu.CompilerParams(
            dimension_semantics=("parallel",)),
    )(*slabs)
    return out.reshape(C, N, Ho, Wo)


def avgpool_global(x):
    """AdaptiveAvgPool2d((1,1)): (C, N, H, W) -> (N, C) in f32.

    Plain XLA reduction per perf review (pallas_call here is launch overhead).
    """
    return jnp.mean(x.astype(jnp.float32), axis=(2, 3)).T


# ---------------------------------------------------------------------------
# ResNet18 structure (BasicBlock x2 per layer), deterministic synthetic params
# ---------------------------------------------------------------------------
def _conv_w(key, cout, cin, k):
    fan_in = cin * k * k
    return (jax.random.normal(key, (cout, cin, k, k), dtype=jnp.float32)
            * (2.0 / fan_in) ** 0.5)


def _bn_fold(key, c):
    """Frozen (eval-mode) BatchNorm folded to per-channel scale/bias."""
    k1, k2, k3, k4 = jax.random.split(key, 4)
    gamma = jax.random.uniform(k1, (c,), minval=0.5, maxval=1.5)
    beta = 0.1 * jax.random.normal(k2, (c,))
    mean = 0.1 * jax.random.normal(k3, (c,))
    var = jax.random.uniform(k4, (c,), minval=0.5, maxval=1.5)
    scale = gamma / jnp.sqrt(var + 1e-5)
    bias = beta - mean * scale
    return scale.astype(jnp.float32), bias.astype(jnp.float32)


def init_resnet18_params(key, widths=(16, 16, 32, 64, 128)):
    keys = iter(jax.random.split(key, 256))
    params = {}
    s0, b0 = _bn_fold(next(keys), widths[0])
    params['layer0'] = dict(w=_conv_w(next(keys), widths[0], 3, 7), scale=s0, bias=b0)
    in_c = widths[0]
    strides = (1, 2, 2, 2)
    for li in range(4):
        out_c = widths[li + 1]
        blocks = []
        for bi in range(2):
            s = strides[li] if bi == 0 else 1
            cin = in_c if bi == 0 else out_c
            s1, b1 = _bn_fold(next(keys), out_c)
            s2, b2 = _bn_fold(next(keys), out_c)
            blk = dict(stride=s,
                       w1=_conv_w(next(keys), out_c, cin, 3), s1=s1, b1=b1,
                       w2=_conv_w(next(keys), out_c, out_c, 3), s2=s2, b2=b2)
            if s != 1 or cin != out_c:       # 1x1 downsample conv + BN
                sd, bd = _bn_fold(next(keys), out_c)
                blk.update(wd=_conv_w(next(keys), out_c, cin, 1), sd=sd, bd=bd)
            blocks.append(blk)
        params[f'layer{li + 1}'] = blocks
        in_c = out_c
    return params


def _pack_conv(w, scale, bias, stride, pad, preconcat):
    """Fold frozen-BN scale into the weights, pack as (T, Cout, Kt) bf16."""
    cout, cin, kh, kw = w.shape
    wt = jnp.transpose(w, (2, 3, 0, 1)).reshape(kh * kw, cout, cin)   # tap-major
    wt = wt * scale.reshape(1, cout, 1)                               # BN fold
    if preconcat:   # single GEMM with K = kh*kw*cin (tap-major row order)
        wt = jnp.transpose(wt, (1, 0, 2)).reshape(1, cout, kh * kw * cin)
    return dict(w=wt.astype(jnp.bfloat16),
                b=bias.reshape(cout, 1).astype(jnp.float32),
                k=kh, stride=stride, pad=pad, preconcat=preconcat)


def _pack_params(params):
    packed = {}
    p0 = params['layer0']
    packed['layer0'] = _pack_conv(p0['w'], p0['scale'], p0['bias'],
                                  stride=2, pad=3, preconcat=True)
    for li in range(1, 5):
        blks = []
        for bp in params[f'layer{li}']:
            blk = dict(conv1=_pack_conv(bp['w1'], bp['s1'], bp['b1'],
                                        bp['stride'], 1, False),
                       conv2=_pack_conv(bp['w2'], bp['s2'], bp['b2'],
                                        1, 1, False))
            if 'wd' in bp:
                blk['down'] = _pack_conv(bp['wd'], bp['sd'], bp['bd'],
                                         bp['stride'], 0, False)
            blks.append(blk)
        packed[f'layer{li}'] = blks
    return packed


def basic_block(x, blk):
    identity = x
    h = conv_bn(x, blk['conv1'], relu=True)
    if 'down' in blk:
        identity = conv_bn(x, blk['down'], relu=False)
    # second conv: bias + residual add + ReLU fused into the GEMM epilogue
    return conv_bn(h, blk['conv2'], relu=True, residual=identity)
    # TODO(synk): fuse conv1+conv2(+downsample) of a BasicBlock into one
    # pallas_call (pltpu.emit_pipeline) to cut inter-conv HBM round-trips.


class ResNetFeatureExtractor:
    """Pallas re-implementation of fae.models.feature_extractor.ResNetFeatureExtractor."""

    def __init__(self, params, layer_names: List[str] = RESNETLAYERS):
        self.layer_names = layer_names
        # Weights packed / BN folded once at construction, not per forward.
        self.packed = _pack_params(params)

    def _run_layer(self, name, x):
        if name == 'layer0':
            x = conv_bn(x, self.packed['layer0'], relu=True)
            return maxpool_3x3_s2(x)
        if name == 'avgpool':
            return avgpool_global(x)          # (N, C) f32
        for blk in self.packed[name]:
            x = basic_block(x, blk)
        return x

    def __call__(self, inp) -> Dict[str, jnp.ndarray]:
        # inp is NCHW, exactly like the PyTorch module.
        if inp.shape[1] == 1:
            inp = jnp.repeat(inp, 3, axis=1)          # mirrors inp.repeat(1,3,1,1)
        # internal layout: channel-major (C, N, H, W) bf16 -> lane-dense GEMMs
        x = jnp.transpose(inp, (1, 0, 2, 3)).astype(jnp.bfloat16)
        out = {}
        for name in RESNETLAYERS:
            x = self._run_layer(name, x)
            if name in self.layer_names:
                if name == 'avgpool':
                    out[name] = x.reshape(x.shape[0], x.shape[1], 1, 1)   # (N,C,1,1)
                else:
                    out[name] = jnp.transpose(x, (1, 0, 2, 3)).astype(jnp.float32)  # NCHW
            if name == self.layer_names[-1]:
                break
        return out


if __name__ == "__main__":
    key = jax.random.PRNGKey(0)
    pkey, xkey = jax.random.split(key)
    params = init_resnet18_params(pkey)
    model = ResNetFeatureExtractor(params)     # default layer_names = all layers
    fwd = jax.jit(lambda inp: model(inp))      # single XLA program wrapping all pallas_calls
    x = jax.random.normal(xkey, (2, 3, 32, 32), dtype=jnp.float32)   # NCHW
    out = fwd(x)
    jax.block_until_ready(out)
    print("KERNEL_OK")
</pallas_src>

<mosaic_0001>
module attributes {stable_mosaic.version = 11 : i64} {
  func.func @_conv_gemm_kernel(%arg0: i32, %arg1: memref<1x16x147xbf16, #tpu.memory_space<vmem>>, %arg2: memref<16x1xf32, #tpu.memory_space<vmem>>, %arg3: memref<147x512xbf16, #tpu.memory_space<vmem>>, %arg4: memref<16x512xbf16, #tpu.memory_space<vmem>>) attributes {dimension_semantics = [#tpu.dimension_semantics<parallel>], iteration_bounds = array<i64: 1>, scalar_prefetch = 0 : i64, scratch_operands = 0 : i64, tpu.core_type = #tpu.core_type<tc>, window_params = [{pipeline_mode = #tpu.pipeline_mode<synchronous>, transform_indices = @transform_0, window_bounds = array<i64: 1, 16, 147>}, {pipeline_mode = #tpu.pipeline_mode<synchronous>, transform_indices = @transform_1, window_bounds = array<i64: 16, 1>}, {transform_indices = @transform_2, window_bounds = array<i64: 147, 512>}, {transform_indices = @transform_3, window_bounds = array<i64: 16, 512>}]} {
    %c0 = arith.constant 0 : index
    %c0_0 = arith.constant 0 : index
    %c0_1 = arith.constant 0 : index
    %0 = vector.load %arg1[%c0, %c0_0, %c0_1] : memref<1x16x147xbf16, #tpu.memory_space<vmem>>, vector<1x16x147xbf16>
    %1 = vector.shape_cast %0 : vector<1x16x147xbf16> to vector<16x147xbf16>
    %c0_2 = arith.constant 0 : index
    %c0_3 = arith.constant 0 : index
    %2 = vector.load %arg3[%c0_2, %c0_3] : memref<147x512xbf16, #tpu.memory_space<vmem>>, vector<147x512xbf16>
    %cst = arith.constant dense<0.000000e+00> : vector<16x512xf32>
    %3 = tpu.matmul %1, %2, %cst {dimension_numbers = #tpu.dot_dimension_numbers<[1], [0], [0], [1], [0, 0, 1, 1], [], []>} : vector<16x147xbf16>, vector<147x512xbf16>, vector<16x512xf32> -> vector<16x512xf32>
    %c0_4 = arith.constant 0 : index
    %c0_5 = arith.constant 0 : index
    %4 = vector.load %arg2[%c0_4, %c0_5] : memref<16x1xf32, #tpu.memory_space<vmem>>, vector<16x1xf32>
    %5 = vector.broadcast %4 : vector<16x1xf32> to vector<16x512xf32>
    %6 = arith.addf %3, %5 : vector<16x512xf32>
    %cst_6 = arith.constant 0.000000e+00 : f32
    %7 = vector.broadcast %cst_6 : f32 to vector<16x512xf32>
    %8 = arith.maximumf %6, %7 : vector<16x512xf32>
    %9 = arith.truncf %8 : vector<16x512xf32> to vector<16x512xbf16>
    %c0_7 = arith.constant 0 : index
    %c0_8 = arith.constant 0 : index
    %10 = vector.load %arg4[%c0_7, %c0_8] : memref<16x512xbf16, #tpu.memory_space<vmem>>, vector<16x512xbf16>
    tpu.vector_store %arg4[%c0_7, %c0_8], %9 {strides = array<i32>} : memref<16x512xbf16, #tpu.memory_space<vmem>>, vector<16x512xbf16>,
    return
  }
  func.func @transform_0(%arg0: i32) -> (i32, i32, i32) {
    %c0_i32 = arith.constant 0 : i32
    %c0_i32_0 = arith.constant 0 : i32
    %c0_i32_1 = arith.constant 0 : i32
    %c0_i32_2 = arith.constant 0 : i32
    return %c0_i32, %c0_i32_0, %c0_i32_1 : i32, i32, i32
  }
  func.func @transform_1(%arg0: i32) -> (i32, i32) {
    %c0_i32 = arith.constant 0 : i32
    %c0_i32_0 = arith.constant 0 : i32
    %c0_i32_1 = arith.constant 0 : i32
    return %c0_i32, %c0_i32_0 : i32, i32
  }
  func.func @transform_2(%arg0: i32) -> (i32, i32) {
    %c0_i32 = arith.constant 0 : i32
    %c0_i32_0 = arith.constant 0 : i32
    return %c0_i32, %arg0 : i32, i32
  }
  func.func @transform_3(%arg0: i32) -> (i32, i32) {
    %c0_i32 = arith.constant 0 : i32
    %c0_i32_0 = arith.constant 0 : i32
    return %c0_i32, %arg0 : i32, i32
  }
}

module attributes {stable_mosaic.version = 11 : i64} {
  func.func @_maxpool_kernel(%arg0: i32, %arg1: memref<16x128xbf16, #tpu.memory_space<vmem>>, %arg2: memref<16x128xbf16, #tpu.memory_space<vmem>>, %arg3: memref<16x128xbf16, #tpu.memory_space<vmem>>, %arg4: memref<16x128xbf16, #tpu.memory_space<vmem>>, %arg5: memref<16x128xbf16, #tpu.memory_space<vmem>>, %arg6: memref<16x128xbf16, #tpu.memory_space<vmem>>, %arg7: memref<16x128xbf16, #tpu.memory_space<vmem>>, %arg8: memref<16x128xbf16, #tpu.memory_space<vmem>>, %arg9: memref<16x128xbf16, #tpu.memory_space<vmem>>, %arg10: memref<16x128xbf16, #tpu.memory_space<vmem>>) attributes {dimension_semantics = [#tpu.dimension_semantics<parallel>], iteration_bounds = array<i64: 1>, scalar_prefetch = 0 : i64, scratch_operands = 0 : i64, tpu.core_type = #tpu.core_type<tc>, window_params = [{transform_indices = @transform_0, window_bounds = array<i64: 16, 128>}, {transform_indices = @transform_1, window_bounds = array<i64: 16, 128>}, {transform_indices = @transform_2, window_bounds = array<i64: 16, 128>}, {transform_indices = @transform_3, window_bounds = array<i64: 16, 128>}, {transform_indices = @transform_4, window_bounds = array<i64: 16, 128>}, {transform_indices = @transform_5, window_bounds = array<i64: 16, 128>}, {transform_indices = @transform_6, window_bounds = array<i64: 16, 128>}, {transform_indices = @transform_7, window_bounds = array<i64: 16, 128>}, {transform_indices = @transform_8, window_bounds = array<i64: 16, 128>}, {transform_indices = @transform_9, window_bounds = array<i64: 16, 128>}]} {
    %c0 = arith.constant 0 : index
    %c0_0 = arith.constant 0 : index
    %0 = vector.load %arg1[%c0, %c0_0] : memref<16x128xbf16, #tpu.memory_space<vmem>>, vector<16x128xbf16>
    %c0_1 = arith.constant 0 : index
    %c0_2 = arith.constant 0 : index
    %1 = vector.load %arg2[%c0_1, %c0_2] : memref<16x128xbf16, #tpu.memory_space<vmem>>, vector<16x128xbf16>
    %2 = arith.maximumf %0, %1 : vector<16x128xbf16>
    %c0_3 = arith.constant 0 : index
    %c0_4 = arith.constant 0 : index
    %3 = vector.load %arg3[%c0_3, %c0_4] : memref<16x128xbf16, #tpu.memory_space<vmem>>, vector<16x128xbf16>
    %4 = arith.maximumf %2, %3 : vector<16x128xbf16>
    %c0_5 = arith.constant 0 : index
    %c0_6 = arith.constant 0 : index
    %5 = vector.load %arg4[%c0_5, %c0_6] : memref<16x128xbf16, #tpu.memory_space<vmem>>, vector<16x128xbf16>
    %6 = arith.maximumf %4, %5 : vector<16x128xbf16>
    %c0_7 = arith.constant 0 : index
    %c0_8 = arith.constant 0 : index
    %7 = vector.load %arg5[%c0_7, %c0_8] : memref<16x128xbf16, #tpu.memory_space<vmem>>, vector<16x128xbf16>
    %8 = arith.maximumf %6, %7 : vector<16x128xbf16>
    %c0_9 = arith.constant 0 : index
    %c0_10 = arith.constant 0 : index
    %9 = vector.load %arg6[%c0_9, %c0_10] : memref<16x128xbf16, #tpu.memory_space<vmem>>, vector<16x128xbf16>
    %10 = arith.maximumf %8, %9 : vector<16x128xbf16>
    %c0_11 = arith.constant 0 : index
    %c0_12 = arith.constant 0 : index
    %11 = vector.load %arg7[%c0_11, %c0_12] : memref<16x128xbf16, #tpu.memory_space<vmem>>, vector<16x128xbf16>
    %12 = arith.maximumf %10, %11 : vector<16x128xbf16>
    %c0_13 = arith.constant 0 : index
    %c0_14 = arith.constant 0 : index
    %13 = vector.load %arg8[%c0_13, %c0_14] : memref<16x128xbf16, #tpu.memory_space<vmem>>, vector<16x128xbf16>
    %14 = arith.maximumf %12, %13 : vector<16x128xbf16>
    %c0_15 = arith.constant 0 : index
    %c0_16 = arith.constant 0 : index
    %15 = vector.load %arg9[%c0_15, %c0_16] : memref<16x128xbf16, #tpu.memory_space<vmem>>, vector<16x128xbf16>
    %16 = arith.maximumf %14, %15 : vector<16x128xbf16>
    %c0_17 = arith.constant 0 : index
    %c0_18 = arith.constant 0 : index
    %17 = vector.load %arg10[%c0_17, %c0_18] : memref<16x128xbf16, #tpu.memory_space<vmem>>, vector<16x128xbf16>
    tpu.vector_store %arg10[%c0_17, %c0_18], %16 {strides = array<i32>} : memref<16x128xbf16, #tpu.memory_space<vmem>>, vector<16x128xbf16>,
    return
  }
  func.func @transform_0(%arg0: i32) -> (i32, i32) {
    %c0_i32 = arith.constant 0 : i32
    %c0_i32_0 = arith.constant 0 : i32
    return %c0_i32, %arg0 : i32, i32
  }
  func.func @transform_1(%arg0: i32) -> (i32, i32) {
    %c0_i32 = arith.constant 0 : i32
    %c0_i32_0 = arith.constant 0 : i32
    return %c0_i32, %arg0 : i32, i32
  }
  func.func @transform_2(%arg0: i32) -> (i32, i32) {
    %c0_i32 = arith.constant 0 : i32
    %c0_i32_0 = arith.constant 0 : i32
    return %c0_i32, %arg0 : i32, i32
  }
  func.func @transform_3(%arg0: i32) -> (i32, i32) {
    %c0_i32 = arith.constant 0 : i32
    %c0_i32_0 = arith.constant 0 : i32
    return %c0_i32, %arg0 : i32, i32
  }
  func.func @transform_4(%arg0: i32) -> (i32, i32) {
    %c0_i32 = arith.constant 0 : i32
    %c0_i32_0 = arith.constant 0 : i32
    return %c0_i32, %arg0 : i32, i32
  }
  func.func @transform_5(%arg0: i32) -> (i32, i32) {
    %c0_i32 = arith.constant 0 : i32
    %c0_i32_0 = arith.constant 0 : i32
    return %c0_i32, %arg0 : i32, i32
  }
  func.func @transform_6(%arg0: i32) -> (i32, i32) {
    %c0_i32 = arith.constant 0 : i32
    %c0_i32_0 = arith.constant 0 : i32
    return %c0_i32, %arg0 : i32, i32
  }
  func.func @transform_7(%arg0: i32) -> (i32, i32) {
    %c0_i32 = arith.constant 0 : i32
    %c0_i32_0 = arith.constant 0 : i32
    return %c0_i32, %arg0 : i32, i32
  }
  func.func @transform_8(%arg0: i32) -> (i32, i32) {
    %c0_i32 = arith.constant 0 : i32
    %c0_i32_0 = arith.constant 0 : i32
    return %c0_i32, %arg0 : i32, i32
  }
  func.func @transform_9(%arg0: i32) -> (i32, i32) {
    %c0_i32 = arith.constant 0 : i32
    %c0_i32_0 = arith.constant 0 : i32
    return %c0_i32, %arg0 : i32, i32
  }
}

module attributes {stable_mosaic.version = 11 : i64} {
  func.func @_conv_gemm_kernel(%arg0: i32, %arg1: memref<9x16x16xbf16, #tpu.memory_space<vmem>>, %arg2: memref<16x1xf32, #tpu.memory_space<vmem>>, %arg3: memref<16x128xbf16, #tpu.memory_space<vmem>>, %arg4: memref<16x128xbf16, #tpu.memory_space<vmem>>, %arg5: memref<16x128xbf16, #tpu.memory_space<vmem>>, %arg6: memref<16x128xbf16, #tpu.memory_space<vmem>>, %arg7: memref<16x128xbf16, #tpu.memory_space<vmem>>, %arg8: memref<16x128xbf16, #tpu.memory_space<vmem>>, %arg9: memref<16x128xbf16, #tpu.memory_space<vmem>>, %arg10: memref<16x128xbf16, #tpu.memory_space<vmem>>, %arg11: memref<16x128xbf16, #tpu.memory_space<vmem>>, %arg12: memref<16x128xbf16, #tpu.memory_space<vmem>>) attributes {dimension_semantics = [#tpu.dimension_semantics<parallel>], iteration_bounds = array<i64: 1>, scalar_prefetch = 0 : i64, scratch_operands = 0 : i64, tpu.core_type = #tpu.core_type<tc>, window_params = [{pipeline_mode = #tpu.pipeline_mode<synchronous>, transform_indices = @transform_0, window_bounds = array<i64: 9, 16, 16>}, {pipeline_mode = #tpu.pipeline_mode<synchronous>, transform_indices = @transform_1, window_bounds = array<i64: 16, 1>}, {transform_indices = @transform_2, window_bounds = array<i64: 16, 128>}, {transform_indices = @transform_3, window_bounds = array<i64: 16, 128>}, {transform_indices = @transform_4, window_bounds = array<i64: 16, 128>}, {transform_indices = @transform_5, window_bounds = array<i64: 16, 128>}, {transform_indices = @transform_6, window_bounds = array<i64: 16, 128>}, {transform_indices = @transform_7, window_bounds = array<i64: 16, 128>}, {transform_indices = @transform_8, window_bounds = array<i64: 16, 128>}, {transform_indices = @transform_9, window_bounds = array<i64: 16, 128>}, {transform_indices = @transform_10, window_bounds = array<i64: 16, 128>}, {transform_indices = @transform_11, window_bounds = array<i64: 16, 128>}]} {
    %c0 = arith.constant 0 : index
    %c0_0 = arith.constant 0 : index
    %c0_1 = arith.constant 0 : index
    %0 = vector.load %arg1[%c0, %c0_0, %c0_1] : memref<9x16x16xbf16, #tpu.memory_space<vmem>>, vector<1x16x16xbf16>
    %1 = vector.shape_cast %0 : vector<1x16x16xbf16> to vector<16x16xbf16>
    %c0_2 = arith.constant 0 : index
    %c0_3 = arith.constant 0 : index
    %2 = vector.load %arg3[%c0_2, %c0_3] : memref<16x128xbf16, #tpu.memory_space<vmem>>, vector<16x128xbf16>
    %cst = arith.constant dense<0.000000e+00> : vector<16x128xf32>
    %3 = tpu.matmul %1, %2, %cst {dimension_numbers = #tpu.dot_dimension_numbers<[1], [0], [0], [1], [0, 0, 1, 1], [], []>} : vector<16x16xbf16>, vector<16x128xbf16>, vector<16x128xf32> -> vector<16x128xf32>
    %c1 = arith.constant 1 : index
    %c0_4 = arith.constant 0 : index
    %c0_5 = arith.constant 0 : index
    %4 = vector.load %arg1[%c1, %c0_4, %c0_5] : memref<9x16x16xbf16, #tpu.memory_space<vmem>>, vector<1x16x16xbf16>
    %5 = vector.shape_cast %4 : vector<1x16x16xbf16> to vector<16x16xbf16>
    %c0_6 = arith.constant 0 : index
    %c0_7 = arith.constant 0 : index
    %6 = vector.load %arg4[%c0_6, %c0_7] : memref<16x128xbf16, #tpu.memory_space<vmem>>, vector<16x128xbf16>
    %cst_8 = arith.constant dense<0.000000e+00> : vector<16x128xf32>
    %7 = tpu.matmul %5, %6, %cst_8 {dimension_numbers = #tpu.dot_dimension_numbers<[1], [0], [0], [1], [0, 0, 1, 1], [], []>} : vector<16x16xbf16>, vector<16x128xbf16>, vector<16x128xf32> -> vector<16x128xf32>
    %8 = arith.addf %3, %7 : vector<16x128xf32>
    %c2 = arith.constant 2 : index
    %c0_9 = arith.constant 0 : index
    %c0_10 = arith.constant 0 : index
    %9 = vector.load %arg1[%c2, %c0_9, %c0_10] : memref<9x16x16xbf16, #tpu.memory_space<vmem>>, vector<1x16x16xbf16>
    %10 = vector.shape_cast %9 : vector<1x16x16xbf16> to vector<16x16xbf16>
    %c0_11 = arith.constant 0 : index
    %c0_12 = arith.constant 0 : index
    %11 = vector.load %arg5[%c0_11, %c0_12] : memref<16x128xbf16, #tpu.memory_space<vmem>>, vector<16x128xbf16>
    %cst_13 = arith.constant dense<0.000000e+00> : vector<16x128xf32>
    %12 = tpu.matmul %10, %11, %cst_13 {dimension_numbers = #tpu.dot_dimension_numbers<[1], [0], [0], [1], [0, 0, 1, 1], [], []>} : vector<16x16xbf16>, vector<16x128xbf16>, vector<16x128xf32> -> vector<16x128xf32>
    %13 = arith.addf %8, %12 : vector<16x128xf32>
    %c3 = arith.constant 3 : index
    %c0_14 = arith.constant 0 : index
    %c0_15 = arith.constant 0 : index
    %14 = vector.load %arg1[%c3, %c0_14, %c0_15] : memref<9x16x16xbf16, #tpu.memory_space<vmem>>, vector<1x16x16xbf16>
    %15 = vector.shape_cast %14 : vector<1x16x16xbf16> to vector<16x16xbf16>
    %c0_16 = arith.constant 0 : index
    %c0_17 = arith.constant 0 : index
    %16 = vector.load %arg6[%c0_16, %c0_17] : memref<16x128xbf16, #tpu.memory_space<vmem>>, vector<16x128xbf16>
    %cst_18 = arith.constant dense<0.000000e+00> : vector<16x128xf32>
    %17 = tpu.matmul %15, %16, %cst_18 {dimension_numbers = #tpu.dot_dimension_numbers<[1], [0], [0], [1], [0, 0, 1, 1], [], []>} : vector<16x16xbf16>, vector<16x128xbf16>, vector<16x128xf32> -> vector<16x128xf32>
    %18 = arith.addf %13, %17 : vector<16x128xf32>
    %c4 = arith.constant 4 : index
    %c0_19 = arith.constant 0 : index
    %c0_20 = arith.constant 0 : index
    %19 = vector.load %arg1[%c4, %c0_19, %c0_20] : memref<9x16x16xbf16, #tpu.memory_space<vmem>>, vector<1x16x16xbf16>
    %20 = vector.shape_cast %19 : vector<1x16x16xbf16> to vector<16x16xbf16>
    %c0_21 = arith.constant 0 : index
    %c0_22 = arith.constant 0 : index
    %21 = vector.load %arg7[%c0_21, %c0_22] : memref<16x128xbf16, #tpu.memory_space<vmem>>, vector<16x128xbf16>
    %cst_23 = arith.constant dense<0.000000e+00> : vector<16x128xf32>
    %22 = tpu.matmul %20, %21, %cst_23 {dimension_numbers = #tpu.dot_dimension_numbers<[1], [0], [0], [1], [0, 0, 1, 1], [], []>} : vector<16x16xbf16>, vector<16x128xbf16>, vector<16x128xf32> -> vector<16x128xf32>
    %23 = arith.addf %18, %22 : vector<16x128xf32>
    %c5 = arith.constant 5 : index
    %c0_24 = arith.constant 0 : index
    %c0_25 = arith.constant 0 : index
    %24 = vector.load %arg1[%c5, %c0_24, %c0_25] : memref<9x16x16xbf16, #tpu.memory_space<vmem>>, vector<1x16x16xbf16>
    %25 = vector.shape_cast %24 : vector<1x16x16xbf16> to vector<16x16xbf16>
    %c0_26 = arith.constant 0 : index
    %c0_27 = arith.constant 0 : index
    %26 = vector.load %arg8[%c0_26, %c0_27] : memref<16x128xbf16, #tpu.memory_space<vmem>>, vector<16x128xbf16>
    %cst_28 = arith.constant dense<0.000000e+00> : vector<16x128xf32>
    %27 = tpu.matmul %25, %26, %cst_28 {dimension_numbers = #tpu.dot_dimension_numbers<[1], [0], [0], [1], [0, 0, 1, 1], [], []>} : vector<16x16xbf16>, vector<16x128xbf16>, vector<16x128xf32> -> vector<16x128xf32>
    %28 = arith.addf %23, %27 : vector<16x128xf32>
    %c6 = arith.constant 6 : index
    %c0_29 = arith.constant 0 : index
    %c0_30 = arith.constant 0 : index
    %29 = vector.load %arg1[%c6, %c0_29, %c0_30] : memref<9x16x16xbf16, #tpu.memory_space<vmem>>, vector<1x16x16xbf16>
    %30 = vector.shape_cast %29 : vector<1x16x16xbf16> to vector<16x16xbf16>
    %c0_31 = arith.constant 0 : index
    %c0_32 = arith.constant 0 : index
    %31 = vector.load %arg9[%c0_31, %c0_32] : memref<16x128xbf16, #tpu.memory_space<vmem>>, vector<16x128xbf16>
    %cst_33 = arith.constant dense<0.000000e+00> : vector<16x128xf32>
    %32 = tpu.matmul %30, %31, %cst_33 {dimension_numbers = #tpu.dot_dimension_numbers<[1], [0], [0], [1], [0, 0, 1, 1], [], []>} : vector<16x16xbf16>, vector<16x128xbf16>, vector<16x128xf32> -> vector<16x128xf32>
    %33 = arith.addf %28, %32 : vector<16x128xf32>
    %c7 = arith.constant 7 : index
    %c0_34 = arith.constant 0 : index
    %c0_35 = arith.constant 0 : index
    %34 = vector.load %arg1[%c7, %c0_34, %c0_35] : memref<9x16x16xbf16, #tpu.memory_space<vmem>>, vector<1x16x16xbf16>
    %35 = vector.shape_cast %34 : vector<1x16x16xbf16> to vector<16x16xbf16>
    %c0_36 = arith.constant 0 : index
    %c0_37 = arith.constant 0 : index
    %36 = vector.load %arg10[%c0_36, %c0_37] : memref<16x128xbf16, #tpu.memory_space<vmem>>, vector<16x128xbf16>
    %cst_38 = arith.constant dense<0.000000e+00> : vector<16x128xf32>
    %37 = tpu.matmul %35, %36, %cst_38 {dimension_numbers = #tpu.dot_dimension_numbers<[1], [0], [0], [1], [0, 0, 1, 1], [], []>} : vector<16x16xbf16>, vector<16x128xbf16>, vector<16x128xf32> -> vector<16x128xf32>
    %38 = arith.addf %33, %37 : vector<16x128xf32>
    %c8 = arith.constant 8 : index
    %c0_39 = arith.constant 0 : index
    %c0_40 = arith.constant 0 : index
    %39 = vector.load %arg1[%c8, %c0_39, %c0_40] : memref<9x16x16xbf16, #tpu.memory_space<vmem>>, vector<1x16x16xbf16>
    %40 = vector.shape_cast %39 : vector<1x16x16xbf16> to vector<16x16xbf16>
    %c0_41 = arith.constant 0 : index
    %c0_42 = arith.constant 0 : index
    %41 = vector.load %arg11[%c0_41, %c0_42] : memref<16x128xbf16, #tpu.memory_space<vmem>>, vector<16x128xbf16>
    %cst_43 = arith.constant dense<0.000000e+00> : vector<16x128xf32>
    %42 = tpu.matmul %40, %41, %cst_43 {dimension_numbers = #tpu.dot_dimension_numbers<[1], [0], [0], [1], [0, 0, 1, 1], [], []>} : vector<16x16xbf16>, vector<16x128xbf16>, vector<16x128xf32> -> vector<16x128xf32>
    %43 = arith.addf %38, %42 : vector<16x128xf32>
    %c0_44 = arith.constant 0 : index
    %c0_45 = arith.constant 0 : index
    %44 = vector.load %arg2[%c0_44, %c0_45] : memref<16x1xf32, #tpu.memory_space<vmem>>, vector<16x1xf32>
    %45 = vector.broadcast %44 : vector<16x1xf32> to vector<16x128xf32>
    %46 = arith.addf %43, %45 : vector<16x128xf32>
    %cst_46 = arith.constant 0.000000e+00 : f32
    %47 = vector.broadcast %cst_46 : f32 to vector<16x128xf32>
    %48 = arith.maximumf %46, %47 : vector<16x128xf32>
    %49 = arith.truncf %48 : vector<16x128xf32> to vector<16x128xbf16>
    %c0_47 = arith.constant 0 : index
    %c0_48 = arith.constant 0 : index
    %50 = vector.load %arg12[%c0_47, %c0_48] : memref<16x128xbf16, #tpu.memory_space<vmem>>, vector<16x128xbf16>
    tpu.vector_store %arg12[%c0_47, %c0_48], %49 {strides = array<i32>} : memref<16x128xbf16, #tpu.memory_space<vmem>>, vector<16x128xbf16>,
    return
  }
  func.func @transform_0(%arg0: i32) -> (i32, i32, i32) {
    %c0_i32 = arith.constant 0 : i32
    %c0_i32_0 = arith.constant 0 : i32
    %c0_i32_1 = arith.constant 0 : i32
    %c0_i32_2 = arith.constant 0 : i32
    return %c0_i32, %c0_i32_0, %c0_i32_1 : i32, i32, i32
  }
  func.func @transform_1(%arg0: i32) -> (i32, i32) {
    %c0_i32 = arith.constant 0 : i32
    %c0_i32_0 = arith.constant 0 : i32
    %c0_i32_1 = arith.constant 0 : i32
    return %c0_i32, %c0_i32_0 : i32, i32
  }
  func.func @transform_2(%arg0: i32) -> (i32, i32) {
    %c0_i32 = arith.constant 0 : i32
    %c0_i32_0 = arith.constant 0 : i32
    return %c0_i32, %arg0 : i32, i32
  }
  func.func @transform_3(%arg0: i32) -> (i32, i32) {
    %c0_i32 = arith.constant 0 : i32
    %c0_i32_0 = arith.constant 0 : i32
    return %c0_i32, %arg0 : i32, i32
  }
  func.func @transform_4(%arg0: i32) -> (i32, i32) {
    %c0_i32 = arith.constant 0 : i32
    %c0_i32_0 = arith.constant 0 : i32
    return %c0_i32, %arg0 : i32, i32
  }
  func.func @transform_5(%arg0: i32) -> (i32, i32) {
    %c0_i32 = arith.constant 0 : i32
    %c0_i32_0 = arith.constant 0 : i32
    return %c0_i32, %arg0 : i32, i32
  }
  func.func @transform_6(%arg0: i32) -> (i32, i32) {
    %c0_i32 = arith.constant 0 : i32
    %c0_i32_0 = arith.constant 0 : i32
    return %c0_i32, %arg0 : i32, i32
  }
  func.func @transform_7(%arg0: i32) -> (i32, i32) {
    %c0_i32 = arith.constant 0 : i32
    %c0_i32_0 = arith.constant 0 : i32
    return %c0_i32, %arg0 : i32, i32
  }
  func.func @transform_8(%arg0: i32) -> (i32, i32) {
    %c0_i32 = arith.constant 0 : i32
    %c0_i32_0 = arith.constant 0 : i32
    return %c0_i32, %arg0 : i32, i32
  }
  func.func @transform_9(%arg0: i32) -> (i32, i32) {
    %c0_i32 = arith.constant 0 : i32
    %c0_i32_0 = arith.constant 0 : i32
    return %c0_i32, %arg0 : i32, i32
  }
  func.func @transform_10(%arg0: i32) -> (i32, i32) {
    %c0_i32 = arith.constant 0 : i32
    %c0_i32_0 = arith.constant 0 : i32
    return %c0_i32, %arg0 : i32, i32
  }
  func.func @transform_11(%arg0: i32) -> (i32, i32) {
    %c0_i32 = arith.constant 0 : i32
    %c0_i32_0 = arith.constant 0 : i32
    return %c0_i32, %arg0 : i32, i32
  }
}

module attributes {stable_mosaic.version = 11 : i64} {
  func.func @_conv_gemm_kernel(%arg0: i32, %arg1: memref<9x16x16xbf16, #tpu.memory_space<vmem>>, %arg2: memref<16x1xf32, #tpu.memory_space<vmem>>, %arg3: memref<16x128xbf16, #tpu.memory_space<vmem>>, %arg4: memref<16x128xbf16, #tpu.memory_space<vmem>>, %arg5: memref<16x128xbf16, #tpu.memory_space<vmem>>, %arg6: memref<16x128xbf16, #tpu.memory_space<vmem>>, %arg7: memref<16x128xbf16, #tpu.memory_space<vmem>>, %arg8: memref<16x128xbf16, #tpu.memory_space<vmem>>, %arg9: memref<16x128xbf16, #tpu.memory_space<vmem>>, %arg10: memref<16x128xbf16, #tpu.memory_space<vmem>>, %arg11: memref<16x128xbf16, #tpu.memory_space<vmem>>, %arg12: memref<16x128xbf16, #tpu.memory_space<vmem>>, %arg13: memref<16x128xbf16, #tpu.memory_space<vmem>>) attributes {dimension_semantics = [#tpu.dimension_semantics<parallel>], iteration_bounds = array<i64: 1>, scalar_prefetch = 0 : i64, scratch_operands = 0 : i64, tpu.core_type = #tpu.core_type<tc>, window_params = [{pipeline_mode = #tpu.pipeline_mode<synchronous>, transform_indices = @transform_0, window_bounds = array<i64: 9, 16, 16>}, {pipeline_mode = #tpu.pipeline_mode<synchronous>, transform_indices = @transform_1, window_bounds = array<i64: 16, 1>}, {transform_indices = @transform_2, window_bounds = array<i64: 16, 128>}, {transform_indices = @transform_3, window_bounds = array<i64: 16, 128>}, {transform_indices = @transform_4, window_bounds = array<i64: 16, 128>}, {transform_indices = @transform_5, window_bounds = array<i64: 16, 128>}, {transform_indices = @transform_6, window_bounds = array<i64: 16, 128>}, {transform_indices = @transform_7, window_bounds = array<i64: 16, 128>}, {transform_indices = @transform_8, window_bounds = array<i64: 16, 128>}, {transform_indices = @transform_9, window_bounds = array<i64: 16, 128>}, {transform_indices = @transform_10, window_bounds = array<i64: 16, 128>}, {transform_indices = @transform_11, window_bounds = array<i64: 16, 128>}, {transform_indices = @transform_12, window_bounds = array<i64: 16, 128>}]} {
    %c0 = arith.constant 0 : index
    %c0_0 = arith.constant 0 : index
    %c0_1 = arith.constant 0 : index
    %0 = vector.load %arg1[%c0, %c0_0, %c0_1] : memref<9x16x16xbf16, #tpu.memory_space<vmem>>, vector<1x16x16xbf16>
    %1 = vector.shape_cast %0 : vector<1x16x16xbf16> to vector<16x16xbf16>
    %c0_2 = arith.constant 0 : index
    %c0_3 = arith.constant 0 : index
    %2 = vector.load %arg4[%c0_2, %c0_3] : memref<16x128xbf16, #tpu.memory_space<vmem>>, vector<16x128xbf16>
    %cst = arith.constant dense<0.000000e+00> : vector<16x128xf32>
    %3 = tpu.matmul %1, %2, %cst {dimension_numbers = #tpu.dot_dimension_numbers<[1], [0], [0], [1], [0, 0, 1, 1], [], []>} : vector<16x16xbf16>, vector<16x128xbf16>, vector<16x128xf32> -> vector<16x128xf32>
    %c1 = arith.constant 1 : index
    %c0_4 = arith.constant 0 : index
    %c0_5 = arith.constant 0 : index
    %4 = vector.load %arg1[%c1, %c0_4, %c0_5] : memref<9x16x16xbf16, #tpu.memory_space<vmem>>, vector<1x16x16xbf16>
    %5 = vector.shape_cast %4 : vector<1x16x16xbf16> to vector<16x16xbf16>
    %c0_6 = arith.constant 0 : index
    %c0_7 = arith.constant 0 : index
    %6 = vector.load %arg5[%c0_6, %c0_7] : memref<16x128xbf16, #tpu.memory_space<vmem>>, vector<16x128xbf16>
    %cst_8 = arith.constant dense<0.000000e+00> : vector<16x128xf32>
    %7 = tpu.matmul %5, %6, %cst_8 {dimension_numbers = #tpu.dot_dimension_numbers<[1], [0], [0], [1], [0, 0, 1, 1], [], []>} : vector<16x16xbf16>, vector<16x128xbf16>, vector<16x128xf32> -> vector<16x128xf32>
    %8 = arith.addf %3, %7 : vector<16x128xf32>
    %c2 = arith.constant 2 : index
    %c0_9 = arith.constant 0 : index
    %c0_10 = arith.constant 0 : index
    %9 = vector.load %arg1[%c2, %c0_9, %c0_10] : memref<9x16x16xbf16, #tpu.memory_space<vmem>>, vector<1x16x16xbf16>
    %10 = vector.shape_cast %9 : vector<1x16x16xbf16> to vector<16x16xbf16>
    %c0_11 = arith.constant 0 : index
    %c0_12 = arith.constant 0 : index
    %11 = vector.load %arg6[%c0_11, %c0_12] : memref<16x128xbf16, #tpu.memory_space<vmem>>, vector<16x128xbf16>
    %cst_13 = arith.constant dense<0.000000e+00> : vector<16x128xf32>
    %12 = tpu.matmul %10, %11, %cst_13 {dimension_numbers = #tpu.dot_dimension_numbers<[1], [0], [0], [1], [0, 0, 1, 1], [], []>} : vector<16x16xbf16>, vector<16x128xbf16>, vector<16x128xf32> -> vector<16x128xf32>
    %13 = arith.addf %8, %12 : vector<16x128xf32>
    %c3 = arith.constant 3 : index
    %c0_14 = arith.constant 0 : index
    %c0_15 = arith.constant 0 : index
    %14 = vector.load %arg1[%c3, %c0_14, %c0_15] : memref<9x16x16xbf16, #tpu.memory_space<vmem>>, vector<1x16x16xbf16>
    %15 = vector.shape_cast %14 : vector<1x16x16xbf16> to vector<16x16xbf16>
    %c0_16 = arith.constant 0 : index
    %c0_17 = arith.constant 0 : index
    %16 = vector.load %arg7[%c0_16, %c0_17] : memref<16x128xbf16, #tpu.memory_space<vmem>>, vector<16x128xbf16>
    %cst_18 = arith.constant dense<0.000000e+00> : vector<16x128xf32>
    %17 = tpu.matmul %15, %16, %cst_18 {dimension_numbers = #tpu.dot_dimension_numbers<[1], [0], [0], [1], [0, 0, 1, 1], [], []>} : vector<16x16xbf16>, vector<16x128xbf16>, vector<16x128xf32> -> vector<16x128xf32>
    %18 = arith.addf %13, %17 : vector<16x128xf32>
    %c4 = arith.constant 4 : index
    %c0_19 = arith.constant 0 : index
    %c0_20 = arith.constant 0 : index
    %19 = vector.load %arg1[%c4, %c0_19, %c0_20] : memref<9x16x16xbf16, #tpu.memory_space<vmem>>, vector<1x16x16xbf16>
    %20 = vector.shape_cast %19 : vector<1x16x16xbf16> to vector<16x16xbf16>
    %c0_21 = arith.constant 0 : index
    %c0_22 = arith.constant 0 : index
    %21 = vector.load %arg8[%c0_21, %c0_22] : memref<16x128xbf16, #tpu.memory_space<vmem>>, vector<16x128xbf16>
    %cst_23 = arith.constant dense<0.000000e+00> : vector<16x128xf32>
    %22 = tpu.matmul %20, %21, %cst_23 {dimension_numbers = #tpu.dot_dimension_numbers<[1], [0], [0], [1], [0, 0, 1, 1], [], []>} : vector<16x16xbf16>, vector<16x128xbf16>, vector<16x128xf32> -> vector<16x128xf32>
    %23 = arith.addf %18, %22 : vector<16x128xf32>
    %c5 = arith.constant 5 : index
    %c0_24 = arith.constant 0 : index
    %c0_25 = arith.constant 0 : index
    %24 = vector.load %arg1[%c5, %c0_24, %c0_25] : memref<9x16x16xbf16, #tpu.memory_space<vmem>>, vector<1x16x16xbf16>
    %25 = vector.shape_cast %24 : vector<1x16x16xbf16> to vector<16x16xbf16>
    %c0_26 = arith.constant 0 : index
    %c0_27 = arith.constant 0 : index
    %26 = vector.load %arg9[%c0_26, %c0_27] : memref<16x128xbf16, #tpu.memory_space<vmem>>, vector<16x128xbf16>
    %cst_28 = arith.constant dense<0.000000e+00> : vector<16x128xf32>
    %27 = tpu.matmul %25, %26, %cst_28 {dimension_numbers = #tpu.dot_dimension_numbers<[1], [0], [0], [1], [0, 0, 1, 1], [], []>} : vector<16x16xbf16>, vector<16x128xbf16>, vector<16x128xf32> -> vector<16x128xf32>
    %28 = arith.addf %23, %27 : vector<16x128xf32>
    %c6 = arith.constant 6 : index
    %c0_29 = arith.constant 0 : index
    %c0_30 = arith.constant 0 : index
    %29 = vector.load %arg1[%c6, %c0_29, %c0_30] : memref<9x16x16xbf16, #tpu.memory_space<vmem>>, vector<1x16x16xbf16>
    %30 = vector.shape_cast %29 : vector<1x16x16xbf16> to vector<16x16xbf16>
    %c0_31 = arith.constant 0 : index
    %c0_32 = arith.constant 0 : index
    %31 = vector.load %arg10[%c0_31, %c0_32] : memref<16x128xbf16, #tpu.memory_space<vmem>>, vector<16x128xbf16>
    %cst_33 = arith.constant dense<0.000000e+00> : vector<16x128xf32>
    %32 = tpu.matmul %30, %31, %cst_33 {dimension_numbers = #tpu.dot_dimension_numbers<[1], [0], [0], [1], [0, 0, 1, 1], [], []>} : vector<16x16xbf16>, vector<16x128xbf16>, vector<16x128xf32> -> vector<16x128xf32>
    %33 = arith.addf %28, %32 : vector<16x128xf32>
    %c7 = arith.constant 7 : index
    %c0_34 = arith.constant 0 : index
    %c0_35 = arith.constant 0 : index
    %34 = vector.load %arg1[%c7, %c0_34, %c0_35] : memref<9x16x16xbf16, #tpu.memory_space<vmem>>, vector<1x16x16xbf16>
    %35 = vector.shape_cast %34 : vector<1x16x16xbf16> to vector<16x16xbf16>
    %c0_36 = arith.constant 0 : index
    %c0_37 = arith.constant 0 : index
    %36 = vector.load %arg11[%c0_36, %c0_37] : memref<16x128xbf16, #tpu.memory_space<vmem>>, vector<16x128xbf16>
    %cst_38 = arith.constant dense<0.000000e+00> : vector<16x128xf32>
    %37 = tpu.matmul %35, %36, %cst_38 {dimension_numbers = #tpu.dot_dimension_numbers<[1], [0], [0], [1], [0, 0, 1, 1], [], []>} : vector<16x16xbf16>, vector<16x128xbf16>, vector<16x128xf32> -> vector<16x128xf32>
    %38 = arith.addf %33, %37 : vector<16x128xf32>
    %c8 = arith.constant 8 : index
    %c0_39 = arith.constant 0 : index
    %c0_40 = arith.constant 0 : index
    %39 = vector.load %arg1[%c8, %c0_39, %c0_40] : memref<9x16x16xbf16, #tpu.memory_space<vmem>>, vector<1x16x16xbf16>
    %40 = vector.shape_cast %39 : vector<1x16x16xbf16> to vector<16x16xbf16>
    %c0_41 = arith.constant 0 : index
    %c0_42 = arith.constant 0 : index
    %41 = vector.load %arg12[%c0_41, %c0_42] : memref<16x128xbf16, #tpu.memory_space<vmem>>, vector<16x128xbf16>
    %cst_43 = arith.constant dense<0.000000e+00> : vector<16x128xf32>
    %42 = tpu.matmul %40, %41, %cst_43 {dimension_numbers = #tpu.dot_dimension_numbers<[1], [0], [0], [1], [0, 0, 1, 1], [], []>} : vector<16x16xbf16>, vector<16x128xbf16>, vector<16x128xf32> -> vector<16x128xf32>
    %43 = arith.addf %38, %42 : vector<16x128xf32>
    %c0_44 = arith.constant 0 : index
    %c0_45 = arith.constant 0 : index
    %44 = vector.load %arg2[%c0_44, %c0_45] : memref<16x1xf32, #tpu.memory_space<vmem>>, vector<16x1xf32>
    %45 = vector.broadcast %44 : vector<16x1xf32> to vector<16x128xf32>
    %46 = arith.addf %43, %45 : vector<16x128xf32>
    %c0_46 = arith.constant 0 : index
    %c0_47 = arith.constant 0 : index
    %47 = vector.load %arg3[%c0_46, %c0_47] : memref<16x128xbf16, #tpu.memory_space<vmem>>, vector<16x128xbf16>
    %48 = arith.extf %47 : vector<16x128xbf16> to vector<16x128xf32>
    %49 = arith.addf %46, %48 : vector<16x128xf32>
    %cst_48 = arith.constant 0.000000e+00 : f32
    %50 = vector.broadcast %cst_48 : f32 to vector<16x128xf32>
    %51 = arith.maximumf %49, %50 : vector<16x128xf32>
    %52 = arith.truncf %51 : vector<16x128xf32> to vector<16x128xbf16>
    %c0_49 = arith.constant 0 : index
    %c0_50 = arith.constant 0 : index
    %53 = vector.load %arg13[%c0_49, %c0_50] : memref<16x128xbf16, #tpu.memory_space<vmem>>, vector<16x128xbf16>
    tpu.vector_store %arg13[%c0_49, %c0_50], %52 {strides = array<i32>} : memref<16x128xbf16, #tpu.memory_space<vmem>>, vector<16x128xbf16>,
    return
  }
  func.func @transform_0(%arg0: i32) -> (i32, i32, i32) {
    %c0_i32 = arith.constant 0 : i32
    %c0_i32_0 = arith.constant 0 : i32
    %c0_i32_1 = arith.constant 0 : i32
    %c0_i32_2 = arith.constant 0 : i32
    return %c0_i32, %c0_i32_0, %c0_i32_1 : i32, i32, i32
  }
  func.func @transform_1(%arg0: i32) -> (i32, i32) {
    %c0_i32 = arith.constant 0 : i32
    %c0_i32_0 = arith.constant 0 : i32
    %c0_i32_1 = arith.constant 0 : i32
    return %c0_i32, %c0_i32_0 : i32, i32
  }
  func.func @transform_2(%arg0: i32) -> (i32, i32) {
    %c0_i32 = arith.constant 0 : i32
    %c0_i32_0 = arith.constant 0 : i32
    return %c0_i32, %arg0 : i32, i32
  }
  func.func @transform_3(%arg0: i32) -> (i32, i32) {
    %c0_i32 = arith.constant 0 : i32
    %c0_i32_0 = arith.constant 0 : i32
    return %c0_i32, %arg0 : i32, i32
  }
  func.func @transform_4(%arg0: i32) -> (i32, i32) {
    %c0_i32 = arith.constant 0 : i32
    %c0_i32_0 = arith.constant 0 : i32
    return %c0_i32, %arg0 : i32, i32
  }
  func.func @transform_5(%arg0: i32) -> (i32, i32) {
    %c0_i32 = arith.constant 0 : i32
    %c0_i32_0 = arith.constant 0 : i32
    return %c0_i32, %arg0 : i32, i32
  }
  func.func @transform_6(%arg0: i32) -> (i32, i32) {
    %c0_i32 = arith.constant 0 : i32
    %c0_i32_0 = arith.constant 0 : i32
    return %c0_i32, %arg0 : i32, i32
  }
  func.func @transform_7(%arg0: i32) -> (i32, i32) {
    %c0_i32 = arith.constant 0 : i32
    %c0_i32_0 = arith.constant 0 : i32
    return %c0_i32, %arg0 : i32, i32
  }
  func.func @transform_8(%arg0: i32) -> (i32, i32) {
    %c0_i32 = arith.constant 0 : i32
    %c0_i32_0 = arith.constant 0 : i32
    return %c0_i32, %arg0 : i32, i32
  }
  func.func @transform_9(%arg0: i32) -> (i32, i32) {
    %c0_i32 = arith.constant 0 : i32
    %c0_i32_0 = arith.constant 0 : i32
    return %c0_i32, %arg0 : i32, i32
  }
  func.func @transform_10(%arg0: i32) -> (i32, i32) {
    %c0_i32 = arith.constant 0 : i32
    %c0_i32_0 = arith.constant 0 : i32
    return %c0_i32, %arg0 : i32, i32
  }
  func.func @transform_11(%arg0: i32) -> (i32, i32) {
    %c0_i32 = arith.constant 0 : i32
    %c0_i32_0 = arith.constant 0 : i32
    return %c0_i32, %arg0 : i32, i32
  }
  func.func @transform_12(%arg0: i32) -> (i32, i32) {
    %c0_i32 = arith.constant 0 : i32
    %c0_i32_0 = arith.constant 0 : i32
    return %c0_i32, %arg0 : i32, i32
  }
}

module attributes {stable_mosaic.version = 11 : i64} {
  func.func @_conv_gemm_kernel(%arg0: i32, %arg1: memref<9x32x16xbf16, #tpu.memory_space<vmem>>, %arg2: memref<32x1xf32, #tpu.memory_space<vmem>>, %arg3: memref<16x32xbf16, #tpu.memory_space<vmem>>, %arg4: memref<16x32xbf16, #tpu.memory_space<vmem>>, %arg5: memref<16x32xbf16, #tpu.memory_space<vmem>>, %arg6: memref<16x32xbf16, #tpu.memory_space<vmem>>, %arg7: memref<16x32xbf16, #tpu.memory_space<vmem>>, %arg8: memref<16x32xbf16, #tpu.memory_space<vmem>>, %arg9: memref<16x32xbf16, #tpu.memory_space<vmem>>, %arg10: memref<16x32xbf16, #tpu.memory_space<vmem>>, %arg11: memref<16x32xbf16, #tpu.memory_space<vmem>>, %arg12: memref<32x32xbf16, #tpu.memory_space<vmem>>) attributes {dimension_semantics = [#tpu.dimension_semantics<parallel>], iteration_bounds = array<i64: 1>, scalar_prefetch = 0 : i64, scratch_operands = 0 : i64, tpu.core_type = #tpu.core_type<tc>, window_params = [{pipeline_mode = #tpu.pipeline_mode<synchronous>, transform_indices = @transform_0, window_bounds = array<i64: 9, 32, 16>}, {pipeline_mode = #tpu.pipeline_mode<synchronous>, transform_indices = @transform_1, window_bounds = array<i64: 32, 1>}, {transform_indices = @transform_2, window_bounds = array<i64: 16, 32>}, {transform_indices = @transform_3, window_bounds = array<i64: 16, 32>}, {transform_indices = @transform_4, window_bounds = array<i64: 16, 32>}, {transform_indices = @transform_5, window_bounds = array<i64: 16, 32>}, {transform_indices = @transform_6, window_bounds = array<i64: 16, 32>}, {transform_indices = @transform_7, window_bounds = array<i64: 16, 32>}, {transform_indices = @transform_8, window_bounds = array<i64: 16, 32>}, {transform_indices = @transform_9, window_bounds = array<i64: 16, 32>}, {transform_indices = @transform_10, window_bounds = array<i64: 16, 32>}, {transform_indices = @transform_11, window_bounds = array<i64: 32, 32>}]} {
    %c0 = arith.constant 0 : index
    %c0_0 = arith.constant 0 : index
    %c0_1 = arith.constant 0 : index
    %0 = vector.load %arg1[%c0, %c0_0, %c0_1] : memref<9x32x16xbf16, #tpu.memory_space<vmem>>, vector<1x32x16xbf16>
    %1 = vector.shape_cast %0 : vector<1x32x16xbf16> to vector<32x16xbf16>
    %c0_2 = arith.constant 0 : index
    %c0_3 = arith.constant 0 : index
    %2 = vector.load %arg3[%c0_2, %c0_3] : memref<16x32xbf16, #tpu.memory_space<vmem>>, vector<16x32xbf16>
    %cst = arith.constant dense<0.000000e+00> : vector<32x32xf32>
    %3 = tpu.matmul %1, %2, %cst {dimension_numbers = #tpu.dot_dimension_numbers<[1], [0], [0], [1], [0, 0, 1, 1], [], []>} : vector<32x16xbf16>, vector<16x32xbf16>, vector<32x32xf32> -> vector<32x32xf32>
    %c1 = arith.constant 1 : index
    %c0_4 = arith.constant 0 : index
    %c0_5 = arith.constant 0 : index
    %4 = vector.load %arg1[%c1, %c0_4, %c0_5] : memref<9x32x16xbf16, #tpu.memory_space<vmem>>, vector<1x32x16xbf16>
    %5 = vector.shape_cast %4 : vector<1x32x16xbf16> to vector<32x16xbf16>
    %c0_6 = arith.constant 0 : index
    %c0_7 = arith.constant 0 : index
    %6 = vector.load %arg4[%c0_6, %c0_7] : memref<16x32xbf16, #tpu.memory_space<vmem>>, vector<16x32xbf16>
    %cst_8 = arith.constant dense<0.000000e+00> : vector<32x32xf32>
    %7 = tpu.matmul %5, %6, %cst_8 {dimension_numbers = #tpu.dot_dimension_numbers<[1], [0], [0], [1], [0, 0, 1, 1], [], []>} : vector<32x16xbf16>, vector<16x32xbf16>, vector<32x32xf32> -> vector<32x32xf32>
    %8 = arith.addf %3, %7 : vector<32x32xf32>
    %c2 = arith.constant 2 : index
    %c0_9 = arith.constant 0 : index
    %c0_10 = arith.constant 0 : index
    %9 = vector.load %arg1[%c2, %c0_9, %c0_10] : memref<9x32x16xbf16, #tpu.memory_space<vmem>>, vector<1x32x16xbf16>
    %10 = vector.shape_cast %9 : vector<1x32x16xbf16> to vector<32x16xbf16>
    %c0_11 = arith.constant 0 : index
    %c0_12 = arith.constant 0 : index
    %11 = vector.load %arg5[%c0_11, %c0_12] : memref<16x32xbf16, #tpu.memory_space<vmem>>, vector<16x32xbf16>
    %cst_13 = arith.constant dense<0.000000e+00> : vector<32x32xf32>
    %12 = tpu.matmul %10, %11, %cst_13 {dimension_numbers = #tpu.dot_dimension_numbers<[1], [0], [0], [1], [0, 0, 1, 1], [], []>} : vector<32x16xbf16>, vector<16x32xbf16>, vector<32x32xf32> -> vector<32x32xf32>
    %13 = arith.addf %8, %12 : vector<32x32xf32>
    %c3 = arith.constant 3 : index
    %c0_14 = arith.constant 0 : index
    %c0_15 = arith.constant 0 : index
    %14 = vector.load %arg1[%c3, %c0_14, %c0_15] : memref<9x32x16xbf16, #tpu.memory_space<vmem>>, vector<1x32x16xbf16>
    %15 = vector.shape_cast %14 : vector<1x32x16xbf16> to vector<32x16xbf16>
    %c0_16 = arith.constant 0 : index
    %c0_17 = arith.constant 0 : index
    %16 = vector.load %arg6[%c0_16, %c0_17] : memref<16x32xbf16, #tpu.memory_space<vmem>>, vector<16x32xbf16>
    %cst_18 = arith.constant dense<0.000000e+00> : vector<32x32xf32>
    %17 = tpu.matmul %15, %16, %cst_18 {dimension_numbers = #tpu.dot_dimension_numbers<[1], [0], [0], [1], [0, 0, 1, 1], [], []>} : vector<32x16xbf16>, vector<16x32xbf16>, vector<32x32xf32> -> vector<32x32xf32>
    %18 = arith.addf %13, %17 : vector<32x32xf32>
    %c4 = arith.constant 4 : index
    %c0_19 = arith.constant 0 : index
    %c0_20 = arith.constant 0 : index
    %19 = vector.load %arg1[%c4, %c0_19, %c0_20] : memref<9x32x16xbf16, #tpu.memory_space<vmem>>, vector<1x32x16xbf16>
    %20 = vector.shape_cast %19 : vector<1x32x16xbf16> to vector<32x16xbf16>
    %c0_21 = arith.constant 0 : index
    %c0_22 = arith.constant 0 : index
    %21 = vector.load %arg7[%c0_21, %c0_22] : memref<16x32xbf16, #tpu.memory_space<vmem>>, vector<16x32xbf16>
    %cst_23 = arith.constant dense<0.000000e+00> : vector<32x32xf32>
    %22 = tpu.matmul %20, %21, %cst_23 {dimension_numbers = #tpu.dot_dimension_numbers<[1], [0], [0], [1], [0, 0, 1, 1], [], []>} : vector<32x16xbf16>, vector<16x32xbf16>, vector<32x32xf32> -> vector<32x32xf32>
    %23 = arith.addf %18, %22 : vector<32x32xf32>
    %c5 = arith.constant 5 : index
    %c0_24 = arith.constant 0 : index
    %c0_25 = arith.constant 0 : index
    %24 = vector.load %arg1[%c5, %c0_24, %c0_25] : memref<9x32x16xbf16, #tpu.memory_space<vmem>>, vector<1x32x16xbf16>
    %25 = vector.shape_cast %24 : vector<1x32x16xbf16> to vector<32x16xbf16>
    %c0_26 = arith.constant 0 : index
    %c0_27 = arith.constant 0 : index
    %26 = vector.load %arg8[%c0_26, %c0_27] : memref<16x32xbf16, #tpu.memory_space<vmem>>, vector<16x32xbf16>
    %cst_28 = arith.constant dense<0.000000e+00> : vector<32x32xf32>
    %27 = tpu.matmul %25, %26, %cst_28 {dimension_numbers = #tpu.dot_dimension_numbers<[1], [0], [0], [1], [0, 0, 1, 1], [], []>} : vector<32x16xbf16>, vector<16x32xbf16>, vector<32x32xf32> -> vector<32x32xf32>
    %28 = arith.addf %23, %27 : vector<32x32xf32>
    %c6 = arith.constant 6 : index
    %c0_29 = arith.constant 0 : index
    %c0_30 = arith.constant 0 : index
    %29 = vector.load %arg1[%c6, %c0_29, %c0_30] : memref<9x32x16xbf16, #tpu.memory_space<vmem>>, vector<1x32x16xbf16>
    %30 = vector.shape_cast %29 : vector<1x32x16xbf16> to vector<32x16xbf16>
    %c0_31 = arith.constant 0 : index
    %c0_32 = arith.constant 0 : index
    %31 = vector.load %arg9[%c0_31, %c0_32] : memref<16x32xbf16, #tpu.memory_space<vmem>>, vector<16x32xbf16>
    %cst_33 = arith.constant dense<0.000000e+00> : vector<32x32xf32>
    %32 = tpu.matmul %30, %31, %cst_33 {dimension_numbers = #tpu.dot_dimension_numbers<[1], [0], [0], [1], [0, 0, 1, 1], [], []>} : vector<32x16xbf16>, vector<16x32xbf16>, vector<32x32xf32> -> vector<32x32xf32>
    %33 = arith.addf %28, %32 : vector<32x32xf32>
    %c7 = arith.constant 7 : index
    %c0_34 = arith.constant 0 : index
    %c0_35 = arith.constant 0 : index
    %34 = vector.load %arg1[%c7, %c0_34, %c0_35] : memref<9x32x16xbf16, #tpu.memory_space<vmem>>, vector<1x32x16xbf16>
    %35 = vector.shape_cast %34 : vector<1x32x16xbf16> to vector<32x16xbf16>
    %c0_36 = arith.constant 0 : index
    %c0_37 = arith.constant 0 : index
    %36 = vector.load %arg10[%c0_36, %c0_37] : memref<16x32xbf16, #tpu.memory_space<vmem>>, vector<16x32xbf16>
    %cst_38 = arith.constant dense<0.000000e+00> : vector<32x32xf32>
    %37 = tpu.matmul %35, %36, %cst_38 {dimension_numbers = #tpu.dot_dimension_numbers<[1], [0], [0], [1], [0, 0, 1, 1], [], []>} : vector<32x16xbf16>, vector<16x32xbf16>, vector<32x32xf32> -> vector<32x32xf32>
    %38 = arith.addf %33, %37 : vector<32x32xf32>
    %c8 = arith.constant 8 : index
    %c0_39 = arith.constant 0 : index
    %c0_40 = arith.constant 0 : index
    %39 = vector.load %arg1[%c8, %c0_39, %c0_40] : memref<9x32x16xbf16, #tpu.memory_space<vmem>>, vector<1x32x16xbf16>
    %40 = vector.shape_cast %39 : vector<1x32x16xbf16> to vector<32x16xbf16>
    %c0_41 = arith.constant 0 : index
    %c0_42 = arith.constant 0 : index
    %41 = vector.load %arg11[%c0_41, %c0_42] : memref<16x32xbf16, #tpu.memory_space<vmem>>, vector<16x32xbf16>
    %cst_43 = arith.constant dense<0.000000e+00> : vector<32x32xf32>
    %42 = tpu.matmul %40, %41, %cst_43 {dimension_numbers = #tpu.dot_dimension_numbers<[1], [0], [0], [1], [0, 0, 1, 1], [], []>} : vector<32x16xbf16>, vector<16x32xbf16>, vector<32x32xf32> -> vector<32x32xf32>
    %43 = arith.addf %38, %42 : vector<32x32xf32>
    %c0_44 = arith.constant 0 : index
    %c0_45 = arith.constant 0 : index
    %44 = vector.load %arg2[%c0_44, %c0_45] : memref<32x1xf32, #tpu.memory_space<vmem>>, vector<32x1xf32>
    %45 = vector.broadcast %44 : vector<32x1xf32> to vector<32x32xf32>
    %46 = arith.addf %43, %45 : vector<32x32xf32>
    %cst_46 = arith.constant 0.000000e+00 : f32
    %47 = vector.broadcast %cst_46 : f32 to vector<32x32xf32>
    %48 = arith.maximumf %46, %47 : vector<32x32xf32>
    %49 = arith.truncf %48 : vector<32x32xf32> to vector<32x32xbf16>
    %c0_47 = arith.constant 0 : index
    %c0_48 = arith.constant 0 : index
    %50 = vector.load %arg12[%c0_47, %c0_48] : memref<32x32xbf16, #tpu.memory_space<vmem>>, vector<32x32xbf16>
    tpu.vector_store %arg12[%c0_47, %c0_48], %49 {strides = array<i32>} : memref<32x32xbf16, #tpu.memory_space<vmem>>, vector<32x32xbf16>,
    return
  }
  func.func @transform_0(%arg0: i32) -> (i32, i32, i32) {
    %c0_i32 = arith.constant 0 : i32
    %c0_i32_0 = arith.constant 0 : i32
    %c0_i32_1 = arith.constant 0 : i32
    %c0_i32_2 = arith.constant 0 : i32
    return %c0_i32, %c0_i32_0, %c0_i32_1 : i32, i32, i32
  }
  func.func @transform_1(%arg0: i32) -> (i32, i32) {
    %c0_i32 = arith.constant 0 : i32
    %c0_i32_0 = arith.constant 0 : i32
    %c0_i32_1 = arith.constant 0 : i32
    return %c0_i32, %c0_i32_0 : i32, i32
  }
  func.func @transform_2(%arg0: i32) -> (i32, i32) {
    %c0_i32 = arith.constant 0 : i32
    %c0_i32_0 = arith.constant 0 : i32
    return %c0_i32, %arg0 : i32, i32
  }
  func.func @transform_3(%arg0: i32) -> (i32, i32) {
    %c0_i32 = arith.constant 0 : i32
    %c0_i32_0 = arith.constant 0 : i32
    return %c0_i32, %arg0 : i32, i32
  }
  func.func @transform_4(%arg0: i32) -> (i32, i32) {
    %c0_i32 = arith.constant 0 : i32
    %c0_i32_0 = arith.constant 0 : i32
    return %c0_i32, %arg0 : i32, i32
  }
  func.func @transform_5(%arg0: i32) -> (i32, i32) {
    %c0_i32 = arith.constant 0 : i32
    %c0_i32_0 = arith.constant 0 : i32
    return %c0_i32, %arg0 : i32, i32
  }
  func.func @transform_6(%arg0: i32) -> (i32, i32) {
    %c0_i32 = arith.constant 0 : i32
    %c0_i32_0 = arith.constant 0 : i32
    return %c0_i32, %arg0 : i32, i32
  }
  func.func @transform_7(%arg0: i32) -> (i32, i32) {
    %c0_i32 = arith.constant 0 : i32
    %c0_i32_0 = arith.constant 0 : i32
    return %c0_i32, %arg0 : i32, i32
  }
  func.func @transform_8(%arg0: i32) -> (i32, i32) {
    %c0_i32 = arith.constant 0 : i32
    %c0_i32_0 = arith.constant 0 : i32
    return %c0_i32, %arg0 : i32, i32
  }
  func.func @transform_9(%arg0: i32) -> (i32, i32) {
    %c0_i32 = arith.constant 0 : i32
    %c0_i32_0 = arith.constant 0 : i32
    return %c0_i32, %arg0 : i32, i32
  }
  func.func @transform_10(%arg0: i32) -> (i32, i32) {
    %c0_i32 = arith.constant 0 : i32
    %c0_i32_0 = arith.constant 0 : i32
    return %c0_i32, %arg0 : i32, i32
  }
  func.func @transform_11(%arg0: i32) -> (i32, i32) {
    %c0_i32 = arith.constant 0 : i32
    %c0_i32_0 = arith.constant 0 : i32
    return %c0_i32, %arg0 : i32, i32
  }
}

module attributes {stable_mosaic.version = 11 : i64} {
  func.func @_conv_gemm_kernel(%arg0: i32, %arg1: memref<1x32x16xbf16, #tpu.memory_space<vmem>>, %arg2: memref<32x1xf32, #tpu.memory_space<vmem>>, %arg3: memref<16x32xbf16, #tpu.memory_space<vmem>>, %arg4: memref<32x32xbf16, #tpu.memory_space<vmem>>) attributes {dimension_semantics = [#tpu.dimension_semantics<parallel>], iteration_bounds = array<i64: 1>, scalar_prefetch = 0 : i64, scratch_operands = 0 : i64, tpu.core_type = #tpu.core_type<tc>, window_params = [{pipeline_mode = #tpu.pipeline_mode<synchronous>, transform_indices = @transform_0, window_bounds = array<i64: 1, 32, 16>}, {pipeline_mode = #tpu.pipeline_mode<synchronous>, transform_indices = @transform_1, window_bounds = array<i64: 32, 1>}, {transform_indices = @transform_2, window_bounds = array<i64: 16, 32>}, {transform_indices = @transform_3, window_bounds = array<i64: 32, 32>}]} {
    %c0 = arith.constant 0 : index
    %c0_0 = arith.constant 0 : index
    %c0_1 = arith.constant 0 : index
    %0 = vector.load %arg1[%c0, %c0_0, %c0_1] : memref<1x32x16xbf16, #tpu.memory_space<vmem>>, vector<1x32x16xbf16>
    %1 = vector.shape_cast %0 : vector<1x32x16xbf16> to vector<32x16xbf16>
    %c0_2 = arith.constant 0 : index
    %c0_3 = arith.constant 0 : index
    %2 = vector.load %arg3[%c0_2, %c0_3] : memref<16x32xbf16, #tpu.memory_space<vmem>>, vector<16x32xbf16>
    %cst = arith.constant dense<0.000000e+00> : vector<32x32xf32>
    %3 = tpu.matmul %1, %2, %cst {dimension_numbers = #tpu.dot_dimension_numbers<[1], [0], [0], [1], [0, 0, 1, 1], [], []>} : vector<32x16xbf16>, vector<16x32xbf16>, vector<32x32xf32> -> vector<32x32xf32>
    %c0_4 = arith.constant 0 : index
    %c0_5 = arith.constant 0 : index
    %4 = vector.load %arg2[%c0_4, %c0_5] : memref<32x1xf32, #tpu.memory_space<vmem>>, vector<32x1xf32>
    %5 = vector.broadcast %4 : vector<32x1xf32> to vector<32x32xf32>
    %6 = arith.addf %3, %5 : vector<32x32xf32>
    %7 = arith.truncf %6 : vector<32x32xf32> to vector<32x32xbf16>
    %c0_6 = arith.constant 0 : index
    %c0_7 = arith.constant 0 : index
    %8 = vector.load %arg4[%c0_6, %c0_7] : memref<32x32xbf16, #tpu.memory_space<vmem>>, vector<32x32xbf16>
    tpu.vector_store %arg4[%c0_6, %c0_7], %7 {strides = array<i32>} : memref<32x32xbf16, #tpu.memory_space<vmem>>, vector<32x32xbf16>,
    return
  }
  func.func @transform_0(%arg0: i32) -> (i32, i32, i32) {
    %c0_i32 = arith.constant 0 : i32
    %c0_i32_0 = arith.constant 0 : i32
    %c0_i32_1 = arith.constant 0 : i32
    %c0_i32_2 = arith.constant 0 : i32
    return %c0_i32, %c0_i32_0, %c0_i32_1 : i32, i32, i32
  }
  func.func @transform_1(%arg0: i32) -> (i32, i32) {
    %c0_i32 = arith.constant 0 : i32
    %c0_i32_0 = arith.constant 0 : i32
    %c0_i32_1 = arith.constant 0 : i32
    return %c0_i32, %c0_i32_0 : i32, i32
  }
  func.func @transform_2(%arg0: i32) -> (i32, i32) {
    %c0_i32 = arith.constant 0 : i32
    %c0_i32_0 = arith.constant 0 : i32
    return %c0_i32, %arg0 : i32, i32
  }
  func.func @transform_3(%arg0: i32) -> (i32, i32) {
    %c0_i32 = arith.constant 0 : i32
    %c0_i32_0 = arith.constant 0 : i32
    return %c0_i32, %arg0 : i32, i32
  }
}

module attributes {stable_mosaic.version = 11 : i64} {
  func.func @_conv_gemm_kernel(%arg0: i32, %arg1: memref<9x32x32xbf16, #tpu.memory_space<vmem>>, %arg2: memref<32x1xf32, #tpu.memory_space<vmem>>, %arg3: memref<32x32xbf16, #tpu.memory_space<vmem>>, %arg4: memref<32x32xbf16, #tpu.memory_space<vmem>>, %arg5: memref<32x32xbf16, #tpu.memory_space<vmem>>, %arg6: memref<32x32xbf16, #tpu.memory_space<vmem>>, %arg7: memref<32x32xbf16, #tpu.memory_space<vmem>>, %arg8: memref<32x32xbf16, #tpu.memory_space<vmem>>, %arg9: memref<32x32xbf16, #tpu.memory_space<vmem>>, %arg10: memref<32x32xbf16, #tpu.memory_space<vmem>>, %arg11: memref<32x32xbf16, #tpu.memory_space<vmem>>, %arg12: memref<32x32xbf16, #tpu.memory_space<vmem>>, %arg13: memref<32x32xbf16, #tpu.memory_space<vmem>>) attributes {dimension_semantics = [#tpu.dimension_semantics<parallel>], iteration_bounds = array<i64: 1>, scalar_prefetch = 0 : i64, scratch_operands = 0 : i64, tpu.core_type = #tpu.core_type<tc>, window_params = [{pipeline_mode = #tpu.pipeline_mode<synchronous>, transform_indices = @transform_0, window_bounds = array<i64: 9, 32, 32>}, {pipeline_mode = #tpu.pipeline_mode<synchronous>, transform_indices = @transform_1, window_bounds = array<i64: 32, 1>}, {transform_indices = @transform_2, window_bounds = array<i64: 32, 32>}, {transform_indices = @transform_3, window_bounds = array<i64: 32, 32>}, {transform_indices = @transform_4, window_bounds = array<i64: 32, 32>}, {transform_indices = @transform_5, window_bounds = array<i64: 32, 32>}, {transform_indices = @transform_6, window_bounds = array<i64: 32, 32>}, {transform_indices = @transform_7, window_bounds = array<i64: 32, 32>}, {transform_indices = @transform_8, window_bounds = array<i64: 32, 32>}, {transform_indices = @transform_9, window_bounds = array<i64: 32, 32>}, {transform_indices = @transform_10, window_bounds = array<i64: 32, 32>}, {transform_indices = @transform_11, window_bounds = array<i64: 32, 32>}, {transform_indices = @transform_12, window_bounds = array<i64: 32, 32>}]} {
    %c0 = arith.constant 0 : index
    %c0_0 = arith.constant 0 : index
    %c0_1 = arith.constant 0 : index
    %0 = vector.load %arg1[%c0, %c0_0, %c0_1] : memref<9x32x32xbf16, #tpu.memory_space<vmem>>, vector<1x32x32xbf16>
    %1 = vector.shape_cast %0 : vector<1x32x32xbf16> to vector<32x32xbf16>
    %c0_2 = arith.constant 0 : index
    %c0_3 = arith.constant 0 : index
    %2 = vector.load %arg4[%c0_2, %c0_3] : memref<32x32xbf16, #tpu.memory_space<vmem>>, vector<32x32xbf16>
    %cst = arith.constant dense<0.000000e+00> : vector<32x32xf32>
    %3 = tpu.matmul %1, %2, %cst {dimension_numbers = #tpu.dot_dimension_numbers<[1], [0], [0], [1], [0, 0, 1, 1], [], []>} : vector<32x32xbf16>, vector<32x32xbf16>, vector<32x32xf32> -> vector<32x32xf32>
    %c1 = arith.constant 1 : index
    %c0_4 = arith.constant 0 : index
    %c0_5 = arith.constant 0 : index
    %4 = vector.load %arg1[%c1, %c0_4, %c0_5] : memref<9x32x32xbf16, #tpu.memory_space<vmem>>, vector<1x32x32xbf16>
    %5 = vector.shape_cast %4 : vector<1x32x32xbf16> to vector<32x32xbf16>
    %c0_6 = arith.constant 0 : index
    %c0_7 = arith.constant 0 : index
    %6 = vector.load %arg5[%c0_6, %c0_7] : memref<32x32xbf16, #tpu.memory_space<vmem>>, vector<32x32xbf16>
    %cst_8 = arith.constant dense<0.000000e+00> : vector<32x32xf32>
    %7 = tpu.matmul %5, %6, %cst_8 {dimension_numbers = #tpu.dot_dimension_numbers<[1], [0], [0], [1], [0, 0, 1, 1], [], []>} : vector<32x32xbf16>, vector<32x32xbf16>, vector<32x32xf32> -> vector<32x32xf32>
    %8 = arith.addf %3, %7 : vector<32x32xf32>
    %c2 = arith.constant 2 : index
    %c0_9 = arith.constant 0 : index
    %c0_10 = arith.constant 0 : index
    %9 = vector.load %arg1[%c2, %c0_9, %c0_10] : memref<9x32x32xbf16, #tpu.memory_space<vmem>>, vector<1x32x32xbf16>
    %10 = vector.shape_cast %9 : vector<1x32x32xbf16> to vector<32x32xbf16>
    %c0_11 = arith.constant 0 : index
    %c0_12 = arith.constant 0 : index
    %11 = vector.load %arg6[%c0_11, %c0_12] : memref<32x32xbf16, #tpu.memory_space<vmem>>, vector<32x32xbf16>
    %cst_13 = arith.constant dense<0.000000e+00> : vector<32x32xf32>
    %12 = tpu.matmul %10, %11, %cst_13 {dimension_numbers = #tpu.dot_dimension_numbers<[1], [0], [0], [1], [0, 0, 1, 1], [], []>} : vector<32x32xbf16>, vector<32x32xbf16>, vector<32x32xf32> -> vector<32x32xf32>
    %13 = arith.addf %8, %12 : vector<32x32xf32>
    %c3 = arith.constant 3 : index
    %c0_14 = arith.constant 0 : index
    %c0_15 = arith.constant 0 : index
    %14 = vector.load %arg1[%c3, %c0_14, %c0_15] : memref<9x32x32xbf16, #tpu.memory_space<vmem>>, vector<1x32x32xbf16>
    %15 = vector.shape_cast %14 : vector<1x32x32xbf16> to vector<32x32xbf16>
    %c0_16 = arith.constant 0 : index
    %c0_17 = arith.constant 0 : index
    %16 = vector.load %arg7[%c0_16, %c0_17] : memref<32x32xbf16, #tpu.memory_space<vmem>>, vector<32x32xbf16>
    %cst_18 = arith.constant dense<0.000000e+00> : vector<32x32xf32>
    %17 = tpu.matmul %15, %16, %cst_18 {dimension_numbers = #tpu.dot_dimension_numbers<[1], [0], [0], [1], [0, 0, 1, 1], [], []>} : vector<32x32xbf16>, vector<32x32xbf16>, vector<32x32xf32> -> vector<32x32xf32>
    %18 = arith.addf %13, %17 : vector<32x32xf32>
    %c4 = arith.constant 4 : index
    %c0_19 = arith.constant 0 : index
    %c0_20 = arith.constant 0 : index
    %19 = vector.load %arg1[%c4, %c0_19, %c0_20] : memref<9x32x32xbf16, #tpu.memory_space<vmem>>, vector<1x32x32xbf16>
    %20 = vector.shape_cast %19 : vector<1x32x32xbf16> to vector<32x32xbf16>
    %c0_21 = arith.constant 0 : index
    %c0_22 = arith.constant 0 : index
    %21 = vector.load %arg8[%c0_21, %c0_22] : memref<32x32xbf16, #tpu.memory_space<vmem>>, vector<32x32xbf16>
    %cst_23 = arith.constant dense<0.000000e+00> : vector<32x32xf32>
    %22 = tpu.matmul %20, %21, %cst_23 {dimension_numbers = #tpu.dot_dimension_numbers<[1], [0], [0], [1], [0, 0, 1, 1], [], []>} : vector<32x32xbf16>, vector<32x32xbf16>, vector<32x32xf32> -> vector<32x32xf32>
    %23 = arith.addf %18, %22 : vector<32x32xf32>
    %c5 = arith.constant 5 : index
    %c0_24 = arith.constant 0 : index
    %c0_25 = arith.constant 0 : index
    %24 = vector.load %arg1[%c5, %c0_24, %c0_25] : memref<9x32x32xbf16, #tpu.memory_space<vmem>>, vector<1x32x32xbf16>
    %25 = vector.shape_cast %24 : vector<1x32x32xbf16> to vector<32x32xbf16>
    %c0_26 = arith.constant 0 : index
    %c0_27 = arith.constant 0 : index
    %26 = vector.load %arg9[%c0_26, %c0_27] : memref<32x32xbf16, #tpu.memory_space<vmem>>, vector<32x32xbf16>
    %cst_28 = arith.constant dense<0.000000e+00> : vector<32x32xf32>
    %27 = tpu.matmul %25, %26, %cst_28 {dimension_numbers = #tpu.dot_dimension_numbers<[1], [0], [0], [1], [0, 0, 1, 1], [], []>} : vector<32x32xbf16>, vector<32x32xbf16>, vector<32x32xf32> -> vector<32x32xf32>
    %28 = arith.addf %23, %27 : vector<32x32xf32>
    %c6 = arith.constant 6 : index
    %c0_29 = arith.constant 0 : index
    %c0_30 = arith.constant 0 : index
    %29 = vector.load %arg1[%c6, %c0_29, %c0_30] : memref<9x32x32xbf16, #tpu.memory_space<vmem>>, vector<1x32x32xbf16>
    %30 = vector.shape_cast %29 : vector<1x32x32xbf16> to vector<32x32xbf16>
    %c0_31 = arith.constant 0 : index
    %c0_32 = arith.constant 0 : index
    %31 = vector.load %arg10[%c0_31, %c0_32] : memref<32x32xbf16, #tpu.memory_space<vmem>>, vector<32x32xbf16>
    %cst_33 = arith.constant dense<0.000000e+00> : vector<32x32xf32>
    %32 = tpu.matmul %30, %31, %cst_33 {dimension_numbers = #tpu.dot_dimension_numbers<[1], [0], [0], [1], [0, 0, 1, 1], [], []>} : vector<32x32xbf16>, vector<32x32xbf16>, vector<32x32xf32> -> vector<32x32xf32>
    %33 = arith.addf %28, %32 : vector<32x32xf32>
    %c7 = arith.constant 7 : index
    %c0_34 = arith.constant 0 : index
    %c0_35 = arith.constant 0 : index
    %34 = vector.load %arg1[%c7, %c0_34, %c0_35] : memref<9x32x32xbf16, #tpu.memory_space<vmem>>, vector<1x32x32xbf16>
    %35 = vector.shape_cast %34 : vector<1x32x32xbf16> to vector<32x32xbf16>
    %c0_36 = arith.constant 0 : index
    %c0_37 = arith.constant 0 : index
    %36 = vector.load %arg11[%c0_36, %c0_37] : memref<32x32xbf16, #tpu.memory_space<vmem>>, vector<32x32xbf16>
    %cst_38 = arith.constant dense<0.000000e+00> : vector<32x32xf32>
    %37 = tpu.matmul %35, %36, %cst_38 {dimension_numbers = #tpu.dot_dimension_numbers<[1], [0], [0], [1], [0, 0, 1, 1], [], []>} : vector<32x32xbf16>, vector<32x32xbf16>, vector<32x32xf32> -> vector<32x32xf32>
    %38 = arith.addf %33, %37 : vector<32x32xf32>
    %c8 = arith.constant 8 : index
    %c0_39 = arith.constant 0 : index
    %c0_40 = arith.constant 0 : index
    %39 = vector.load %arg1[%c8, %c0_39, %c0_40] : memref<9x32x32xbf16, #tpu.memory_space<vmem>>, vector<1x32x32xbf16>
    %40 = vector.shape_cast %39 : vector<1x32x32xbf16> to vector<32x32xbf16>
    %c0_41 = arith.constant 0 : index
    %c0_42 = arith.constant 0 : index
    %41 = vector.load %arg12[%c0_41, %c0_42] : memref<32x32xbf16, #tpu.memory_space<vmem>>, vector<32x32xbf16>
    %cst_43 = arith.constant dense<0.000000e+00> : vector<32x32xf32>
    %42 = tpu.matmul %40, %41, %cst_43 {dimension_numbers = #tpu.dot_dimension_numbers<[1], [0], [0], [1], [0, 0, 1, 1], [], []>} : vector<32x32xbf16>, vector<32x32xbf16>, vector<32x32xf32> -> vector<32x32xf32>
    %43 = arith.addf %38, %42 : vector<32x32xf32>
    %c0_44 = arith.constant 0 : index
    %c0_45 = arith.constant 0 : index
    %44 = vector.load %arg2[%c0_44, %c0_45] : memref<32x1xf32, #tpu.memory_space<vmem>>, vector<32x1xf32>
    %45 = vector.broadcast %44 : vector<32x1xf32> to vector<32x32xf32>
    %46 = arith.addf %43, %45 : vector<32x32xf32>
    %c0_46 = arith.constant 0 : index
    %c0_47 = arith.constant 0 : index
    %47 = vector.load %arg3[%c0_46, %c0_47] : memref<32x32xbf16, #tpu.memory_space<vmem>>, vector<32x32xbf16>
    %48 = arith.extf %47 : vector<32x32xbf16> to vector<32x32xf32>
    %49 = arith.addf %46, %48 : vector<32x32xf32>
    %cst_48 = arith.constant 0.000000e+00 : f32
    %50 = vector.broadcast %cst_48 : f32 to vector<32x32xf32>
    %51 = arith.maximumf %49, %50 : vector<32x32xf32>
    %52 = arith.truncf %51 : vector<32x32xf32> to vector<32x32xbf16>
    %c0_49 = arith.constant 0 : index
    %c0_50 = arith.constant 0 : index
    %53 = vector.load %arg13[%c0_49, %c0_50] : memref<32x32xbf16, #tpu.memory_space<vmem>>, vector<32x32xbf16>
    tpu.vector_store %arg13[%c0_49, %c0_50], %52 {strides = array<i32>} : memref<32x32xbf16, #tpu.memory_space<vmem>>, vector<32x32xbf16>,
    return
  }
  func.func @transform_0(%arg0: i32) -> (i32, i32, i32) {
    %c0_i32 = arith.constant 0 : i32
    %c0_i32_0 = arith.constant 0 : i32
    %c0_i32_1 = arith.constant 0 : i32
    %c0_i32_2 = arith.constant 0 : i32
    return %c0_i32, %c0_i32_0, %c0_i32_1 : i32, i32, i32
  }
  func.func @transform_1(%arg0: i32) -> (i32, i32) {
    %c0_i32 = arith.constant 0 : i32
    %c0_i32_0 = arith.constant 0 : i32
    %c0_i32_1 = arith.constant 0 : i32
    return %c0_i32, %c0_i32_0 : i32, i32
  }
  func.func @transform_2(%arg0: i32) -> (i32, i32) {
    %c0_i32 = arith.constant 0 : i32
    %c0_i32_0 = arith.constant 0 : i32
    return %c0_i32, %arg0 : i32, i32
  }
  func.func @transform_3(%arg0: i32) -> (i32, i32) {
    %c0_i32 = arith.constant 0 : i32
    %c0_i32_0 = arith.constant 0 : i32
    return %c0_i32, %arg0 : i32, i32
  }
  func.func @transform_4(%arg0: i32) -> (i32, i32) {
    %c0_i32 = arith.constant 0 : i32
    %c0_i32_0 = arith.constant 0 : i32
    return %c0_i32, %arg0 : i32, i32
  }
  func.func @transform_5(%arg0: i32) -> (i32, i32) {
    %c0_i32 = arith.constant 0 : i32
    %c0_i32_0 = arith.constant 0 : i32
    return %c0_i32, %arg0 : i32, i32
  }
  func.func @transform_6(%arg0: i32) -> (i32, i32) {
    %c0_i32 = arith.constant 0 : i32
    %c0_i32_0 = arith.constant 0 : i32
    return %c0_i32, %arg0 : i32, i32
  }
  func.func @transform_7(%arg0: i32) -> (i32, i32) {
    %c0_i32 = arith.constant 0 : i32
    %c0_i32_0 = arith.constant 0 : i32
    return %c0_i32, %arg0 : i32, i32
  }
  func.func @transform_8(%arg0: i32) -> (i32, i32) {
    %c0_i32 = arith.constant 0 : i32
    %c0_i32_0 = arith.constant 0 : i32
    return %c0_i32, %arg0 : i32, i32
  }
  func.func @transform_9(%arg0: i32) -> (i32, i32) {
    %c0_i32 = arith.constant 0 : i32
    %c0_i32_0 = arith.constant 0 : i32
    return %c0_i32, %arg0 : i32, i32
  }
  func.func @transform_10(%arg0: i32) -> (i32, i32) {
    %c0_i32 = arith.constant 0 : i32
    %c0_i32_0 = arith.constant 0 : i32
    return %c0_i32, %arg0 : i32, i32
  }
  func.func @transform_11(%arg0: i32) -> (i32, i32) {
    %c0_i32 = arith.constant 0 : i32
    %c0_i32_0 = arith.constant 0 : i32
    return %c0_i32, %arg0 : i32, i32
  }
  func.func @transform_12(%arg0: i32) -> (i32, i32) {
    %c0_i32 = arith.constant 0 : i32
    %c0_i32_0 = arith.constant 0 : i32
    return %c0_i32, %arg0 : i32, i32
  }
}

module attributes {stable_mosaic.version = 11 : i64} {
  func.func @_conv_gemm_kernel(%arg0: i32, %arg1: memref<9x32x32xbf16, #tpu.memory_space<vmem>>, %arg2: memref<32x1xf32, #tpu.memory_space<vmem>>, %arg3: memref<32x32xbf16, #tpu.memory_space<vmem>>, %arg4: memref<32x32xbf16, #tpu.memory_space<vmem>>, %arg5: memref<32x32xbf16, #tpu.memory_space<vmem>>, %arg6: memref<32x32xbf16, #tpu.memory_space<vmem>>, %arg7: memref<32x32xbf16, #tpu.memory_space<vmem>>, %arg8: memref<32x32xbf16, #tpu.memory_space<vmem>>, %arg9: memref<32x32xbf16, #tpu.memory_space<vmem>>, %arg10: memref<32x32xbf16, #tpu.memory_space<vmem>>, %arg11: memref<32x32xbf16, #tpu.memory_space<vmem>>, %arg12: memref<32x32xbf16, #tpu.memory_space<vmem>>) attributes {dimension_semantics = [#tpu.dimension_semantics<parallel>], iteration_bounds = array<i64: 1>, scalar_prefetch = 0 : i64, scratch_operands = 0 : i64, tpu.core_type = #tpu.core_type<tc>, window_params = [{pipeline_mode = #tpu.pipeline_mode<synchronous>, transform_indices = @transform_0, window_bounds = array<i64: 9, 32, 32>}, {pipeline_mode = #tpu.pipeline_mode<synchronous>, transform_indices = @transform_1, window_bounds = array<i64: 32, 1>}, {transform_indices = @transform_2, window_bounds = array<i64: 32, 32>}, {transform_indices = @transform_3, window_bounds = array<i64: 32, 32>}, {transform_indices = @transform_4, window_bounds = array<i64: 32, 32>}, {transform_indices = @transform_5, window_bounds = array<i64: 32, 32>}, {transform_indices = @transform_6, window_bounds = array<i64: 32, 32>}, {transform_indices = @transform_7, window_bounds = array<i64: 32, 32>}, {transform_indices = @transform_8, window_bounds = array<i64: 32, 32>}, {transform_indices = @transform_9, window_bounds = array<i64: 32, 32>}, {transform_indices = @transform_10, window_bounds = array<i64: 32, 32>}, {transform_indices = @transform_11, window_bounds = array<i64: 32, 32>}]} {
    %c0 = arith.constant 0 : index
    %c0_0 = arith.constant 0 : index
    %c0_1 = arith.constant 0 : index
    %0 = vector.load %arg1[%c0, %c0_0, %c0_1] : memref<9x32x32xbf16, #tpu.memory_space<vmem>>, vector<1x32x32xbf16>
    %1 = vector.shape_cast %0 : vector<1x32x32xbf16> to vector<32x32xbf16>
    %c0_2 = arith.constant 0 : index
    %c0_3 = arith.constant 0 : index
    %2 = vector.load %arg3[%c0_2, %c0_3] : memref<32x32xbf16, #tpu.memory_space<vmem>>, vector<32x32xbf16>
    %cst = arith.constant dense<0.000000e+00> : vector<32x32xf32>
    %3 = tpu.matmul %1, %2, %cst {dimension_numbers = #tpu.dot_dimension_numbers<[1], [0], [0], [1], [0, 0, 1, 1], [], []>} : vector<32x32xbf16>, vector<32x32xbf16>, vector<32x32xf32> -> vector<32x32xf32>
    %c1 = arith.constant 1 : index
    %c0_4 = arith.constant 0 : index
    %c0_5 = arith.constant 0 : index
    %4 = vector.load %arg1[%c1, %c0_4, %c0_5] : memref<9x32x32xbf16, #tpu.memory_space<vmem>>, vector<1x32x32xbf16>
    %5 = vector.shape_cast %4 : vector<1x32x32xbf16> to vector<32x32xbf16>
    %c0_6 = arith.constant 0 : index
    %c0_7 = arith.constant 0 : index
    %6 = vector.load %arg4[%c0_6, %c0_7] : memref<32x32xbf16, #tpu.memory_space<vmem>>, vector<32x32xbf16>
    %cst_8 = arith.constant dense<0.000000e+00> : vector<32x32xf32>
    %7 = tpu.matmul %5, %6, %cst_8 {dimension_numbers = #tpu.dot_dimension_numbers<[1], [0], [0], [1], [0, 0, 1, 1], [], []>} : vector<32x32xbf16>, vector<32x32xbf16>, vector<32x32xf32> -> vector<32x32xf32>
    %8 = arith.addf %3, %7 : vector<32x32xf32>
    %c2 = arith.constant 2 : index
    %c0_9 = arith.constant 0 : index
    %c0_10 = arith.constant 0 : index
    %9 = vector.load %arg1[%c2, %c0_9, %c0_10] : memref<9x32x32xbf16, #tpu.memory_space<vmem>>, vector<1x32x32xbf16>
    %10 = vector.shape_cast %9 : vector<1x32x32xbf16> to vector<32x32xbf16>
    %c0_11 = arith.constant 0 : index
    %c0_12 = arith.constant 0 : index
    %11 = vector.load %arg5[%c0_11, %c0_12] : memref<32x32xbf16, #tpu.memory_space<vmem>>, vector<32x32xbf16>
    %cst_13 = arith.constant dense<0.000000e+00> : vector<32x32xf32>
    %12 = tpu.matmul %10, %11, %cst_13 {dimension_numbers = #tpu.dot_dimension_numbers<[1], [0], [0], [1], [0, 0, 1, 1], [], []>} : vector<32x32xbf16>, vector<32x32xbf16>, vector<32x32xf32> -> vector<32x32xf32>
    %13 = arith.addf %8, %12 : vector<32x32xf32>
    %c3 = arith.constant 3 : index
    %c0_14 = arith.constant 0 : index
    %c0_15 = arith.constant 0 : index
    %14 = vector.load %arg1[%c3, %c0_14, %c0_15] : memref<9x32x32xbf16, #tpu.memory_space<vmem>>, vector<1x32x32xbf16>
    %15 = vector.shape_cast %14 : vector<1x32x32xbf16> to vector<32x32xbf16>
    %c0_16 = arith.constant 0 : index
    %c0_17 = arith.constant 0 : index
    %16 = vector.load %arg6[%c0_16, %c0_17] : memref<32x32xbf16, #tpu.memory_space<vmem>>, vector<32x32xbf16>
    %cst_18 = arith.constant dense<0.000000e+00> : vector<32x32xf32>
    %17 = tpu.matmul %15, %16, %cst_18 {dimension_numbers = #tpu.dot_dimension_numbers<[1], [0], [0], [1], [0, 0, 1, 1], [], []>} : vector<32x32xbf16>, vector<32x32xbf16>, vector<32x32xf32> -> vector<32x32xf32>
    %18 = arith.addf %13, %17 : vector<32x32xf32>
    %c4 = arith.constant 4 : index
    %c0_19 = arith.constant 0 : index
    %c0_20 = arith.constant 0 : index
    %19 = vector.load %arg1[%c4, %c0_19, %c0_20] : memref<9x32x32xbf16, #tpu.memory_space<vmem>>, vector<1x32x32xbf16>
    %20 = vector.shape_cast %19 : vector<1x32x32xbf16> to vector<32x32xbf16>
    %c0_21 = arith.constant 0 : index
    %c0_22 = arith.constant 0 : index
    %21 = vector.load %arg7[%c0_21, %c0_22] : memref<32x32xbf16, #tpu.memory_space<vmem>>, vector<32x32xbf16>
    %cst_23 = arith.constant dense<0.000000e+00> : vector<32x32xf32>
    %22 = tpu.matmul %20, %21, %cst_23 {dimension_numbers = #tpu.dot_dimension_numbers<[1], [0], [0], [1], [0, 0, 1, 1], [], []>} : vector<32x32xbf16>, vector<32x32xbf16>, vector<32x32xf32> -> vector<32x32xf32>
    %23 = arith.addf %18, %22 : vector<32x32xf32>
    %c5 = arith.constant 5 : index
    %c0_24 = arith.constant 0 : index
    %c0_25 = arith.constant 0 : index
    %24 = vector.load %arg1[%c5, %c0_24, %c0_25] : memref<9x32x32xbf16, #tpu.memory_space<vmem>>, vector<1x32x32xbf16>
    %25 = vector.shape_cast %24 : vector<1x32x32xbf16> to vector<32x32xbf16>
    %c0_26 = arith.constant 0 : index
    %c0_27 = arith.constant 0 : index
    %26 = vector.load %arg8[%c0_26, %c0_27] : memref<32x32xbf16, #tpu.memory_space<vmem>>, vector<32x32xbf16>
    %cst_28 = arith.constant dense<0.000000e+00> : vector<32x32xf32>
    %27 = tpu.matmul %25, %26, %cst_28 {dimension_numbers = #tpu.dot_dimension_numbers<[1], [0], [0], [1], [0, 0, 1, 1], [], []>} : vector<32x32xbf16>, vector<32x32xbf16>, vector<32x32xf32> -> vector<32x32xf32>
    %28 = arith.addf %23, %27 : vector<32x32xf32>
    %c6 = arith.constant 6 : index
    %c0_29 = arith.constant 0 : index
    %c0_30 = arith.constant 0 : index
    %29 = vector.load %arg1[%c6, %c0_29, %c0_30] : memref<9x32x32xbf16, #tpu.memory_space<vmem>>, vector<1x32x32xbf16>
    %30 = vector.shape_cast %29 : vector<1x32x32xbf16> to vector<32x32xbf16>
    %c0_31 = arith.constant 0 : index
    %c0_32 = arith.constant 0 : index
    %31 = vector.load %arg9[%c0_31, %c0_32] : memref<32x32xbf16, #tpu.memory_space<vmem>>, vector<32x32xbf16>
    %cst_33 = arith.constant dense<0.000000e+00> : vector<32x32xf32>
    %32 = tpu.matmul %30, %31, %cst_33 {dimension_numbers = #tpu.dot_dimension_numbers<[1], [0], [0], [1], [0, 0, 1, 1], [], []>} : vector<32x32xbf16>, vector<32x32xbf16>, vector<32x32xf32> -> vector<32x32xf32>
    %33 = arith.addf %28, %32 : vector<32x32xf32>
    %c7 = arith.constant 7 : index
    %c0_34 = arith.constant 0 : index
    %c0_35 = arith.constant 0 : index
    %34 = vector.load %arg1[%c7, %c0_34, %c0_35] : memref<9x32x32xbf16, #tpu.memory_space<vmem>>, vector<1x32x32xbf16>
    %35 = vector.shape_cast %34 : vector<1x32x32xbf16> to vector<32x32xbf16>
    %c0_36 = arith.constant 0 : index
    %c0_37 = arith.constant 0 : index
    %36 = vector.load %arg10[%c0_36, %c0_37] : memref<32x32xbf16, #tpu.memory_space<vmem>>, vector<32x32xbf16>
    %cst_38 = arith.constant dense<0.000000e+00> : vector<32x32xf32>
    %37 = tpu.matmul %35, %36, %cst_38 {dimension_numbers = #tpu.dot_dimension_numbers<[1], [0], [0], [1], [0, 0, 1, 1], [], []>} : vector<32x32xbf16>, vector<32x32xbf16>, vector<32x32xf32> -> vector<32x32xf32>
    %38 = arith.addf %33, %37 : vector<32x32xf32>
    %c8 = arith.constant 8 : index
    %c0_39 = arith.constant 0 : index
    %c0_40 = arith.constant 0 : index
    %39 = vector.load %arg1[%c8, %c0_39, %c0_40] : memref<9x32x32xbf16, #tpu.memory_space<vmem>>, vector<1x32x32xbf16>
    %40 = vector.shape_cast %39 : vector<1x32x32xbf16> to vector<32x32xbf16>
    %c0_41 = arith.constant 0 : index
    %c0_42 = arith.constant 0 : index
    %41 = vector.load %arg11[%c0_41, %c0_42] : memref<32x32xbf16, #tpu.memory_space<vmem>>, vector<32x32xbf16>
    %cst_43 = arith.constant dense<0.000000e+00> : vector<32x32xf32>
    %42 = tpu.matmul %40, %41, %cst_43 {dimension_numbers = #tpu.dot_dimension_numbers<[1], [0], [0], [1], [0, 0, 1, 1], [], []>} : vector<32x32xbf16>, vector<32x32xbf16>, vector<32x32xf32> -> vector<32x32xf32>
    %43 = arith.addf %38, %42 : vector<32x32xf32>
    %c0_44 = arith.constant 0 : index
    %c0_45 = arith.constant 0 : index
    %44 = vector.load %arg2[%c0_44, %c0_45] : memref<32x1xf32, #tpu.memory_space<vmem>>, vector<32x1xf32>
    %45 = vector.broadcast %44 : vector<32x1xf32> to vector<32x32xf32>
    %46 = arith.addf %43, %45 : vector<32x32xf32>
    %cst_46 = arith.constant 0.000000e+00 : f32
    %47 = vector.broadcast %cst_46 : f32 to vector<32x32xf32>
    %48 = arith.maximumf %46, %47 : vector<32x32xf32>
    %49 = arith.truncf %48 : vector<32x32xf32> to vector<32x32xbf16>
    %c0_47 = arith.constant 0 : index
    %c0_48 = arith.constant 0 : index
    %50 = vector.load %arg12[%c0_47, %c0_48] : memref<32x32xbf16, #tpu.memory_space<vmem>>, vector<32x32xbf16>
    tpu.vector_store %arg12[%c0_47, %c0_48], %49 {strides = array<i32>} : memref<32x32xbf16, #tpu.memory_space<vmem>>, vector<32x32xbf16>,
    return
  }
  func.func @transform_0(%arg0: i32) -> (i32, i32, i32) {
    %c0_i32 = arith.constant 0 : i32
    %c0_i32_0 = arith.constant 0 : i32
    %c0_i32_1 = arith.constant 0 : i32
    %c0_i32_2 = arith.constant 0 : i32
    return %c0_i32, %c0_i32_0, %c0_i32_1 : i32, i32, i32
  }
  func.func @transform_1(%arg0: i32) -> (i32, i32) {
    %c0_i32 = arith.constant 0 : i32
    %c0_i32_0 = arith.constant 0 : i32
    %c0_i32_1 = arith.constant 0 : i32
    return %c0_i32, %c0_i32_0 : i32, i32
  }
  func.func @transform_2(%arg0: i32) -> (i32, i32) {
    %c0_i32 = arith.constant 0 : i32
    %c0_i32_0 = arith.constant 0 : i32
    return %c0_i32, %arg0 : i32, i32
  }
  func.func @transform_3(%arg0: i32) -> (i32, i32) {
    %c0_i32 = arith.constant 0 : i32
    %c0_i32_0 = arith.constant 0 : i32
    return %c0_i32, %arg0 : i32, i32
  }
  func.func @transform_4(%arg0: i32) -> (i32, i32) {
    %c0_i32 = arith.constant 0 : i32
    %c0_i32_0 = arith.constant 0 : i32
    return %c0_i32, %arg0 : i32, i32
  }
  func.func @transform_5(%arg0: i32) -> (i32, i32) {
    %c0_i32 = arith.constant 0 : i32
    %c0_i32_0 = arith.constant 0 : i32
    return %c0_i32, %arg0 : i32, i32
  }
  func.func @transform_6(%arg0: i32) -> (i32, i32) {
    %c0_i32 = arith.constant 0 : i32
    %c0_i32_0 = arith.constant 0 : i32
    return %c0_i32, %arg0 : i32, i32
  }
  func.func @transform_7(%arg0: i32) -> (i32, i32) {
    %c0_i32 = arith.constant 0 : i32
    %c0_i32_0 = arith.constant 0 : i32
    return %c0_i32, %arg0 : i32, i32
  }
  func.func @transform_8(%arg0: i32) -> (i32, i32) {
    %c0_i32 = arith.constant 0 : i32
    %c0_i32_0 = arith.constant 0 : i32
    return %c0_i32, %arg0 : i32, i32
  }
  func.func @transform_9(%arg0: i32) -> (i32, i32) {
    %c0_i32 = arith.constant 0 : i32
    %c0_i32_0 = arith.constant 0 : i32
    return %c0_i32, %arg0 : i32, i32
  }
  func.func @transform_10(%arg0: i32) -> (i32, i32) {
    %c0_i32 = arith.constant 0 : i32
    %c0_i32_0 = arith.constant 0 : i32
    return %c0_i32, %arg0 : i32, i32
  }
  func.func @transform_11(%arg0: i32) -> (i32, i32) {
    %c0_i32 = arith.constant 0 : i32
    %c0_i32_0 = arith.constant 0 : i32
    return %c0_i32, %arg0 : i32, i32
  }
}

module attributes {stable_mosaic.version = 11 : i64} {
  func.func @_conv_gemm_kernel(%arg0: i32, %arg1: memref<9x64x32xbf16, #tpu.memory_space<vmem>>, %arg2: memref<64x1xf32, #tpu.memory_space<vmem>>, %arg3: memref<32x8xbf16, #tpu.memory_space<vmem>>, %arg4: memref<32x8xbf16, #tpu.memory_space<vmem>>, %arg5: memref<32x8xbf16, #tpu.memory_space<vmem>>, %arg6: memref<32x8xbf16, #tpu.memory_space<vmem>>, %arg7: memref<32x8xbf16, #tpu.memory_space<vmem>>, %arg8: memref<32x8xbf16, #tpu.memory_space<vmem>>, %arg9: memref<32x8xbf16, #tpu.memory_space<vmem>>, %arg10: memref<32x8xbf16, #tpu.memory_space<vmem>>, %arg11: memref<32x8xbf16, #tpu.memory_space<vmem>>, %arg12: memref<64x8xbf16, #tpu.memory_space<vmem>>) attributes {dimension_semantics = [#tpu.dimension_semantics<parallel>], iteration_bounds = array<i64: 1>, scalar_prefetch = 0 : i64, scratch_operands = 0 : i64, tpu.core_type = #tpu.core_type<tc>, window_params = [{pipeline_mode = #tpu.pipeline_mode<synchronous>, transform_indices = @transform_0, window_bounds = array<i64: 9, 64, 32>}, {pipeline_mode = #tpu.pipeline_mode<synchronous>, transform_indices = @transform_1, window_bounds = array<i64: 64, 1>}, {transform_indices = @transform_2, window_bounds = array<i64: 32, 8>}, {transform_indices = @transform_3, window_bounds = array<i64: 32, 8>}, {transform_indices = @transform_4, window_bounds = array<i64: 32, 8>}, {transform_indices = @transform_5, window_bounds = array<i64: 32, 8>}, {transform_indices = @transform_6, window_bounds = array<i64: 32, 8>}, {transform_indices = @transform_7, window_bounds = array<i64: 32, 8>}, {transform_indices = @transform_8, window_bounds = array<i64: 32, 8>}, {transform_indices = @transform_9, window_bounds = array<i64: 32, 8>}, {transform_indices = @transform_10, window_bounds = array<i64: 32, 8>}, {transform_indices = @transform_11, window_bounds = array<i64: 64, 8>}]} {
    %c0 = arith.constant 0 : index
    %c0_0 = arith.constant 0 : index
    %c0_1 = arith.constant 0 : index
    %0 = vector.load %arg1[%c0, %c0_0, %c0_1] : memref<9x64x32xbf16, #tpu.memory_space<vmem>>, vector<1x64x32xbf16>
    %1 = vector.shape_cast %0 : vector<1x64x32xbf16> to vector<64x32xbf16>
    %c0_2 = arith.constant 0 : index
    %c0_3 = arith.constant 0 : index
    %2 = vector.load %arg3[%c0_2, %c0_3] : memref<32x8xbf16, #tpu.memory_space<vmem>>, vector<32x8xbf16>
    %cst = arith.constant dense<0.000000e+00> : vector<64x8xf32>
    %3 = tpu.matmul %1, %2, %cst {dimension_numbers = #tpu.dot_dimension_numbers<[1], [0], [0], [1], [0, 0, 1, 1], [], []>} : vector<64x32xbf16>, vector<32x8xbf16>, vector<64x8xf32> -> vector<64x8xf32>
    %c1 = arith.constant 1 : index
    %c0_4 = arith.constant 0 : index
    %c0_5 = arith.constant 0 : index
    %4 = vector.load %arg1[%c1, %c0_4, %c0_5] : memref<9x64x32xbf16, #tpu.memory_space<vmem>>, vector<1x64x32xbf16>
    %5 = vector.shape_cast %4 : vector<1x64x32xbf16> to vector<64x32xbf16>
    %c0_6 = arith.constant 0 : index
    %c0_7 = arith.constant 0 : index
    %6 = vector.load %arg4[%c0_6, %c0_7] : memref<32x8xbf16, #tpu.memory_space<vmem>>, vector<32x8xbf16>
    %cst_8 = arith.constant dense<0.000000e+00> : vector<64x8xf32>
    %7 = tpu.matmul %5, %6, %cst_8 {dimension_numbers = #tpu.dot_dimension_numbers<[1], [0], [0], [1], [0, 0, 1, 1], [], []>} : vector<64x32xbf16>, vector<32x8xbf16>, vector<64x8xf32> -> vector<64x8xf32>
    %8 = arith.addf %3, %7 : vector<64x8xf32>
    %c2 = arith.constant 2 : index
    %c0_9 = arith.constant 0 : index
    %c0_10 = arith.constant 0 : index
    %9 = vector.load %arg1[%c2, %c0_9, %c0_10] : memref<9x64x32xbf16, #tpu.memory_space<vmem>>, vector<1x64x32xbf16>
    %10 = vector.shape_cast %9 : vector<1x64x32xbf16> to vector<64x32xbf16>
    %c0_11 = arith.constant 0 : index
    %c0_12 = arith.constant 0 : index
    %11 = vector.load %arg5[%c0_11, %c0_12] : memref<32x8xbf16, #tpu.memory_space<vmem>>, vector<32x8xbf16>
    %cst_13 = arith.constant dense<0.000000e+00> : vector<64x8xf32>
    %12 = tpu.matmul %10, %11, %cst_13 {dimension_numbers = #tpu.dot_dimension_numbers<[1], [0], [0], [1], [0, 0, 1, 1], [], []>} : vector<64x32xbf16>, vector<32x8xbf16>, vector<64x8xf32> -> vector<64x8xf32>
    %13 = arith.addf %8, %12 : vector<64x8xf32>
    %c3 = arith.constant 3 : index
    %c0_14 = arith.constant 0 : index
    %c0_15 = arith.constant 0 : index
    %14 = vector.load %arg1[%c3, %c0_14, %c0_15] : memref<9x64x32xbf16, #tpu.memory_space<vmem>>, vector<1x64x32xbf16>
    %15 = vector.shape_cast %14 : vector<1x64x32xbf16> to vector<64x32xbf16>
    %c0_16 = arith.constant 0 : index
    %c0_17 = arith.constant 0 : index
    %16 = vector.load %arg6[%c0_16, %c0_17] : memref<32x8xbf16, #tpu.memory_space<vmem>>, vector<32x8xbf16>
    %cst_18 = arith.constant dense<0.000000e+00> : vector<64x8xf32>
    %17 = tpu.matmul %15, %16, %cst_18 {dimension_numbers = #tpu.dot_dimension_numbers<[1], [0], [0], [1], [0, 0, 1, 1], [], []>} : vector<64x32xbf16>, vector<32x8xbf16>, vector<64x8xf32> -> vector<64x8xf32>
    %18 = arith.addf %13, %17 : vector<64x8xf32>
    %c4 = arith.constant 4 : index
    %c0_19 = arith.constant 0 : index
    %c0_20 = arith.constant 0 : index
    %19 = vector.load %arg1[%c4, %c0_19, %c0_20] : memref<9x64x32xbf16, #tpu.memory_space<vmem>>, vector<1x64x32xbf16>
    %20 = vector.shape_cast %19 : vector<1x64x32xbf16> to vector<64x32xbf16>
    %c0_21 = arith.constant 0 : index
    %c0_22 = arith.constant 0 : index
    %21 = vector.load %arg7[%c0_21, %c0_22] : memref<32x8xbf16, #tpu.memory_space<vmem>>, vector<32x8xbf16>
    %cst_23 = arith.constant dense<0.000000e+00> : vector<64x8xf32>
    %22 = tpu.matmul %20, %21, %cst_23 {dimension_numbers = #tpu.dot_dimension_numbers<[1], [0], [0], [1], [0, 0, 1, 1], [], []>} : vector<64x32xbf16>, vector<32x8xbf16>, vector<64x8xf32> -> vector<64x8xf32>
    %23 = arith.addf %18, %22 : vector<64x8xf32>
    %c5 = arith.constant 5 : index
    %c0_24 = arith.constant 0 : index
    %c0_25 = arith.constant 0 : index
    %24 = vector.load %arg1[%c5, %c0_24, %c0_25] : memref<9x64x32xbf16, #tpu.memory_space<vmem>>, vector<1x64x32xbf16>
    %25 = vector.shape_cast %24 : vector<1x64x32xbf16> to vector<64x32xbf16>
    %c0_26 = arith.constant 0 : index
    %c0_27 = arith.constant 0 : index
    %26 = vector.load %arg8[%c0_26, %c0_27] : memref<32x8xbf16, #tpu.memory_space<vmem>>, vector<32x8xbf16>
    %cst_28 = arith.constant dense<0.000000e+00> : vector<64x8xf32>
    %27 = tpu.matmul %25, %26, %cst_28 {dimension_numbers = #tpu.dot_dimension_numbers<[1], [0], [0], [1], [0, 0, 1, 1], [], []>} : vector<64x32xbf16>, vector<32x8xbf16>, vector<64x8xf32> -> vector<64x8xf32>
    %28 = arith.addf %23, %27 : vector<64x8xf32>
    %c6 = arith.constant 6 : index
    %c0_29 = arith.constant 0 : index
    %c0_30 = arith.constant 0 : index
    %29 = vector.load %arg1[%c6, %c0_29, %c0_30] : memref<9x64x32xbf16, #tpu.memory_space<vmem>>, vector<1x64x32xbf16>
    %30 = vector.shape_cast %29 : vector<1x64x32xbf16> to vector<64x32xbf16>
    %c0_31 = arith.constant 0 : index
    %c0_32 = arith.constant 0 : index
    %31 = vector.load %arg9[%c0_31, %c0_32] : memref<32x8xbf16, #tpu.memory_space<vmem>>, vector<32x8xbf16>
    %cst_33 = arith.constant dense<0.000000e+00> : vector<64x8xf32>
    %32 = tpu.matmul %30, %31, %cst_33 {dimension_numbers = #tpu.dot_dimension_numbers<[1], [0], [0], [1], [0, 0, 1, 1], [], []>} : vector<64x32xbf16>, vector<32x8xbf16>, vector<64x8xf32> -> vector<64x8xf32>
    %33 = arith.addf %28, %32 : vector<64x8xf32>
    %c7 = arith.constant 7 : index
    %c0_34 = arith.constant 0 : index
    %c0_35 = arith.constant 0 : index
    %34 = vector.load %arg1[%c7, %c0_34, %c0_35] : memref<9x64x32xbf16, #tpu.memory_space<vmem>>, vector<1x64x32xbf16>
    %35 = vector.shape_cast %34 : vector<1x64x32xbf16> to vector<64x32xbf16>
    %c0_36 = arith.constant 0 : index
    %c0_37 = arith.constant 0 : index
    %36 = vector.load %arg10[%c0_36, %c0_37] : memref<32x8xbf16, #tpu.memory_space<vmem>>, vector<32x8xbf16>
    %cst_38 = arith.constant dense<0.000000e+00> : vector<64x8xf32>
    %37 = tpu.matmul %35, %36, %cst_38 {dimension_numbers = #tpu.dot_dimension_numbers<[1], [0], [0], [1], [0, 0, 1, 1], [], []>} : vector<64x32xbf16>, vector<32x8xbf16>, vector<64x8xf32> -> vector<64x8xf32>
    %38 = arith.addf %33, %37 : vector<64x8xf32>
    %c8 = arith.constant 8 : index
    %c0_39 = arith.constant 0 : index
    %c0_40 = arith.constant 0 : index
    %39 = vector.load %arg1[%c8, %c0_39, %c0_40] : memref<9x64x32xbf16, #tpu.memory_space<vmem>>, vector<1x64x32xbf16>
    %40 = vector.shape_cast %39 : vector<1x64x32xbf16> to vector<64x32xbf16>
    %c0_41 = arith.constant 0 : index
    %c0_42 = arith.constant 0 : index
    %41 = vector.load %arg11[%c0_41, %c0_42] : memref<32x8xbf16, #tpu.memory_space<vmem>>, vector<32x8xbf16>
    %cst_43 = arith.constant dense<0.000000e+00> : vector<64x8xf32>
    %42 = tpu.matmul %40, %41, %cst_43 {dimension_numbers = #tpu.dot_dimension_numbers<[1], [0], [0], [1], [0, 0, 1, 1], [], []>} : vector<64x32xbf16>, vector<32x8xbf16>, vector<64x8xf32> -> vector<64x8xf32>
    %43 = arith.addf %38, %42 : vector<64x8xf32>
    %c0_44 = arith.constant 0 : index
    %c0_45 = arith.constant 0 : index
    %44 = vector.load %arg2[%c0_44, %c0_45] : memref<64x1xf32, #tpu.memory_space<vmem>>, vector<64x1xf32>
    %45 = vector.broadcast %44 : vector<64x1xf32> to vector<64x8xf32>
    %46 = arith.addf %43, %45 : vector<64x8xf32>
    %cst_46 = arith.constant 0.000000e+00 : f32
    %47 = vector.broadcast %cst_46 : f32 to vector<64x8xf32>
    %48 = arith.maximumf %46, %47 : vector<64x8xf32>
    %49 = arith.truncf %48 : vector<64x8xf32> to vector<64x8xbf16>
    %c0_47 = arith.constant 0 : index
    %c0_48 = arith.constant 0 : index
    %50 = vector.load %arg12[%c0_47, %c0_48] : memref<64x8xbf16, #tpu.memory_space<vmem>>, vector<64x8xbf16>
    tpu.vector_store %arg12[%c0_47, %c0_48], %49 {strides = array<i32>} : memref<64x8xbf16, #tpu.memory_space<vmem>>, vector<64x8xbf16>,
    return
  }
  func.func @transform_0(%arg0: i32) -> (i32, i32, i32) {
    %c0_i32 = arith.constant 0 : i32
    %c0_i32_0 = arith.constant 0 : i32
    %c0_i32_1 = arith.constant 0 : i32
    %c0_i32_2 = arith.constant 0 : i32
    return %c0_i32, %c0_i32_0, %c0_i32_1 : i32, i32, i32
  }
  func.func @transform_1(%arg0: i32) -> (i32, i32) {
    %c0_i32 = arith.constant 0 : i32
    %c0_i32_0 = arith.constant 0 : i32
    %c0_i32_1 = arith.constant 0 : i32
    return %c0_i32, %c0_i32_0 : i32, i32
  }
  func.func @transform_2(%arg0: i32) -> (i32, i32) {
    %c0_i32 = arith.constant 0 : i32
    %c0_i32_0 = arith.constant 0 : i32
    return %c0_i32, %arg0 : i32, i32
  }
  func.func @transform_3(%arg0: i32) -> (i32, i32) {
    %c0_i32 = arith.constant 0 : i32
    %c0_i32_0 = arith.constant 0 : i32
    return %c0_i32, %arg0 : i32, i32
  }
  func.func @transform_4(%arg0: i32) -> (i32, i32) {
    %c0_i32 = arith.constant 0 : i32
    %c0_i32_0 = arith.constant 0 : i32
    return %c0_i32, %arg0 : i32, i32
  }
  func.func @transform_5(%arg0: i32) -> (i32, i32) {
    %c0_i32 = arith.constant 0 : i32
    %c0_i32_0 = arith.constant 0 : i32
    return %c0_i32, %arg0 : i32, i32
  }
  func.func @transform_6(%arg0: i32) -> (i32, i32) {
    %c0_i32 = arith.constant 0 : i32
    %c0_i32_0 = arith.constant 0 : i32
    return %c0_i32, %arg0 : i32, i32
  }
  func.func @transform_7(%arg0: i32) -> (i32, i32) {
    %c0_i32 = arith.constant 0 : i32
    %c0_i32_0 = arith.constant 0 : i32
    return %c0_i32, %arg0 : i32, i32
  }
  func.func @transform_8(%arg0: i32) -> (i32, i32) {
    %c0_i32 = arith.constant 0 : i32
    %c0_i32_0 = arith.constant 0 : i32
    return %c0_i32, %arg0 : i32, i32
  }
  func.func @transform_9(%arg0: i32) -> (i32, i32) {
    %c0_i32 = arith.constant 0 : i32
    %c0_i32_0 = arith.constant 0 : i32
    return %c0_i32, %arg0 : i32, i32
  }
  func.func @transform_10(%arg0: i32) -> (i32, i32) {
    %c0_i32 = arith.constant 0 : i32
    %c0_i32_0 = arith.constant 0 : i32
    return %c0_i32, %arg0 : i32, i32
  }
  func.func @transform_11(%arg0: i32) -> (i32, i32) {
    %c0_i32 = arith.constant 0 : i32
    %c0_i32_0 = arith.constant 0 : i32
    return %c0_i32, %arg0 : i32, i32
  }
}

module attributes {stable_mosaic.version = 11 : i64} {
  func.func @_conv_gemm_kernel(%arg0: i32, %arg1: memref<9x64x64xbf16, #tpu.memory_space<vmem>>, %arg2: memref<64x1xf32, #tpu.memory_space<vmem>>, %arg3: memref<64x8xbf16, #tpu.memory_space<vmem>>, %arg4: memref<64x8xbf16, #tpu.memory_space<vmem>>, %arg5: memref<64x8xbf16, #tpu.memory_space<vmem>>, %arg6: memref<64x8xbf16, #tpu.memory_space<vmem>>, %arg7: memref<64x8xbf16, #tpu.memory_space<vmem>>, %arg8: memref<64x8xbf16, #tpu.memory_space<vmem>>, %arg9: memref<64x8xbf16, #tpu.memory_space<vmem>>, %arg10: memref<64x8xbf16, #tpu.memory_space<vmem>>, %arg11: memref<64x8xbf16, #tpu.memory_space<vmem>>, %arg12: memref<64x8xbf16, #tpu.memory_space<vmem>>, %arg13: memref<64x8xbf16, #tpu.memory_space<vmem>>) attributes {dimension_semantics = [#tpu.dimension_semantics<parallel>], iteration_bounds = array<i64: 1>, scalar_prefetch = 0 : i64, scratch_operands = 0 : i64, tpu.core_type = #tpu.core_type<tc>, window_params = [{pipeline_mode = #tpu.pipeline_mode<synchronous>, transform_indices = @transform_0, window_bounds = array<i64: 9, 64, 64>}, {pipeline_mode = #tpu.pipeline_mode<synchronous>, transform_indices = @transform_1, window_bounds = array<i64: 64, 1>}, {transform_indices = @transform_2, window_bounds = array<i64: 64, 8>}, {transform_indices = @transform_3, window_bounds = array<i64: 64, 8>}, {transform_indices = @transform_4, window_bounds = array<i64: 64, 8>}, {transform_indices = @transform_5, window_bounds = array<i64: 64, 8>}, {transform_indices = @transform_6, window_bounds = array<i64: 64, 8>}, {transform_indices = @transform_7, window_bounds = array<i64: 64, 8>}, {transform_indices = @transform_8, window_bounds = array<i64: 64, 8>}, {transform_indices = @transform_9, window_bounds = array<i64: 64, 8>}, {transform_indices = @transform_10, window_bounds = array<i64: 64, 8>}, {transform_indices = @transform_11, window_bounds = array<i64: 64, 8>}, {transform_indices = @transform_12, window_bounds = array<i64: 64, 8>}]} {
    %c0 = arith.constant 0 : index
    %c0_0 = arith.constant 0 : index
    %c0_1 = arith.constant 0 : index
    %0 = vector.load %arg1[%c0, %c0_0, %c0_1] : memref<9x64x64xbf16, #tpu.memory_space<vmem>>, vector<1x64x64xbf16>
    %1 = vector.shape_cast %0 : vector<1x64x64xbf16> to vector<64x64xbf16>
    %c0_2 = arith.constant 0 : index
    %c0_3 = arith.constant 0 : index
    %2 = vector.load %arg4[%c0_2, %c0_3] : memref<64x8xbf16, #tpu.memory_space<vmem>>, vector<64x8xbf16>
    %cst = arith.constant dense<0.000000e+00> : vector<64x8xf32>
    %3 = tpu.matmul %1, %2, %cst {dimension_numbers = #tpu.dot_dimension_numbers<[1], [0], [0], [1], [0, 0, 1, 1], [], []>} : vector<64x64xbf16>, vector<64x8xbf16>, vector<64x8xf32> -> vector<64x8xf32>
    %c1 = arith.constant 1 : index
    %c0_4 = arith.constant 0 : index
    %c0_5 = arith.constant 0 : index
    %4 = vector.load %arg1[%c1, %c0_4, %c0_5] : memref<9x64x64xbf16, #tpu.memory_space<vmem>>, vector<1x64x64xbf16>
    %5 = vector.shape_cast %4 : vector<1x64x64xbf16> to vector<64x64xbf16>
    %c0_6 = arith.constant 0 : index
    %c0_7 = arith.constant 0 : index
    %6 = vector.load %arg5[%c0_6, %c0_7] : memref<64x8xbf16, #tpu.memory_space<vmem>>, vector<64x8xbf16>
    %cst_8 = arith.constant dense<0.000000e+00> : vector<64x8xf32>
    %7 = tpu.matmul %5, %6, %cst_8 {dimension_numbers = #tpu.dot_dimension_numbers<[1], [0], [0], [1], [0, 0, 1, 1], [], []>} : vector<64x64xbf16>, vector<64x8xbf16>, vector<64x8xf32> -> vector<64x8xf32>
    %8 = arith.addf %3, %7 : vector<64x8xf32>
    %c2 = arith.constant 2 : index
    %c0_9 = arith.constant 0 : index
    %c0_10 = arith.constant 0 : index
    %9 = vector.load %arg1[%c2, %c0_9, %c0_10] : memref<9x64x64xbf16, #tpu.memory_space<vmem>>, vector<1x64x64xbf16>
    %10 = vector.shape_cast %9 : vector<1x64x64xbf16> to vector<64x64xbf16>
    %c0_11 = arith.constant 0 : index
    %c0_12 = arith.constant 0 : index
    %11 = vector.load %arg6[%c0_11, %c0_12] : memref<64x8xbf16, #tpu.memory_space<vmem>>, vector<64x8xbf16>
    %cst_13 = arith.constant dense<0.000000e+00> : vector<64x8xf32>
    %12 = tpu.matmul %10, %11, %cst_13 {dimension_numbers = #tpu.dot_dimension_numbers<[1], [0], [0], [1], [0, 0, 1, 1], [], []>} : vector<64x64xbf16>, vector<64x8xbf16>, vector<64x8xf32> -> vector<64x8xf32>
    %13 = arith.addf %8, %12 : vector<64x8xf32>
    %c3 = arith.constant 3 : index
    %c0_14 = arith.constant 0 : index
    %c0_15 = arith.constant 0 : index
    %14 = vector.load %arg1[%c3, %c0_14, %c0_15] : memref<9x64x64xbf16, #tpu.memory_space<vmem>>, vector<1x64x64xbf16>
    %15 = vector.shape_cast %14 : vector<1x64x64xbf16> to vector<64x64xbf16>
    %c0_16 = arith.constant 0 : index
    %c0_17 = arith.constant 0 : index
    %16 = vector.load %arg7[%c0_16, %c0_17] : memref<64x8xbf16, #tpu.memory_space<vmem>>, vector<64x8xbf16>
    %cst_18 = arith.constant dense<0.000000e+00> : vector<64x8xf32>
    %17 = tpu.matmul %15, %16, %cst_18 {dimension_numbers = #tpu.dot_dimension_numbers<[1], [0], [0], [1], [0, 0, 1, 1], [], []>} : vector<64x64xbf16>, vector<64x8xbf16>, vector<64x8xf32> -> vector<64x8xf32>
    %18 = arith.addf %13, %17 : vector<64x8xf32>
    %c4 = arith.constant 4 : index
    %c0_19 = arith.constant 0 : index
    %c0_20 = arith.constant 0 : index
    %19 = vector.load %arg1[%c4, %c0_19, %c0_20] : memref<9x64x64xbf16, #tpu.memory_space<vmem>>, vector<1x64x64xbf16>
    %20 = vector.shape_cast %19 : vector<1x64x64xbf16> to vector<64x64xbf16>
    %c0_21 = arith.constant 0 : index
    %c0_22 = arith.constant 0 : index
    %21 = vector.load %arg8[%c0_21, %c0_22] : memref<64x8xbf16, #tpu.memory_space<vmem>>, vector<64x8xbf16>
    %cst_23 = arith.constant dense<0.000000e+00> : vector<64x8xf32>
    %22 = tpu.matmul %20, %21, %cst_23 {dimension_numbers = #tpu.dot_dimension_numbers<[1], [0], [0], [1], [0, 0, 1, 1], [], []>} : vector<64x64xbf16>, vector<64x8xbf16>, vector<64x8xf32> -> vector<64x8xf32>
    %23 = arith.addf %18, %22 : vector<64x8xf32>
    %c5 = arith.constant 5 : index
    %c0_24 = arith.constant 0 : index
    %c0_25 = arith.constant 0 : index
    %24 = vector.load %arg1[%c5, %c0_24, %c0_25] : memref<9x64x64xbf16, #tpu.memory_space<vmem>>, vector<1x64x64xbf16>
    %25 = vector.shape_cast %24 : vector<1x64x64xbf16> to vector<64x64xbf16>
    %c0_26 = arith.constant 0 : index
    %c0_27 = arith.constant 0 : index
    %26 = vector.load %arg9[%c0_26, %c0_27] : memref<64x8xbf16, #tpu.memory_space<vmem>>, vector<64x8xbf16>
    %cst_28 = arith.constant dense<0.000000e+00> : vector<64x8xf32>
    %27 = tpu.matmul %25, %26, %cst_28 {dimension_numbers = #tpu.dot_dimension_numbers<[1], [0], [0], [1], [0, 0, 1, 1], [], []>} : vector<64x64xbf16>, vector<64x8xbf16>, vector<64x8xf32> -> vector<64x8xf32>
    %28 = arith.addf %23, %27 : vector<64x8xf32>
    %c6 = arith.constant 6 : index
    %c0_29 = arith.constant 0 : index
    %c0_30 = arith.constant 0 : index
    %29 = vector.load %arg1[%c6, %c0_29, %c0_30] : memref<9x64x64xbf16, #tpu.memory_space<vmem>>, vector<1x64x64xbf16>
    %30 = vector.shape_cast %29 : vector<1x64x64xbf16> to vector<64x64xbf16>
    %c0_31 = arith.constant 0 : index
    %c0_32 = arith.constant 0 : index
    %31 = vector.load %arg10[%c0_31, %c0_32] : memref<64x8xbf16, #tpu.memory_space<vmem>>, vector<64x8xbf16>
    %cst_33 = arith.constant dense<0.000000e+00> : vector<64x8xf32>
    %32 = tpu.matmul %30, %31, %cst_33 {dimension_numbers = #tpu.dot_dimension_numbers<[1], [0], [0], [1], [0, 0, 1, 1], [], []>} : vector<64x64xbf16>, vector<64x8xbf16>, vector<64x8xf32> -> vector<64x8xf32>
    %33 = arith.addf %28, %32 : vector<64x8xf32>
    %c7 = arith.constant 7 : index
    %c0_34 = arith.constant 0 : index
    %c0_35 = arith.constant 0 : index
    %34 = vector.load %arg1[%c7, %c0_34, %c0_35] : memref<9x64x64xbf16, #tpu.memory_space<vmem>>, vector<1x64x64xbf16>
    %35 = vector.shape_cast %34 : vector<1x64x64xbf16> to vector<64x64xbf16>
    %c0_36 = arith.constant 0 : index
    %c0_37 = arith.constant 0 : index
    %36 = vector.load %arg11[%c0_36, %c0_37] : memref<64x8xbf16, #tpu.memory_space<vmem>>, vector<64x8xbf16>
    %cst_38 = arith.constant dense<0.000000e+00> : vector<64x8xf32>
    %37 = tpu.matmul %35, %36, %cst_38 {dimension_numbers = #tpu.dot_dimension_numbers<[1], [0], [0], [1], [0, 0, 1, 1], [], []>} : vector<64x64xbf16>, vector<64x8xbf16>, vector<64x8xf32> -> vector<64x8xf32>
    %38 = arith.addf %33, %37 : vector<64x8xf32>
    %c8 = arith.constant 8 : index
    %c0_39 = arith.constant 0 : index
    %c0_40 = arith.constant 0 : index
    %39 = vector.load %arg1[%c8, %c0_39, %c0_40] : memref<9x64x64xbf16, #tpu.memory_space<vmem>>, vector<1x64x64xbf16>
    %40 = vector.shape_cast %39 : vector<1x64x64xbf16> to vector<64x64xbf16>
    %c0_41 = arith.constant 0 : index
    %c0_42 = arith.constant 0 : index
    %41 = vector.load %arg12[%c0_41, %c0_42] : memref<64x8xbf16, #tpu.memory_space<vmem>>, vector<64x8xbf16>
    %cst_43 = arith.constant dense<0.000000e+00> : vector<64x8xf32>
    %42 = tpu.matmul %40, %41, %cst_43 {dimension_numbers = #tpu.dot_dimension_numbers<[1], [0], [0], [1], [0, 0, 1, 1], [], []>} : vector<64x64xbf16>, vector<64x8xbf16>, vector<64x8xf32> -> vector<64x8xf32>
    %43 = arith.addf %38, %42 : vector<64x8xf32>
    %c0_44 = arith.constant 0 : index
    %c0_45 = arith.constant 0 : index
    %44 = vector.load %arg2[%c0_44, %c0_45] : memref<64x1xf32, #tpu.memory_space<vmem>>, vector<64x1xf32>
    %45 = vector.broadcast %44 : vector<64x1xf32> to vector<64x8xf32>
    %46 = arith.addf %43, %45 : vector<64x8xf32>
    %c0_46 = arith.constant 0 : index
    %c0_47 = arith.constant 0 : index
    %47 = vector.load %arg3[%c0_46, %c0_47] : memref<64x8xbf16, #tpu.memory_space<vmem>>, vector<64x8xbf16>
    %48 = arith.extf %47 : vector<64x8xbf16> to vector<64x8xf32>
    %49 = arith.addf %46, %48 : vector<64x8xf32>
    %cst_48 = arith.constant 0.000000e+00 : f32
    %50 = vector.broadcast %cst_48 : f32 to vector<64x8xf32>
    %51 = arith.maximumf %49, %50 : vector<64x8xf32>
    %52 = arith.truncf %51 : vector<64x8xf32> to vector<64x8xbf16>
    %c0_49 = arith.constant 0 : index
    %c0_50 = arith.constant 0 : index
    %53 = vector.load %arg13[%c0_49, %c0_50] : memref<64x8xbf16, #tpu.memory_space<vmem>>, vector<64x8xbf16>
    tpu.vector_store %arg13[%c0_49, %c0_50], %52 {strides = array<i32>} : memref<64x8xbf16, #tpu.memory_space<vmem>>, vector<64x8xbf16>,
    return
  }
  func.func @transform_0(%arg0: i32) -> (i32, i32, i32) {
    %c0_i32 = arith.constant 0 : i32
    %c0_i32_0 = arith.constant 0 : i32
    %c0_i32_1 = arith.constant 0 : i32
    %c0_i32_2 = arith.constant 0 : i32
    return %c0_i32, %c0_i32_0, %c0_i32_1 : i32, i32, i32
  }
  func.func @transform_1(%arg0: i32) -> (i32, i32) {
    %c0_i32 = arith.constant 0 : i32
    %c0_i32_0 = arith.constant 0 : i32
    %c0_i32_1 = arith.constant 0 : i32
    return %c0_i32, %c0_i32_0 : i32, i32
  }
  func.func @transform_2(%arg0: i32) -> (i32, i32) {
    %c0_i32 = arith.constant 0 : i32
    %c0_i32_0 = arith.constant 0 : i32
    return %c0_i32, %arg0 : i32, i32
  }
  func.func @transform_3(%arg0: i32) -> (i32, i32) {
    %c0_i32 = arith.constant 0 : i32
    %c0_i32_0 = arith.constant 0 : i32
    return %c0_i32, %arg0 : i32, i32
  }
  func.func @transform_4(%arg0: i32) -> (i32, i32) {
    %c0_i32 = arith.constant 0 : i32
    %c0_i32_0 = arith.constant 0 : i32
    return %c0_i32, %arg0 : i32, i32
  }
  func.func @transform_5(%arg0: i32) -> (i32, i32) {
    %c0_i32 = arith.constant 0 : i32
    %c0_i32_0 = arith.constant 0 : i32
    return %c0_i32, %arg0 : i32, i32
  }
  func.func @transform_6(%arg0: i32) -> (i32, i32) {
    %c0_i32 = arith.constant 0 : i32
    %c0_i32_0 = arith.constant 0 : i32
    return %c0_i32, %arg0 : i32, i32
  }
  func.func @transform_7(%arg0: i32) -> (i32, i32) {
    %c0_i32 = arith.constant 0 : i32
    %c0_i32_0 = arith.constant 0 : i32
    return %c0_i32, %arg0 : i32, i32
  }
  func.func @transform_8(%arg0: i32) -> (i32, i32) {
    %c0_i32 = arith.constant 0 : i32
    %c0_i32_0 = arith.constant 0 : i32
    return %c0_i32, %arg0 : i32, i32
  }
  func.func @transform_9(%arg0: i32) -> (i32, i32) {
    %c0_i32 = arith.constant 0 : i32
    %c0_i32_0 = arith.constant 0 : i32
    return %c0_i32, %arg0 : i32, i32
  }
  func.func @transform_10(%arg0: i32) -> (i32, i32) {
    %c0_i32 = arith.constant 0 : i32
    %c0_i32_0 = arith.constant 0 : i32
    return %c0_i32, %arg0 : i32, i32
  }
  func.func @transform_11(%arg0: i32) -> (i32, i32) {
    %c0_i32 = arith.constant 0 : i32
    %c0_i32_0 = arith.constant 0 : i32
    return %c0_i32, %arg0 : i32, i32
  }
  func.func @transform_12(%arg0: i32) -> (i32, i32) {
    %c0_i32 = arith.constant 0 : i32
    %c0_i32_0 = arith.constant 0 : i32
    return %c0_i32, %arg0 : i32, i32
  }
}

module attributes {stable_mosaic.version = 11 : i64} {
  func.func @_conv_gemm_kernel(%arg0: i32, %arg1: memref<9x64x64xbf16, #tpu.memory_space<vmem>>, %arg2: memref<64x1xf32, #tpu.memory_space<vmem>>, %arg3: memref<64x8xbf16, #tpu.memory_space<vmem>>, %arg4: memref<64x8xbf16, #tpu.memory_space<vmem>>, %arg5: memref<64x8xbf16, #tpu.memory_space<vmem>>, %arg6: memref<64x8xbf16, #tpu.memory_space<vmem>>, %arg7: memref<64x8xbf16, #tpu.memory_space<vmem>>, %arg8: memref<64x8xbf16, #tpu.memory_space<vmem>>, %arg9: memref<64x8xbf16, #tpu.memory_space<vmem>>, %arg10: memref<64x8xbf16, #tpu.memory_space<vmem>>, %arg11: memref<64x8xbf16, #tpu.memory_space<vmem>>, %arg12: memref<64x8xbf16, #tpu.memory_space<vmem>>) attributes {dimension_semantics = [#tpu.dimension_semantics<parallel>], iteration_bounds = array<i64: 1>, scalar_prefetch = 0 : i64, scratch_operands = 0 : i64, tpu.core_type = #tpu.core_type<tc>, window_params = [{pipeline_mode = #tpu.pipeline_mode<synchronous>, transform_indices = @transform_0, window_bounds = array<i64: 9, 64, 64>}, {pipeline_mode = #tpu.pipeline_mode<synchronous>, transform_indices = @transform_1, window_bounds = array<i64: 64, 1>}, {transform_indices = @transform_2, window_bounds = array<i64: 64, 8>}, {transform_indices = @transform_3, window_bounds = array<i64: 64, 8>}, {transform_indices = @transform_4, window_bounds = array<i64: 64, 8>}, {transform_indices = @transform_5, window_bounds = array<i64: 64, 8>}, {transform_indices = @transform_6, window_bounds = array<i64: 64, 8>}, {transform_indices = @transform_7, window_bounds = array<i64: 64, 8>}, {transform_indices = @transform_8, window_bounds = array<i64: 64, 8>}, {transform_indices = @transform_9, window_bounds = array<i64: 64, 8>}, {transform_indices = @transform_10, window_bounds = array<i64: 64, 8>}, {transform_indices = @transform_11, window_bounds = array<i64: 64, 8>}]} {
    %c0 = arith.constant 0 : index
    %c0_0 = arith.constant 0 : index
    %c0_1 = arith.constant 0 : index
    %0 = vector.load %arg1[%c0, %c0_0, %c0_1] : memref<9x64x64xbf16, #tpu.memory_space<vmem>>, vector<1x64x64xbf16>
    %1 = vector.shape_cast %0 : vector<1x64x64xbf16> to vector<64x64xbf16>
    %c0_2 = arith.constant 0 : index
    %c0_3 = arith.constant 0 : index
    %2 = vector.load %arg3[%c0_2, %c0_3] : memref<64x8xbf16, #tpu.memory_space<vmem>>, vector<64x8xbf16>
    %cst = arith.constant dense<0.000000e+00> : vector<64x8xf32>
    %3 = tpu.matmul %1, %2, %cst {dimension_numbers = #tpu.dot_dimension_numbers<[1], [0], [0], [1], [0, 0, 1, 1], [], []>} : vector<64x64xbf16>, vector<64x8xbf16>, vector<64x8xf32> -> vector<64x8xf32>
    %c1 = arith.constant 1 : index
    %c0_4 = arith.constant 0 : index
    %c0_5 = arith.constant 0 : index
    %4 = vector.load %arg1[%c1, %c0_4, %c0_5] : memref<9x64x64xbf16, #tpu.memory_space<vmem>>, vector<1x64x64xbf16>
    %5 = vector.shape_cast %4 : vector<1x64x64xbf16> to vector<64x64xbf16>
    %c0_6 = arith.constant 0 : index
    %c0_7 = arith.constant 0 : index
    %6 = vector.load %arg4[%c0_6, %c0_7] : memref<64x8xbf16, #tpu.memory_space<vmem>>, vector<64x8xbf16>
    %cst_8 = arith.constant dense<0.000000e+00> : vector<64x8xf32>
    %7 = tpu.matmul %5, %6, %cst_8 {dimension_numbers = #tpu.dot_dimension_numbers<[1], [0], [0], [1], [0, 0, 1, 1], [], []>} : vector<64x64xbf16>, vector<64x8xbf16>, vector<64x8xf32> -> vector<64x8xf32>
    %8 = arith.addf %3, %7 : vector<64x8xf32>
    %c2 = arith.constant 2 : index
    %c0_9 = arith.constant 0 : index
    %c0_10 = arith.constant 0 : index
    %9 = vector.load %arg1[%c2, %c0_9, %c0_10] : memref<9x64x64xbf16, #tpu.memory_space<vmem>>, vector<1x64x64xbf16>
    %10 = vector.shape_cast %9 : vector<1x64x64xbf16> to vector<64x64xbf16>
    %c0_11 = arith.constant 0 : index
    %c0_12 = arith.constant 0 : index
    %11 = vector.load %arg5[%c0_11, %c0_12] : memref<64x8xbf16, #tpu.memory_space<vmem>>, vector<64x8xbf16>
    %cst_13 = arith.constant dense<0.000000e+00> : vector<64x8xf32>
    %12 = tpu.matmul %10, %11, %cst_13 {dimension_numbers = #tpu.dot_dimension_numbers<[1], [0], [0], [1], [0, 0, 1, 1], [], []>} : vector<64x64xbf16>, vector<64x8xbf16>, vector<64x8xf32> -> vector<64x8xf32>
    %13 = arith.addf %8, %12 : vector<64x8xf32>
    %c3 = arith.constant 3 : index
    %c0_14 = arith.constant 0 : index
    %c0_15 = arith.constant 0 : index
    %14 = vector.load %arg1[%c3, %c0_14, %c0_15] : memref<9x64x64xbf16, #tpu.memory_space<vmem>>, vector<1x64x64xbf16>
    %15 = vector.shape_cast %14 : vector<1x64x64xbf16> to vector<64x64xbf16>
    %c0_16 = arith.constant 0 : index
    %c0_17 = arith.constant 0 : index
    %16 = vector.load %arg6[%c0_16, %c0_17] : memref<64x8xbf16, #tpu.memory_space<vmem>>, vector<64x8xbf16>
    %cst_18 = arith.constant dense<0.000000e+00> : vector<64x8xf32>
    %17 = tpu.matmul %15, %16, %cst_18 {dimension_numbers = #tpu.dot_dimension_numbers<[1], [0], [0], [1], [0, 0, 1, 1], [], []>} : vector<64x64xbf16>, vector<64x8xbf16>, vector<64x8xf32> -> vector<64x8xf32>
    %18 = arith.addf %13, %17 : vector<64x8xf32>
    %c4 = arith.constant 4 : index
    %c0_19 = arith.constant 0 : index
    %c0_20 = arith.constant 0 : index
    %19 = vector.load %arg1[%c4, %c0_19, %c0_20] : memref<9x64x64xbf16, #tpu.memory_space<vmem>>, vector<1x64x64xbf16>
    %20 = vector.shape_cast %19 : vector<1x64x64xbf16> to vector<64x64xbf16>
    %c0_21 = arith.constant 0 : index
    %c0_22 = arith.constant 0 : index
    %21 = vector.load %arg7[%c0_21, %c0_22] : memref<64x8xbf16, #tpu.memory_space<vmem>>, vector<64x8xbf16>
    %cst_23 = arith.constant dense<0.000000e+00> : vector<64x8xf32>
    %22 = tpu.matmul %20, %21, %cst_23 {dimension_numbers = #tpu.dot_dimension_numbers<[1], [0], [0], [1], [0, 0, 1, 1], [], []>} : vector<64x64xbf16>, vector<64x8xbf16>, vector<64x8xf32> -> vector<64x8xf32>
    %23 = arith.addf %18, %22 : vector<64x8xf32>
    %c5 = arith.constant 5 : index
    %c0_24 = arith.constant 0 : index
    %c0_25 = arith.constant 0 : index
    %24 = vector.load %arg1[%c5, %c0_24, %c0_25] : memref<9x64x64xbf16, #tpu.memory_space<vmem>>, vector<1x64x64xbf16>
    %25 = vector.shape_cast %24 : vector<1x64x64xbf16> to vector<64x64xbf16>
    %c0_26 = arith.constant 0 : index
    %c0_27 = arith.constant 0 : index
    %26 = vector.load %arg8[%c0_26, %c0_27] : memref<64x8xbf16, #tpu.memory_space<vmem>>, vector<64x8xbf16>
    %cst_28 = arith.constant dense<0.000000e+00> : vector<64x8xf32>
    %27 = tpu.matmul %25, %26, %cst_28 {dimension_numbers = #tpu.dot_dimension_numbers<[1], [0], [0], [1], [0, 0, 1, 1], [], []>} : vector<64x64xbf16>, vector<64x8xbf16>, vector<64x8xf32> -> vector<64x8xf32>
    %28 = arith.addf %23, %27 : vector<64x8xf32>
    %c6 = arith.constant 6 : index
    %c0_29 = arith.constant 0 : index
    %c0_30 = arith.constant 0 : index
    %29 = vector.load %arg1[%c6, %c0_29, %c0_30] : memref<9x64x64xbf16, #tpu.memory_space<vmem>>, vector<1x64x64xbf16>
    %30 = vector.shape_cast %29 : vector<1x64x64xbf16> to vector<64x64xbf16>
    %c0_31 = arith.constant 0 : index
    %c0_32 = arith.constant 0 : index
    %31 = vector.load %arg9[%c0_31, %c0_32] : memref<64x8xbf16, #tpu.memory_space<vmem>>, vector<64x8xbf16>
    %cst_33 = arith.constant dense<0.000000e+00> : vector<64x8xf32>
    %32 = tpu.matmul %30, %31, %cst_33 {dimension_numbers = #tpu.dot_dimension_numbers<[1], [0], [0], [1], [0, 0, 1, 1], [], []>} : vector<64x64xbf16>, vector<64x8xbf16>, vector<64x8xf32> -> vector<64x8xf32>
    %33 = arith.addf %28, %32 : vector<64x8xf32>
    %c7 = arith.constant 7 : index
    %c0_34 = arith.constant 0 : index
    %c0_35 = arith.constant 0 : index
    %34 = vector.load %arg1[%c7, %c0_34, %c0_35] : memref<9x64x64xbf16, #tpu.memory_space<vmem>>, vector<1x64x64xbf16>
    %35 = vector.shape_cast %34 : vector<1x64x64xbf16> to vector<64x64xbf16>
    %c0_36 = arith.constant 0 : index
    %c0_37 = arith.constant 0 : index
    %36 = vector.load %arg10[%c0_36, %c0_37] : memref<64x8xbf16, #tpu.memory_space<vmem>>, vector<64x8xbf16>
    %cst_38 = arith.constant dense<0.000000e+00> : vector<64x8xf32>
    %37 = tpu.matmul %35, %36, %cst_38 {dimension_numbers = #tpu.dot_dimension_numbers<[1], [0], [0], [1], [0, 0, 1, 1], [], []>} : vector<64x64xbf16>, vector<64x8xbf16>, vector<64x8xf32> -> vector<64x8xf32>
    %38 = arith.addf %33, %37 : vector<64x8xf32>
    %c8 = arith.constant 8 : index
    %c0_39 = arith.constant 0 : index
    %c0_40 = arith.constant 0 : index
    %39 = vector.load %arg1[%c8, %c0_39, %c0_40] : memref<9x64x64xbf16, #tpu.memory_space<vmem>>, vector<1x64x64xbf16>
    %40 = vector.shape_cast %39 : vector<1x64x64xbf16> to vector<64x64xbf16>
    %c0_41 = arith.constant 0 : index
    %c0_42 = arith.constant 0 : index
    %41 = vector.load %arg11[%c0_41, %c0_42] : memref<64x8xbf16, #tpu.memory_space<vmem>>, vector<64x8xbf16>
    %cst_43 = arith.constant dense<0.000000e+00> : vector<64x8xf32>
    %42 = tpu.matmul %40, %41, %cst_43 {dimension_numbers = #tpu.dot_dimension_numbers<[1], [0], [0], [1], [0, 0, 1, 1], [], []>} : vector<64x64xbf16>, vector<64x8xbf16>, vector<64x8xf32> -> vector<64x8xf32>
    %43 = arith.addf %38, %42 : vector<64x8xf32>
    %c0_44 = arith.constant 0 : index
    %c0_45 = arith.constant 0 : index
    %44 = vector.load %arg2[%c0_44, %c0_45] : memref<64x1xf32, #tpu.memory_space<vmem>>, vector<64x1xf32>
    %45 = vector.broadcast %44 : vector<64x1xf32> to vector<64x8xf32>
    %46 = arith.addf %43, %45 : vector<64x8xf32>
    %cst_46 = arith.constant 0.000000e+00 : f32
    %47 = vector.broadcast %cst_46 : f32 to vector<64x8xf32>
    %48 = arith.maximumf %46, %47 : vector<64x8xf32>
    %49 = arith.truncf %48 : vector<64x8xf32> to vector<64x8xbf16>
    %c0_47 = arith.constant 0 : index
    %c0_48 = arith.constant 0 : index
    %50 = vector.load %arg12[%c0_47, %c0_48] : memref<64x8xbf16, #tpu.memory_space<vmem>>, vector<64x8xbf16>
    tpu.vector_store %arg12[%c0_47, %c0_48], %49 {strides = array<i32>} : memref<64x8xbf16, #tpu.memory_space<vmem>>, vector<64x8xbf16>,
    return
  }
  func.func @transform_0(%arg0: i32) -> (i32, i32, i32) {
    %c0_i32 = arith.constant 0 : i32
    %c0_i32_0 = arith.constant 0 : i32
    %c0_i32_1 = arith.constant 0 : i32
    %c0_i32_2 = arith.constant 0 : i32
    return %c0_i32, %c0_i32_0, %c0_i32_1 : i32, i32, i32
  }
  func.func @transform_1(%arg0: i32) -> (i32, i32) {
    %c0_i32 = arith.constant 0 : i32
    %c0_i32_0 = arith.constant 0 : i32
    %c0_i32_1 = arith.constant 0 : i32
    return %c0_i32, %c0_i32_0 : i32, i32
  }
  func.func @transform_2(%arg0: i32) -> (i32, i32) {
    %c0_i32 = arith.constant 0 : i32
    %c0_i32_0 = arith.constant 0 : i32
    return %c0_i32, %arg0 : i32, i32
  }
  func.func @transform_3(%arg0: i32) -> (i32, i32) {
    %c0_i32 = arith.constant 0 : i32
    %c0_i32_0 = arith.constant 0 : i32
    return %c0_i32, %arg0 : i32, i32
  }
  func.func @transform_4(%arg0: i32) -> (i32, i32) {
    %c0_i32 = arith.constant 0 : i32
    %c0_i32_0 = arith.constant 0 : i32
    return %c0_i32, %arg0 : i32, i32
  }
  func.func @transform_5(%arg0: i32) -> (i32, i32) {
    %c0_i32 = arith.constant 0 : i32
    %c0_i32_0 = arith.constant 0 : i32
    return %c0_i32, %arg0 : i32, i32
  }
  func.func @transform_6(%arg0: i32) -> (i32, i32) {
    %c0_i32 = arith.constant 0 : i32
    %c0_i32_0 = arith.constant 0 : i32
    return %c0_i32, %arg0 : i32, i32
  }
  func.func @transform_7(%arg0: i32) -> (i32, i32) {
    %c0_i32 = arith.constant 0 : i32
    %c0_i32_0 = arith.constant 0 : i32
    return %c0_i32, %arg0 : i32, i32
  }
  func.func @transform_8(%arg0: i32) -> (i32, i32) {
    %c0_i32 = arith.constant 0 : i32
    %c0_i32_0 = arith.constant 0 : i32
    return %c0_i32, %arg0 : i32, i32
  }
  func.func @transform_9(%arg0: i32) -> (i32, i32) {
    %c0_i32 = arith.constant 0 : i32
    %c0_i32_0 = arith.constant 0 : i32
    return %c0_i32, %arg0 : i32, i32
  }
  func.func @transform_10(%arg0: i32) -> (i32, i32) {
    %c0_i32 = arith.constant 0 : i32
    %c0_i32_0 = arith.constant 0 : i32
    return %c0_i32, %arg0 : i32, i32
  }
  func.func @transform_11(%arg0: i32) -> (i32, i32) {
    %c0_i32 = arith.constant 0 : i32
    %c0_i32_0 = arith.constant 0 : i32
    return %c0_i32, %arg0 : i32, i32
  }
}

module attributes {stable_mosaic.version = 11 : i64} {
  func.func @_conv_gemm_kernel(%arg0: i32, %arg1: memref<1x64x32xbf16, #tpu.memory_space<vmem>>, %arg2: memref<64x1xf32, #tpu.memory_space<vmem>>, %arg3: memref<32x8xbf16, #tpu.memory_space<vmem>>, %arg4: memref<64x8xbf16, #tpu.memory_space<vmem>>) attributes {dimension_semantics = [#tpu.dimension_semantics<parallel>], iteration_bounds = array<i64: 1>, scalar_prefetch = 0 : i64, scratch_operands = 0 : i64, tpu.core_type = #tpu.core_type<tc>, window_params = [{pipeline_mode = #tpu.pipeline_mode<synchronous>, transform_indices = @transform_0, window_bounds = array<i64: 1, 64, 32>}, {pipeline_mode = #tpu.pipeline_mode<synchronous>, transform_indices = @transform_1, window_bounds = array<i64: 64, 1>}, {transform_indices = @transform_2, window_bounds = array<i64: 32, 8>}, {transform_indices = @transform_3, window_bounds = array<i64: 64, 8>}]} {
    %c0 = arith.constant 0 : index
    %c0_0 = arith.constant 0 : index
    %c0_1 = arith.constant 0 : index
    %0 = vector.load %arg1[%c0, %c0_0, %c0_1] : memref<1x64x32xbf16, #tpu.memory_space<vmem>>, vector<1x64x32xbf16>
    %1 = vector.shape_cast %0 : vector<1x64x32xbf16> to vector<64x32xbf16>
    %c0_2 = arith.constant 0 : index
    %c0_3 = arith.constant 0 : index
    %2 = vector.load %arg3[%c0_2, %c0_3] : memref<32x8xbf16, #tpu.memory_space<vmem>>, vector<32x8xbf16>
    %cst = arith.constant dense<0.000000e+00> : vector<64x8xf32>
    %3 = tpu.matmul %1, %2, %cst {dimension_numbers = #tpu.dot_dimension_numbers<[1], [0], [0], [1], [0, 0, 1, 1], [], []>} : vector<64x32xbf16>, vector<32x8xbf16>, vector<64x8xf32> -> vector<64x8xf32>
    %c0_4 = arith.constant 0 : index
    %c0_5 = arith.constant 0 : index
    %4 = vector.load %arg2[%c0_4, %c0_5] : memref<64x1xf32, #tpu.memory_space<vmem>>, vector<64x1xf32>
    %5 = vector.broadcast %4 : vector<64x1xf32> to vector<64x8xf32>
    %6 = arith.addf %3, %5 : vector<64x8xf32>
    %7 = arith.truncf %6 : vector<64x8xf32> to vector<64x8xbf16>
    %c0_6 = arith.constant 0 : index
    %c0_7 = arith.constant 0 : index
    %8 = vector.load %arg4[%c0_6, %c0_7] : memref<64x8xbf16, #tpu.memory_space<vmem>>, vector<64x8xbf16>
    tpu.vector_store %arg4[%c0_6, %c0_7], %7 {strides = array<i32>} : memref<64x8xbf16, #tpu.memory_space<vmem>>, vector<64x8xbf16>,
    return
  }
  func.func @transform_0(%arg0: i32) -> (i32, i32, i32) {
    %c0_i32 = arith.constant 0 : i32
    %c0_i32_0 = arith.constant 0 : i32
    %c0_i32_1 = arith.constant 0 : i32
    %c0_i32_2 = arith.constant 0 : i32
    return %c0_i32, %c0_i32_0, %c0_i32_1 : i32, i32, i32
  }
  func.func @transform_1(%arg0: i32) -> (i32, i32) {
    %c0_i32 = arith.constant 0 : i32
    %c0_i32_0 = arith.constant 0 : i32
    %c0_i32_1 = arith.constant 0 : i32
    return %c0_i32, %c0_i32_0 : i32, i32
  }
  func.func @transform_2(%arg0: i32) -> (i32, i32) {
    %c0_i32 = arith.constant 0 : i32
    %c0_i32_0 = arith.constant 0 : i32
    return %c0_i32, %arg0 : i32, i32
  }
  func.func @transform_3(%arg0: i32) -> (i32, i32) {
    %c0_i32 = arith.constant 0 : i32
    %c0_i32_0 = arith.constant 0 : i32
    return %c0_i32, %arg0 : i32, i32
  }
}

module attributes {stable_mosaic.version = 11 : i64} {
  func.func @_conv_gemm_kernel(%arg0: i32, %arg1: memref<9x128x64xbf16, #tpu.memory_space<vmem>>, %arg2: memref<128x1xf32, #tpu.memory_space<vmem>>, %arg3: memref<64x2xbf16, #tpu.memory_space<vmem>>, %arg4: memref<64x2xbf16, #tpu.memory_space<vmem>>, %arg5: memref<64x2xbf16, #tpu.memory_space<vmem>>, %arg6: memref<64x2xbf16, #tpu.memory_space<vmem>>, %arg7: memref<64x2xbf16, #tpu.memory_space<vmem>>, %arg8: memref<64x2xbf16, #tpu.memory_space<vmem>>, %arg9: memref<64x2xbf16, #tpu.memory_space<vmem>>, %arg10: memref<64x2xbf16, #tpu.memory_space<vmem>>, %arg11: memref<64x2xbf16, #tpu.memory_space<vmem>>, %arg12: memref<128x2xbf16, #tpu.memory_space<vmem>>) attributes {dimension_semantics = [#tpu.dimension_semantics<parallel>], iteration_bounds = array<i64: 1>, scalar_prefetch = 0 : i64, scratch_operands = 0 : i64, tpu.core_type = #tpu.core_type<tc>, window_params = [{pipeline_mode = #tpu.pipeline_mode<synchronous>, transform_indices = @transform_0, window_bounds = array<i64: 9, 128, 64>}, {pipeline_mode = #tpu.pipeline_mode<synchronous>, transform_indices = @transform_1, window_bounds = array<i64: 128, 1>}, {transform_indices = @transform_2, window_bounds = array<i64: 64, 2>}, {transform_indices = @transform_3, window_bounds = array<i64: 64, 2>}, {transform_indices = @transform_4, window_bounds = array<i64: 64, 2>}, {transform_indices = @transform_5, window_bounds = array<i64: 64, 2>}, {transform_indices = @transform_6, window_bounds = array<i64: 64, 2>}, {transform_indices = @transform_7, window_bounds = array<i64: 64, 2>}, {transform_indices = @transform_8, window_bounds = array<i64: 64, 2>}, {transform_indices = @transform_9, window_bounds = array<i64: 64, 2>}, {transform_indices = @transform_10, window_bounds = array<i64: 64, 2>}, {transform_indices = @transform_11, window_bounds = array<i64: 128, 2>}]} {
    %c0 = arith.constant 0 : index
    %c0_0 = arith.constant 0 : index
    %c0_1 = arith.constant 0 : index
    %0 = vector.load %arg1[%c0, %c0_0, %c0_1] : memref<9x128x64xbf16, #tpu.memory_space<vmem>>, vector<1x128x64xbf16>
    %1 = vector.shape_cast %0 : vector<1x128x64xbf16> to vector<128x64xbf16>
    %c0_2 = arith.constant 0 : index
    %c0_3 = arith.constant 0 : index
    %2 = vector.load %arg3[%c0_2, %c0_3] : memref<64x2xbf16, #tpu.memory_space<vmem>>, vector<64x2xbf16>
    %cst = arith.constant dense<0.000000e+00> : vector<128x2xf32>
    %3 = tpu.matmul %1, %2, %cst {dimension_numbers = #tpu.dot_dimension_numbers<[1], [0], [0], [1], [0, 0, 1, 1], [], []>} : vector<128x64xbf16>, vector<64x2xbf16>, vector<128x2xf32> -> vector<128x2xf32>
    %c1 = arith.constant 1 : index
    %c0_4 = arith.constant 0 : index
    %c0_5 = arith.constant 0 : index
    %4 = vector.load %arg1[%c1, %c0_4, %c0_5] : memref<9x128x64xbf16, #tpu.memory_space<vmem>>, vector<1x128x64xbf16>
    %5 = vector.shape_cast %4 : vector<1x128x64xbf16> to vector<128x64xbf16>
    %c0_6 = arith.constant 0 : index
    %c0_7 = arith.constant 0 : index
    %6 = vector.load %arg4[%c0_6, %c0_7] : memref<64x2xbf16, #tpu.memory_space<vmem>>, vector<64x2xbf16>
    %cst_8 = arith.constant dense<0.000000e+00> : vector<128x2xf32>
    %7 = tpu.matmul %5, %6, %cst_8 {dimension_numbers = #tpu.dot_dimension_numbers<[1], [0], [0], [1], [0, 0, 1, 1], [], []>} : vector<128x64xbf16>, vector<64x2xbf16>, vector<128x2xf32> -> vector<128x2xf32>
    %8 = arith.addf %3, %7 : vector<128x2xf32>
    %c2 = arith.constant 2 : index
    %c0_9 = arith.constant 0 : index
    %c0_10 = arith.constant 0 : index
    %9 = vector.load %arg1[%c2, %c0_9, %c0_10] : memref<9x128x64xbf16, #tpu.memory_space<vmem>>, vector<1x128x64xbf16>
    %10 = vector.shape_cast %9 : vector<1x128x64xbf16> to vector<128x64xbf16>
    %c0_11 = arith.constant 0 : index
    %c0_12 = arith.constant 0 : index
    %11 = vector.load %arg5[%c0_11, %c0_12] : memref<64x2xbf16, #tpu.memory_space<vmem>>, vector<64x2xbf16>
    %cst_13 = arith.constant dense<0.000000e+00> : vector<128x2xf32>
    %12 = tpu.matmul %10, %11, %cst_13 {dimension_numbers = #tpu.dot_dimension_numbers<[1], [0], [0], [1], [0, 0, 1, 1], [], []>} : vector<128x64xbf16>, vector<64x2xbf16>, vector<128x2xf32> -> vector<128x2xf32>
    %13 = arith.addf %8, %12 : vector<128x2xf32>
    %c3 = arith.constant 3 : index
    %c0_14 = arith.constant 0 : index
    %c0_15 = arith.constant 0 : index
    %14 = vector.load %arg1[%c3, %c0_14, %c0_15] : memref<9x128x64xbf16, #tpu.memory_space<vmem>>, vector<1x128x64xbf16>
    %15 = vector.shape_cast %14 : vector<1x128x64xbf16> to vector<128x64xbf16>
    %c0_16 = arith.constant 0 : index
    %c0_17 = arith.constant 0 : index
    %16 = vector.load %arg6[%c0_16, %c0_17] : memref<64x2xbf16, #tpu.memory_space<vmem>>, vector<64x2xbf16>
    %cst_18 = arith.constant dense<0.000000e+00> : vector<128x2xf32>
    %17 = tpu.matmul %15, %16, %cst_18 {dimension_numbers = #tpu.dot_dimension_numbers<[1], [0], [0], [1], [0, 0, 1, 1], [], []>} : vector<128x64xbf16>, vector<64x2xbf16>, vector<128x2xf32> -> vector<128x2xf32>
    %18 = arith.addf %13, %17 : vector<128x2xf32>
    %c4 = arith.constant 4 : index
    %c0_19 = arith.constant 0 : index
    %c0_20 = arith.constant 0 : index
    %19 = vector.load %arg1[%c4, %c0_19, %c0_20] : memref<9x128x64xbf16, #tpu.memory_space<vmem>>, vector<1x128x64xbf16>
    %20 = vector.shape_cast %19 : vector<1x128x64xbf16> to vector<128x64xbf16>
    %c0_21 = arith.constant 0 : index
    %c0_22 = arith.constant 0 : index
    %21 = vector.load %arg7[%c0_21, %c0_22] : memref<64x2xbf16, #tpu.memory_space<vmem>>, vector<64x2xbf16>
    %cst_23 = arith.constant dense<0.000000e+00> : vector<128x2xf32>
    %22 = tpu.matmul %20, %21, %cst_23 {dimension_numbers = #tpu.dot_dimension_numbers<[1], [0], [0], [1], [0, 0, 1, 1], [], []>} : vector<128x64xbf16>, vector<64x2xbf16>, vector<128x2xf32> -> vector<128x2xf32>
    %23 = arith.addf %18, %22 : vector<128x2xf32>
    %c5 = arith.constant 5 : index
    %c0_24 = arith.constant 0 : index
    %c0_25 = arith.constant 0 : index
    %24 = vector.load %arg1[%c5, %c0_24, %c0_25] : memref<9x128x64xbf16, #tpu.memory_space<vmem>>, vector<1x128x64xbf16>
    %25 = vector.shape_cast %24 : vector<1x128x64xbf16> to vector<128x64xbf16>
    %c0_26 = arith.constant 0 : index
    %c0_27 = arith.constant 0 : index
    %26 = vector.load %arg8[%c0_26, %c0_27] : memref<64x2xbf16, #tpu.memory_space<vmem>>, vector<64x2xbf16>
    %cst_28 = arith.constant dense<0.000000e+00> : vector<128x2xf32>
    %27 = tpu.matmul %25, %26, %cst_28 {dimension_numbers = #tpu.dot_dimension_numbers<[1], [0], [0], [1], [0, 0, 1, 1], [], []>} : vector<128x64xbf16>, vector<64x2xbf16>, vector<128x2xf32> -> vector<128x2xf32>
    %28 = arith.addf %23, %27 : vector<128x2xf32>
    %c6 = arith.constant 6 : index
    %c0_29 = arith.constant 0 : index
    %c0_30 = arith.constant 0 : index
    %29 = vector.load %arg1[%c6, %c0_29, %c0_30] : memref<9x128x64xbf16, #tpu.memory_space<vmem>>, vector<1x128x64xbf16>
    %30 = vector.shape_cast %29 : vector<1x128x64xbf16> to vector<128x64xbf16>
    %c0_31 = arith.constant 0 : index
    %c0_32 = arith.constant 0 : index
    %31 = vector.load %arg9[%c0_31, %c0_32] : memref<64x2xbf16, #tpu.memory_space<vmem>>, vector<64x2xbf16>
    %cst_33 = arith.constant dense<0.000000e+00> : vector<128x2xf32>
    %32 = tpu.matmul %30, %31, %cst_33 {dimension_numbers = #tpu.dot_dimension_numbers<[1], [0], [0], [1], [0, 0, 1, 1], [], []>} : vector<128x64xbf16>, vector<64x2xbf16>, vector<128x2xf32> -> vector<128x2xf32>
    %33 = arith.addf %28, %32 : vector<128x2xf32>
    %c7 = arith.constant 7 : index
    %c0_34 = arith.constant 0 : index
    %c0_35 = arith.constant 0 : index
    %34 = vector.load %arg1[%c7, %c0_34, %c0_35] : memref<9x128x64xbf16, #tpu.memory_space<vmem>>, vector<1x128x64xbf16>
    %35 = vector.shape_cast %34 : vector<1x128x64xbf16> to vector<128x64xbf16>
    %c0_36 = arith.constant 0 : index
    %c0_37 = arith.constant 0 : index
    %36 = vector.load %arg10[%c0_36, %c0_37] : memref<64x2xbf16, #tpu.memory_space<vmem>>, vector<64x2xbf16>
    %cst_38 = arith.constant dense<0.000000e+00> : vector<128x2xf32>
    %37 = tpu.matmul %35, %36, %cst_38 {dimension_numbers = #tpu.dot_dimension_numbers<[1], [0], [0], [1], [0, 0, 1, 1], [], []>} : vector<128x64xbf16>, vector<64x2xbf16>, vector<128x2xf32> -> vector<128x2xf32>
    %38 = arith.addf %33, %37 : vector<128x2xf32>
    %c8 = arith.constant 8 : index
    %c0_39 = arith.constant 0 : index
    %c0_40 = arith.constant 0 : index
    %39 = vector.load %arg1[%c8, %c0_39, %c0_40] : memref<9x128x64xbf16, #tpu.memory_space<vmem>>, vector<1x128x64xbf16>
    %40 = vector.shape_cast %39 : vector<1x128x64xbf16> to vector<128x64xbf16>
    %c0_41 = arith.constant 0 : index
    %c0_42 = arith.constant 0 : index
    %41 = vector.load %arg11[%c0_41, %c0_42] : memref<64x2xbf16, #tpu.memory_space<vmem>>, vector<64x2xbf16>
    %cst_43 = arith.constant dense<0.000000e+00> : vector<128x2xf32>
    %42 = tpu.matmul %40, %41, %cst_43 {dimension_numbers = #tpu.dot_dimension_numbers<[1], [0], [0], [1], [0, 0, 1, 1], [], []>} : vector<128x64xbf16>, vector<64x2xbf16>, vector<128x2xf32> -> vector<128x2xf32>
    %43 = arith.addf %38, %42 : vector<128x2xf32>
    %c0_44 = arith.constant 0 : index
    %c0_45 = arith.constant 0 : index
    %44 = vector.load %arg2[%c0_44, %c0_45] : memref<128x1xf32, #tpu.memory_space<vmem>>, vector<128x1xf32>
    %45 = vector.broadcast %44 : vector<128x1xf32> to vector<128x2xf32>
    %46 = arith.addf %43, %45 : vector<128x2xf32>
    %cst_46 = arith.constant 0.000000e+00 : f32
    %47 = vector.broadcast %cst_46 : f32 to vector<128x2xf32>
    %48 = arith.maximumf %46, %47 : vector<128x2xf32>
    %49 = arith.truncf %48 : vector<128x2xf32> to vector<128x2xbf16>
    %c0_47 = arith.constant 0 : index
    %c0_48 = arith.constant 0 : index
    %50 = vector.load %arg12[%c0_47, %c0_48] : memref<128x2xbf16, #tpu.memory_space<vmem>>, vector<128x2xbf16>
    tpu.vector_store %arg12[%c0_47, %c0_48], %49 {strides = array<i32>} : memref<128x2xbf16, #tpu.memory_space<vmem>>, vector<128x2xbf16>,
    return
  }
  func.func @transform_0(%arg0: i32) -> (i32, i32, i32) {
    %c0_i32 = arith.constant 0 : i32
    %c0_i32_0 = arith.constant 0 : i32
    %c0_i32_1 = arith.constant 0 : i32
    %c0_i32_2 = arith.constant 0 : i32
    return %c0_i32, %c0_i32_0, %c0_i32_1 : i32, i32, i32
  }
  func.func @transform_1(%arg0: i32) -> (i32, i32) {
    %c0_i32 = arith.constant 0 : i32
    %c0_i32_0 = arith.constant 0 : i32
    %c0_i32_1 = arith.constant 0 : i32
    return %c0_i32, %c0_i32_0 : i32, i32
  }
  func.func @transform_2(%arg0: i32) -> (i32, i32) {
    %c0_i32 = arith.constant 0 : i32
    %c0_i32_0 = arith.constant 0 : i32
    return %c0_i32, %arg0 : i32, i32
  }
  func.func @transform_3(%arg0: i32) -> (i32, i32) {
    %c0_i32 = arith.constant 0 : i32
    %c0_i32_0 = arith.constant 0 : i32
    return %c0_i32, %arg0 : i32, i32
  }
  func.func @transform_4(%arg0: i32) -> (i32, i32) {
    %c0_i32 = arith.constant 0 : i32
    %c0_i32_0 = arith.constant 0 : i32
    return %c0_i32, %arg0 : i32, i32
  }
  func.func @transform_5(%arg0: i32) -> (i32, i32) {
    %c0_i32 = arith.constant 0 : i32
    %c0_i32_0 = arith.constant 0 : i32
    return %c0_i32, %arg0 : i32, i32
  }
  func.func @transform_6(%arg0: i32) -> (i32, i32) {
    %c0_i32 = arith.constant 0 : i32
    %c0_i32_0 = arith.constant 0 : i32
    return %c0_i32, %arg0 : i32, i32
  }
  func.func @transform_7(%arg0: i32) -> (i32, i32) {
    %c0_i32 = arith.constant 0 : i32
    %c0_i32_0 = arith.constant 0 : i32
    return %c0_i32, %arg0 : i32, i32
  }
  func.func @transform_8(%arg0: i32) -> (i32, i32) {
    %c0_i32 = arith.constant 0 : i32
    %c0_i32_0 = arith.constant 0 : i32
    return %c0_i32, %arg0 : i32, i32
  }
  func.func @transform_9(%arg0: i32) -> (i32, i32) {
    %c0_i32 = arith.constant 0 : i32
    %c0_i32_0 = arith.constant 0 : i32
    return %c0_i32, %arg0 : i32, i32
  }
  func.func @transform_10(%arg0: i32) -> (i32, i32) {
    %c0_i32 = arith.constant 0 : i32
    %c0_i32_0 = arith.constant 0 : i32
    return %c0_i32, %arg0 : i32, i32
  }
  func.func @transform_11(%arg0: i32) -> (i32, i32) {
    %c0_i32 = arith.constant 0 : i32
    %c0_i32_0 = arith.constant 0 : i32
    return %c0_i32, %arg0 : i32, i32
  }
}

module attributes {stable_mosaic.version = 11 : i64} {
  func.func @_conv_gemm_kernel(%arg0: i32, %arg1: memref<1x128x64xbf16, #tpu.memory_space<vmem>>, %arg2: memref<128x1xf32, #tpu.memory_space<vmem>>, %arg3: memref<64x2xbf16, #tpu.memory_space<vmem>>, %arg4: memref<128x2xbf16, #tpu.memory_space<vmem>>) attributes {dimension_semantics = [#tpu.dimension_semantics<parallel>], iteration_bounds = array<i64: 1>, scalar_prefetch = 0 : i64, scratch_operands = 0 : i64, tpu.core_type = #tpu.core_type<tc>, window_params = [{pipeline_mode = #tpu.pipeline_mode<synchronous>, transform_indices = @transform_0, window_bounds = array<i64: 1, 128, 64>}, {pipeline_mode = #tpu.pipeline_mode<synchronous>, transform_indices = @transform_1, window_bounds = array<i64: 128, 1>}, {transform_indices = @transform_2, window_bounds = array<i64: 64, 2>}, {transform_indices = @transform_3, window_bounds = array<i64: 128, 2>}]} {
    %c0 = arith.constant 0 : index
    %c0_0 = arith.constant 0 : index
    %c0_1 = arith.constant 0 : index
    %0 = vector.load %arg1[%c0, %c0_0, %c0_1] : memref<1x128x64xbf16, #tpu.memory_space<vmem>>, vector<1x128x64xbf16>
    %1 = vector.shape_cast %0 : vector<1x128x64xbf16> to vector<128x64xbf16>
    %c0_2 = arith.constant 0 : index
    %c0_3 = arith.constant 0 : index
    %2 = vector.load %arg3[%c0_2, %c0_3] : memref<64x2xbf16, #tpu.memory_space<vmem>>, vector<64x2xbf16>
    %cst = arith.constant dense<0.000000e+00> : vector<128x2xf32>
    %3 = tpu.matmul %1, %2, %cst {dimension_numbers = #tpu.dot_dimension_numbers<[1], [0], [0], [1], [0, 0, 1, 1], [], []>} : vector<128x64xbf16>, vector<64x2xbf16>, vector<128x2xf32> -> vector<128x2xf32>
    %c0_4 = arith.constant 0 : index
    %c0_5 = arith.constant 0 : index
    %4 = vector.load %arg2[%c0_4, %c0_5] : memref<128x1xf32, #tpu.memory_space<vmem>>, vector<128x1xf32>
    %5 = vector.broadcast %4 : vector<128x1xf32> to vector<128x2xf32>
    %6 = arith.addf %3, %5 : vector<128x2xf32>
    %7 = arith.truncf %6 : vector<128x2xf32> to vector<128x2xbf16>
    %c0_6 = arith.constant 0 : index
    %c0_7 = arith.constant 0 : index
    %8 = vector.load %arg4[%c0_6, %c0_7] : memref<128x2xbf16, #tpu.memory_space<vmem>>, vector<128x2xbf16>
    tpu.vector_store %arg4[%c0_6, %c0_7], %7 {strides = array<i32>} : memref<128x2xbf16, #tpu.memory_space<vmem>>, vector<128x2xbf16>,
    return
  }
  func.func @transform_0(%arg0: i32) -> (i32, i32, i32) {
    %c0_i32 = arith.constant 0 : i32
    %c0_i32_0 = arith.constant 0 : i32
    %c0_i32_1 = arith.constant 0 : i32
    %c0_i32_2 = arith.constant 0 : i32
    return %c0_i32, %c0_i32_0, %c0_i32_1 : i32, i32, i32
  }
  func.func @transform_1(%arg0: i32) -> (i32, i32) {
    %c0_i32 = arith.constant 0 : i32
    %c0_i32_0 = arith.constant 0 : i32
    %c0_i32_1 = arith.constant 0 : i32
    return %c0_i32, %c0_i32_0 : i32, i32
  }
  func.func @transform_2(%arg0: i32) -> (i32, i32) {
    %c0_i32 = arith.constant 0 : i32
    %c0_i32_0 = arith.constant 0 : i32
    return %c0_i32, %arg0 : i32, i32
  }
  func.func @transform_3(%arg0: i32) -> (i32, i32) {
    %c0_i32 = arith.constant 0 : i32
    %c0_i32_0 = arith.constant 0 : i32
    return %c0_i32, %arg0 : i32, i32
  }
}

module attributes {stable_mosaic.version = 11 : i64} {
  func.func @_conv_gemm_kernel(%arg0: i32, %arg1: memref<9x128x128xbf16, #tpu.memory_space<vmem>>, %arg2: memref<128x1xf32, #tpu.memory_space<vmem>>, %arg3: memref<128x2xbf16, #tpu.memory_space<vmem>>, %arg4: memref<128x2xbf16, #tpu.memory_space<vmem>>, %arg5: memref<128x2xbf16, #tpu.memory_space<vmem>>, %arg6: memref<128x2xbf16, #tpu.memory_space<vmem>>, %arg7: memref<128x2xbf16, #tpu.memory_space<vmem>>, %arg8: memref<128x2xbf16, #tpu.memory_space<vmem>>, %arg9: memref<128x2xbf16, #tpu.memory_space<vmem>>, %arg10: memref<128x2xbf16, #tpu.memory_space<vmem>>, %arg11: memref<128x2xbf16, #tpu.memory_space<vmem>>, %arg12: memref<128x2xbf16, #tpu.memory_space<vmem>>) attributes {dimension_semantics = [#tpu.dimension_semantics<parallel>], iteration_bounds = array<i64: 1>, scalar_prefetch = 0 : i64, scratch_operands = 0 : i64, tpu.core_type = #tpu.core_type<tc>, window_params = [{pipeline_mode = #tpu.pipeline_mode<synchronous>, transform_indices = @transform_0, window_bounds = array<i64: 9, 128, 128>}, {pipeline_mode = #tpu.pipeline_mode<synchronous>, transform_indices = @transform_1, window_bounds = array<i64: 128, 1>}, {transform_indices = @transform_2, window_bounds = array<i64: 128, 2>}, {transform_indices = @transform_3, window_bounds = array<i64: 128, 2>}, {transform_indices = @transform_4, window_bounds = array<i64: 128, 2>}, {transform_indices = @transform_5, window_bounds = array<i64: 128, 2>}, {transform_indices = @transform_6, window_bounds = array<i64: 128, 2>}, {transform_indices = @transform_7, window_bounds = array<i64: 128, 2>}, {transform_indices = @transform_8, window_bounds = array<i64: 128, 2>}, {transform_indices = @transform_9, window_bounds = array<i64: 128, 2>}, {transform_indices = @transform_10, window_bounds = array<i64: 128, 2>}, {transform_indices = @transform_11, window_bounds = array<i64: 128, 2>}]} {
    %c0 = arith.constant 0 : index
    %c0_0 = arith.constant 0 : index
    %c0_1 = arith.constant 0 : index
    %0 = vector.load %arg1[%c0, %c0_0, %c0_1] : memref<9x128x128xbf16, #tpu.memory_space<vmem>>, vector<1x128x128xbf16>
    %1 = vector.shape_cast %0 : vector<1x128x128xbf16> to vector<128x128xbf16>
    %c0_2 = arith.constant 0 : index
    %c0_3 = arith.constant 0 : index
    %2 = vector.load %arg3[%c0_2, %c0_3] : memref<128x2xbf16, #tpu.memory_space<vmem>>, vector<128x2xbf16>
    %cst = arith.constant dense<0.000000e+00> : vector<128x2xf32>
    %3 = tpu.matmul %1, %2, %cst {dimension_numbers = #tpu.dot_dimension_numbers<[1], [0], [0], [1], [0, 0, 1, 1], [], []>} : vector<128x128xbf16>, vector<128x2xbf16>, vector<128x2xf32> -> vector<128x2xf32>
    %c1 = arith.constant 1 : index
    %c0_4 = arith.constant 0 : index
    %c0_5 = arith.constant 0 : index
    %4 = vector.load %arg1[%c1, %c0_4, %c0_5] : memref<9x128x128xbf16, #tpu.memory_space<vmem>>, vector<1x128x128xbf16>
    %5 = vector.shape_cast %4 : vector<1x128x128xbf16> to vector<128x128xbf16>
    %c0_6 = arith.constant 0 : index
    %c0_7 = arith.constant 0 : index
    %6 = vector.load %arg4[%c0_6, %c0_7] : memref<128x2xbf16, #tpu.memory_space<vmem>>, vector<128x2xbf16>
    %cst_8 = arith.constant dense<0.000000e+00> : vector<128x2xf32>
    %7 = tpu.matmul %5, %6, %cst_8 {dimension_numbers = #tpu.dot_dimension_numbers<[1], [0], [0], [1], [0, 0, 1, 1], [], []>} : vector<128x128xbf16>, vector<128x2xbf16>, vector<128x2xf32> -> vector<128x2xf32>
    %8 = arith.addf %3, %7 : vector<128x2xf32>
    %c2 = arith.constant 2 : index
    %c0_9 = arith.constant 0 : index
    %c0_10 = arith.constant 0 : index
    %9 = vector.load %arg1[%c2, %c0_9, %c0_10] : memref<9x128x128xbf16, #tpu.memory_space<vmem>>, vector<1x128x128xbf16>
    %10 = vector.shape_cast %9 : vector<1x128x128xbf16> to vector<128x128xbf16>
    %c0_11 = arith.constant 0 : index
    %c0_12 = arith.constant 0 : index
    %11 = vector.load %arg5[%c0_11, %c0_12] : memref<128x2xbf16, #tpu.memory_space<vmem>>, vector<128x2xbf16>
    %cst_13 = arith.constant dense<0.000000e+00> : vector<128x2xf32>
    %12 = tpu.matmul %10, %11, %cst_13 {dimension_numbers = #tpu.dot_dimension_numbers<[1], [0], [0], [1], [0, 0, 1, 1], [], []>} : vector<128x128xbf16>, vector<128x2xbf16>, vector<128x2xf32> -> vector<128x2xf32>
    %13 = arith.addf %8, %12 : vector<128x2xf32>
    %c3 = arith.constant 3 : index
    %c0_14 = arith.constant 0 : index
    %c0_15 = arith.constant 0 : index
    %14 = vector.load %arg1[%c3, %c0_14, %c0_15] : memref<9x128x128xbf16, #tpu.memory_space<vmem>>, vector<1x128x128xbf16>
    %15 = vector.shape_cast %14 : vector<1x128x128xbf16> to vector<128x128xbf16>
    %c0_16 = arith.constant 0 : index
    %c0_17 = arith.constant 0 : index
    %16 = vector.load %arg6[%c0_16, %c0_17] : memref<128x2xbf16, #tpu.memory_space<vmem>>, vector<128x2xbf16>
    %cst_18 = arith.constant dense<0.000000e+00> : vector<128x2xf32>
    %17 = tpu.matmul %15, %16, %cst_18 {dimension_numbers = #tpu.dot_dimension_numbers<[1], [0], [0], [1], [0, 0, 1, 1], [], []>} : vector<128x128xbf16>, vector<128x2xbf16>, vector<128x2xf32> -> vector<128x2xf32>
    %18 = arith.addf %13, %17 : vector<128x2xf32>
    %c4 = arith.constant 4 : index
    %c0_19 = arith.constant 0 : index
    %c0_20 = arith.constant 0 : index
    %19 = vector.load %arg1[%c4, %c0_19, %c0_20] : memref<9x128x128xbf16, #tpu.memory_space<vmem>>, vector<1x128x128xbf16>
    %20 = vector.shape_cast %19 : vector<1x128x128xbf16> to vector<128x128xbf16>
    %c0_21 = arith.constant 0 : index
    %c0_22 = arith.constant 0 : index
    %21 = vector.load %arg7[%c0_21, %c0_22] : memref<128x2xbf16, #tpu.memory_space<vmem>>, vector<128x2xbf16>
    %cst_23 = arith.constant dense<0.000000e+00> : vector<128x2xf32>
    %22 = tpu.matmul %20, %21, %cst_23 {dimension_numbers = #tpu.dot_dimension_numbers<[1], [0], [0], [1], [0, 0, 1, 1], [], []>} : vector<128x128xbf16>, vector<128x2xbf16>, vector<128x2xf32> -> vector<128x2xf32>
    %23 = arith.addf %18, %22 : vector<128x2xf32>
    %c5 = arith.constant 5 : index
    %c0_24 = arith.constant 0 : index
    %c0_25 = arith.constant 0 : index
    %24 = vector.load %arg1[%c5, %c0_24, %c0_25] : memref<9x128x128xbf16, #tpu.memory_space<vmem>>, vector<1x128x128xbf16>
    %25 = vector.shape_cast %24 : vector<1x128x128xbf16> to vector<128x128xbf16>
    %c0_26 = arith.constant 0 : index
    %c0_27 = arith.constant 0 : index
    %26 = vector.load %arg8[%c0_26, %c0_27] : memref<128x2xbf16, #tpu.memory_space<vmem>>, vector<128x2xbf16>
    %cst_28 = arith.constant dense<0.000000e+00> : vector<128x2xf32>
    %27 = tpu.matmul %25, %26, %cst_28 {dimension_numbers = #tpu.dot_dimension_numbers<[1], [0], [0], [1], [0, 0, 1, 1], [], []>} : vector<128x128xbf16>, vector<128x2xbf16>, vector<128x2xf32> -> vector<128x2xf32>
    %28 = arith.addf %23, %27 : vector<128x2xf32>
    %c6 = arith.constant 6 : index
    %c0_29 = arith.constant 0 : index
    %c0_30 = arith.constant 0 : index
    %29 = vector.load %arg1[%c6, %c0_29, %c0_30] : memref<9x128x128xbf16, #tpu.memory_space<vmem>>, vector<1x128x128xbf16>
    %30 = vector.shape_cast %29 : vector<1x128x128xbf16> to vector<128x128xbf16>
    %c0_31 = arith.constant 0 : index
    %c0_32 = arith.constant 0 : index
    %31 = vector.load %arg9[%c0_31, %c0_32] : memref<128x2xbf16, #tpu.memory_space<vmem>>, vector<128x2xbf16>
    %cst_33 = arith.constant dense<0.000000e+00> : vector<128x2xf32>
    %32 = tpu.matmul %30, %31, %cst_33 {dimension_numbers = #tpu.dot_dimension_numbers<[1], [0], [0], [1], [0, 0, 1, 1], [], []>} : vector<128x128xbf16>, vector<128x2xbf16>, vector<128x2xf32> -> vector<128x2xf32>
    %33 = arith.addf %28, %32 : vector<128x2xf32>
    %c7 = arith.constant 7 : index
    %c0_34 = arith.constant 0 : index
    %c0_35 = arith.constant 0 : index
    %34 = vector.load %arg1[%c7, %c0_34, %c0_35] : memref<9x128x128xbf16, #tpu.memory_space<vmem>>, vector<1x128x128xbf16>
    %35 = vector.shape_cast %34 : vector<1x128x128xbf16> to vector<128x128xbf16>
    %c0_36 = arith.constant 0 : index
    %c0_37 = arith.constant 0 : index
    %36 = vector.load %arg10[%c0_36, %c0_37] : memref<128x2xbf16, #tpu.memory_space<vmem>>, vector<128x2xbf16>
    %cst_38 = arith.constant dense<0.000000e+00> : vector<128x2xf32>
    %37 = tpu.matmul %35, %36, %cst_38 {dimension_numbers = #tpu.dot_dimension_numbers<[1], [0], [0], [1], [0, 0, 1, 1], [], []>} : vector<128x128xbf16>, vector<128x2xbf16>, vector<128x2xf32> -> vector<128x2xf32>
    %38 = arith.addf %33, %37 : vector<128x2xf32>
    %c8 = arith.constant 8 : index
    %c0_39 = arith.constant 0 : index
    %c0_40 = arith.constant 0 : index
    %39 = vector.load %arg1[%c8, %c0_39, %c0_40] : memref<9x128x128xbf16, #tpu.memory_space<vmem>>, vector<1x128x128xbf16>
    %40 = vector.shape_cast %39 : vector<1x128x128xbf16> to vector<128x128xbf16>
    %c0_41 = arith.constant 0 : index
    %c0_42 = arith.constant 0 : index
    %41 = vector.load %arg11[%c0_41, %c0_42] : memref<128x2xbf16, #tpu.memory_space<vmem>>, vector<128x2xbf16>
    %cst_43 = arith.constant dense<0.000000e+00> : vector<128x2xf32>
    %42 = tpu.matmul %40, %41, %cst_43 {dimension_numbers = #tpu.dot_dimension_numbers<[1], [0], [0], [1], [0, 0, 1, 1], [], []>} : vector<128x128xbf16>, vector<128x2xbf16>, vector<128x2xf32> -> vector<128x2xf32>
    %43 = arith.addf %38, %42 : vector<128x2xf32>
    %c0_44 = arith.constant 0 : index
    %c0_45 = arith.constant 0 : index
    %44 = vector.load %arg2[%c0_44, %c0_45] : memref<128x1xf32, #tpu.memory_space<vmem>>, vector<128x1xf32>
    %45 = vector.broadcast %44 : vector<128x1xf32> to vector<128x2xf32>
    %46 = arith.addf %43, %45 : vector<128x2xf32>
    %cst_46 = arith.constant 0.000000e+00 : f32
    %47 = vector.broadcast %cst_46 : f32 to vector<128x2xf32>
    %48 = arith.maximumf %46, %47 : vector<128x2xf32>
    %49 = arith.truncf %48 : vector<128x2xf32> to vector<128x2xbf16>
    %c0_47 = arith.constant 0 : index
    %c0_48 = arith.constant 0 : index
    %50 = vector.load %arg12[%c0_47, %c0_48] : memref<128x2xbf16, #tpu.memory_space<vmem>>, vector<128x2xbf16>
    tpu.vector_store %arg12[%c0_47, %c0_48], %49 {strides = array<i32>} : memref<128x2xbf16, #tpu.memory_space<vmem>>, vector<128x2xbf16>,
    return
  }
  func.func @transform_0(%arg0: i32) -> (i32, i32, i32) {
    %c0_i32 = arith.constant 0 : i32
    %c0_i32_0 = arith.constant 0 : i32
    %c0_i32_1 = arith.constant 0 : i32
    %c0_i32_2 = arith.constant 0 : i32
    return %c0_i32, %c0_i32_0, %c0_i32_1 : i32, i32, i32
  }
  func.func @transform_1(%arg0: i32) -> (i32, i32) {
    %c0_i32 = arith.constant 0 : i32
    %c0_i32_0 = arith.constant 0 : i32
    %c0_i32_1 = arith.constant 0 : i32
    return %c0_i32, %c0_i32_0 : i32, i32
  }
  func.func @transform_2(%arg0: i32) -> (i32, i32) {
    %c0_i32 = arith.constant 0 : i32
    %c0_i32_0 = arith.constant 0 : i32
    return %c0_i32, %arg0 : i32, i32
  }
  func.func @transform_3(%arg0: i32) -> (i32, i32) {
    %c0_i32 = arith.constant 0 : i32
    %c0_i32_0 = arith.constant 0 : i32
    return %c0_i32, %arg0 : i32, i32
  }
  func.func @transform_4(%arg0: i32) -> (i32, i32) {
    %c0_i32 = arith.constant 0 : i32
    %c0_i32_0 = arith.constant 0 : i32
    return %c0_i32, %arg0 : i32, i32
  }
  func.func @transform_5(%arg0: i32) -> (i32, i32) {
    %c0_i32 = arith.constant 0 : i32
    %c0_i32_0 = arith.constant 0 : i32
    return %c0_i32, %arg0 : i32, i32
  }
  func.func @transform_6(%arg0: i32) -> (i32, i32) {
    %c0_i32 = arith.constant 0 : i32
    %c0_i32_0 = arith.constant 0 : i32
    return %c0_i32, %arg0 : i32, i32
  }
  func.func @transform_7(%arg0: i32) -> (i32, i32) {
    %c0_i32 = arith.constant 0 : i32
    %c0_i32_0 = arith.constant 0 : i32
    return %c0_i32, %arg0 : i32, i32
  }
  func.func @transform_8(%arg0: i32) -> (i32, i32) {
    %c0_i32 = arith.constant 0 : i32
    %c0_i32_0 = arith.constant 0 : i32
    return %c0_i32, %arg0 : i32, i32
  }
  func.func @transform_9(%arg0: i32) -> (i32, i32) {
    %c0_i32 = arith.constant 0 : i32
    %c0_i32_0 = arith.constant 0 : i32
    return %c0_i32, %arg0 : i32, i32
  }
  func.func @transform_10(%arg0: i32) -> (i32, i32) {
    %c0_i32 = arith.constant 0 : i32
    %c0_i32_0 = arith.constant 0 : i32
    return %c0_i32, %arg0 : i32, i32
  }
  func.func @transform_11(%arg0: i32) -> (i32, i32) {
    %c0_i32 = arith.constant 0 : i32
    %c0_i32_0 = arith.constant 0 : i32
    return %c0_i32, %arg0 : i32, i32
  }
}

module attributes {stable_mosaic.version = 11 : i64} {
  func.func @_conv_gemm_kernel(%arg0: i32, %arg1: memref<9x128x128xbf16, #tpu.memory_space<vmem>>, %arg2: memref<128x1xf32, #tpu.memory_space<vmem>>, %arg3: memref<128x2xbf16, #tpu.memory_space<vmem>>, %arg4: memref<128x2xbf16, #tpu.memory_space<vmem>>, %arg5: memref<128x2xbf16, #tpu.memory_space<vmem>>, %arg6: memref<128x2xbf16, #tpu.memory_space<vmem>>, %arg7: memref<128x2xbf16, #tpu.memory_space<vmem>>, %arg8: memref<128x2xbf16, #tpu.memory_space<vmem>>, %arg9: memref<128x2xbf16, #tpu.memory_space<vmem>>, %arg10: memref<128x2xbf16, #tpu.memory_space<vmem>>, %arg11: memref<128x2xbf16, #tpu.memory_space<vmem>>, %arg12: memref<128x2xbf16, #tpu.memory_space<vmem>>, %arg13: memref<128x2xbf16, #tpu.memory_space<vmem>>) attributes {dimension_semantics = [#tpu.dimension_semantics<parallel>], iteration_bounds = array<i64: 1>, scalar_prefetch = 0 : i64, scratch_operands = 0 : i64, tpu.core_type = #tpu.core_type<tc>, window_params = [{pipeline_mode = #tpu.pipeline_mode<synchronous>, transform_indices = @transform_0, window_bounds = array<i64: 9, 128, 128>}, {pipeline_mode = #tpu.pipeline_mode<synchronous>, transform_indices = @transform_1, window_bounds = array<i64: 128, 1>}, {transform_indices = @transform_2, window_bounds = array<i64: 128, 2>}, {transform_indices = @transform_3, window_bounds = array<i64: 128, 2>}, {transform_indices = @transform_4, window_bounds = array<i64: 128, 2>}, {transform_indices = @transform_5, window_bounds = array<i64: 128, 2>}, {transform_indices = @transform_6, window_bounds = array<i64: 128, 2>}, {transform_indices = @transform_7, window_bounds = array<i64: 128, 2>}, {transform_indices = @transform_8, window_bounds = array<i64: 128, 2>}, {transform_indices = @transform_9, window_bounds = array<i64: 128, 2>}, {transform_indices = @transform_10, window_bounds = array<i64: 128, 2>}, {transform_indices = @transform_11, window_bounds = array<i64: 128, 2>}, {transform_indices = @transform_12, window_bounds = array<i64: 128, 2>}]} {
    %c0 = arith.constant 0 : index
    %c0_0 = arith.constant 0 : index
    %c0_1 = arith.constant 0 : index
    %0 = vector.load %arg1[%c0, %c0_0, %c0_1] : memref<9x128x128xbf16, #tpu.memory_space<vmem>>, vector<1x128x128xbf16>
    %1 = vector.shape_cast %0 : vector<1x128x128xbf16> to vector<128x128xbf16>
    %c0_2 = arith.constant 0 : index
    %c0_3 = arith.constant 0 : index
    %2 = vector.load %arg4[%c0_2, %c0_3] : memref<128x2xbf16, #tpu.memory_space<vmem>>, vector<128x2xbf16>
    %cst = arith.constant dense<0.000000e+00> : vector<128x2xf32>
    %3 = tpu.matmul %1, %2, %cst {dimension_numbers = #tpu.dot_dimension_numbers<[1], [0], [0], [1], [0, 0, 1, 1], [], []>} : vector<128x128xbf16>, vector<128x2xbf16>, vector<128x2xf32> -> vector<128x2xf32>
    %c1 = arith.constant 1 : index
    %c0_4 = arith.constant 0 : index
    %c0_5 = arith.constant 0 : index
    %4 = vector.load %arg1[%c1, %c0_4, %c0_5] : memref<9x128x128xbf16, #tpu.memory_space<vmem>>, vector<1x128x128xbf16>
    %5 = vector.shape_cast %4 : vector<1x128x128xbf16> to vector<128x128xbf16>
    %c0_6 = arith.constant 0 : index
    %c0_7 = arith.constant 0 : index
    %6 = vector.load %arg5[%c0_6, %c0_7] : memref<128x2xbf16, #tpu.memory_space<vmem>>, vector<128x2xbf16>
    %cst_8 = arith.constant dense<0.000000e+00> : vector<128x2xf32>
    %7 = tpu.matmul %5, %6, %cst_8 {dimension_numbers = #tpu.dot_dimension_numbers<[1], [0], [0], [1], [0, 0, 1, 1], [], []>} : vector<128x128xbf16>, vector<128x2xbf16>, vector<128x2xf32> -> vector<128x2xf32>
    %8 = arith.addf %3, %7 : vector<128x2xf32>
    %c2 = arith.constant 2 : index
    %c0_9 = arith.constant 0 : index
    %c0_10 = arith.constant 0 : index
    %9 = vector.load %arg1[%c2, %c0_9, %c0_10] : memref<9x128x128xbf16, #tpu.memory_space<vmem>>, vector<1x128x128xbf16>
    %10 = vector.shape_cast %9 : vector<1x128x128xbf16> to vector<128x128xbf16>
    %c0_11 = arith.constant 0 : index
    %c0_12 = arith.constant 0 : index
    %11 = vector.load %arg6[%c0_11, %c0_12] : memref<128x2xbf16, #tpu.memory_space<vmem>>, vector<128x2xbf16>
    %cst_13 = arith.constant dense<0.000000e+00> : vector<128x2xf32>
    %12 = tpu.matmul %10, %11, %cst_13 {dimension_numbers = #tpu.dot_dimension_numbers<[1], [0], [0], [1], [0, 0, 1, 1], [], []>} : vector<128x128xbf16>, vector<128x2xbf16>, vector<128x2xf32> -> vector<128x2xf32>
    %13 = arith.addf %8, %12 : vector<128x2xf32>
    %c3 = arith.constant 3 : index
    %c0_14 = arith.constant 0 : index
    %c0_15 = arith.constant 0 : index
    %14 = vector.load %arg1[%c3, %c0_14, %c0_15] : memref<9x128x128xbf16, #tpu.memory_space<vmem>>, vector<1x128x128xbf16>
    %15 = vector.shape_cast %14 : vector<1x128x128xbf16> to vector<128x128xbf16>
    %c0_16 = arith.constant 0 : index
    %c0_17 = arith.constant 0 : index
    %16 = vector.load %arg7[%c0_16, %c0_17] : memref<128x2xbf16, #tpu.memory_space<vmem>>, vector<128x2xbf16>
    %cst_18 = arith.constant dense<0.000000e+00> : vector<128x2xf32>
    %17 = tpu.matmul %15, %16, %cst_18 {dimension_numbers = #tpu.dot_dimension_numbers<[1], [0], [0], [1], [0, 0, 1, 1], [], []>} : vector<128x128xbf16>, vector<128x2xbf16>, vector<128x2xf32> -> vector<128x2xf32>
    %18 = arith.addf %13, %17 : vector<128x2xf32>
    %c4 = arith.constant 4 : index
    %c0_19 = arith.constant 0 : index
    %c0_20 = arith.constant 0 : index
    %19 = vector.load %arg1[%c4, %c0_19, %c0_20] : memref<9x128x128xbf16, #tpu.memory_space<vmem>>, vector<1x128x128xbf16>
    %20 = vector.shape_cast %19 : vector<1x128x128xbf16> to vector<128x128xbf16>
    %c0_21 = arith.constant 0 : index
    %c0_22 = arith.constant 0 : index
    %21 = vector.load %arg8[%c0_21, %c0_22] : memref<128x2xbf16, #tpu.memory_space<vmem>>, vector<128x2xbf16>
    %cst_23 = arith.constant dense<0.000000e+00> : vector<128x2xf32>
    %22 = tpu.matmul %20, %21, %cst_23 {dimension_numbers = #tpu.dot_dimension_numbers<[1], [0], [0], [1], [0, 0, 1, 1], [], []>} : vector<128x128xbf16>, vector<128x2xbf16>, vector<128x2xf32> -> vector<128x2xf32>
    %23 = arith.addf %18, %22 : vector<128x2xf32>
    %c5 = arith.constant 5 : index
    %c0_24 = arith.constant 0 : index
    %c0_25 = arith.constant 0 : index
    %24 = vector.load %arg1[%c5, %c0_24, %c0_25] : memref<9x128x128xbf16, #tpu.memory_space<vmem>>, vector<1x128x128xbf16>
    %25 = vector.shape_cast %24 : vector<1x128x128xbf16> to vector<128x128xbf16>
    %c0_26 = arith.constant 0 : index
    %c0_27 = arith.constant 0 : index
    %26 = vector.load %arg9[%c0_26, %c0_27] : memref<128x2xbf16, #tpu.memory_space<vmem>>, vector<128x2xbf16>
    %cst_28 = arith.constant dense<0.000000e+00> : vector<128x2xf32>
    %27 = tpu.matmul %25, %26, %cst_28 {dimension_numbers = #tpu.dot_dimension_numbers<[1], [0], [0], [1], [0, 0, 1, 1], [], []>} : vector<128x128xbf16>, vector<128x2xbf16>, vector<128x2xf32> -> vector<128x2xf32>
    %28 = arith.addf %23, %27 : vector<128x2xf32>
    %c6 = arith.constant 6 : index
    %c0_29 = arith.constant 0 : index
    %c0_30 = arith.constant 0 : index
    %29 = vector.load %arg1[%c6, %c0_29, %c0_30] : memref<9x128x128xbf16, #tpu.memory_space<vmem>>, vector<1x128x128xbf16>
    %30 = vector.shape_cast %29 : vector<1x128x128xbf16> to vector<128x128xbf16>
    %c0_31 = arith.constant 0 : index
    %c0_32 = arith.constant 0 : index
    %31 = vector.load %arg10[%c0_31, %c0_32] : memref<128x2xbf16, #tpu.memory_space<vmem>>, vector<128x2xbf16>
    %cst_33 = arith.constant dense<0.000000e+00> : vector<128x2xf32>
    %32 = tpu.matmul %30, %31, %cst_33 {dimension_numbers = #tpu.dot_dimension_numbers<[1], [0], [0], [1], [0, 0, 1, 1], [], []>} : vector<128x128xbf16>, vector<128x2xbf16>, vector<128x2xf32> -> vector<128x2xf32>
    %33 = arith.addf %28, %32 : vector<128x2xf32>
    %c7 = arith.constant 7 : index
    %c0_34 = arith.constant 0 : index
    %c0_35 = arith.constant 0 : index
    %34 = vector.load %arg1[%c7, %c0_34, %c0_35] : memref<9x128x128xbf16, #tpu.memory_space<vmem>>, vector<1x128x128xbf16>
    %35 = vector.shape_cast %34 : vector<1x128x128xbf16> to vector<128x128xbf16>
    %c0_36 = arith.constant 0 : index
    %c0_37 = arith.constant 0 : index
    %36 = vector.load %arg11[%c0_36, %c0_37] : memref<128x2xbf16, #tpu.memory_space<vmem>>, vector<128x2xbf16>
    %cst_38 = arith.constant dense<0.000000e+00> : vector<128x2xf32>
    %37 = tpu.matmul %35, %36, %cst_38 {dimension_numbers = #tpu.dot_dimension_numbers<[1], [0], [0], [1], [0, 0, 1, 1], [], []>} : vector<128x128xbf16>, vector<128x2xbf16>, vector<128x2xf32> -> vector<128x2xf32>
    %38 = arith.addf %33, %37 : vector<128x2xf32>
    %c8 = arith.constant 8 : index
    %c0_39 = arith.constant 0 : index
    %c0_40 = arith.constant 0 : index
    %39 = vector.load %arg1[%c8, %c0_39, %c0_40] : memref<9x128x128xbf16, #tpu.memory_space<vmem>>, vector<1x128x128xbf16>
    %40 = vector.shape_cast %39 : vector<1x128x128xbf16> to vector<128x128xbf16>
    %c0_41 = arith.constant 0 : index
    %c0_42 = arith.constant 0 : index
    %41 = vector.load %arg12[%c0_41, %c0_42] : memref<128x2xbf16, #tpu.memory_space<vmem>>, vector<128x2xbf16>
    %cst_43 = arith.constant dense<0.000000e+00> : vector<128x2xf32>
    %42 = tpu.matmul %40, %41, %cst_43 {dimension_numbers = #tpu.dot_dimension_numbers<[1], [0], [0], [1], [0, 0, 1, 1], [], []>} : vector<128x128xbf16>, vector<128x2xbf16>, vector<128x2xf32> -> vector<128x2xf32>
    %43 = arith.addf %38, %42 : vector<128x2xf32>
    %c0_44 = arith.constant 0 : index
    %c0_45 = arith.constant 0 : index
    %44 = vector.load %arg2[%c0_44, %c0_45] : memref<128x1xf32, #tpu.memory_space<vmem>>, vector<128x1xf32>
    %45 = vector.broadcast %44 : vector<128x1xf32> to vector<128x2xf32>
    %46 = arith.addf %43, %45 : vector<128x2xf32>
    %c0_46 = arith.constant 0 : index
    %c0_47 = arith.constant 0 : index
    %47 = vector.load %arg3[%c0_46, %c0_47] : memref<128x2xbf16, #tpu.memory_space<vmem>>, vector<128x2xbf16>
    %48 = arith.extf %47 : vector<128x2xbf16> to vector<128x2xf32>
    %49 = arith.addf %46, %48 : vector<128x2xf32>
    %cst_48 = arith.constant 0.000000e+00 : f32
    %50 = vector.broadcast %cst_48 : f32 to vector<128x2xf32>
    %51 = arith.maximumf %49, %50 : vector<128x2xf32>
    %52 = arith.truncf %51 : vector<128x2xf32> to vector<128x2xbf16>
    %c0_49 = arith.constant 0 : index
    %c0_50 = arith.constant 0 : index
    %53 = vector.load %arg13[%c0_49, %c0_50] : memref<128x2xbf16, #tpu.memory_space<vmem>>, vector<128x2xbf16>
    tpu.vector_store %arg13[%c0_49, %c0_50], %52 {strides = array<i32>} : memref<128x2xbf16, #tpu.memory_space<vmem>>, vector<128x2xbf16>,
    return
  }
  func.func @transform_0(%arg0: i32) -> (i32, i32, i32) {
    %c0_i32 = arith.constant 0 : i32
    %c0_i32_0 = arith.constant 0 : i32
    %c0_i32_1 = arith.constant 0 : i32
    %c0_i32_2 = arith.constant 0 : i32
    return %c0_i32, %c0_i32_0, %c0_i32_1 : i32, i32, i32
  }
  func.func @transform_1(%arg0: i32) -> (i32, i32) {
    %c0_i32 = arith.constant 0 : i32
    %c0_i32_0 = arith.constant 0 : i32
    %c0_i32_1 = arith.constant 0 : i32
    return %c0_i32, %c0_i32_0 : i32, i32
  }
  func.func @transform_2(%arg0: i32) -> (i32, i32) {
    %c0_i32 = arith.constant 0 : i32
    %c0_i32_0 = arith.constant 0 : i32
    return %c0_i32, %arg0 : i32, i32
  }
  func.func @transform_3(%arg0: i32) -> (i32, i32) {
    %c0_i32 = arith.constant 0 : i32
    %c0_i32_0 = arith.constant 0 : i32
    return %c0_i32, %arg0 : i32, i32
  }
  func.func @transform_4(%arg0: i32) -> (i32, i32) {
    %c0_i32 = arith.constant 0 : i32
    %c0_i32_0 = arith.constant 0 : i32
    return %c0_i32, %arg0 : i32, i32
  }
  func.func @transform_5(%arg0: i32) -> (i32, i32) {
    %c0_i32 = arith.constant 0 : i32
    %c0_i32_0 = arith.constant 0 : i32
    return %c0_i32, %arg0 : i32, i32
  }
  func.func @transform_6(%arg0: i32) -> (i32, i32) {
    %c0_i32 = arith.constant 0 : i32
    %c0_i32_0 = arith.constant 0 : i32
    return %c0_i32, %arg0 : i32, i32
  }
  func.func @transform_7(%arg0: i32) -> (i32, i32) {
    %c0_i32 = arith.constant 0 : i32
    %c0_i32_0 = arith.constant 0 : i32
    return %c0_i32, %arg0 : i32, i32
  }
  func.func @transform_8(%arg0: i32) -> (i32, i32) {
    %c0_i32 = arith.constant 0 : i32
    %c0_i32_0 = arith.constant 0 : i32
    return %c0_i32, %arg0 : i32, i32
  }
  func.func @transform_9(%arg0: i32) -> (i32, i32) {
    %c0_i32 = arith.constant 0 : i32
    %c0_i32_0 = arith.constant 0 : i32
    return %c0_i32, %arg0 : i32, i32
  }
  func.func @transform_10(%arg0: i32) -> (i32, i32) {
    %c0_i32 = arith.constant 0 : i32
    %c0_i32_0 = arith.constant 0 : i32
    return %c0_i32, %arg0 : i32, i32
  }
  func.func @transform_11(%arg0: i32) -> (i32, i32) {
    %c0_i32 = arith.constant 0 : i32
    %c0_i32_0 = arith.constant 0 : i32
    return %c0_i32, %arg0 : i32, i32
  }
  func.func @transform_12(%arg0: i32) -> (i32, i32) {
    %c0_i32 = arith.constant 0 : i32
    %c0_i32_0 = arith.constant 0 : i32
    return %c0_i32, %arg0 : i32, i32
  }
}

</mosaic_0001>

<bundles_post_ra>
// kernel: _lambda_.21
= control target key start
LH: loop header
LB: loop body
LE: loop exit
PB: predicated region body
PF: predicated region fallthrough
CT: control target
= control target key end

     0   :  { %v528_v2 = vmov 0   ;;  %vm270_vm0 = vcmask 1040384   ;;  %vm266_vm1 = vcmask 154624   ;;  %vm271_vm2 = vcmask 1041408   ;;  %s689_s2 = inlined_call_operand.vmem [shape: bf16[147,512], index: 2, kind: input, shape index: {}]   ;;  %s690_s0 = inlined_call_operand.vmem [shape: bf16[1,16,147], index: 0, kind: input, shape index: {}]   ;;  %s691_s1 = inlined_call_operand.vmem [shape: f32[16,1], index: 1, kind: input, shape index: {}]   ;;  %s692_s3 = inlined_call_operand.vmem [shape: bf16[16,512], index: 3, kind: output, shape index: {}]  }
   0x1   :  { %v467_v0 = vld [vmem:[%s689_s2 + $0x4] ss:$16 sps:$4 sm:$0xff]   ;;  %v469_v1 = vld [vmem:[%s689_s2 + $0xc] ss:$16 sps:$4 sm:$0xff]   ;;  %466 = vset.pattern.permute.xlu0 %v528_v2  ;;  %v471_v3 = vld [vmem:[%s689_s2] ss:$16 sps:$4 sm:$0xff]  }
   0x2   :  { %286 = vmatprep.subr.bf16.mxu0 %v467_v0  ;;  %v472_v4 = vld [vmem:[%s689_s2 + $0x8] ss:$16 sps:$4 sm:$0xff]   ;;  %329 = vmatprep.subr.bf16.mxu1 %v469_v1  ;;  %v473_v5 = vld [vmem:[%s689_s2 + $0x24] ss:$16 sps:$4 sm:$0xff]   ;;  %v475_v6 = vld [vmem:[%s689_s2 + $0x2c] ss:$16 sps:$4 sm:$0xff]  }
   0x3   :  { %287 = vmatpush1.bf16.msra.mxu0 %v471_v3  ;;  %330 = vmatpush1.bf16.msra.mxu1 %v472_v4  ;;  %v477_v7 = vld [vmem:[%s689_s2 + $0x20] ss:$16 sps:$4 sm:$0xff]   ;;  %v478_v8 = vld [vmem:[%s689_s2 + $0x28] ss:$16 sps:$4 sm:$0xff]   ;;  %v479_v9 = vld [vmem:[%s689_s2 + $0x44] ss:$16 sps:$4 sm:$0xff]  }
   0x4   :  { %288 = vmatprep.subr.bf16.mxu0 %v473_v5  ;;  %331 = vmatprep.subr.bf16.mxu1 %v475_v6  ;;  %v481_v10 = vld [vmem:[%s689_s2 + $0x4c] ss:$16 sps:$4 sm:$0xff]   ;;  %v483_v11 = vld [vmem:[%s689_s2 + $0x40] ss:$16 sps:$4 sm:$0xff]   ;;  %v484_v12 = vld [vmem:[%s689_s2 + $0x48] ss:$16 sps:$4 sm:$0xff]  }
   0x5   :  { %v485_v13 = vld [vmem:[%s689_s2 + $0x64] ss:$16 sps:$4 sm:$0xff]   ;;  %v487_v14 = vld [vmem:[%s689_s2 + $0x6c] ss:$16 sps:$4 sm:$0xff]   ;;  %v489_v15 = vld [vmem:[%s689_s2 + $0x60] ss:$16 sps:$4 sm:$0xff]  }
   0x6   :  { %v490_v16 = vld [vmem:[%s689_s2 + $0x68] ss:$16 sps:$4 sm:$0xff]   ;;  %v491_v17 = vld [vmem:[%s689_s2 + $0x84] ss:$16 sps:$4 sm:$0xff]   ;;  %v493_v18 = vld [vmem:[%s689_s2 + $0x8c] ss:$16 sps:$4 sm:$0xff]  }
   0x7   :  { %289 = vmatpush1.bf16.msra.mxu0 %v477_v7  ;;  %332 = vmatpush1.bf16.msra.mxu1 %v478_v8  ;;  %v495_v19 = vld [vmem:[%s689_s2 + $0x80] ss:$16 sps:$4 sm:$0xff]   ;;  %v496_v20 = vld [vmem:[%s689_s2 + $0x88] ss:$16 sps:$4 sm:$0xff]   ;;  %v497_v21 = vld [vmem:[%s689_s2 + $0xa4] ss:$16 sps:$4 sm:$0xff]  }
   0x8   :  { %290 = vmatprep.subr.bf16.mxu0 %v479_v9  ;;  %333 = vmatprep.subr.bf16.mxu1 %v481_v10  ;;  %v499_v22 = vld [vmem:[%s689_s2 + $0xac] ss:$16 sps:$4 sm:$0xff]   ;;  %v501_v23 = vld [vmem:[%s689_s2 + $0xa0] ss:$16 sps:$4 sm:$0xff]   ;;  %v502_v24 = vld [vmem:[%s689_s2 + $0xa8] ss:$16 sps:$4 sm:$0xff]  }
   0x9   :  { %v503_v25 = vld [vmem:[%s689_s2 + $0xc4] ss:$16 sps:$4 sm:$0xff]   ;;  %v505_v26 = vld [vmem:[%s689_s2 + $0xcc] ss:$16 sps:$4 sm:$0xff]   ;;  %v507_v27 = vld [vmem:[%s689_s2 + $0xc0] ss:$16 sps:$4 sm:$0xff]  }
   0xa   :  { %v508_v28 = vld [vmem:[%s689_s2 + $0xc8] ss:$16 sps:$4 sm:$0xff]   ;;  %v509_v29 = vld [vmem:[%s689_s2 + $0xe4] ss:$16 sps:$4 sm:$0xff]   ;;  %v511_v30 = vld [vmem:[%s689_s2 + $0xec] ss:$16 sps:$4 sm:$0xff]  }
   0xb   :  { %291 = vmatpush1.bf16.msra.mxu0 %v483_v11  ;;  %334 = vmatpush1.bf16.msra.mxu1 %v484_v12  ;;  %v527_v31 = vld [vmem:[%s690_s0 + $0x4] ss:$8 sps:$4 sm:$0xff]   ;;  %v529_v34 = vmov 65535   ;;  %v513_v37 = vld [vmem:[%s689_s2 + $0xe0] ss:$16 sps:$4 sm:$0xff]  }
   0xc   :  { %292 = vmatprep.subr.bf16.mxu0 %v485_v13  ;;  %335 = vmatprep.subr.bf16.mxu1 %v487_v14  ;;  %v53_v32 = vld [vmem:[%s689_s2 + $0x120] sm:$0x33]  ;;  %v54_v33 = vld [vmem:[%s689_s2 + $0x128] sm:$0x33]  ;;  %v272_v35 = vsel %vm270_vm0, 4294967295, %v529_v34 }
   0xd   :  { %454 = vmatprep.mubr.msk.bf16.mxu0 %vm266_vm1, %v527_v31  ;;  %455 = vmatprep.mubr.msk.bf16.mxu1 %vm266_vm1, %v527_v31  ;;  %v55_v36 = vld [vmem:[%s691_s1] sm:$0xff]  ;;  %v514_v38 = vld [vmem:[%s689_s2 + $0xe8] ss:$16 sps:$4 sm:$0xff]   ;;  %v517_v40 = vld [vmem:[%s689_s2 + $0x10c] ss:$16 sps:$4 sm:$0xff]   ;;  %v451_v41 = vcombine.high %v53_v32, %v53_v32  ;;  %v453_v42 = vcombine.high %v54_v33, %v54_v33  ;;  %v273_v43 = vsel %vm271_vm2, %v272_v35, 0  ;;  %v450_v47 = vcombine.low %v53_v32, %v53_v32 }
   0xe   :  { %v515_v39 = vld [vmem:[%s689_s2 + $0x104] ss:$16 sps:$4 sm:$0xff]   ;;  %59 = vperm.xlu0 %466, %v55_v36   ;;  %v56_v44 = vld [vmem:[%s691_s1 + $0x8] sm:$0xff]  ;;  %v519_v45 = vld [vmem:[%s689_s2 + $0x100] ss:$16 sps:$4 sm:$0xff]   ;;  %v452_v48 = vcombine.low %v54_v33, %v54_v33 }
   0xf   :  { %293 = vmatpush1.bf16.msra.mxu0 %v489_v15  ;;  %336 = vmatpush1.bf16.msra.mxu1 %v490_v16  ;;  %v520_v46 = vld [vmem:[%s689_s2 + $0x108] ss:$16 sps:$4 sm:$0xff]   ;;  %v278_v49 = vand.u32 %v451_v41, %v273_v43  ;;  %v284_v50 = vand.u32 %v453_v42, %v273_v43  ;;  %v275_v51 = vand.u32 %v450_v47, %v273_v43 }
  0x10   :  { %294 = vmatprep.subr.bf16.mxu0 %v491_v17  ;;  %337 = vmatprep.subr.bf16.mxu1 %v493_v18  ;;  %v281_v52 = vand.u32 %v452_v48, %v273_v43  ;;  %v525_v53 = vld [vmem:[%s690_s0] ss:$8 sps:$4 sm:$0xff]  }
  0x12   :  { %64 = vperm.xlu0 %466, %v56_v44  }
  0x13   :  { %295 = vmatpush1.bf16.msra.mxu0 %v495_v19  ;;  %338 = vmatpush1.bf16.msra.mxu1 %v496_v20 }
  0x14   :  { %296 = vmatprep.subr.bf16.mxu0 %v497_v21  ;;  %339 = vmatprep.subr.bf16.mxu1 %v499_v22 }
  0x17   :  { %297 = vmatpush1.bf16.msra.mxu0 %v501_v23  ;;  %340 = vmatpush1.bf16.msra.mxu1 %v502_v24 }
  0x18   :  { %298 = vmatprep.subr.bf16.mxu0 %v503_v25  ;;  %341 = vmatprep.subr.bf16.mxu1 %v505_v26 }
  0x1b   :  { %299 = vmatpush1.bf16.msra.mxu0 %v507_v27  ;;  %342 = vmatpush1.bf16.msra.mxu1 %v508_v28 }
  0x1c   :  { %300 = vmatprep.subr.bf16.mxu0 %v509_v29  ;;  %343 = vmatprep.subr.bf16.mxu1 %v511_v30 }
  0x1f   :  { %301 = vmatpush1.bf16.msra.mxu0 %v513_v37  ;;  %344 = vmatpush1.bf16.msra.mxu1 %v514_v38 }
  0x20   :  { %302 = vmatprep.subr.bf16.mxu0 %v515_v39  ;;  %345 = vmatprep.subr.bf16.mxu1 %v517_v40 }
  0x23   :  { %303 = vmatpush1.bf16.msra.mxu0 %v519_v45  ;;  %346 = vmatpush1.bf16.msra.mxu1 %v520_v46 }
  0x24   :  { %304 = vmatprep.subr.bf16.mxu0 %v278_v49  ;;  %347 = vmatprep.subr.bf16.mxu1 %v284_v50 }
  0x27   :  { %305 = vmatpush1.bf16.msra.mxu0 %v275_v51  ;;  %348 = vmatpush1.bf16.msra.mxu1 %v281_v52 }
  0x2a   :  { %319 = vmatmul.mubr.bf16.vlgmr.msra.gmra.mrb[0].mxu0 %v525_v53  ;;  %362 = vmatmul.mubr.bf16.vlgmr.msra.gmra.mrb[0].mxu1 %v525_v53 }
  0x8d   :  { %v60_v54 = vpop.permute.xlu0 %59 }
  0x91   :  { %v65_v55 = vpop.permute.xlu0 %64 }
  0xfd   :  { %v320_v56 = vpop.f32.mrb[0].mxu0  ;;  %v363_v57 = vpop.f32.mrb[0].mxu1 }
  0xfe   :  { %v321_v58 = vadd.f32 %v320_v56, %v60_v54  ;;  %v364_v59 = vadd.f32 %v363_v57, %v60_v54  ;;  %v322_v60 = vpop.f32.mrb[1].mxu0  ;;  %v365_v61 = vpop.f32.mrb[1].mxu1 }
  0xff   :  { %v323_v62 = vadd.f32 %v322_v60, %v60_v54  ;;  %v366_v63 = vadd.f32 %v365_v61, %v60_v54  ;;  %v324_v0 = vpop.f32.mrb[2].mxu0  ;;  %v367_v1 = vpop.f32.mrb[2].mxu1 }
 0x100   :  { %v372_v2 = vmax.f32 %v321_v58, 0.0  ;;  %v374_v3 = vmax.f32 %v364_v59, 0.0  ;;  %v325_v4 = vadd.f32 %v324_v0, %v65_v55  ;;  %v368_v5 = vadd.f32 %v367_v1, %v65_v55  ;;  %v326_v6 = vpop.f32.mrb[3].mxu0  ;;  %v369_v7 = vpop.f32.mrb[3].mxu1 }
 0x101   :  { %v373_v8 = vmax.f32 %v323_v62, 0.0  ;;  %v375_v9 = vmax.f32 %v366_v63, 0.0  ;;  %v327_v10 = vadd.f32 %v326_v6, %v65_v55  ;;  %v370_v11 = vadd.f32 %v369_v7, %v65_v55 }
 0x102   :  { %v376_v12 = vmax.f32 %v325_v4, 0.0  ;;  %v378_v13 = vmax.f32 %v368_v5, 0.0 }
 0x103   :  { %v460_v14 = vpack.c.bf16 %v373_v8, %v372_v2  ;;  %v461_v15 = vpack.c.bf16 %v375_v9, %v374_v3  ;;  %v377_v16 = vmax.f32 %v327_v10, 0.0  ;;  %v379_v17 = vmax.f32 %v370_v11, 0.0 }
 0x105   :  { %404 = vst [vmem:[%s692_s3] sm:$0xff] %v460_v14  ;;  %405 = vst [vmem:[%s692_s3 + $0x8] sm:$0xff] %v461_v15  ;;  %v462_v18 = vpack.c.bf16 %v377_v16, %v376_v12  ;;  %v463_v19 = vpack.c.bf16 %v379_v17, %v378_v13 }
 0x107   :  { %406 = vst [vmem:[%s692_s3 + $0x10] sm:$0xff] %v462_v18  ;;  %407 = vst [vmem:[%s692_s3 + $0x18] sm:$0xff] %v463_v19 }

// kernel: _lambda_.22
= control target key start
LH: loop header
LB: loop body
LE: loop exit
PB: predicated region body
PF: predicated region fallthrough
CT: control target
= control target key end

     0   :  { %s185_s0 = inlined_call_operand.vmem [shape: bf16[16,128], index: 0, kind: input, shape index: {}]   ;;  %s186_s1 = inlined_call_operand.vmem [shape: bf16[16,128], index: 1, kind: input, shape index: {}]   ;;  %s187_s2 = inlined_call_operand.vmem [shape: bf16[16,128], index: 2, kind: input, shape index: {}]   ;;  %s188_s3 = inlined_call_operand.vmem [shape: bf16[16,128], index: 3, kind: input, shape index: {}]   ;;  %s189_s4 = inlined_call_operand.vmem [shape: bf16[16,128], index: 4, kind: input, shape index: {}]   ;;  %s190_s5 = inlined_call_operand.vmem [shape: bf16[16,128], index: 5, kind: input, shape index: {}]   ;;  %s191_s6 = inlined_call_operand.vmem [shape: bf16[16,128], index: 6, kind: input, shape index: {}]   ;;  %s192_s7 = inlined_call_operand.vmem [shape: bf16[16,128], index: 7, kind: input, shape index: {}]   ;;  %s193_s8 = inlined_call_operand.vmem [shape: bf16[16,128], index: 8, kind: input, shape index: {}]   ;;  %s194_s9 = inlined_call_operand.vmem [shape: bf16[16,128], index: 9, kind: output, shape index: {}]  }
   0x1   :  { %v32_v0 = vld [vmem:[%s185_s0] sm:$0xf]  ;;  %v33_v1 = vld [vmem:[%s185_s0 + $0x4] sm:$0xf] }
   0x2   :  { %v34_v2 = vld [vmem:[%s186_s1] sm:$0xf]  ;;  %v35_v3 = vld [vmem:[%s186_s1 + $0x4] sm:$0xf] }
   0x3   :  { %v36_v4 = vmax.bf16 %v34_v2, %v32_v0  ;;  %v38_v5 = vld [vmem:[%s187_s2] sm:$0xf]  ;;  %v39_v6 = vld [vmem:[%s187_s2 + $0x4] sm:$0xf]  ;;  %v37_v7 = vmax.bf16 %v35_v3, %v33_v1 }
   0x4   :  { %v42_v8 = vld [vmem:[%s188_s3] sm:$0xf]  ;;  %v43_v10 = vld [vmem:[%s188_s3 + $0x4] sm:$0xf] }
   0x5   :  { %v40_v9 = vmax.bf16 %v38_v5, %v36_v4  ;;  %v41_v11 = vmax.bf16 %v39_v6, %v37_v7  ;;  %v46_v12 = vld [vmem:[%s189_s4] sm:$0xf]  ;;  %v47_v14 = vld [vmem:[%s189_s4 + $0x4] sm:$0xf] }
   0x6   :  { %v50_v16 = vld [vmem:[%s190_s5] sm:$0xf]  ;;  %v51_v18 = vld [vmem:[%s190_s5 + $0x4] sm:$0xf] }
   0x7   :  { %v44_v13 = vmax.bf16 %v42_v8, %v40_v9  ;;  %v45_v15 = vmax.bf16 %v43_v10, %v41_v11  ;;  %v54_v20 = vld [vmem:[%s191_s6] sm:$0xf]  ;;  %v55_v22 = vld [vmem:[%s191_s6 + $0x4] sm:$0xf] }
   0x8   :  { %v58_v24 = vld [vmem:[%s192_s7] sm:$0xf]  ;;  %v59_v26 = vld [vmem:[%s192_s7 + $0x4] sm:$0xf] }
   0x9   :  { %v48_v17 = vmax.bf16 %v46_v12, %v44_v13  ;;  %v49_v19 = vmax.bf16 %v47_v14, %v45_v15  ;;  %v62_v28 = vld [vmem:[%s193_s8] sm:$0xf]  ;;  %v63_v30 = vld [vmem:[%s193_s8 + $0x4] sm:$0xf] }
   0xb   :  { %v52_v21 = vmax.bf16 %v50_v16, %v48_v17  ;;  %v53_v23 = vmax.bf16 %v51_v18, %v49_v19 }
   0xd   :  { %v56_v25 = vmax.bf16 %v54_v20, %v52_v21  ;;  %v57_v27 = vmax.bf16 %v55_v22, %v53_v23 }
   0xf   :  { %v60_v29 = vmax.bf16 %v58_v24, %v56_v25  ;;  %v61_v31 = vmax.bf16 %v59_v26, %v57_v27 }
  0x11   :  { %v64_v32 = vmax.bf16 %v62_v28, %v60_v29  ;;  %v65_v33 = vmax.bf16 %v63_v30, %v61_v31 }
  0x13   :  { %v77_v34 = vcombine.low %v64_v32, %v65_v33 }
  0x15   :  { %76 = vst [vmem:[%s194_s9] sm:$0xff] %v77_v34  }

// kernel: _lambda_.23
= control target key start
LH: loop header
LB: loop body
LE: loop exit
PB: predicated region body
PF: predicated region fallthrough
CT: control target
= control target key end

     0   :  { %v769_v0 = vmov 0.0   ;;  %vm770_vm0 = vmmov 0   ;;  %vm59_vm1 = vcmask 130048   ;;  %v771_v4 = vmov 0   ;;  %s931_s3 = inlined_call_operand.vmem [shape: bf16[16,128], index: 3, kind: input, shape index: {}]   ;;  %s932_s2 = inlined_call_operand.vmem [shape: bf16[16,128], index: 2, kind: input, shape index: {}]   ;;  %s933_s0 = inlined_call_operand.vmem [shape: bf16[9,16,16], index: 0, kind: input, shape index: {}]   ;;  %s934_s4 = inlined_call_operand.vmem [shape: bf16[16,128], index: 4, kind: input, shape index: {}]   ;;  %s935_s5 = inlined_call_operand.vmem [shape: bf16[16,128], index: 5, kind: input, shape index: {}]   ;;  %s936_s6 = inlined_call_operand.vmem [shape: bf16[16,128], index: 6, kind: input, shape index: {}]   ;;  %s937_s7 = inlined_call_operand.vmem [shape: bf16[16,128], index: 7, kind: input, shape index: {}]   ;;  %s938_s8 = inlined_call_operand.vmem [shape: bf16[16,128], index: 8, kind: input, shape index: {}]   ;;  %s939_s9 = inlined_call_operand.vmem [shape: bf16[16,128], index: 9, kind: input, shape index: {}]   ;;  %s940_s10 = inlined_call_operand.vmem [shape: bf16[16,128], index: 10, kind: input, shape index: {}]   ;;  %s941_s1 = inlined_call_operand.vmem [shape: f32[16,1], index: 1, kind: input, shape index: {}]   ;;  %s942_s11 = inlined_call_operand.vmem [shape: bf16[16,128], index: 11, kind: output, shape index: {}]  }
   0x1   :  { %693 = vmatprep.subr.bf16.mxu0 %v769_v0  ;;  %699 = vmatprep.subr.bf16.mxu1 %v769_v0  ;;  %v751_v1 = vld [vmem:[%s931_s3] sm:$0xff]   ;;  %v753_v3 = vld [vmem:[%s933_s0 + $0x8] sm:$0xff]   ;;  %v757_v8 = vld [vmem:[%s933_s0 + $0x10] sm:$0xff]  }
   0x2   :  { %v752_v2 = vld [vmem:[%s932_s2] sm:$0xff]   ;;  %695 = vmatprep.mubr.msk.bf16.mxu0 %vm770_vm0, %v769_v0  ;;  %701 = vmatprep.mubr.msk.bf16.mxu1 %vm770_vm0, %v769_v0  ;;  %v759_v10 = vld [vmem:[%s933_s0 + $0x18] sm:$0xff]   ;;  %v763_v14 = vld [vmem:[%s933_s0 + $0x28] sm:$0xff]  }
   0x3   :  { %694 = vmatpush3.bf16.msra.mxu0 %v751_v1  ;;  %750 = vset.pattern.permute.xlu0 %v771_v4  ;;  %v754_v5 = vld [vmem:[%s933_s0] sm:$0xff]   ;;  %v594_v17 = vld [vmem:[%s941_s1 + $0x8] sm:$0xff]  ;;  %v765_v18 = vld [vmem:[%s933_s0 + $0x30] sm:$0xff]  }
   0x4   :  { %700 = vmatpush3.bf16.msra.mxu1 %v752_v2  ;;  %705 = vmatprep.subr.bf16.mxu0 %v769_v0  ;;  %v755_v6 = vld [vmem:[%s934_s4] sm:$0xff]   ;;  %v767_v20 = vld [vmem:[%s933_s0 + $0x38] sm:$0xff]  }
   0x5   :  { %711 = vmatprep.subr.bf16.mxu1 %v769_v0  ;;  %v756_v7 = vld [vmem:[%s935_s5] sm:$0xff]  }
   0x6   :  { %696 = vmatmul.mubr.msk.bf16.vlgmr.msra.gmra.mrb[0].mxu0 %vm59_vm1, %v753_v3  ;;  %v758_v9 = vld [vmem:[%s936_s6] sm:$0xff]  }
   0x7   :  { %702 = vmatmul.mubr.msk.bf16.vlgmr.msra.gmra.mrb[0].mxu1 %vm59_vm1, %v754_v5  ;;  %706 = vmatpush3.bf16.msra.mxu0 %v755_v6  ;;  %v760_v11 = vld [vmem:[%s937_s7] sm:$0xff]  }
   0x8   :  { %707 = vmatprep.mubr.msk.bf16.mxu0 %vm770_vm0, %v769_v0  ;;  %712 = vmatpush3.bf16.msra.mxu1 %v756_v7  ;;  %v761_v12 = vld [vmem:[%s933_s0 + $0x20] sm:$0xff]  }
   0x9   :  { %717 = vmatprep.subr.bf16.mxu0 %v769_v0  ;;  %713 = vmatprep.mubr.msk.bf16.mxu1 %vm770_vm0, %v769_v0  ;;  %v762_v13 = vld [vmem:[%s938_s8] sm:$0xff]  }
   0xa   :  { %723 = vmatprep.subr.bf16.mxu1 %v769_v0  ;;  %v593_v15 = vld [vmem:[%s941_s1] sm:$0xff] }
   0xb   :  { %v764_v16 = vld [vmem:[%s939_s9] sm:$0xff]   ;;  %597 = vperm.xlu0 %750, %v593_v15  }
   0xc   :  { %v766_v19 = vld [vmem:[%s940_s10] sm:$0xff]  }
   0xd   :  { %v768_v21 = vld [vmem:[%s933_s0 + $0x40] sm:$0xff]  }
   0xe   :  { %708 = vmatmul.mubr.msk.bf16.vlgmr.msra.gmra.mrb[4].mxu0 %vm59_vm1, %v757_v8 }
   0xf   :  { %718 = vmatpush3.bf16.msra.mxu0 %v758_v9  ;;  %714 = vmatmul.mubr.msk.bf16.vlgmr.msra.gmra.mrb[4].mxu1 %vm59_vm1, %v759_v10 }
  0x10   :  { %719 = vmatprep.mubr.msk.bf16.mxu0 %vm770_vm0, %v769_v0  ;;  %724 = vmatpush3.bf16.msra.mxu1 %v760_v11 }
  0x11   :  { %729 = vmatprep.subr.bf16.mxu0 %v769_v0  ;;  %725 = vmatprep.mubr.msk.bf16.mxu1 %vm770_vm0, %v769_v0 }
  0x12   :  { %735 = vmatprep.subr.bf16.mxu1 %v769_v0  ;;  %602 = vperm.xlu0 %750, %v594_v17  }
  0x16   :  { %720 = vmatmul.mubr.msk.bf16.vlgmr.msra.gmra.mrb[8].mxu0 %vm59_vm1, %v761_v12 }
  0x17   :  { %730 = vmatpush3.bf16.msra.mxu0 %v762_v13  ;;  %726 = vmatmul.mubr.msk.bf16.vlgmr.msra.gmra.mrb[8].mxu1 %vm59_vm1, %v763_v14 }
  0x18   :  { %731 = vmatprep.mubr.msk.bf16.mxu0 %vm770_vm0, %v769_v0  ;;  %736 = vmatpush3.bf16.msra.mxu1 %v764_v16 }
  0x19   :  { %741 = vmatprep.subr.bf16.mxu0 %v769_v0  ;;  %737 = vmatprep.mubr.msk.bf16.mxu1 %vm770_vm0, %v769_v0 }
  0x1e   :  { %732 = vmatmul.mubr.msk.bf16.vlgmr.msra.gmra.mrb[12].mxu0 %vm59_vm1, %v765_v18 }
  0x1f   :  { %742 = vmatpush3.bf16.msra.mxu0 %v766_v19  ;;  %738 = vmatmul.mubr.msk.bf16.vlgmr.msra.gmra.mrb[12].mxu1 %vm59_vm1, %v767_v20 }
  0x20   :  { %743 = vmatprep.mubr.msk.bf16.mxu0 %vm770_vm0, %v769_v0 }
  0x26   :  { %744 = vmatmul.mubr.msk.bf16.vlgmr.msra.gmra.mrb[16].mxu0 %vm59_vm1, %v768_v21 }
  0x8a   :  { %v598_v4 = vpop.permute.xlu0 %597 }
  0x91   :  { %v603_v12 = vpop.permute.xlu0 %602 }
  0xd9   :  { %v97_v22 = vpop.f32.mrb[0].mxu0 }
  0xda   :  { %v152_v23 = vpop.f32.mrb[0].mxu1  ;;  %v697_v24 = vpop.f32.mrb[1].mxu0 }
  0xdb   :  { %v153_v25 = vadd.f32 %v152_v23, %v97_v22  ;;  %v703_v26 = vpop.f32.mrb[1].mxu1  ;;  %v100_v27 = vpop.f32.mrb[2].mxu0 }
  0xdc   :  { %v155_v28 = vpop.f32.mrb[2].mxu1  ;;  %v698_v29 = vpop.f32.mrb[3].mxu0 }
  0xdd   :  { %v156_v30 = vadd.f32 %v155_v28, %v100_v27  ;;  %v704_v31 = vpop.f32.mrb[3].mxu1 }
  0xe1   :  { %v212_v32 = vpop.f32.mrb[4].mxu0 }
  0xe2   :  { %v219_v33 = vadd.f32 %v212_v32, %v153_v25  ;;  %v709_v34 = vpop.f32.mrb[5].mxu0  ;;  %v274_v35 = vpop.f32.mrb[4].mxu1 }
  0xe3   :  { %v215_v36 = vpop.f32.mrb[6].mxu0  ;;  %v715_v37 = vpop.f32.mrb[5].mxu1 }
  0xe4   :  { %v220_v38 = vadd.f32 %v215_v36, %v156_v30  ;;  %v281_v39 = vadd.f32 %v274_v35, %v219_v33  ;;  %v710_v40 = vpop.f32.mrb[7].mxu0  ;;  %v277_v41 = vpop.f32.mrb[6].mxu1 }
  0xe5   :  { %v716_v42 = vpop.f32.mrb[7].mxu1 }
  0xe6   :  { %v282_v43 = vadd.f32 %v277_v41, %v220_v38 }
  0xe9   :  { %v336_v44 = vpop.f32.mrb[8].mxu0 }
  0xea   :  { %v343_v45 = vadd.f32 %v336_v44, %v281_v39  ;;  %v721_v46 = vpop.f32.mrb[9].mxu0  ;;  %v398_v47 = vpop.f32.mrb[8].mxu1 }
  0xeb   :  { %v339_v48 = vpop.f32.mrb[10].mxu0  ;;  %v727_v49 = vpop.f32.mrb[9].mxu1 }
  0xec   :  { %v344_v50 = vadd.f32 %v339_v48, %v282_v43  ;;  %v405_v51 = vadd.f32 %v398_v47, %v343_v45  ;;  %v722_v52 = vpop.f32.mrb[11].mxu0  ;;  %v401_v53 = vpop.f32.mrb[10].mxu1 }
  0xed   :  { %v728_v54 = vpop.f32.mrb[11].mxu1 }
  0xee   :  { %v406_v55 = vadd.f32 %v401_v53, %v344_v50 }
  0xf1   :  { %v460_v56 = vpop.f32.mrb[12].mxu0 }
  0xf2   :  { %v467_v57 = vadd.f32 %v460_v56, %v405_v51  ;;  %v733_v58 = vpop.f32.mrb[13].mxu0  ;;  %v522_v59 = vpop.f32.mrb[12].mxu1 }
  0xf3   :  { %v463_v60 = vpop.f32.mrb[14].mxu0  ;;  %v739_v61 = vpop.f32.mrb[13].mxu1 }
  0xf4   :  { %v468_v62 = vadd.f32 %v463_v60, %v406_v55  ;;  %v529_v63 = vadd.f32 %v522_v59, %v467_v57  ;;  %v734_v0 = vpop.f32.mrb[15].mxu0  ;;  %v525_v1 = vpop.f32.mrb[14].mxu1 }
  0xf5   :  { %v740_v2 = vpop.f32.mrb[15].mxu1 }
  0xf6   :  { %v530_v3 = vadd.f32 %v525_v1, %v468_v62 }
  0xf9   :  { %v584_v5 = vpop.f32.mrb[16].mxu0 }
  0xfa   :  { %v591_v6 = vadd.f32 %v584_v5, %v529_v63  ;;  %v745_v7 = vpop.f32.mrb[17].mxu0 }
  0xfb   :  { %v587_v8 = vpop.f32.mrb[18].mxu0 }
  0xfc   :  { %v605_v9 = vadd.f32 %v598_v4, %v591_v6  ;;  %v592_v10 = vadd.f32 %v587_v8, %v530_v3  ;;  %v746_v11 = vpop.f32.mrb[19].mxu0 }
  0xfe   :  { %v606_v13 = vadd.f32 %v603_v12, %v592_v10  ;;  %v607_v14 = vmax.f32 %v605_v9, 0.0 }
 0x100   :  { %v608_v15 = vmax.f32 %v606_v13, 0.0 }
 0x102   :  { %v673_v16 = vpack.c.bf16 %v608_v15, %v607_v14 }
 0x104   :  { %674 = vst [vmem:[%s942_s11] sm:$0xff] %v673_v16  }

// kernel: _lambda_.24
= control target key start
LH: loop header
LB: loop body
LE: loop exit
PB: predicated region body
PF: predicated region fallthrough
CT: control target
= control target key end

     0   :  { %v782_v0 = vmov 0.0   ;;  %vm783_vm0 = vmmov 0   ;;  %vm62_vm1 = vcmask 130048   ;;  %v784_v4 = vmov 0   ;;  %s952_s4 = inlined_call_operand.vmem [shape: bf16[16,128], index: 4, kind: input, shape index: {}]   ;;  %s953_s3 = inlined_call_operand.vmem [shape: bf16[16,128], index: 3, kind: input, shape index: {}]   ;;  %s954_s0 = inlined_call_operand.vmem [shape: bf16[9,16,16], index: 0, kind: input, shape index: {}]   ;;  %s955_s5 = inlined_call_operand.vmem [shape: bf16[16,128], index: 5, kind: input, shape index: {}]   ;;  %s956_s6 = inlined_call_operand.vmem [shape: bf16[16,128], index: 6, kind: input, shape index: {}]   ;;  %s957_s7 = inlined_call_operand.vmem [shape: bf16[16,128], index: 7, kind: input, shape index: {}]   ;;  %s958_s8 = inlined_call_operand.vmem [shape: bf16[16,128], index: 8, kind: input, shape index: {}]   ;;  %s959_s9 = inlined_call_operand.vmem [shape: bf16[16,128], index: 9, kind: input, shape index: {}]   ;;  %s960_s10 = inlined_call_operand.vmem [shape: bf16[16,128], index: 10, kind: input, shape index: {}]   ;;  %s961_s11 = inlined_call_operand.vmem [shape: bf16[16,128], index: 11, kind: input, shape index: {}]   ;;  %s962_s1 = inlined_call_operand.vmem [shape: f32[16,1], index: 1, kind: input, shape index: {}]   ;;  %s963_s2 = inlined_call_operand.vmem [shape: bf16[16,128], index: 2, kind: input, shape index: {}]   ;;  %s964_s12 = inlined_call_operand.vmem [shape: bf16[16,128], index: 12, kind: output, shape index: {}]  }
   0x1   :  { %706 = vmatprep.subr.bf16.mxu0 %v782_v0  ;;  %712 = vmatprep.subr.bf16.mxu1 %v782_v0  ;;  %v764_v1 = vld [vmem:[%s952_s4] sm:$0xff]   ;;  %v766_v3 = vld [vmem:[%s954_s0 + $0x8] sm:$0xff]   ;;  %v770_v8 = vld [vmem:[%s954_s0 + $0x10] sm:$0xff]  }
   0x2   :  { %v765_v2 = vld [vmem:[%s953_s3] sm:$0xff]   ;;  %708 = vmatprep.mubr.msk.bf16.mxu0 %vm783_vm0, %v782_v0  ;;  %714 = vmatprep.mubr.msk.bf16.mxu1 %vm783_vm0, %v782_v0  ;;  %v772_v10 = vld [vmem:[%s954_s0 + $0x18] sm:$0xff]   ;;  %v776_v14 = vld [vmem:[%s954_s0 + $0x28] sm:$0xff]  }
   0x3   :  { %707 = vmatpush3.bf16.msra.mxu0 %v764_v1  ;;  %763 = vset.pattern.permute.xlu0 %v784_v4  ;;  %v767_v5 = vld [vmem:[%s954_s0] sm:$0xff]   ;;  %v597_v17 = vld [vmem:[%s962_s1 + $0x8] sm:$0xff]  ;;  %v778_v18 = vld [vmem:[%s954_s0 + $0x30] sm:$0xff]  }
   0x4   :  { %713 = vmatpush3.bf16.msra.mxu1 %v765_v2  ;;  %718 = vmatprep.subr.bf16.mxu0 %v782_v0  ;;  %v768_v6 = vld [vmem:[%s955_s5] sm:$0xff]   ;;  %v780_v20 = vld [vmem:[%s954_s0 + $0x38] sm:$0xff]  }
   0x5   :  { %724 = vmatprep.subr.bf16.mxu1 %v782_v0  ;;  %v769_v7 = vld [vmem:[%s956_s6] sm:$0xff]  }
   0x6   :  { %709 = vmatmul.mubr.msk.bf16.vlgmr.msra.gmra.mrb[0].mxu0 %vm62_vm1, %v766_v3  ;;  %v771_v9 = vld [vmem:[%s957_s7] sm:$0xff]  }
   0x7   :  { %715 = vmatmul.mubr.msk.bf16.vlgmr.msra.gmra.mrb[0].mxu1 %vm62_vm1, %v767_v5  ;;  %719 = vmatpush3.bf16.msra.mxu0 %v768_v6  ;;  %v773_v11 = vld [vmem:[%s958_s8] sm:$0xff]  }
   0x8   :  { %720 = vmatprep.mubr.msk.bf16.mxu0 %vm783_vm0, %v782_v0  ;;  %725 = vmatpush3.bf16.msra.mxu1 %v769_v7  ;;  %v774_v12 = vld [vmem:[%s954_s0 + $0x20] sm:$0xff]  }
   0x9   :  { %730 = vmatprep.subr.bf16.mxu0 %v782_v0  ;;  %726 = vmatprep.mubr.msk.bf16.mxu1 %vm783_vm0, %v782_v0  ;;  %v775_v13 = vld [vmem:[%s959_s9] sm:$0xff]  }
   0xa   :  { %736 = vmatprep.subr.bf16.mxu1 %v782_v0  ;;  %v596_v15 = vld [vmem:[%s962_s1] sm:$0xff] }
   0xb   :  { %v777_v16 = vld [vmem:[%s960_s10] sm:$0xff]   ;;  %600 = vperm.xlu0 %763, %v596_v15  }
   0xc   :  { %v779_v19 = vld [vmem:[%s961_s11] sm:$0xff]  }
   0xd   :  { %v781_v21 = vld [vmem:[%s954_s0 + $0x40] sm:$0xff]  }
   0xe   :  { %721 = vmatmul.mubr.msk.bf16.vlgmr.msra.gmra.mrb[4].mxu0 %vm62_vm1, %v770_v8  ;;  %v680_v5 = vld [vmem:[%s963_s2] sm:$0xff]  }
   0xf   :  { %731 = vmatpush3.bf16.msra.mxu0 %v771_v9  ;;  %727 = vmatmul.mubr.msk.bf16.vlgmr.msra.gmra.mrb[4].mxu1 %vm62_vm1, %v772_v10  ;;  %v681_v8 = vunpack.c.l.bf16 %v680_v5 }
  0x10   :  { %732 = vmatprep.mubr.msk.bf16.mxu0 %vm783_vm0, %v782_v0  ;;  %737 = vmatpush3.bf16.msra.mxu1 %v773_v11 }
  0x11   :  { %742 = vmatprep.subr.bf16.mxu0 %v782_v0  ;;  %738 = vmatprep.mubr.msk.bf16.mxu1 %vm783_vm0, %v782_v0 }
  0x12   :  { %748 = vmatprep.subr.bf16.mxu1 %v782_v0  ;;  %605 = vperm.xlu0 %763, %v597_v17  }
  0x16   :  { %733 = vmatmul.mubr.msk.bf16.vlgmr.msra.gmra.mrb[8].mxu0 %vm62_vm1, %v774_v12 }
  0x17   :  { %743 = vmatpush3.bf16.msra.mxu0 %v775_v13  ;;  %739 = vmatmul.mubr.msk.bf16.vlgmr.msra.gmra.mrb[8].mxu1 %vm62_vm1, %v776_v14  ;;  %v682_v13 = vunpack.c.h.bf16 %v680_v5 }
  0x18   :  { %744 = vmatprep.mubr.msk.bf16.mxu0 %vm783_vm0, %v782_v0  ;;  %749 = vmatpush3.bf16.msra.mxu1 %v777_v16 }
  0x19   :  { %754 = vmatprep.subr.bf16.mxu0 %v782_v0  ;;  %750 = vmatprep.mubr.msk.bf16.mxu1 %vm783_vm0, %v782_v0 }
  0x1e   :  { %745 = vmatmul.mubr.msk.bf16.vlgmr.msra.gmra.mrb[12].mxu0 %vm62_vm1, %v778_v18 }
  0x1f   :  { %755 = vmatpush3.bf16.msra.mxu0 %v779_v19  ;;  %751 = vmatmul.mubr.msk.bf16.vlgmr.msra.gmra.mrb[12].mxu1 %vm62_vm1, %v780_v20 }
  0x20   :  { %756 = vmatprep.mubr.msk.bf16.mxu0 %vm783_vm0, %v782_v0 }
  0x26   :  { %757 = vmatmul.mubr.msk.bf16.vlgmr.msra.gmra.mrb[16].mxu0 %vm62_vm1, %v781_v21 }
  0x8a   :  { %v601_v4 = vpop.permute.xlu0 %600 }
  0x91   :  { %v606_v15 = vpop.permute.xlu0 %605 }
  0xd9   :  { %v100_v22 = vpop.f32.mrb[0].mxu0 }
  0xda   :  { %v155_v23 = vpop.f32.mrb[0].mxu1  ;;  %v710_v24 = vpop.f32.mrb[1].mxu0 }
  0xdb   :  { %v156_v25 = vadd.f32 %v155_v23, %v100_v22  ;;  %v716_v26 = vpop.f32.mrb[1].mxu1  ;;  %v103_v27 = vpop.f32.mrb[2].mxu0 }
  0xdc   :  { %v158_v28 = vpop.f32.mrb[2].mxu1  ;;  %v711_v29 = vpop.f32.mrb[3].mxu0 }
  0xdd   :  { %v159_v30 = vadd.f32 %v158_v28, %v103_v27  ;;  %v717_v31 = vpop.f32.mrb[3].mxu1 }
  0xe1   :  { %v215_v32 = vpop.f32.mrb[4].mxu0 }
  0xe2   :  { %v222_v33 = vadd.f32 %v215_v32, %v156_v25  ;;  %v722_v34 = vpop.f32.mrb[5].mxu0  ;;  %v277_v35 = vpop.f32.mrb[4].mxu1 }
  0xe3   :  { %v218_v36 = vpop.f32.mrb[6].mxu0  ;;  %v728_v37 = vpop.f32.mrb[5].mxu1 }
  0xe4   :  { %v223_v38 = vadd.f32 %v218_v36, %v159_v30  ;;  %v284_v39 = vadd.f32 %v277_v35, %v222_v33  ;;  %v723_v40 = vpop.f32.mrb[7].mxu0  ;;  %v280_v41 = vpop.f32.mrb[6].mxu1 }
  0xe5   :  { %v729_v42 = vpop.f32.mrb[7].mxu1 }
  0xe6   :  { %v285_v43 = vadd.f32 %v280_v41, %v223_v38 }
  0xe9   :  { %v339_v44 = vpop.f32.mrb[8].mxu0 }
  0xea   :  { %v346_v45 = vadd.f32 %v339_v44, %v284_v39  ;;  %v734_v46 = vpop.f32.mrb[9].mxu0  ;;  %v401_v47 = vpop.f32.mrb[8].mxu1 }
  0xeb   :  { %v342_v48 = vpop.f32.mrb[10].mxu0  ;;  %v740_v49 = vpop.f32.mrb[9].mxu1 }
  0xec   :  { %v347_v50 = vadd.f32 %v342_v48, %v285_v43  ;;  %v408_v51 = vadd.f32 %v401_v47, %v346_v45  ;;  %v735_v52 = vpop.f32.mrb[11].mxu0  ;;  %v404_v53 = vpop.f32.mrb[10].mxu1 }
  0xed   :  { %v741_v54 = vpop.f32.mrb[11].mxu1 }
  0xee   :  { %v409_v55 = vadd.f32 %v404_v53, %v347_v50 }
  0xf1   :  { %v463_v56 = vpop.f32.mrb[12].mxu0 }
  0xf2   :  { %v470_v57 = vadd.f32 %v463_v56, %v408_v51  ;;  %v746_v58 = vpop.f32.mrb[13].mxu0  ;;  %v525_v59 = vpop.f32.mrb[12].mxu1 }
  0xf3   :  { %v466_v60 = vpop.f32.mrb[14].mxu0  ;;  %v752_v61 = vpop.f32.mrb[13].mxu1 }
  0xf4   :  { %v471_v62 = vadd.f32 %v466_v60, %v409_v55  ;;  %v532_v63 = vadd.f32 %v525_v59, %v470_v57  ;;  %v747_v0 = vpop.f32.mrb[15].mxu0  ;;  %v528_v1 = vpop.f32.mrb[14].mxu1 }
  0xf5   :  { %v753_v2 = vpop.f32.mrb[15].mxu1 }
  0xf6   :  { %v533_v3 = vadd.f32 %v528_v1, %v471_v62 }
  0xf9   :  { %v587_v6 = vpop.f32.mrb[16].mxu0 }
  0xfa   :  { %v594_v7 = vadd.f32 %v587_v6, %v532_v63  ;;  %v758_v9 = vpop.f32.mrb[17].mxu0 }
  0xfb   :  { %v590_v10 = vpop.f32.mrb[18].mxu0 }
  0xfc   :  { %v608_v11 = vadd.f32 %v601_v4, %v594_v7  ;;  %v595_v12 = vadd.f32 %v590_v10, %v533_v3  ;;  %v759_v14 = vpop.f32.mrb[19].mxu0 }
  0xfe   :  { %v614_v16 = vadd.f32 %v681_v8, %v608_v11  ;;  %v609_v17 = vadd.f32 %v606_v15, %v595_v12 }
 0x100   :  { %v615_v18 = vadd.f32 %v682_v13, %v609_v17  ;;  %v616_v19 = vmax.f32 %v614_v16, 0.0 }
 0x102   :  { %v617_v20 = vmax.f32 %v615_v18, 0.0 }
 0x104   :  { %v686_v21 = vpack.c.bf16 %v617_v20, %v616_v19 }
 0x106   :  { %687 = vst [vmem:[%s964_s12] sm:$0xff] %v686_v21  }

// kernel: _lambda_.27
= control target key start
LH: loop header
LB: loop body
LE: loop exit
PB: predicated region body
PF: predicated region fallthrough
CT: control target
= control target key end

     0   :  { %v1054_v1 = vmov 0   ;;  %vm68_vm0 = vcmask 130048   ;;  %vm817_vm1 = vcmask 257024   ;;  %s1238_s3 = inlined_call_operand.vmem [shape: bf16[16,32], index: 3, kind: input, shape index: {}]   ;;  %s1239_s6 = inlined_call_operand.vmem [shape: bf16[16,32], index: 6, kind: input, shape index: {}]   ;;  %s1240_s0 = inlined_call_operand.vmem [shape: bf16[9,32,16], index: 0, kind: input, shape index: {}]   ;;  %s1241_s7 = inlined_call_operand.vmem [shape: bf16[16,32], index: 7, kind: input, shape index: {}]   ;;  %s1242_s2 = inlined_call_operand.vmem [shape: bf16[16,32], index: 2, kind: input, shape index: {}]   ;;  %s1243_s8 = inlined_call_operand.vmem [shape: bf16[16,32], index: 8, kind: input, shape index: {}]   ;;  %s1244_s4 = inlined_call_operand.vmem [shape: bf16[16,32], index: 4, kind: input, shape index: {}]   ;;  %s1245_s9 = inlined_call_operand.vmem [shape: bf16[16,32], index: 9, kind: input, shape index: {}]   ;;  %s1246_s5 = inlined_call_operand.vmem [shape: bf16[16,32], index: 5, kind: input, shape index: {}]   ;;  %s1247_s10 = inlined_call_operand.vmem [shape: bf16[16,32], index: 10, kind: input, shape index: {}]   ;;  %s1248_s1 = inlined_call_operand.vmem [shape: f32[32,1], index: 1, kind: input, shape index: {}]   ;;  %s1249_s11 = inlined_call_operand.vmem [shape: bf16[32,32], index: 11, kind: output, shape index: {}]  }
   0x1   :  { %v1027_v0 = vld [vmem:[%s1238_s3] sm:$0xff]   ;;  %1026 = vset.pattern.permute.xlu1 %v1054_v1  ;;  %1025 = vset.pattern.permute.xlu0 %v1054_v1  ;;  %v1029_v3 = vld [vmem:[%s1240_s0 + $0x10] sm:$0xff]   ;;  %v1031_v5 = vld [vmem:[%s1240_s0 + $0x18] sm:$0xff]  }
   0x2   :  { %v1028_v2 = vld [vmem:[%s1239_s6] sm:$0xff]   ;;  %938 = vmatprep.subr.bf16.mxu1 %v1027_v0  ;;  %940 = vmatprep.mubr.msk.bf16.mxu1 %vm68_vm0, %v1029_v3  ;;  %v1032_v6 = vld [vmem:[%s1240_s0 + $0x48] sm:$0xff]   ;;  %v1036_v10 = vld [vmem:[%s1240_s0 + $0x50] sm:$0xff]  }
   0x3   :  { %962 = vmatprep.subr.bf16.mxu0 %v1028_v2  ;;  %939 = vmatpush3.bf16.msra.mxu1 %v1027_v0  ;;  %v1030_v4 = vld [vmem:[%s1240_s0 + $0x40] sm:$0xff]   ;;  %v1037_v13 = vld [vmem:[%s1240_s0 + $0x8] sm:$0xff]   ;;  %v1038_v14 = vld [vmem:[%s1240_s0 + $0x58] sm:$0xff]  }
   0x4   :  { %963 = vmatpush3.bf16.msra.mxu0 %v1028_v2  ;;  %964 = vmatprep.mubr.msk.bf16.mxu0 %vm68_vm0, %v1030_v4  ;;  %v1033_v7 = vld [vmem:[%s1241_s7] sm:$0xff]   ;;  %v1043_v19 = vld [vmem:[%s1240_s0 + $0x28] sm:$0xff]   ;;  %v771_v21 = vld [vmem:[%s1248_s1 + $0x10] sm:$0xff] }
   0x5   :  { %v1034_v8 = vld [vmem:[%s1242_s2] sm:$0xff]   ;;  %968 = vmatprep.subr.bf16.mxu0 %v1033_v7  ;;  %v1044_v20 = vld [vmem:[%s1240_s0 + $0x68] sm:$0xff]   ;;  %v1047_v23 = vld [vmem:[%s1240_s0 + $0x30] sm:$0xff]   ;;  %785 = vperm.xlu1 %1026, %v771_v21  }
   0x6   :  { %941 = vmatmul.mubr.msk.bf16.vlgmr.msra.gmra.mrb[0].mxu1 %vm68_vm0, %v1031_v5  ;;  %v1035_v9 = vld [vmem:[%s1240_s0] sm:$0xff]   ;;  %944 = vmatprep.subr.bf16.mxu1 %v1034_v8  ;;  %v1048_v24 = vld [vmem:[%s1240_s0 + $0x70] sm:$0xff]   ;;  %v772_v26 = vld [vmem:[%s1248_s1 + $0x18] sm:$0xff] }
   0x7   :  { %965 = vmatmul.mubr.msk.bf16.vlgmr.msra.gmra.mrb[0].mxu0 %vm68_vm0, %v1032_v6  ;;  %945 = vmatpush3.bf16.msra.mxu1 %v1034_v8  ;;  %v1039_v11 = vld [vmem:[%s1243_s8] sm:$0xff]   ;;  %v770_v27 = vld [vmem:[%s1248_s1 + $0x8] sm:$0xff]  ;;  %v1049_v28 = vld [vmem:[%s1240_s0 + $0x38] sm:$0xff]  }
   0x8   :  { %969 = vmatpush3.bf16.msra.mxu0 %v1033_v7  ;;  %946 = vmatprep.mubr.msk.bf16.mxu1 %vm68_vm0, %v1035_v9  ;;  %v1040_v12 = vld [vmem:[%s1244_s4] sm:$0xff]   ;;  %v1050_v29 = vld [vmem:[%s1240_s0 + $0x78] sm:$0xff]   ;;  %v1053_v31 = vld [vmem:[%s1240_s0 + $0x88] sm:$0xff]  }
   0x9   :  { %970 = vmatprep.mubr.msk.bf16.mxu0 %vm68_vm0, %v1036_v10  ;;  %974 = vmatprep.subr.bf16.mxu0 %v1039_v11  ;;  %v1041_v15 = vld [vmem:[%s1240_s0 + $0x20] sm:$0xff]  }
   0xa   :  { %950 = vmatprep.subr.bf16.mxu1 %v1040_v12  ;;  %v1042_v16 = vld [vmem:[%s1240_s0 + $0x60] sm:$0xff]   ;;  %790 = vperm.xlu1 %1026, %v772_v26  }
   0xb   :  { %v1045_v17 = vld [vmem:[%s1245_s9] sm:$0xff]  }
   0xc   :  { %v1046_v18 = vld [vmem:[%s1246_s5] sm:$0xff]  }
   0xd   :  { %v769_v22 = vld [vmem:[%s1248_s1] sm:$0xff] }
   0xe   :  { %775 = vperm.xlu0 %1025, %v769_v22   ;;  %v1051_v25 = vld [vmem:[%s1247_s10] sm:$0xff]  }
   0xf   :  { %v1052_v30 = vld [vmem:[%s1240_s0 + $0x80] sm:$0xff]  }
  0x12   :  { %947 = vmatmul.mubr.msk.bf16.vlgmr.msra.gmra.mrb[0].mxu1 %vm68_vm0, %v1037_v13  ;;  %780 = vperm.xlu0 %1025, %v770_v27  }
  0x13   :  { %971 = vmatmul.mubr.msk.bf16.vlgmr.msra.gmra.mrb[0].mxu0 %vm68_vm0, %v1038_v14  ;;  %951 = vmatpush3.bf16.msra.mxu1 %v1040_v12 }
  0x14   :  { %975 = vmatpush3.bf16.msra.mxu0 %v1039_v11  ;;  %952 = vmatprep.mubr.msk.bf16.mxu1 %vm68_vm0, %v1041_v15 }
  0x15   :  { %976 = vmatprep.mubr.msk.bf16.mxu0 %vm68_vm0, %v1042_v16  ;;  %980 = vmatprep.subr.bf16.mxu0 %v1045_v17 }
  0x16   :  { %956 = vmatprep.subr.bf16.mxu1 %v1046_v18 }
  0x1e   :  { %953 = vmatmul.mubr.msk.bf16.vlgmr.msra.gmra.mrb[0].mxu1 %vm68_vm0, %v1043_v19 }
  0x1f   :  { %977 = vmatmul.mubr.msk.bf16.vlgmr.msra.gmra.mrb[0].mxu0 %vm68_vm0, %v1044_v20  ;;  %957 = vmatpush3.bf16.msra.mxu1 %v1046_v18 }
  0x20   :  { %981 = vmatpush3.bf16.msra.mxu0 %v1045_v17  ;;  %958 = vmatprep.mubr.msk.bf16.mxu1 %vm68_vm0, %v1047_v23 }
  0x21   :  { %982 = vmatprep.mubr.msk.bf16.mxu0 %vm68_vm0, %v1048_v24  ;;  %986 = vmatprep.subr.bf16.mxu0 %v1051_v25 }
  0x2a   :  { %959 = vmatmul.mubr.msk.bf16.vlgmr.msra.gmra.mrb[0].mxu1 %vm68_vm0, %v1049_v28 }
  0x2b   :  { %983 = vmatmul.mubr.msk.bf16.vlgmr.msra.gmra.mrb[0].mxu0 %vm68_vm0, %v1050_v29 }
  0x2c   :  { %987 = vmatpush3.bf16.msra.mxu0 %v1051_v25  ;;  %988 = vmatprep.mubr.msk.bf16.mxu0 %vm68_vm0, %v1052_v30 }
  0x37   :  { %989 = vmatmul.mubr.msk.bf16.vlgmr.msra.gmra.mrb[0].mxu0 %vm68_vm0, %v1053_v31 }
  0x84   :  { %v786_v36 = vpop.permute.xlu1 %785 }
  0x89   :  { %v791_v47 = vpop.permute.xlu1 %790 }
  0x8d   :  { %v776_v37 = vpop.permute.xlu0 %775 }
  0x91   :  { %v781_v50 = vpop.permute.xlu0 %780 }
  0xfd   :  { %v960_v32 = vpop.f32.mrb[0].mxu1 }
  0xfe   :  { %v340_v33 = vpop.f32.mrb[1].mxu1 }
  0xff   :  { %v961_v34 = vpop.f32.mrb[2].mxu1 }
 0x100   :  { %v343_v35 = vpop.f32.mrb[3].mxu1 }
 0x10a   :  { %v990_v38 = vpop.f32.mrb[0].mxu0 }
 0x10b   :  { %v992_v39 = vadd.f32 %v990_v38, %v960_v32  ;;  %v750_v40 = vpop.f32.mrb[1].mxu0 }
 0x10c   :  { %v993_v41 = vadd.f32 %v750_v40, %v340_v33  ;;  %v991_v42 = vpop.f32.mrb[2].mxu0 }
 0x10d   :  { %v795_v43 = vadd.f32 %v992_v39, %v786_v36  ;;  %v994_v44 = vadd.f32 %v991_v42, %v961_v34  ;;  %v753_v45 = vpop.f32.mrb[3].mxu0 }
 0x10e   :  { %v793_v46 = vadd.f32 %v993_v41, %v776_v37  ;;  %v995_v48 = vadd.f32 %v753_v45, %v343_v35 }
 0x10f   :  { %v799_v49 = vmax.f32 %v795_v43, 0.0  ;;  %v796_v51 = vadd.f32 %v994_v44, %v791_v47 }
 0x110   :  { %v797_v52 = vmax.f32 %v793_v46, 0.0  ;;  %v794_v53 = vadd.f32 %v995_v48, %v781_v50 }
 0x111   :  { %v909_v54 = vpack.c.bf16 %v799_v49, %v799_v49  ;;  %v800_v55 = vmax.f32 %v796_v51, 0.0 }
 0x112   :  { %v907_v56 = vpack.c.bf16 %v797_v52, %v797_v52  ;;  %v798_v57 = vmax.f32 %v794_v53, 0.0 }
 0x113   :  { %820 = vst.msk [vmem:[%s1249_s11 + $0x8] sm:$0xf] %vm817_vm1, %v909_v54  ;;  %v910_v58 = vpack.c.bf16 %v800_v55, %v800_v55 }
 0x114   :  { %818 = vst.msk [vmem:[%s1249_s11] sm:$0xf] %vm817_vm1, %v907_v56  ;;  %v908_v59 = vpack.c.bf16 %v798_v57, %v798_v57 }
 0x115   :  { %821 = vst.msk [vmem:[%s1249_s11 + $0xc] sm:$0xf] %vm817_vm1, %v910_v58 }
 0x116   :  { %819 = vst.msk [vmem:[%s1249_s11 + $0x4] sm:$0xf] %vm817_vm1, %v908_v59 }

// kernel: _lambda_.28
= control target key start
LH: loop header
LB: loop body
LE: loop exit
PB: predicated region body
PF: predicated region fallthrough
CT: control target
= control target key end

     0   :  { %vm61_vm0 = vcmask 130048   ;;  %v170_v1 = vmov 0   ;;  %vm133_vm1 = vcmask 257024   ;;  %s226_s2 = inlined_call_operand.vmem [shape: bf16[16,32], index: 2, kind: input, shape index: {}]   ;;  %s227_s0 = inlined_call_operand.vmem [shape: bf16[1,32,16], index: 0, kind: input, shape index: {}]   ;;  %s228_s1 = inlined_call_operand.vmem [shape: f32[32,1], index: 1, kind: input, shape index: {}]   ;;  %s229_s3 = inlined_call_operand.vmem [shape: bf16[32,32], index: 3, kind: output, shape index: {}]  }
   0x1   :  { %v167_v0 = vld [vmem:[%s226_s2] sm:$0xff]   ;;  %166 = vset.pattern.permute.xlu1 %v170_v1  ;;  %165 = vset.pattern.permute.xlu0 %v170_v1  ;;  %v169_v3 = vld [vmem:[%s227_s0 + $0x8] sm:$0xff]   ;;  %v23_v4 = vld [vmem:[%s228_s1 + $0x10] sm:$0xff] }
   0x2   :  { %v168_v2 = vld [vmem:[%s227_s0] sm:$0xff]   ;;  %158 = vmatprep.subr.bf16.mxu0 %v167_v0  ;;  %37 = vperm.xlu1 %166, %v23_v4   ;;  %v24_v6 = vld [vmem:[%s228_s1 + $0x18] sm:$0xff]  ;;  %v22_v7 = vld [vmem:[%s228_s1 + $0x8] sm:$0xff] }
   0x3   :  { %159 = vmatpush3.bf16.msra.mxu0 %v167_v0  ;;  %160 = vmatprep.mubr.msk.bf16.mxu0 %vm61_vm0, %v168_v2  ;;  %v21_v5 = vld [vmem:[%s228_s1] sm:$0xff] }
   0x4   :  { %27 = vperm.xlu0 %165, %v21_v5  }
   0x6   :  { %161 = vmatmul.mubr.msk.bf16.vlgmr.msra.gmra.mrb[0].mxu0 %vm61_vm0, %v169_v3  ;;  %42 = vperm.xlu1 %166, %v24_v6  }
   0x8   :  { %32 = vperm.xlu0 %165, %v22_v7  }
  0x81   :  { %v38_v8 = vpop.permute.xlu1 %37 }
  0x83   :  { %v28_v9 = vpop.permute.xlu0 %27 }
  0x85   :  { %v43_v13 = vpop.permute.xlu1 %42 }
  0x87   :  { %v33_v16 = vpop.permute.xlu0 %32 }
  0xd9   :  { %v162_v10 = vpop.f32.mrb[0].mxu0 }
  0xda   :  { %v111_v11 = vadd.f32 %v162_v10, %v38_v8  ;;  %v102_v12 = vpop.f32.mrb[1].mxu0 }
  0xdb   :  { %v103_v14 = vadd.f32 %v102_v12, %v28_v9  ;;  %v163_v15 = vpop.f32.mrb[2].mxu0 }
  0xdc   :  { %v153_v17 = vpack.c.bf16 %v111_v11, %v111_v11  ;;  %v114_v18 = vadd.f32 %v163_v15, %v43_v13  ;;  %v105_v19 = vpop.f32.mrb[3].mxu0 }
  0xdd   :  { %v151_v20 = vpack.c.bf16 %v103_v14, %v103_v14  ;;  %v106_v21 = vadd.f32 %v105_v19, %v33_v16 }
  0xde   :  { %136 = vst.msk [vmem:[%s229_s3 + $0x8] sm:$0xf] %vm133_vm1, %v153_v17  ;;  %v154_v22 = vpack.c.bf16 %v114_v18, %v114_v18 }
  0xdf   :  { %134 = vst.msk [vmem:[%s229_s3] sm:$0xf] %vm133_vm1, %v151_v20  ;;  %v152_v23 = vpack.c.bf16 %v106_v21, %v106_v21 }
  0xe0   :  { %137 = vst.msk [vmem:[%s229_s3 + $0xc] sm:$0xf] %vm133_vm1, %v154_v22 }
  0xe1   :  { %135 = vst.msk [vmem:[%s229_s3 + $0x4] sm:$0xf] %vm133_vm1, %v152_v23 }

// kernel: _lambda_.29
= control target key start
LH: loop header
LB: loop body
LE: loop exit
PB: predicated region body
PF: predicated region fallthrough
CT: control target
= control target key end

     0   :  { %v1195_v1 = vmov 0   ;;  %vm81_vm0 = vcmask 261120   ;;  %vm904_vm1 = vcmask 257024   ;;  %s1417_s4 = inlined_call_operand.vmem [shape: bf16[32,32], index: 4, kind: input, shape index: {}]   ;;  %s1418_s7 = inlined_call_operand.vmem [shape: bf16[32,32], index: 7, kind: input, shape index: {}]   ;;  %s1419_s0 = inlined_call_operand.vmem [shape: bf16[9,32,32], index: 0, kind: input, shape index: {}]   ;;  %s1420_s8 = inlined_call_operand.vmem [shape: bf16[32,32], index: 8, kind: input, shape index: {}]   ;;  %s1421_s3 = inlined_call_operand.vmem [shape: bf16[32,32], index: 3, kind: input, shape index: {}]   ;;  %s1422_s9 = inlined_call_operand.vmem [shape: bf16[32,32], index: 9, kind: input, shape index: {}]   ;;  %s1423_s5 = inlined_call_operand.vmem [shape: bf16[32,32], index: 5, kind: input, shape index: {}]   ;;  %s1424_s10 = inlined_call_operand.vmem [shape: bf16[32,32], index: 10, kind: input, shape index: {}]   ;;  %s1425_s6 = inlined_call_operand.vmem [shape: bf16[32,32], index: 6, kind: input, shape index: {}]   ;;  %s1426_s11 = inlined_call_operand.vmem [shape: bf16[32,32], index: 11, kind: input, shape index: {}]   ;;  %s1427_s1 = inlined_call_operand.vmem [shape: f32[32,1], index: 1, kind: input, shape index: {}]   ;;  %s1428_s2 = inlined_call_operand.vmem [shape: bf16[32,32], index: 2, kind: input, shape index: {}]   ;;  %s1429_s12 = inlined_call_operand.vmem [shape: bf16[32,32], index: 12, kind: output, shape index: {}]  }
   0x1   :  { %v1159_v0 = vld [vmem:[%s1417_s4] sm:$0xff]   ;;  %1158 = vset.pattern.permute.xlu1 %v1195_v1  ;;  %1157 = vset.pattern.permute.xlu0 %v1195_v1  ;;  %v1161_v3 = vld [vmem:[%s1417_s4 + $0x8] sm:$0xff]   ;;  %v1163_v5 = vld [vmem:[%s1419_s0 + $0x10] sm:$0xff]  }
   0x2   :  { %v1160_v2 = vld [vmem:[%s1418_s7] sm:$0xff]   ;;  %1052 = vmatprep.subr.bf16.mxu1 %v1159_v0  ;;  %v1162_v4 = vld [vmem:[%s1418_s7 + $0x8] sm:$0xff]   ;;  %1056 = vmatprep.mubr.msk.bf16.mxu1 %vm81_vm0, %v1163_v5  ;;  %v1165_v7 = vld [vmem:[%s1419_s0 + $0x18] sm:$0xff]  }
   0x3   :  { %1084 = vmatprep.subr.bf16.mxu0 %v1160_v2  ;;  %1053 = vmatpush3.bf16.msra.mxu1 %v1159_v0  ;;  %v1164_v6 = vld [vmem:[%s1419_s0 + $0x40] sm:$0xff]   ;;  %v1166_v8 = vld [vmem:[%s1419_s0 + $0x48] sm:$0xff]   ;;  %v1172_v14 = vld [vmem:[%s1419_s0 + $0x50] sm:$0xff]  }
   0x4   :  { %1085 = vmatpush3.bf16.msra.mxu0 %v1160_v2  ;;  %1054 = vmatprep.subr.bf16.mxu1 %v1161_v3  ;;  %v1167_v9 = vld [vmem:[%s1420_s8] sm:$0xff]   ;;  %v1169_v11 = vld [vmem:[%s1420_s8 + $0x8] sm:$0xff]   ;;  %v1174_v18 = vld [vmem:[%s1419_s0 + $0x58] sm:$0xff]  }
   0x5   :  { %1086 = vmatprep.subr.bf16.mxu0 %v1162_v4  ;;  %1088 = vmatprep.mubr.msk.bf16.mxu0 %vm81_vm0, %v1164_v6  ;;  %v1168_v10 = vld [vmem:[%s1421_s3] sm:$0xff]   ;;  %v1170_v12 = vld [vmem:[%s1421_s3 + $0x8] sm:$0xff]   ;;  %v1187_v29 = vld [vmem:[%s1419_s0 + $0x30] sm:$0xff]  }
   0x6   :  { %v1171_v13 = vld [vmem:[%s1419_s0] sm:$0xff]   ;;  %v1173_v15 = vld [vmem:[%s1419_s0 + $0x8] sm:$0xff]   ;;  %v1188_v30 = vld [vmem:[%s1419_s0 + $0x70] sm:$0xff]  }
   0x7   :  { %1055 = vmatpush3.bf16.msra.mxu1 %v1161_v3  ;;  %v1175_v16 = vld [vmem:[%s1422_s9] sm:$0xff]   ;;  %v1177_v19 = vld [vmem:[%s1422_s9 + $0x8] sm:$0xff]   ;;  %v846_v31 = vld [vmem:[%s1427_s1 + $0x10] sm:$0xff] }
   0x8   :  { %1087 = vmatpush3.bf16.msra.mxu0 %v1162_v4  ;;  %1060 = vmatprep.subr.bf16.mxu1 %v1168_v10  ;;  %v1176_v17 = vld [vmem:[%s1423_s5] sm:$0xff]   ;;  %v1178_v20 = vld [vmem:[%s1423_s5 + $0x8] sm:$0xff]   ;;  %v847_v34 = vld [vmem:[%s1427_s1 + $0x18] sm:$0xff] }
   0x9   :  { %1092 = vmatprep.subr.bf16.mxu0 %v1167_v9  ;;  %v1179_v21 = vld [vmem:[%s1419_s0 + $0x20] sm:$0xff]   ;;  %v1181_v25 = vld [vmem:[%s1419_s0 + $0x28] sm:$0xff]   ;;  %860 = vperm.xlu1 %1158, %v846_v31   ;;  %v1189_v36 = vld [vmem:[%s1419_s0 + $0x38] sm:$0xff]  }
   0xa   :  { %1057 = vmatmul.mubr.msk.bf16.vlgmr.msra.gmra.mrb[0].mxu1 %vm81_vm0, %v1165_v7  ;;  %v1180_v22 = vld [vmem:[%s1419_s0 + $0x60] sm:$0xff]   ;;  %v1182_v26 = vld [vmem:[%s1419_s0 + $0x68] sm:$0xff]   ;;  %v1190_v37 = vld [vmem:[%s1419_s0 + $0x78] sm:$0xff]  }
   0xb   :  { %1089 = vmatmul.mubr.msk.bf16.vlgmr.msra.gmra.mrb[0].mxu0 %vm81_vm0, %v1166_v8  ;;  %1061 = vmatpush3.bf16.msra.mxu1 %v1168_v10  ;;  %v1183_v23 = vld [vmem:[%s1424_s10] sm:$0xff]   ;;  %v1185_v27 = vld [vmem:[%s1424_s10 + $0x8] sm:$0xff]  }
   0xc   :  { %1093 = vmatpush3.bf16.msra.mxu0 %v1167_v9  ;;  %1062 = vmatprep.subr.bf16.mxu1 %v1170_v12  ;;  %v1184_v24 = vld [vmem:[%s1425_s6] sm:$0xff]   ;;  %v1186_v28 = vld [vmem:[%s1425_s6 + $0x8] sm:$0xff]  }
   0xd   :  { %1094 = vmatprep.subr.bf16.mxu0 %v1169_v11  ;;  %1064 = vmatprep.mubr.msk.bf16.mxu1 %vm81_vm0, %v1171_v13  ;;  %v844_v32 = vld [vmem:[%s1427_s1] sm:$0xff]  ;;  %v845_v35 = vld [vmem:[%s1427_s1 + $0x8] sm:$0xff] }
   0xe   :  { %1096 = vmatprep.mubr.msk.bf16.mxu0 %vm81_vm0, %v1172_v14  ;;  %v1191_v33 = vld [vmem:[%s1426_s11] sm:$0xff]   ;;  %850 = vperm.xlu0 %1157, %v844_v32   ;;  %v1192_v39 = vld [vmem:[%s1426_s11 + $0x8] sm:$0xff]  }
   0xf   :  { %1063 = vmatpush3.bf16.msra.mxu1 %v1170_v12  ;;  %865 = vperm.xlu1 %1158, %v847_v34   ;;  %v1193_v38 = vld [vmem:[%s1419_s0 + $0x80] sm:$0xff]   ;;  %v1194_v40 = vld [vmem:[%s1419_s0 + $0x88] sm:$0xff]  }
  0x10   :  { %1095 = vmatpush3.bf16.msra.mxu0 %v1169_v11  ;;  %1068 = vmatprep.subr.bf16.mxu1 %v1176_v17  ;;  %v1015_v46 = vld [vmem:[%s1428_s2 + $0x8] sm:$0xff]   ;;  %v1008_v48 = vld [vmem:[%s1428_s2] sm:$0xff]  }
  0x11   :  { %1100 = vmatprep.subr.bf16.mxu0 %v1175_v16  ;;  %v1013_v51 = vunpack.c.l.bf16 %v1015_v46  ;;  %v1009_v54 = vunpack.c.l.bf16 %v1008_v48  ;;  %v1014_v58 = vunpack.c.h.bf16 %v1015_v46  ;;  %v1010_v63 = vunpack.c.h.bf16 %v1008_v48 }
  0x12   :  { %855 = vperm.xlu0 %1157, %v845_v35  }
  0x16   :  { %1065 = vmatmul.mubr.msk.bf16.vlgmr.msra.gmra.mrb[0].mxu1 %vm81_vm0, %v1173_v15 }
  0x17   :  { %1097 = vmatmul.mubr.msk.bf16.vlgmr.msra.gmra.mrb[0].mxu0 %vm81_vm0, %v1174_v18  ;;  %1069 = vmatpush3.bf16.msra.mxu1 %v1176_v17 }
  0x18   :  { %1101 = vmatpush3.bf16.msra.mxu0 %v1175_v16  ;;  %1070 = vmatprep.subr.bf16.mxu1 %v1178_v20 }
  0x19   :  { %1102 = vmatprep.subr.bf16.mxu0 %v1177_v19  ;;  %1072 = vmatprep.mubr.msk.bf16.mxu1 %vm81_vm0, %v1179_v21 }
  0x1a   :  { %1104 = vmatprep.mubr.msk.bf16.mxu0 %vm81_vm0, %v1180_v22 }
  0x1b   :  { %1071 = vmatpush3.bf16.msra.mxu1 %v1178_v20 }
  0x1c   :  { %1103 = vmatpush3.bf16.msra.mxu0 %v1177_v19  ;;  %1076 = vmatprep.subr.bf16.mxu1 %v1184_v24 }
  0x1d   :  { %1108 = vmatprep.subr.bf16.mxu0 %v1183_v23 }
  0x22   :  { %1073 = vmatmul.mubr.msk.bf16.vlgmr.msra.gmra.mrb[0].mxu1 %vm81_vm0, %v1181_v25 }
  0x23   :  { %1105 = vmatmul.mubr.msk.bf16.vlgmr.msra.gmra.mrb[0].mxu0 %vm81_vm0, %v1182_v26  ;;  %1077 = vmatpush3.bf16.msra.mxu1 %v1184_v24 }
  0x24   :  { %1109 = vmatpush3.bf16.msra.mxu0 %v1183_v23  ;;  %1078 = vmatprep.subr.bf16.mxu1 %v1186_v28 }
  0x25   :  { %1110 = vmatprep.subr.bf16.mxu0 %v1185_v27  ;;  %1080 = vmatprep.mubr.msk.bf16.mxu1 %vm81_vm0, %v1187_v29 }
  0x26   :  { %1112 = vmatprep.mubr.msk.bf16.mxu0 %vm81_vm0, %v1188_v30 }
  0x27   :  { %1079 = vmatpush3.bf16.msra.mxu1 %v1186_v28 }
  0x28   :  { %1111 = vmatpush3.bf16.msra.mxu0 %v1185_v27 }
  0x29   :  { %1116 = vmatprep.subr.bf16.mxu0 %v1191_v33 }
  0x2e   :  { %1081 = vmatmul.mubr.msk.bf16.vlgmr.msra.gmra.mrb[0].mxu1 %vm81_vm0, %v1189_v36 }
  0x2f   :  { %1113 = vmatmul.mubr.msk.bf16.vlgmr.msra.gmra.mrb[0].mxu0 %vm81_vm0, %v1190_v37 }
  0x30   :  { %1117 = vmatpush3.bf16.msra.mxu0 %v1191_v33  ;;  %1120 = vmatprep.mubr.msk.bf16.mxu0 %vm81_vm0, %v1193_v38 }
  0x31   :  { %1118 = vmatprep.subr.bf16.mxu0 %v1192_v39 }
  0x34   :  { %1119 = vmatpush3.bf16.msra.mxu0 %v1192_v39 }
  0x3b   :  { %1121 = vmatmul.mubr.msk.bf16.vlgmr.msra.gmra.mrb[0].mxu0 %vm81_vm0, %v1194_v40 }
  0x88   :  { %v861_v45 = vpop.permute.xlu1 %860 }
  0x8d   :  { %v851_v47 = vpop.permute.xlu0 %850 }
  0x8e   :  { %v866_v61 = vpop.permute.xlu1 %865 }
  0x91   :  { %v856_v1 = vpop.permute.xlu0 %855 }
 0x101   :  { %v1082_v41 = vpop.f32.mrb[0].mxu1 }
 0x102   :  { %v375_v42 = vpop.f32.mrb[1].mxu1 }
 0x103   :  { %v1083_v43 = vpop.f32.mrb[2].mxu1 }
 0x104   :  { %v378_v44 = vpop.f32.mrb[3].mxu1 }
 0x10e   :  { %v1122_v49 = vpop.f32.mrb[0].mxu0 }
 0x10f   :  { %v1124_v50 = vadd.f32 %v1122_v49, %v1082_v41  ;;  %v825_v52 = vpop.f32.mrb[1].mxu0 }
 0x110   :  { %v1125_v53 = vadd.f32 %v825_v52, %v375_v42  ;;  %v1123_v55 = vpop.f32.mrb[2].mxu0 }
 0x111   :  { %v870_v56 = vadd.f32 %v1124_v50, %v861_v45  ;;  %v1126_v57 = vadd.f32 %v1123_v55, %v1083_v43  ;;  %v828_v59 = vpop.f32.mrb[3].mxu0 }
 0x112   :  { %v868_v60 = vadd.f32 %v1125_v53, %v851_v47  ;;  %v1127_v62 = vadd.f32 %v828_v59, %v378_v44 }
 0x113   :  { %v882_v0 = vadd.f32 %v1013_v51, %v870_v56  ;;  %v871_v2 = vadd.f32 %v1126_v57, %v866_v61 }
 0x114   :  { %v880_v3 = vadd.f32 %v1009_v54, %v868_v60  ;;  %v869_v4 = vadd.f32 %v1127_v62, %v856_v1 }
 0x115   :  { %v886_v5 = vmax.f32 %v882_v0, 0.0  ;;  %v883_v6 = vadd.f32 %v1014_v58, %v871_v2 }
 0x116   :  { %v884_v7 = vmax.f32 %v880_v3, 0.0  ;;  %v881_v8 = vadd.f32 %v1010_v63, %v869_v4 }
 0x117   :  { %v1005_v9 = vpack.c.bf16 %v886_v5, %v886_v5  ;;  %v887_v10 = vmax.f32 %v883_v6, 0.0 }
 0x118   :  { %v1003_v11 = vpack.c.bf16 %v884_v7, %v884_v7  ;;  %v885_v12 = vmax.f32 %v881_v8, 0.0 }
 0x119   :  { %907 = vst.msk [vmem:[%s1429_s12 + $0x8] sm:$0xf] %vm904_vm1, %v1005_v9  ;;  %v1006_v13 = vpack.c.bf16 %v887_v10, %v887_v10 }
 0x11a   :  { %905 = vst.msk [vmem:[%s1429_s12] sm:$0xf] %vm904_vm1, %v1003_v11  ;;  %v1004_v14 = vpack.c.bf16 %v885_v12, %v885_v12 }
 0x11b   :  { %908 = vst.msk [vmem:[%s1429_s12 + $0xc] sm:$0xf] %vm904_vm1, %v1006_v13 }
 0x11c   :  { %906 = vst.msk [vmem:[%s1429_s12 + $0x4] sm:$0xf] %vm904_vm1, %v1004_v14 }

// kernel: _lambda_.30
= control target key start
LH: loop header
LB: loop body
LE: loop exit
PB: predicated region body
PF: predicated region fallthrough
CT: control target
= control target key end

     0   :  { %v1171_v1 = vmov 0   ;;  %vm78_vm0 = vcmask 261120   ;;  %vm889_vm1 = vcmask 257024   ;;  %s1382_s3 = inlined_call_operand.vmem [shape: bf16[32,32], index: 3, kind: input, shape index: {}]   ;;  %s1383_s6 = inlined_call_operand.vmem [shape: bf16[32,32], index: 6, kind: input, shape index: {}]   ;;  %s1384_s0 = inlined_call_operand.vmem [shape: bf16[9,32,32], index: 0, kind: input, shape index: {}]   ;;  %s1385_s7 = inlined_call_operand.vmem [shape: bf16[32,32], index: 7, kind: input, shape index: {}]   ;;  %s1386_s2 = inlined_call_operand.vmem [shape: bf16[32,32], index: 2, kind: input, shape index: {}]   ;;  %s1387_s8 = inlined_call_operand.vmem [shape: bf16[32,32], index: 8, kind: input, shape index: {}]   ;;  %s1388_s4 = inlined_call_operand.vmem [shape: bf16[32,32], index: 4, kind: input, shape index: {}]   ;;  %s1389_s9 = inlined_call_operand.vmem [shape: bf16[32,32], index: 9, kind: input, shape index: {}]   ;;  %s1390_s5 = inlined_call_operand.vmem [shape: bf16[32,32], index: 5, kind: input, shape index: {}]   ;;  %s1391_s10 = inlined_call_operand.vmem [shape: bf16[32,32], index: 10, kind: input, shape index: {}]   ;;  %s1392_s1 = inlined_call_operand.vmem [shape: f32[32,1], index: 1, kind: input, shape index: {}]   ;;  %s1393_s11 = inlined_call_operand.vmem [shape: bf16[32,32], index: 11, kind: output, shape index: {}]  }
   0x1   :  { %v1135_v0 = vld [vmem:[%s1382_s3] sm:$0xff]   ;;  %1134 = vset.pattern.permute.xlu1 %v1171_v1  ;;  %1133 = vset.pattern.permute.xlu0 %v1171_v1  ;;  %v1137_v3 = vld [vmem:[%s1382_s3 + $0x8] sm:$0xff]   ;;  %v1139_v5 = vld [vmem:[%s1384_s0 + $0x10] sm:$0xff]  }
   0x2   :  { %v1136_v2 = vld [vmem:[%s1383_s6] sm:$0xff]   ;;  %1028 = vmatprep.subr.bf16.mxu1 %v1135_v0  ;;  %v1138_v4 = vld [vmem:[%s1383_s6 + $0x8] sm:$0xff]   ;;  %1032 = vmatprep.mubr.msk.bf16.mxu1 %vm78_vm0, %v1139_v5  ;;  %v1141_v7 = vld [vmem:[%s1384_s0 + $0x18] sm:$0xff]  }
   0x3   :  { %1060 = vmatprep.subr.bf16.mxu0 %v1136_v2  ;;  %1029 = vmatpush3.bf16.msra.mxu1 %v1135_v0  ;;  %v1140_v6 = vld [vmem:[%s1384_s0 + $0x40] sm:$0xff]   ;;  %v1142_v8 = vld [vmem:[%s1384_s0 + $0x48] sm:$0xff]   ;;  %v1148_v14 = vld [vmem:[%s1384_s0 + $0x50] sm:$0xff]  }
   0x4   :  { %1061 = vmatpush3.bf16.msra.mxu0 %v1136_v2  ;;  %1030 = vmatprep.subr.bf16.mxu1 %v1137_v3  ;;  %v1143_v9 = vld [vmem:[%s1385_s7] sm:$0xff]   ;;  %v1145_v11 = vld [vmem:[%s1385_s7 + $0x8] sm:$0xff]   ;;  %v1150_v18 = vld [vmem:[%s1384_s0 + $0x58] sm:$0xff]  }
   0x5   :  { %1062 = vmatprep.subr.bf16.mxu0 %v1138_v4  ;;  %1064 = vmatprep.mubr.msk.bf16.mxu0 %vm78_vm0, %v1140_v6  ;;  %v1144_v10 = vld [vmem:[%s1386_s2] sm:$0xff]   ;;  %v1146_v12 = vld [vmem:[%s1386_s2 + $0x8] sm:$0xff]   ;;  %v1163_v29 = vld [vmem:[%s1384_s0 + $0x30] sm:$0xff]  }
   0x6   :  { %v1147_v13 = vld [vmem:[%s1384_s0] sm:$0xff]   ;;  %v1149_v15 = vld [vmem:[%s1384_s0 + $0x8] sm:$0xff]   ;;  %v1164_v30 = vld [vmem:[%s1384_s0 + $0x70] sm:$0xff]  }
   0x7   :  { %1031 = vmatpush3.bf16.msra.mxu1 %v1137_v3  ;;  %v1151_v16 = vld [vmem:[%s1387_s8] sm:$0xff]   ;;  %v1153_v19 = vld [vmem:[%s1387_s8 + $0x8] sm:$0xff]   ;;  %v843_v31 = vld [vmem:[%s1392_s1 + $0x10] sm:$0xff] }
   0x8   :  { %1063 = vmatpush3.bf16.msra.mxu0 %v1138_v4  ;;  %1036 = vmatprep.subr.bf16.mxu1 %v1144_v10  ;;  %v1152_v17 = vld [vmem:[%s1388_s4] sm:$0xff]   ;;  %v1154_v20 = vld [vmem:[%s1388_s4 + $0x8] sm:$0xff]   ;;  %v844_v34 = vld [vmem:[%s1392_s1 + $0x18] sm:$0xff] }
   0x9   :  { %1068 = vmatprep.subr.bf16.mxu0 %v1143_v9  ;;  %v1155_v21 = vld [vmem:[%s1384_s0 + $0x20] sm:$0xff]   ;;  %v1157_v25 = vld [vmem:[%s1384_s0 + $0x28] sm:$0xff]   ;;  %857 = vperm.xlu1 %1134, %v843_v31   ;;  %v1165_v36 = vld [vmem:[%s1384_s0 + $0x38] sm:$0xff]  }
   0xa   :  { %1033 = vmatmul.mubr.msk.bf16.vlgmr.msra.gmra.mrb[0].mxu1 %vm78_vm0, %v1141_v7  ;;  %v1156_v22 = vld [vmem:[%s1384_s0 + $0x60] sm:$0xff]   ;;  %v1158_v26 = vld [vmem:[%s1384_s0 + $0x68] sm:$0xff]   ;;  %v1166_v37 = vld [vmem:[%s1384_s0 + $0x78] sm:$0xff]  }
   0xb   :  { %1065 = vmatmul.mubr.msk.bf16.vlgmr.msra.gmra.mrb[0].mxu0 %vm78_vm0, %v1142_v8  ;;  %1037 = vmatpush3.bf16.msra.mxu1 %v1144_v10  ;;  %v1159_v23 = vld [vmem:[%s1389_s9] sm:$0xff]   ;;  %v1161_v27 = vld [vmem:[%s1389_s9 + $0x8] sm:$0xff]  }
   0xc   :  { %1069 = vmatpush3.bf16.msra.mxu0 %v1143_v9  ;;  %1038 = vmatprep.subr.bf16.mxu1 %v1146_v12  ;;  %v1160_v24 = vld [vmem:[%s1390_s5] sm:$0xff]   ;;  %v1162_v28 = vld [vmem:[%s1390_s5 + $0x8] sm:$0xff]  }
   0xd   :  { %1070 = vmatprep.subr.bf16.mxu0 %v1145_v11  ;;  %1040 = vmatprep.mubr.msk.bf16.mxu1 %vm78_vm0, %v1147_v13  ;;  %v841_v32 = vld [vmem:[%s1392_s1] sm:$0xff]  ;;  %v842_v35 = vld [vmem:[%s1392_s1 + $0x8] sm:$0xff] }
   0xe   :  { %1072 = vmatprep.mubr.msk.bf16.mxu0 %vm78_vm0, %v1148_v14  ;;  %v1167_v33 = vld [vmem:[%s1391_s10] sm:$0xff]   ;;  %847 = vperm.xlu0 %1133, %v841_v32   ;;  %v1168_v39 = vld [vmem:[%s1391_s10 + $0x8] sm:$0xff]  }
   0xf   :  { %1039 = vmatpush3.bf16.msra.mxu1 %v1146_v12  ;;  %862 = vperm.xlu1 %1134, %v844_v34   ;;  %v1169_v38 = vld [vmem:[%s1384_s0 + $0x80] sm:$0xff]   ;;  %v1170_v40 = vld [vmem:[%s1384_s0 + $0x88] sm:$0xff]  }
  0x10   :  { %1071 = vmatpush3.bf16.msra.mxu0 %v1145_v11  ;;  %1044 = vmatprep.subr.bf16.mxu1 %v1152_v17 }
  0x11   :  { %1076 = vmatprep.subr.bf16.mxu0 %v1151_v16 }
  0x12   :  { %852 = vperm.xlu0 %1133, %v842_v35  }
  0x16   :  { %1041 = vmatmul.mubr.msk.bf16.vlgmr.msra.gmra.mrb[0].mxu1 %vm78_vm0, %v1149_v15 }
  0x17   :  { %1073 = vmatmul.mubr.msk.bf16.vlgmr.msra.gmra.mrb[0].mxu0 %vm78_vm0, %v1150_v18  ;;  %1045 = vmatpush3.bf16.msra.mxu1 %v1152_v17 }
  0x18   :  { %1077 = vmatpush3.bf16.msra.mxu0 %v1151_v16  ;;  %1046 = vmatprep.subr.bf16.mxu1 %v1154_v20 }
  0x19   :  { %1078 = vmatprep.subr.bf16.mxu0 %v1153_v19  ;;  %1048 = vmatprep.mubr.msk.bf16.mxu1 %vm78_vm0, %v1155_v21 }
  0x1a   :  { %1080 = vmatprep.mubr.msk.bf16.mxu0 %vm78_vm0, %v1156_v22 }
  0x1b   :  { %1047 = vmatpush3.bf16.msra.mxu1 %v1154_v20 }
  0x1c   :  { %1079 = vmatpush3.bf16.msra.mxu0 %v1153_v19  ;;  %1052 = vmatprep.subr.bf16.mxu1 %v1160_v24 }
  0x1d   :  { %1084 = vmatprep.subr.bf16.mxu0 %v1159_v23 }
  0x22   :  { %1049 = vmatmul.mubr.msk.bf16.vlgmr.msra.gmra.mrb[0].mxu1 %vm78_vm0, %v1157_v25 }
  0x23   :  { %1081 = vmatmul.mubr.msk.bf16.vlgmr.msra.gmra.mrb[0].mxu0 %vm78_vm0, %v1158_v26  ;;  %1053 = vmatpush3.bf16.msra.mxu1 %v1160_v24 }
  0x24   :  { %1085 = vmatpush3.bf16.msra.mxu0 %v1159_v23  ;;  %1054 = vmatprep.subr.bf16.mxu1 %v1162_v28 }
  0x25   :  { %1086 = vmatprep.subr.bf16.mxu0 %v1161_v27  ;;  %1056 = vmatprep.mubr.msk.bf16.mxu1 %vm78_vm0, %v1163_v29 }
  0x26   :  { %1088 = vmatprep.mubr.msk.bf16.mxu0 %vm78_vm0, %v1164_v30 }
  0x27   :  { %1055 = vmatpush3.bf16.msra.mxu1 %v1162_v28 }
  0x28   :  { %1087 = vmatpush3.bf16.msra.mxu0 %v1161_v27 }
  0x29   :  { %1092 = vmatprep.subr.bf16.mxu0 %v1167_v33 }
  0x2e   :  { %1057 = vmatmul.mubr.msk.bf16.vlgmr.msra.gmra.mrb[0].mxu1 %vm78_vm0, %v1165_v36 }
  0x2f   :  { %1089 = vmatmul.mubr.msk.bf16.vlgmr.msra.gmra.mrb[0].mxu0 %vm78_vm0, %v1166_v37 }
  0x30   :  { %1093 = vmatpush3.bf16.msra.mxu0 %v1167_v33  ;;  %1096 = vmatprep.mubr.msk.bf16.mxu0 %vm78_vm0, %v1169_v38 }
  0x31   :  { %1094 = vmatprep.subr.bf16.mxu0 %v1168_v39 }
  0x34   :  { %1095 = vmatpush3.bf16.msra.mxu0 %v1168_v39 }
  0x3b   :  { %1097 = vmatmul.mubr.msk.bf16.vlgmr.msra.gmra.mrb[0].mxu0 %vm78_vm0, %v1170_v40 }
  0x88   :  { %v858_v45 = vpop.permute.xlu1 %857 }
  0x8d   :  { %v848_v46 = vpop.permute.xlu0 %847 }
  0x8e   :  { %v863_v56 = vpop.permute.xlu1 %862 }
  0x91   :  { %v853_v59 = vpop.permute.xlu0 %852 }
 0x101   :  { %v1058_v41 = vpop.f32.mrb[0].mxu1 }
 0x102   :  { %v372_v42 = vpop.f32.mrb[1].mxu1 }
 0x103   :  { %v1059_v43 = vpop.f32.mrb[2].mxu1 }
 0x104   :  { %v375_v44 = vpop.f32.mrb[3].mxu1 }
 0x10e   :  { %v1098_v47 = vpop.f32.mrb[0].mxu0 }
 0x10f   :  { %v1100_v48 = vadd.f32 %v1098_v47, %v1058_v41  ;;  %v822_v49 = vpop.f32.mrb[1].mxu0 }
 0x110   :  { %v1101_v50 = vadd.f32 %v822_v49, %v372_v42  ;;  %v1099_v51 = vpop.f32.mrb[2].mxu0 }
 0x111   :  { %v867_v52 = vadd.f32 %v1100_v48, %v858_v45  ;;  %v1102_v53 = vadd.f32 %v1099_v51, %v1059_v43  ;;  %v825_v54 = vpop.f32.mrb[3].mxu0 }
 0x112   :  { %v865_v55 = vadd.f32 %v1101_v50, %v848_v46  ;;  %v1103_v57 = vadd.f32 %v825_v54, %v375_v44 }
 0x113   :  { %v871_v58 = vmax.f32 %v867_v52, 0.0  ;;  %v868_v60 = vadd.f32 %v1102_v53, %v863_v56 }
 0x114   :  { %v869_v61 = vmax.f32 %v865_v55, 0.0  ;;  %v866_v62 = vadd.f32 %v1103_v57, %v853_v59 }
 0x115   :  { %v990_v63 = vpack.c.bf16 %v871_v58, %v871_v58  ;;  %v872_v0 = vmax.f32 %v868_v60, 0.0 }
 0x116   :  { %v988_v1 = vpack.c.bf16 %v869_v61, %v869_v61  ;;  %v870_v2 = vmax.f32 %v866_v62, 0.0 }
 0x117   :  { %892 = vst.msk [vmem:[%s1393_s11 + $0x8] sm:$0xf] %vm889_vm1, %v990_v63  ;;  %v991_v3 = vpack.c.bf16 %v872_v0, %v872_v0 }
 0x118   :  { %890 = vst.msk [vmem:[%s1393_s11] sm:$0xf] %vm889_vm1, %v988_v1  ;;  %v989_v4 = vpack.c.bf16 %v870_v2, %v870_v2 }
 0x119   :  { %893 = vst.msk [vmem:[%s1393_s11 + $0xc] sm:$0xf] %vm889_vm1, %v991_v3 }
 0x11a   :  { %891 = vst.msk [vmem:[%s1393_s11 + $0x4] sm:$0xf] %vm889_vm1, %v989_v4 }

// kernel: _lambda_.32
= control target key start
LH: loop header
LB: loop body
LE: loop exit
PB: predicated region body
PF: predicated region fallthrough
CT: control target
= control target key end

     0   :  { %v1759_v1 = vmov 0   ;;  %vm96_vm0 = vcmask 261120   ;;  %vm1289_vm1 = vcmask 60416   ;;  %s2086_s3 = inlined_call_operand.vmem [shape: bf16[32,8], index: 3, kind: input, shape index: {}]   ;;  %s2087_s6 = inlined_call_operand.vmem [shape: bf16[32,8], index: 6, kind: input, shape index: {}]   ;;  %s2088_s0 = inlined_call_operand.vmem [shape: bf16[9,64,32], index: 0, kind: input, shape index: {}]   ;;  %s2089_s2 = inlined_call_operand.vmem [shape: bf16[32,8], index: 2, kind: input, shape index: {}]   ;;  %s2090_s7 = inlined_call_operand.vmem [shape: bf16[32,8], index: 7, kind: input, shape index: {}]   ;;  %s2091_s8 = inlined_call_operand.vmem [shape: bf16[32,8], index: 8, kind: input, shape index: {}]   ;;  %s2092_s4 = inlined_call_operand.vmem [shape: bf16[32,8], index: 4, kind: input, shape index: {}]   ;;  %s2093_s9 = inlined_call_operand.vmem [shape: bf16[32,8], index: 9, kind: input, shape index: {}]   ;;  %s2094_s5 = inlined_call_operand.vmem [shape: bf16[32,8], index: 5, kind: input, shape index: {}]   ;;  %s2095_s10 = inlined_call_operand.vmem [shape: bf16[32,8], index: 10, kind: input, shape index: {}]   ;;  %s2096_s1 = inlined_call_operand.vmem [shape: f32[64,1], index: 1, kind: input, shape index: {}]   ;;  %s2097_s11 = inlined_call_operand.vmem [shape: bf16[64,8], index: 11, kind: output, shape index: {}]  }
   0x1   :  { %v1705_v0 = vld [vmem:[%s2086_s3] sm:$0xff]   ;;  %1704 = vset.pattern.permute.xlu1 %v1759_v1  ;;  %1703 = vset.pattern.permute.xlu0 %v1759_v1  ;;  %v1707_v3 = vld [vmem:[%s2086_s3 + $0x8] sm:$0xff]   ;;  %v1716_v12 = vld [vmem:[%s2088_s0 + $0x30] sm:$0xff]  }
   0x2   :  { %v1826_v2 = vld [vmem:[%s2087_s6] sm:$0xff]   ;;  %1526 = vmatprep.subr.bf16.mxu1 %v1705_v0  ;;  %v1835_v4 = vld [vmem:[%s2087_s6 + $0x8] sm:$0xff]   ;;  %v1717_v13 = vld [vmem:[%s2088_s0 + $0x38] sm:$0xff]  }
   0x3   :  { %1574 = vmatprep.subr.bf16.mxu0 %v1826_v2  ;;  %1527 = vmatpush3.bf16.msra.mxu1 %v1705_v0  ;;  %v1709_v5 = vld [vmem:[%s2088_s0 + $0x20] sm:$0xff]   ;;  %v1711_v7 = vld [vmem:[%s2088_s0 + $0x28] sm:$0xff]   ;;  %v1725_v20 = vld [vmem:[%s2088_s0 + $0xb0] sm:$0xff]  }
   0x4   :  { %1575 = vmatpush3.bf16.msra.mxu0 %v1826_v2  ;;  %1528 = vmatprep.subr.bf16.mxu1 %v1707_v3  ;;  %v1710_v6 = vld [vmem:[%s2088_s0 + $0x80] sm:$0xff]   ;;  %v1713_v9 = vld [vmem:[%s2088_s0 + $0x88] sm:$0xff]   ;;  %v1728_v23 = vld [vmem:[%s2088_s0 + $0x10] sm:$0xff]  }
   0x5   :  { %1576 = vmatprep.subr.bf16.mxu0 %v1835_v4  ;;  %1530 = vmatprep.mubr.msk.bf16.mxu1 %vm96_vm0, %v1709_v5  ;;  %v1712_v8 = vld [vmem:[%s2089_s2] sm:$0xff]   ;;  %v1715_v11 = vld [vmem:[%s2090_s7 + $0x8] sm:$0xff]   ;;  %v1726_v25 = vld [vmem:[%s2088_s0 + $0xb8] sm:$0xff]  }
   0x6   :  { %1578 = vmatprep.mubr.msk.bf16.mxu0 %vm96_vm0, %v1710_v6  ;;  %v1714_v10 = vld [vmem:[%s2090_s7] sm:$0xff]   ;;  %v1718_v14 = vld [vmem:[%s2089_s2 + $0x8] sm:$0xff]   ;;  %v1729_v28 = vld [vmem:[%s2088_s0 + $0x18] sm:$0xff]  }
   0x7   :  { %1529 = vmatpush3.bf16.msra.mxu1 %v1707_v3  ;;  %v1719_v15 = vld [vmem:[%s2088_s0 + $0xa0] sm:$0xff]   ;;  %v1720_v18 = vld [vmem:[%s2088_s0 + $0xa8] sm:$0xff]   ;;  %v1737_v32 = vld [vmem:[%s2088_s0 + $0xd0] sm:$0xff]  }
   0x8   :  { %1577 = vmatpush3.bf16.msra.mxu0 %v1835_v4  ;;  %1538 = vmatprep.subr.bf16.mxu1 %v1712_v8  ;;  %v1721_v16 = vld [vmem:[%s2091_s8] sm:$0xff]   ;;  %v1723_v21 = vld [vmem:[%s2088_s0 + $0x8] sm:$0xff]   ;;  %v1740_v35 = vld [vmem:[%s2088_s0 + $0x50] sm:$0xff]  }
   0x9   :  { %1586 = vmatprep.subr.bf16.mxu0 %v1714_v10  ;;  %v1722_v17 = vld [vmem:[%s2088_s0] sm:$0xff]   ;;  %v1727_v22 = vld [vmem:[%s2091_s8 + $0x8] sm:$0xff]   ;;  %v1738_v38 = vld [vmem:[%s2088_s0 + $0xd8] sm:$0xff]  }
   0xa   :  { %1531 = vmatmul.mubr.msk.bf16.vlgmr.msra.gmra.mrb[0].mxu1 %vm96_vm0, %v1711_v7  ;;  %v1724_v19 = vld [vmem:[%s2092_s4] sm:$0xff]   ;;  %v1730_v24 = vld [vmem:[%s2092_s4 + $0x8] sm:$0xff]   ;;  %v1741_v40 = vld [vmem:[%s2088_s0 + $0x58] sm:$0xff]  }
   0xb   :  { %1579 = vmatmul.mubr.msk.bf16.vlgmr.msra.gmra.mrb[0].mxu0 %vm96_vm0, %v1713_v9  ;;  %1539 = vmatpush3.bf16.msra.mxu1 %v1712_v8  ;;  %v1731_v26 = vld [vmem:[%s2088_s0 + $0xc0] sm:$0xff]   ;;  %v1732_v31 = vld [vmem:[%s2088_s0 + $0xc8] sm:$0xff]   ;;  %v1748_v43 = vld [vmem:[%s2088_s0 + $0xf0] sm:$0xff]  }
   0xc   :  { %1587 = vmatpush3.bf16.msra.mxu0 %v1714_v10  ;;  %1534 = vmatprep.mubr.msk.bf16.mxu1 %vm96_vm0, %v1716_v12  ;;  %v1733_v27 = vld [vmem:[%s2093_s9] sm:$0xff]   ;;  %v1739_v33 = vld [vmem:[%s2093_s9 + $0x8] sm:$0xff]   ;;  %v1195_v46 = vld [vmem:[%s2096_s1 + $0x10] sm:$0xff] }
   0xd   :  { %1588 = vmatprep.subr.bf16.mxu0 %v1715_v11  ;;  %1540 = vmatprep.subr.bf16.mxu1 %v1718_v14  ;;  %v1734_v29 = vld [vmem:[%s2088_s0 + $0x40] sm:$0xff]   ;;  %v1735_v34 = vld [vmem:[%s2088_s0 + $0x48] sm:$0xff]   ;;  %v1751_v48 = vld [vmem:[%s2088_s0 + $0x70] sm:$0xff]  }
   0xe   :  { %1590 = vmatprep.mubr.msk.bf16.mxu0 %vm96_vm0, %v1719_v15  ;;  %v1736_v30 = vld [vmem:[%s2094_s5] sm:$0xff]   ;;  %v1742_v36 = vld [vmem:[%s2094_s5 + $0x8] sm:$0xff]   ;;  %1213 = vperm.xlu1 %1704, %v1195_v46   ;;  %v1196_v49 = vld [vmem:[%s2096_s1 + $0x18] sm:$0xff] }
   0xf   :  { %1541 = vmatpush3.bf16.msra.mxu1 %v1718_v14  ;;  %v1745_v37 = vld [vmem:[%s2095_s10] sm:$0xff]   ;;  %v1744_v42 = vld [vmem:[%s2088_s0 + $0xe8] sm:$0xff]   ;;  %v1749_v51 = vld [vmem:[%s2088_s0 + $0xf8] sm:$0xff]  }
  0x10   :  { %1589 = vmatpush3.bf16.msra.mxu0 %v1715_v11  ;;  %1550 = vmatprep.subr.bf16.mxu1 %v1724_v19  ;;  %v1743_v39 = vld [vmem:[%s2088_s0 + $0xe0] sm:$0xff]   ;;  %v1750_v44 = vld [vmem:[%s2095_s10 + $0x8] sm:$0xff]   ;;  %v1752_v53 = vld [vmem:[%s2088_s0 + $0x78] sm:$0xff]  }
  0x11   :  { %1598 = vmatprep.subr.bf16.mxu0 %v1721_v16  ;;  %v1746_v41 = vld [vmem:[%s2088_s0 + $0x60] sm:$0xff]   ;;  %v1747_v45 = vld [vmem:[%s2088_s0 + $0x68] sm:$0xff]   ;;  %v1755_v56 = vld [vmem:[%s2088_s0 + $0x90] sm:$0xff]  }
  0x12   :  { %1535 = vmatmul.mubr.msk.bf16.gmra.mrb[4].mxu1 %vm96_vm0, %v1717_v13  ;;  %v1193_v47 = vld [vmem:[%s2096_s1] sm:$0xff]  ;;  %v1194_v50 = vld [vmem:[%s2096_s1 + $0x8] sm:$0xff]  ;;  %1218 = vperm.xlu1 %1704, %v1196_v49   ;;  %v1200_v57 = vld [vmem:[%s2096_s1 + $0x38] sm:$0xff] }
  0x13   :  { %1542 = vmatprep.mubr.msk.bf16.mxu1 %vm96_vm0, %v1722_v17  ;;  %1203 = vperm.xlu0 %1703, %v1193_v47   ;;  %v1753_v52 = vld [vmem:[%s2088_s0 + $0x100] sm:$0xff]   ;;  %v1198_v54 = vld [vmem:[%s2096_s1 + $0x28] sm:$0xff]  ;;  %v1199_v58 = vld [vmem:[%s2096_s1 + $0x30] sm:$0xff] }
  0x14   :  { %v1197_v55 = vld [vmem:[%s2096_s1 + $0x20] sm:$0xff]  ;;  %v1754_v59 = vld [vmem:[%s2088_s0 + $0x108] sm:$0xff]   ;;  %v1756_v60 = vld [vmem:[%s2088_s0 + $0x110] sm:$0xff]  }
  0x15   :  { %v1757_v61 = vld [vmem:[%s2088_s0 + $0x98] sm:$0xff]  }
  0x16   :  { %1228 = vperm.xlu1 %1704, %v1198_v54   ;;  %v1758_v62 = vld [vmem:[%s2088_s0 + $0x118] sm:$0xff]  }
  0x17   :  { %1591 = vmatmul.mubr.msk.bf16.vlgmr.msra.gmra.mrb[0].mxu0 %vm96_vm0, %v1720_v18  ;;  %1208 = vperm.xlu0 %1703, %v1194_v50  }
  0x18   :  { %1599 = vmatpush3.bf16.msra.mxu0 %v1721_v16  ;;  %1594 = vmatprep.mubr.msk.bf16.mxu0 %vm96_vm0, %v1725_v20 }
  0x19   :  { %1600 = vmatprep.subr.bf16.mxu0 %v1727_v22 }
  0x1a   :  { %1543 = vmatmul.mubr.msk.bf16.vlgmr.msra.gmra.mrb[0].mxu1 %vm96_vm0, %v1723_v21  ;;  %1238 = vperm.xlu1 %1704, %v1200_v57  }
  0x1b   :  { %1551 = vmatpush3.bf16.msra.mxu1 %v1724_v19  ;;  %1546 = vmatprep.mubr.msk.bf16.mxu1 %vm96_vm0, %v1728_v23 }
  0x1c   :  { %1601 = vmatpush3.bf16.msra.mxu0 %v1727_v22  ;;  %1552 = vmatprep.subr.bf16.mxu1 %v1730_v24 }
  0x1d   :  { %1610 = vmatprep.subr.bf16.mxu0 %v1733_v27  ;;  %1223 = vperm.xlu0 %1703, %v1197_v55  }
  0x1f   :  { %1595 = vmatmul.mubr.msk.bf16.gmra.mrb[4].mxu0 %vm96_vm0, %v1726_v25  ;;  %1553 = vmatpush3.bf16.msra.mxu1 %v1730_v24 }
  0x20   :  { %1602 = vmatprep.mubr.msk.bf16.mxu0 %vm96_vm0, %v1731_v26  ;;  %1562 = vmatprep.subr.bf16.mxu1 %v1736_v30 }
  0x21   :  { %1233 = vperm.xlu0 %1703, %v1199_v58  }
  0x22   :  { %1547 = vmatmul.mubr.msk.bf16.gmra.mrb[4].mxu1 %vm96_vm0, %v1729_v28 }
  0x23   :  { %1554 = vmatprep.mubr.msk.bf16.mxu1 %vm96_vm0, %v1734_v29 }
  0x27   :  { %1603 = vmatmul.mubr.msk.bf16.vlgmr.msra.gmra.mrb[0].mxu0 %vm96_vm0, %v1732_v31 }
  0x28   :  { %1611 = vmatpush3.bf16.msra.mxu0 %v1733_v27  ;;  %1606 = vmatprep.mubr.msk.bf16.mxu0 %vm96_vm0, %v1737_v32 }
  0x29   :  { %1612 = vmatprep.subr.bf16.mxu0 %v1739_v33 }
  0x2a   :  { %1555 = vmatmul.mubr.msk.bf16.vlgmr.msra.gmra.mrb[0].mxu1 %vm96_vm0, %v1735_v34 }
  0x2b   :  { %1563 = vmatpush3.bf16.msra.mxu1 %v1736_v30  ;;  %1558 = vmatprep.mubr.msk.bf16.mxu1 %vm96_vm0, %v1740_v35 }
  0x2c   :  { %1613 = vmatpush3.bf16.msra.mxu0 %v1739_v33  ;;  %1564 = vmatprep.subr.bf16.mxu1 %v1742_v36 }
  0x2d   :  { %1622 = vmatprep.subr.bf16.mxu0 %v1745_v37 }
  0x2f   :  { %1607 = vmatmul.mubr.msk.bf16.gmra.mrb[4].mxu0 %vm96_vm0, %v1738_v38  ;;  %1565 = vmatpush3.bf16.msra.mxu1 %v1742_v36 }
  0x30   :  { %1614 = vmatprep.mubr.msk.bf16.mxu0 %vm96_vm0, %v1743_v39  ;;  %1634 = vmatprep.subr.bf16.mxu1 %v1826_v2 }
  0x32   :  { %1559 = vmatmul.mubr.msk.bf16.gmra.mrb[4].mxu1 %vm96_vm0, %v1741_v40 }
  0x33   :  { %1566 = vmatprep.mubr.msk.bf16.mxu1 %vm96_vm0, %v1746_v41 }
  0x37   :  { %1615 = vmatmul.mubr.msk.bf16.vlgmr.msra.gmra.mrb[0].mxu0 %vm96_vm0, %v1744_v42 }
  0x38   :  { %1623 = vmatpush3.bf16.msra.mxu0 %v1745_v37  ;;  %1618 = vmatprep.mubr.msk.bf16.mxu0 %vm96_vm0, %v1748_v43 }
  0x39   :  { %1624 = vmatprep.subr.bf16.mxu0 %v1750_v44 }
  0x3a   :  { %1567 = vmatmul.mubr.msk.bf16.vlgmr.msra.gmra.mrb[0].mxu1 %vm96_vm0, %v1747_v45 }
  0x3b   :  { %1636 = vmatpush3.bf16.msra.mxu1 %v1826_v2  ;;  %1570 = vmatprep.mubr.msk.bf16.mxu1 %vm96_vm0, %v1751_v48 }
  0x3c   :  { %1625 = vmatpush3.bf16.msra.mxu0 %v1750_v44  ;;  %1635 = vmatprep.subr.bf16.mxu1 %v1835_v4 }
  0x3f   :  { %1619 = vmatmul.mubr.msk.bf16.gmra.mrb[4].mxu0 %vm96_vm0, %v1749_v51  ;;  %1637 = vmatpush3.bf16.msra.mxu1 %v1835_v4 }
  0x40   :  { %1626 = vmatprep.mubr.msk.bf16.mxu0 %vm96_vm0, %v1753_v52 }
  0x42   :  { %1571 = vmatmul.mubr.msk.bf16.gmra.mrb[4].mxu1 %vm96_vm0, %v1752_v53 }
  0x43   :  { %1582 = vmatprep.mubr.msk.bf16.mxu1 %vm96_vm0, %v1755_v56 }
  0x47   :  { %1627 = vmatmul.mubr.msk.bf16.vlgmr.msra.gmra.mrb[0].mxu0 %vm96_vm0, %v1754_v59 }
  0x48   :  { %1630 = vmatprep.mubr.msk.bf16.mxu0 %vm96_vm0, %v1756_v60 }
  0x4e   :  { %1583 = vmatmul.mubr.msk.bf16.vlgmr.msra.gmra.mrb[4].mxu1 %vm96_vm0, %v1757_v61 }
  0x4f   :  { %1631 = vmatmul.mubr.msk.bf16.gmra.mrb[4].mxu0 %vm96_vm0, %v1758_v62 }
  0x8d   :  { %v1214_v4 = vpop.permute.xlu1 %1213 }
  0x91   :  { %v1219_v6 = vpop.permute.xlu1 %1218 }
  0x92   :  { %v1204_v1 = vpop.permute.xlu0 %1203 }
  0x95   :  { %v1229_v20 = vpop.permute.xlu1 %1228 }
  0x96   :  { %v1209_v5 = vpop.permute.xlu0 %1208 }
  0x99   :  { %v1239_v42 = vpop.permute.xlu1 %1238 }
  0x9c   :  { %v1224_v8 = vpop.permute.xlu0 %1223 }
  0xa0   :  { %v1234_v24 = vpop.permute.xlu0 %1233 }
 0x10d   :  { %v1568_v63 = vpop.f32.mrb[0].mxu1 }
 0x10e   :  { %v504_v0 = vpop.f32.mrb[1].mxu1 }
 0x10f   :  { %v1569_v2 = vpop.f32.mrb[2].mxu1 }
 0x110   :  { %v507_v3 = vpop.f32.mrb[3].mxu1 }
 0x11a   :  { %v1628_v7 = vpop.f32.mrb[0].mxu0 }
 0x11b   :  { %v1638_v9 = vadd.f32 %v1628_v7, %v1568_v63  ;;  %v1154_v10 = vpop.f32.mrb[1].mxu0 }
 0x11c   :  { %v1639_v11 = vadd.f32 %v1154_v10, %v504_v0  ;;  %v1629_v12 = vpop.f32.mrb[2].mxu0 }
 0x11d   :  { %v1243_v13 = vadd.f32 %v1638_v9, %v1214_v4  ;;  %v1640_v14 = vadd.f32 %v1629_v12, %v1569_v2  ;;  %v1157_v15 = vpop.f32.mrb[3].mxu0 }
 0x11e   :  { %v1241_v16 = vadd.f32 %v1639_v11, %v1204_v1  ;;  %v1641_v17 = vadd.f32 %v1157_v15, %v507_v3 }
 0x11f   :  { %v1251_v18 = vmax.f32 %v1243_v13, 0.0  ;;  %v1244_v19 = vadd.f32 %v1640_v14, %v1219_v6 }
 0x120   :  { %v1249_v21 = vmax.f32 %v1241_v16, 0.0  ;;  %v1242_v22 = vadd.f32 %v1641_v17, %v1209_v5 }
 0x121   :  { %v1466_v23 = vpack.c.bf16 %v1251_v18, %v1251_v18  ;;  %v1252_v25 = vmax.f32 %v1244_v19, 0.0  ;;  %v1584_v26 = vpop.f32.mrb[4].mxu1 }
 0x122   :  { %v1464_v27 = vpack.c.bf16 %v1249_v21, %v1249_v21  ;;  %v1250_v28 = vmax.f32 %v1242_v22, 0.0  ;;  %v1632_v29 = vpop.f32.mrb[4].mxu0  ;;  %v650_v30 = vpop.f32.mrb[5].mxu1 }
 0x123   :  { %1292 = vst.msk [vmem:[%s2097_s11 + $0x8] sm:$0xf] %vm1289_vm1, %v1466_v23  ;;  %v1467_v31 = vpack.c.bf16 %v1252_v25, %v1252_v25  ;;  %v1642_v32 = vadd.f32 %v1632_v29, %v1584_v26  ;;  %v1170_v33 = vpop.f32.mrb[5].mxu0  ;;  %v1585_v34 = vpop.f32.mrb[6].mxu1 }
 0x124   :  { %1290 = vst.msk [vmem:[%s2097_s11] sm:$0xf] %vm1289_vm1, %v1464_v27  ;;  %v1465_v35 = vpack.c.bf16 %v1250_v28, %v1250_v28  ;;  %v1643_v36 = vadd.f32 %v1170_v33, %v650_v30  ;;  %v1633_v37 = vpop.f32.mrb[6].mxu0  ;;  %v653_v38 = vpop.f32.mrb[7].mxu1 }
 0x125   :  { %1293 = vst.msk [vmem:[%s2097_s11 + $0xc] sm:$0xf] %vm1289_vm1, %v1467_v31  ;;  %v1247_v39 = vadd.f32 %v1642_v32, %v1234_v24  ;;  %v1644_v40 = vadd.f32 %v1633_v37, %v1585_v34  ;;  %v1173_v41 = vpop.f32.mrb[7].mxu0 }
 0x126   :  { %1291 = vst.msk [vmem:[%s2097_s11 + $0x4] sm:$0xf] %vm1289_vm1, %v1465_v35  ;;  %v1245_v43 = vadd.f32 %v1643_v36, %v1224_v8  ;;  %v1645_v44 = vadd.f32 %v1173_v41, %v653_v38 }
 0x127   :  { %v1255_v45 = vmax.f32 %v1247_v39, 0.0  ;;  %v1248_v46 = vadd.f32 %v1644_v40, %v1239_v42 }
 0x128   :  { %v1253_v47 = vmax.f32 %v1245_v43, 0.0  ;;  %v1246_v48 = vadd.f32 %v1645_v44, %v1229_v20 }
 0x129   :  { %v1470_v49 = vpack.c.bf16 %v1255_v45, %v1255_v45  ;;  %v1256_v50 = vmax.f32 %v1248_v46, 0.0 }
 0x12a   :  { %v1468_v51 = vpack.c.bf16 %v1253_v47, %v1253_v47  ;;  %v1254_v52 = vmax.f32 %v1246_v48, 0.0 }
 0x12b   :  { %1296 = vst.msk [vmem:[%s2097_s11 + $0x18] sm:$0xf] %vm1289_vm1, %v1470_v49  ;;  %v1471_v53 = vpack.c.bf16 %v1256_v50, %v1256_v50 }
 0x12c   :  { %1294 = vst.msk [vmem:[%s2097_s11 + $0x10] sm:$0xf] %vm1289_vm1, %v1468_v51  ;;  %v1469_v54 = vpack.c.bf16 %v1254_v52, %v1254_v52 }
 0x12d   :  { %1297 = vst.msk [vmem:[%s2097_s11 + $0x1c] sm:$0xf] %vm1289_vm1, %v1471_v53 }
 0x12e   :  { %1295 = vst.msk [vmem:[%s2097_s11 + $0x14] sm:$0xf] %vm1289_vm1, %v1469_v54 }

// kernel: _lambda_.33
= control target key start
LH: loop header
LB: loop body
LE: loop exit
PB: predicated region body
PF: predicated region fallthrough
CT: control target
= control target key end

     0   :  { %v287_v1 = vmov 0   ;;  %vm107_vm0 = vcmask 261120   ;;  %vm217_vm1 = vcmask 60416   ;;  %s386_s2 = inlined_call_operand.vmem [shape: bf16[32,8], index: 2, kind: input, shape index: {}]   ;;  %s387_s0 = inlined_call_operand.vmem [shape: bf16[1,64,32], index: 0, kind: input, shape index: {}]   ;;  %s388_s1 = inlined_call_operand.vmem [shape: f32[64,1], index: 1, kind: input, shape index: {}]   ;;  %s389_s3 = inlined_call_operand.vmem [shape: bf16[64,8], index: 3, kind: output, shape index: {}]  }
   0x1   :  { %v281_v0 = vld [vmem:[%s386_s2] sm:$0xff]   ;;  %280 = vset.pattern.permute.xlu1 %v287_v1  ;;  %279 = vset.pattern.permute.xlu0 %v287_v1  ;;  %v282_v2 = vld [vmem:[%s386_s2 + $0x8] sm:$0xff]   ;;  %v284_v4 = vld [vmem:[%s387_s0 + $0x10] sm:$0xff]  }
   0x2   :  { %262 = vmatprep.subr.bf16.mxu0 %v281_v0  ;;  %274 = vmatprep.subr.bf16.mxu1 %v281_v0  ;;  %v283_v3 = vld [vmem:[%s387_s0] sm:$0xff]   ;;  %v285_v5 = vld [vmem:[%s387_s0 + $0x8] sm:$0xff]   ;;  %v286_v6 = vld [vmem:[%s387_s0 + $0x18] sm:$0xff]  }
   0x3   :  { %263 = vmatpush3.bf16.msra.mxu0 %v281_v0  ;;  %276 = vmatpush3.bf16.msra.mxu1 %v281_v0  ;;  %v29_v7 = vld [vmem:[%s388_s1 + $0x10] sm:$0xff]  ;;  %v27_v8 = vld [vmem:[%s388_s1] sm:$0xff]  ;;  %v30_v9 = vld [vmem:[%s388_s1 + $0x18] sm:$0xff] }
   0x4   :  { %264 = vmatprep.subr.bf16.mxu0 %v282_v2  ;;  %275 = vmatprep.subr.bf16.mxu1 %v282_v2  ;;  %v28_v10 = vld [vmem:[%s388_s1 + $0x8] sm:$0xff]  ;;  %v31_v12 = vld [vmem:[%s388_s1 + $0x20] sm:$0xff]  ;;  %v34_v13 = vld [vmem:[%s388_s1 + $0x38] sm:$0xff] }
   0x5   :  { %266 = vmatprep.mubr.msk.bf16.mxu0 %vm107_vm0, %v283_v3  ;;  %270 = vmatprep.mubr.msk.bf16.mxu1 %vm107_vm0, %v284_v4  ;;  %v32_v11 = vld [vmem:[%s388_s1 + $0x28] sm:$0xff]  ;;  %v33_v14 = vld [vmem:[%s388_s1 + $0x30] sm:$0xff] }
   0x6   :  { %47 = vperm.xlu1 %280, %v29_v7   ;;  %37 = vperm.xlu0 %279, %v27_v8  }
   0x7   :  { %265 = vmatpush3.bf16.msra.mxu0 %v282_v2  ;;  %277 = vmatpush3.bf16.msra.mxu1 %v282_v2 }
   0xa   :  { %267 = vmatmul.mubr.msk.bf16.vlgmr.msra.gmra.mrb[0].mxu0 %vm107_vm0, %v285_v5  ;;  %271 = vmatmul.mubr.msk.bf16.vlgmr.msra.gmra.mrb[0].mxu1 %vm107_vm0, %v286_v6 }
   0xb   :  { %52 = vperm.xlu1 %280, %v30_v9   ;;  %42 = vperm.xlu0 %279, %v28_v10  }
   0xf   :  { %62 = vperm.xlu1 %280, %v32_v11   ;;  %57 = vperm.xlu0 %279, %v31_v12  }
  0x13   :  { %72 = vperm.xlu1 %280, %v34_v13   ;;  %67 = vperm.xlu0 %279, %v33_v14  }
  0x85   :  { %v48_v15 = vpop.permute.xlu1 %47  ;;  %v38_v16 = vpop.permute.xlu0 %37 }
  0x8a   :  { %v53_v17 = vpop.permute.xlu1 %52  ;;  %v43_v18 = vpop.permute.xlu0 %42 }
  0x8e   :  { %v63_v19 = vpop.permute.xlu1 %62  ;;  %v58_v20 = vpop.permute.xlu0 %57 }
  0x92   :  { %v73_v21 = vpop.permute.xlu1 %72  ;;  %v68_v22 = vpop.permute.xlu0 %67 }
  0xdd   :  { %v268_v23 = vpop.f32.mrb[0].mxu0  ;;  %v272_v24 = vpop.f32.mrb[0].mxu1 }
  0xde   :  { %v163_v25 = vadd.f32 %v268_v23, %v48_v15  ;;  %v179_v26 = vadd.f32 %v272_v24, %v68_v22  ;;  %v154_v27 = vpop.f32.mrb[1].mxu0  ;;  %v170_v28 = vpop.f32.mrb[1].mxu1 }
  0xdf   :  { %v155_v29 = vadd.f32 %v154_v27, %v38_v16  ;;  %v171_v30 = vadd.f32 %v170_v28, %v58_v20  ;;  %v269_v31 = vpop.f32.mrb[2].mxu0  ;;  %v273_v32 = vpop.f32.mrb[2].mxu1 }
  0xe0   :  { %v250_v33 = vpack.c.bf16 %v163_v25, %v163_v25  ;;  %v254_v34 = vpack.c.bf16 %v179_v26, %v179_v26  ;;  %v166_v35 = vadd.f32 %v269_v31, %v53_v17  ;;  %v182_v36 = vadd.f32 %v273_v32, %v73_v21  ;;  %v157_v37 = vpop.f32.mrb[3].mxu0  ;;  %v173_v38 = vpop.f32.mrb[3].mxu1 }
  0xe1   :  { %v248_v39 = vpack.c.bf16 %v155_v29, %v155_v29  ;;  %v252_v40 = vpack.c.bf16 %v171_v30, %v171_v30  ;;  %v158_v41 = vadd.f32 %v157_v37, %v43_v18  ;;  %v174_v42 = vadd.f32 %v173_v38, %v63_v19 }
  0xe2   :  { %220 = vst.msk [vmem:[%s389_s3 + $0x8] sm:$0xf] %vm217_vm1, %v250_v33  ;;  %224 = vst.msk [vmem:[%s389_s3 + $0x18] sm:$0xf] %vm217_vm1, %v254_v34  ;;  %v251_v43 = vpack.c.bf16 %v166_v35, %v166_v35  ;;  %v255_v44 = vpack.c.bf16 %v182_v36, %v182_v36 }
  0xe3   :  { %218 = vst.msk [vmem:[%s389_s3] sm:$0xf] %vm217_vm1, %v248_v39  ;;  %222 = vst.msk [vmem:[%s389_s3 + $0x10] sm:$0xf] %vm217_vm1, %v252_v40  ;;  %v249_v45 = vpack.c.bf16 %v158_v41, %v158_v41  ;;  %v253_v46 = vpack.c.bf16 %v174_v42, %v174_v42 }
  0xe4   :  { %221 = vst.msk [vmem:[%s389_s3 + $0xc] sm:$0xf] %vm217_vm1, %v251_v43  ;;  %225 = vst.msk [vmem:[%s389_s3 + $0x1c] sm:$0xf] %vm217_vm1, %v255_v44 }
  0xe5   :  { %219 = vst.msk [vmem:[%s389_s3 + $0x4] sm:$0xf] %vm217_vm1, %v249_v45  ;;  %223 = vst.msk [vmem:[%s389_s3 + $0x14] sm:$0xf] %vm217_vm1, %v253_v46 }

// kernel: _lambda_.34
= control target key start
LH: loop header
LB: loop body
LE: loop exit
PB: predicated region body
PF: predicated region fallthrough
CT: control target
= control target key end

     0   :  { %v2043_v1 = vmov 0   ;;  %vm119_vm0 = vcmask 523264   ;;  %vm1460_vm1 = vcmask 60416   ;;  %s2432_s4 = inlined_call_operand.vmem [shape: bf16[64,8], index: 4, kind: input, shape index: {}]   ;;  %s2433_s7 = inlined_call_operand.vmem [shape: bf16[64,8], index: 7, kind: input, shape index: {}]   ;;  %s2434_s0 = inlined_call_operand.vmem [shape: bf16[9,64,64], index: 0, kind: input, shape index: {}]   ;;  %s2435_s3 = inlined_call_operand.vmem [shape: bf16[64,8], index: 3, kind: input, shape index: {}]   ;;  %s2436_s8 = inlined_call_operand.vmem [shape: bf16[64,8], index: 8, kind: input, shape index: {}]   ;;  %s2437_s5 = inlined_call_operand.vmem [shape: bf16[64,8], index: 5, kind: input, shape index: {}]   ;;  %s2438_s9 = inlined_call_operand.vmem [shape: bf16[64,8], index: 9, kind: input, shape index: {}]   ;;  %s2439_s6 = inlined_call_operand.vmem [shape: bf16[64,8], index: 6, kind: input, shape index: {}]   ;;  %s2440_s10 = inlined_call_operand.vmem [shape: bf16[64,8], index: 10, kind: input, shape index: {}]   ;;  %s2441_s11 = inlined_call_operand.vmem [shape: bf16[64,8], index: 11, kind: input, shape index: {}]   ;;  %s2442_s1 = inlined_call_operand.vmem [shape: f32[64,1], index: 1, kind: input, shape index: {}]   ;;  %s2443_s2 = inlined_call_operand.vmem [shape: bf16[64,8], index: 2, kind: input, shape index: {}]   ;;  %s2444_s12 = inlined_call_operand.vmem [shape: bf16[64,8], index: 12, kind: output, shape index: {}]  }
   0x1   :  { %v1971_v0 = vld [vmem:[%s2432_s4] sm:$0xff]   ;;  %1970 = vset.pattern.permute.xlu1 %v2043_v1  ;;  %1969 = vset.pattern.permute.xlu0 %v2043_v1  ;;  %v1973_v3 = vld [vmem:[%s2432_s4 + $0x8] sm:$0xff]   ;;  %v1975_v5 = vld [vmem:[%s2432_s4 + $0x10] sm:$0xff]  }
   0x2   :  { %v1972_v2 = vld [vmem:[%s2433_s7] sm:$0xff]   ;;  %1752 = vmatprep.subr.bf16.mxu1 %v1971_v0  ;;  %v1974_v4 = vld [vmem:[%s2433_s7 + $0x8] sm:$0xff]   ;;  %v1976_v6 = vld [vmem:[%s2433_s7 + $0x10] sm:$0xff]  }
   0x3   :  { %1816 = vmatprep.subr.bf16.mxu0 %v1972_v2  ;;  %1753 = vmatpush3.bf16.msra.mxu1 %v1971_v0  ;;  %v1977_v7 = vld [vmem:[%s2432_s4 + $0x18] sm:$0xff]   ;;  %v1979_v9 = vld [vmem:[%s2434_s0 + $0x20] sm:$0xff]   ;;  %v1981_v11 = vld [vmem:[%s2434_s0 + $0x28] sm:$0xff]  }
   0x4   :  { %1817 = vmatpush3.bf16.msra.mxu0 %v1972_v2  ;;  %1754 = vmatprep.subr.bf16.mxu1 %v1973_v3  ;;  %v1978_v8 = vld [vmem:[%s2433_s7 + $0x18] sm:$0xff]   ;;  %v1980_v10 = vld [vmem:[%s2434_s0 + $0x80] sm:$0xff]   ;;  %v1983_v14 = vld [vmem:[%s2434_s0 + $0x88] sm:$0xff]  }
   0x5   :  { %1818 = vmatprep.subr.bf16.mxu0 %v1974_v4  ;;  %1760 = vmatprep.mubr.msk.bf16.mxu1 %vm119_vm0, %v1979_v9  ;;  %v1982_v12 = vld [vmem:[%s2435_s3] sm:$0xff]   ;;  %v1985_v15 = vld [vmem:[%s2435_s3 + $0x8] sm:$0xff]   ;;  %v1987_v17 = vld [vmem:[%s2434_s0 + $0x30] sm:$0xff]  }
   0x6   :  { %1824 = vmatprep.mubr.msk.bf16.mxu0 %vm119_vm0, %v1980_v10  ;;  %v1984_v13 = vld [vmem:[%s2436_s8] sm:$0xff]   ;;  %v1986_v16 = vld [vmem:[%s2436_s8 + $0x8] sm:$0xff]   ;;  %v1988_v18 = vld [vmem:[%s2434_s0 + $0x90] sm:$0xff]  }
   0x7   :  { %1755 = vmatpush3.bf16.msra.mxu1 %v1973_v3  ;;  %v1989_v19 = vld [vmem:[%s2434_s0 + $0x38] sm:$0xff]   ;;  %v1990_v20 = vld [vmem:[%s2435_s3 + $0x10] sm:$0xff]   ;;  %v1995_v25 = vld [vmem:[%s2434_s0] sm:$0xff]  }
   0x8   :  { %1819 = vmatpush3.bf16.msra.mxu0 %v1974_v4  ;;  %1756 = vmatprep.subr.bf16.mxu1 %v1975_v5  ;;  %v1992_v21 = vld [vmem:[%s2436_s8 + $0x10] sm:$0xff]   ;;  %v1991_v22 = vld [vmem:[%s2434_s0 + $0x98] sm:$0xff]   ;;  %v1996_v26 = vld [vmem:[%s2434_s0 + $0xa0] sm:$0xff]  }
   0x9   :  { %1820 = vmatprep.subr.bf16.mxu0 %v1976_v6  ;;  %v1993_v23 = vld [vmem:[%s2435_s3 + $0x18] sm:$0xff]   ;;  %v1997_v27 = vld [vmem:[%s2434_s0 + $0x8] sm:$0xff]   ;;  %v1998_v28 = vld [vmem:[%s2437_s5] sm:$0xff]  }
   0xa   :  { %v1994_v24 = vld [vmem:[%s2436_s8 + $0x18] sm:$0xff]   ;;  %v2000_v29 = vld [vmem:[%s2438_s9] sm:$0xff]   ;;  %v1999_v30 = vld [vmem:[%s2434_s0 + $0xa8] sm:$0xff]  }
   0xb   :  { %1757 = vmatpush3.bf16.msra.mxu1 %v1975_v5  ;;  %v2001_v31 = vld [vmem:[%s2437_s5 + $0x8] sm:$0xff]   ;;  %v2003_v33 = vld [vmem:[%s2434_s0 + $0x10] sm:$0xff]   ;;  %v2005_v35 = vld [vmem:[%s2434_s0 + $0x18] sm:$0xff]  }
   0xc   :  { %1821 = vmatpush3.bf16.msra.mxu0 %v1976_v6  ;;  %1758 = vmatprep.subr.bf16.mxu1 %v1977_v7  ;;  %v2002_v32 = vld [vmem:[%s2438_s9 + $0x8] sm:$0xff]   ;;  %v2004_v34 = vld [vmem:[%s2434_s0 + $0xb0] sm:$0xff]   ;;  %v2007_v38 = vld [vmem:[%s2434_s0 + $0xb8] sm:$0xff]  }
   0xd   :  { %1822 = vmatprep.subr.bf16.mxu0 %v1978_v8  ;;  %v2006_v36 = vld [vmem:[%s2437_s5 + $0x10] sm:$0xff]   ;;  %v2009_v39 = vld [vmem:[%s2437_s5 + $0x18] sm:$0xff]   ;;  %v2011_v41 = vld [vmem:[%s2434_s0 + $0x40] sm:$0xff]  }
   0xe   :  { %v2008_v37 = vld [vmem:[%s2438_s9 + $0x10] sm:$0xff]   ;;  %v2010_v40 = vld [vmem:[%s2438_s9 + $0x18] sm:$0xff]   ;;  %v2012_v42 = vld [vmem:[%s2434_s0 + $0xc0] sm:$0xff]  }
   0xf   :  { %1759 = vmatpush3.bf16.msra.mxu1 %v1977_v7  ;;  %v2013_v43 = vld [vmem:[%s2434_s0 + $0x48] sm:$0xff]   ;;  %v2014_v44 = vld [vmem:[%s2439_s6] sm:$0xff]   ;;  %v2019_v49 = vld [vmem:[%s2434_s0 + $0x50] sm:$0xff]  }
  0x10   :  { %1823 = vmatpush3.bf16.msra.mxu0 %v1978_v8  ;;  %1768 = vmatprep.subr.bf16.mxu1 %v1982_v12  ;;  %v2016_v45 = vld [vmem:[%s2440_s10] sm:$0xff]   ;;  %v2015_v46 = vld [vmem:[%s2434_s0 + $0xc8] sm:$0xff]   ;;  %v2020_v50 = vld [vmem:[%s2434_s0 + $0xd0] sm:$0xff]  }
  0x11   :  { %1832 = vmatprep.subr.bf16.mxu0 %v1984_v13  ;;  %v2017_v47 = vld [vmem:[%s2439_s6 + $0x8] sm:$0xff]   ;;  %v2021_v51 = vld [vmem:[%s2434_s0 + $0x58] sm:$0xff]   ;;  %v2022_v52 = vld [vmem:[%s2439_s6 + $0x10] sm:$0xff]  }
  0x12   :  { %1761 = vmatmul.mubr.msk.bf16.vlgmr.msra.gmra.mrb[0].mxu1 %vm119_vm0, %v1981_v11  ;;  %v2018_v48 = vld [vmem:[%s2440_s10 + $0x8] sm:$0xff]   ;;  %v2024_v53 = vld [vmem:[%s2440_s10 + $0x10] sm:$0xff]   ;;  %v2023_v54 = vld [vmem:[%s2434_s0 + $0xd8] sm:$0xff]  }
  0x13   :  { %1825 = vmatmul.mubr.msk.bf16.vlgmr.msra.gmra.mrb[0].mxu0 %vm119_vm0, %v1983_v14  ;;  %1769 = vmatpush3.bf16.msra.mxu1 %v1982_v12  ;;  %v2025_v55 = vld [vmem:[%s2439_s6 + $0x18] sm:$0xff]   ;;  %v2027_v57 = vld [vmem:[%s2434_s0 + $0x60] sm:$0xff]   ;;  %v2029_v60 = vld [vmem:[%s2434_s0 + $0x68] sm:$0xff]  }
  0x14   :  { %1833 = vmatpush3.bf16.msra.mxu0 %v1984_v13  ;;  %1770 = vmatprep.subr.bf16.mxu1 %v1985_v15  ;;  %v2026_v56 = vld [vmem:[%s2440_s10 + $0x18] sm:$0xff]   ;;  %v2028_v58 = vld [vmem:[%s2434_s0 + $0xe0] sm:$0xff]   ;;  %v2030_v61 = vld [vmem:[%s2434_s0 + $0xe8] sm:$0xff]  }
  0x15   :  { %1834 = vmatprep.subr.bf16.mxu0 %v1986_v16  ;;  %1764 = vmatprep.mubr.msk.bf16.mxu1 %vm119_vm0, %v1987_v17  ;;  %v2031_v59 = vld [vmem:[%s2441_s11] sm:$0xff]   ;;  %v2032_v62 = vld [vmem:[%s2441_s11 + $0x8] sm:$0xff]   ;;  %v2033_v63 = vld [vmem:[%s2434_s0 + $0x70] sm:$0xff]  }
  0x16   :  { %1828 = vmatprep.mubr.msk.bf16.mxu0 %vm119_vm0, %v1988_v18  ;;  %v2034_v0 = vld [vmem:[%s2434_s0 + $0xf0] sm:$0xff]   ;;  %v2035_v2 = vld [vmem:[%s2434_s0 + $0x78] sm:$0xff]   ;;  %v1340_v6 = vld [vmem:[%s2442_s1] sm:$0xff] }
  0x17   :  { %1771 = vmatpush3.bf16.msra.mxu1 %v1985_v15  ;;  %v2037_v1 = vld [vmem:[%s2441_s11 + $0x10] sm:$0xff]   ;;  %v2036_v3 = vld [vmem:[%s2434_s0 + $0xf8] sm:$0xff]   ;;  %v2039_v7 = vld [vmem:[%s2434_s0 + $0x100] sm:$0xff]   ;;  %1350 = vperm.xlu0 %1969, %v1340_v6  }
  0x18   :  { %1835 = vmatpush3.bf16.msra.mxu0 %v1986_v16  ;;  %1772 = vmatprep.subr.bf16.mxu1 %v1990_v20  ;;  %v2038_v4 = vld [vmem:[%s2441_s11 + $0x18] sm:$0xff]   ;;  %v1342_v5 = vld [vmem:[%s2442_s1 + $0x10] sm:$0xff]  ;;  %v1341_v10 = vld [vmem:[%s2442_s1 + $0x8] sm:$0xff] }
  0x19   :  { %1836 = vmatprep.subr.bf16.mxu0 %v1992_v21  ;;  %1360 = vperm.xlu1 %1970, %v1342_v5   ;;  %v2040_v8 = vld [vmem:[%s2434_s0 + $0x110] sm:$0xff]   ;;  %v1343_v9 = vld [vmem:[%s2442_s1 + $0x18] sm:$0xff]  ;;  %v2041_v12 = vld [vmem:[%s2434_s0 + $0x108] sm:$0xff]  }
  0x1a   :  { %1765 = vmatmul.mubr.msk.bf16.gmra.mrb[4].mxu1 %vm119_vm0, %v1989_v19  ;;  %v2042_v11 = vld [vmem:[%s2434_s0 + $0x118] sm:$0xff]   ;;  %v1345_v13 = vld [vmem:[%s2442_s1 + $0x28] sm:$0xff]  ;;  %v1344_v14 = vld [vmem:[%s2442_s1 + $0x20] sm:$0xff] }
  0x1b   :  { %1829 = vmatmul.mubr.msk.bf16.gmra.mrb[4].mxu0 %vm119_vm0, %v1991_v22  ;;  %1773 = vmatpush3.bf16.msra.mxu1 %v1990_v20  ;;  %v1347_v15 = vld [vmem:[%s2442_s1 + $0x38] sm:$0xff]  ;;  %v1346_v16 = vld [vmem:[%s2442_s1 + $0x30] sm:$0xff] }
  0x1c   :  { %1837 = vmatpush3.bf16.msra.mxu0 %v1992_v21  ;;  %1774 = vmatprep.subr.bf16.mxu1 %v1993_v23 }
  0x1d   :  { %1838 = vmatprep.subr.bf16.mxu0 %v1994_v24  ;;  %1776 = vmatprep.mubr.msk.bf16.mxu1 %vm119_vm0, %v1995_v25 }
  0x1e   :  { %1840 = vmatprep.mubr.msk.bf16.mxu0 %vm119_vm0, %v1996_v26  ;;  %1365 = vperm.xlu1 %1970, %v1343_v9  }
  0x1f   :  { %1775 = vmatpush3.bf16.msra.mxu1 %v1993_v23  ;;  %1355 = vperm.xlu0 %1969, %v1341_v10  }
  0x20   :  { %1839 = vmatpush3.bf16.msra.mxu0 %v1994_v24  ;;  %1784 = vmatprep.subr.bf16.mxu1 %v1998_v28 }
  0x21   :  { %1848 = vmatprep.subr.bf16.mxu0 %v2000_v29 }
  0x22   :  { %1777 = vmatmul.mubr.msk.bf16.vlgmr.msra.gmra.mrb[0].mxu1 %vm119_vm0, %v1997_v27  ;;  %1375 = vperm.xlu1 %1970, %v1345_v13  }
  0x23   :  { %1841 = vmatmul.mubr.msk.bf16.vlgmr.msra.gmra.mrb[0].mxu0 %vm119_vm0, %v1999_v30  ;;  %1785 = vmatpush3.bf16.msra.mxu1 %v1998_v28 }
  0x24   :  { %1849 = vmatpush3.bf16.msra.mxu0 %v2000_v29  ;;  %1786 = vmatprep.subr.bf16.mxu1 %v2001_v31 }
  0x25   :  { %1850 = vmatprep.subr.bf16.mxu0 %v2002_v32  ;;  %1780 = vmatprep.mubr.msk.bf16.mxu1 %vm119_vm0, %v2003_v33 }
  0x26   :  { %1844 = vmatprep.mubr.msk.bf16.mxu0 %vm119_vm0, %v2004_v34  ;;  %1370 = vperm.xlu0 %1969, %v1344_v14  }
  0x27   :  { %1787 = vmatpush3.bf16.msra.mxu1 %v2001_v31  ;;  %1385 = vperm.xlu1 %1970, %v1347_v15  }
  0x28   :  { %1851 = vmatpush3.bf16.msra.mxu0 %v2002_v32  ;;  %1788 = vmatprep.subr.bf16.mxu1 %v2006_v36 }
  0x29   :  { %1852 = vmatprep.subr.bf16.mxu0 %v2008_v37 }
  0x2a   :  { %1781 = vmatmul.mubr.msk.bf16.gmra.mrb[4].mxu1 %vm119_vm0, %v2005_v35  ;;  %1380 = vperm.xlu0 %1969, %v1346_v16  }
  0x2b   :  { %1845 = vmatmul.mubr.msk.bf16.gmra.mrb[4].mxu0 %vm119_vm0, %v2007_v38  ;;  %1789 = vmatpush3.bf16.msra.mxu1 %v2006_v36  ;;  %v1677_v38 = vld [vmem:[%s2443_s2 + $0x8] sm:$0xff]  }
  0x2c   :  { %1853 = vmatpush3.bf16.msra.mxu0 %v2008_v37  ;;  %1790 = vmatprep.subr.bf16.mxu1 %v2009_v39 }
  0x2d   :  { %1854 = vmatprep.subr.bf16.mxu0 %v2010_v40  ;;  %1792 = vmatprep.mubr.msk.bf16.mxu1 %vm119_vm0, %v2011_v41 }
  0x2e   :  { %1856 = vmatprep.mubr.msk.bf16.mxu0 %vm119_vm0, %v2012_v42  ;;  %v1678_v42 = vld [vmem:[%s2443_s2 + $0x10] sm:$0xff]  }
  0x2f   :  { %1791 = vmatpush3.bf16.msra.mxu1 %v2009_v39  ;;  %v1679_v39 = vld [vmem:[%s2443_s2 + $0x18] sm:$0xff]  }
  0x30   :  { %1855 = vmatpush3.bf16.msra.mxu0 %v2010_v40  ;;  %1800 = vmatprep.subr.bf16.mxu1 %v2014_v44  ;;  %v1662_v40 = vld [vmem:[%s2443_s2] sm:$0xff]  }
  0x31   :  { %1864 = vmatprep.subr.bf16.mxu0 %v2016_v45 }
  0x32   :  { %1793 = vmatmul.mubr.msk.bf16.vlgmr.msra.gmra.mrb[0].mxu1 %vm119_vm0, %v2013_v43 }
  0x33   :  { %1857 = vmatmul.mubr.msk.bf16.vlgmr.msra.gmra.mrb[0].mxu0 %vm119_vm0, %v2015_v46  ;;  %1801 = vmatpush3.bf16.msra.mxu1 %v2014_v44  ;;  %v1667_v44 = vunpack.c.l.bf16 %v1677_v38  ;;  %v1675_v46 = vunpack.c.l.bf16 %v1679_v39 }
  0x34   :  { %1865 = vmatpush3.bf16.msra.mxu0 %v2016_v45  ;;  %1802 = vmatprep.subr.bf16.mxu1 %v2017_v47 }
  0x35   :  { %1866 = vmatprep.subr.bf16.mxu0 %v2018_v48  ;;  %1796 = vmatprep.mubr.msk.bf16.mxu1 %vm119_vm0, %v2019_v49 }
  0x36   :  { %1860 = vmatprep.mubr.msk.bf16.mxu0 %vm119_vm0, %v2020_v50 }
  0x37   :  { %1803 = vmatpush3.bf16.msra.mxu1 %v2017_v47  ;;  %v1663_v47 = vunpack.c.l.bf16 %v1662_v40 }
  0x38   :  { %1867 = vmatpush3.bf16.msra.mxu0 %v2018_v48  ;;  %1804 = vmatprep.subr.bf16.mxu1 %v2022_v52 }
  0x39   :  { %1868 = vmatprep.subr.bf16.mxu0 %v2024_v53 }
  0x3a   :  { %1797 = vmatmul.mubr.msk.bf16.gmra.mrb[4].mxu1 %vm119_vm0, %v2021_v51  ;;  %v1671_v51 = vunpack.c.l.bf16 %v1678_v42 }
  0x3b   :  { %1861 = vmatmul.mubr.msk.bf16.gmra.mrb[4].mxu0 %vm119_vm0, %v2023_v54  ;;  %1805 = vmatpush3.bf16.msra.mxu1 %v2022_v52  ;;  %v1668_v52 = vunpack.c.h.bf16 %v1677_v38 }
  0x3c   :  { %1869 = vmatpush3.bf16.msra.mxu0 %v2024_v53  ;;  %1806 = vmatprep.subr.bf16.mxu1 %v2025_v55  ;;  %v1676_v53 = vunpack.c.h.bf16 %v1679_v39 }
  0x3d   :  { %1870 = vmatprep.subr.bf16.mxu0 %v2026_v56  ;;  %1808 = vmatprep.mubr.msk.bf16.mxu1 %vm119_vm0, %v2027_v57 }
  0x3e   :  { %1872 = vmatprep.mubr.msk.bf16.mxu0 %vm119_vm0, %v2028_v58  ;;  %v1664_v58 = vunpack.c.h.bf16 %v1662_v40 }
  0x3f   :  { %1807 = vmatpush3.bf16.msra.mxu1 %v2025_v55 }
  0x40   :  { %1871 = vmatpush3.bf16.msra.mxu0 %v2026_v56  ;;  %1896 = vmatprep.subr.bf16.mxu1 %v2031_v59 }
  0x41   :  { %1880 = vmatprep.subr.bf16.mxu0 %v2031_v59 }
  0x42   :  { %1809 = vmatmul.mubr.msk.bf16.vlgmr.msra.gmra.mrb[0].mxu1 %vm119_vm0, %v2029_v60 }
  0x43   :  { %1873 = vmatmul.mubr.msk.bf16.vlgmr.msra.gmra.mrb[0].mxu0 %vm119_vm0, %v2030_v61  ;;  %1900 = vmatpush3.bf16.msra.mxu1 %v2031_v59 }
  0x44   :  { %1881 = vmatpush3.bf16.msra.mxu0 %v2031_v59  ;;  %1897 = vmatprep.subr.bf16.mxu1 %v2032_v62  ;;  %v1672_v59 = vunpack.c.h.bf16 %v1678_v42 }
  0x45   :  { %1882 = vmatprep.subr.bf16.mxu0 %v2032_v62  ;;  %1812 = vmatprep.mubr.msk.bf16.mxu1 %vm119_vm0, %v2033_v63 }
  0x46   :  { %1876 = vmatprep.mubr.msk.bf16.mxu0 %vm119_vm0, %v2034_v0 }
  0x47   :  { %1901 = vmatpush3.bf16.msra.mxu1 %v2032_v62 }
  0x48   :  { %1883 = vmatpush3.bf16.msra.mxu0 %v2032_v62  ;;  %1898 = vmatprep.subr.bf16.mxu1 %v2037_v1 }
  0x49   :  { %1884 = vmatprep.subr.bf16.mxu0 %v2037_v1 }
  0x4a   :  { %1813 = vmatmul.mubr.msk.bf16.gmra.mrb[4].mxu1 %vm119_vm0, %v2035_v2 }
  0x4b   :  { %1877 = vmatmul.mubr.msk.bf16.gmra.mrb[4].mxu0 %vm119_vm0, %v2036_v3  ;;  %1902 = vmatpush3.bf16.msra.mxu1 %v2037_v1 }
  0x4c   :  { %1885 = vmatpush3.bf16.msra.mxu0 %v2037_v1  ;;  %1899 = vmatprep.subr.bf16.mxu1 %v2038_v4 }
  0x4d   :  { %1886 = vmatprep.subr.bf16.mxu0 %v2038_v4  ;;  %1888 = vmatprep.mubr.msk.bf16.mxu0 %vm119_vm0, %v2039_v7 }
  0x4e   :  { %1892 = vmatprep.mubr.msk.bf16.mxu1 %vm119_vm0, %v2040_v8 }
  0x4f   :  { %1903 = vmatpush3.bf16.msra.mxu1 %v2038_v4 }
  0x50   :  { %1887 = vmatpush3.bf16.msra.mxu0 %v2038_v4 }
  0x52   :  { %1893 = vmatmul.mubr.msk.bf16.vlgmr.msra.gmra.mrb[8].mxu1 %vm119_vm0, %v2042_v11 }
  0x53   :  { %1889 = vmatmul.mubr.msk.bf16.vlgmr.msra.gmra.mrb[0].mxu0 %vm119_vm0, %v2041_v12 }
  0x96   :  { %v1351_v17 = vpop.permute.xlu0 %1350 }
  0x98   :  { %v1361_v19 = vpop.permute.xlu1 %1360 }
  0x9d   :  { %v1366_v24 = vpop.permute.xlu1 %1365 }
  0x9e   :  { %v2385_v21 = vpop.permute.xlu0 %1355 }
  0xa1   :  { %v1376_v41 = vpop.permute.xlu1 %1375 }
  0xa5   :  { %v1371_v25 = vpop.permute.xlu0 %1370 }
  0xa6   :  { %v1386_v1 = vpop.permute.xlu1 %1385 }
  0xa9   :  { %v1381_v43 = vpop.permute.xlu0 %1380 }
 0x115   :  { %v1810_v18 = vpop.f32.mrb[0].mxu1 }
 0x116   :  { %v571_v20 = vpop.f32.mrb[1].mxu1 }
 0x117   :  { %v1811_v22 = vpop.f32.mrb[2].mxu1 }
 0x118   :  { %v574_v23 = vpop.f32.mrb[3].mxu1 }
 0x11d   :  { %v1814_v26 = vpop.f32.mrb[4].mxu1 }
 0x11e   :  { %v1878_v27 = vpop.f32.mrb[4].mxu0  ;;  %v587_v28 = vpop.f32.mrb[5].mxu1 }
 0x11f   :  { %v1908_v29 = vadd.f32 %v1878_v27, %v1814_v26  ;;  %v1171_v30 = vpop.f32.mrb[5].mxu0  ;;  %v1815_v31 = vpop.f32.mrb[6].mxu1 }
 0x120   :  { %v1910_v32 = vadd.f32 %v1171_v30, %v587_v28  ;;  %v1879_v33 = vpop.f32.mrb[6].mxu0  ;;  %v590_v34 = vpop.f32.mrb[7].mxu1 }
 0x121   :  { %v1912_v35 = vadd.f32 %v1879_v33, %v1815_v31  ;;  %v1174_v36 = vpop.f32.mrb[7].mxu0 }
 0x122   :  { %v1914_v37 = vadd.f32 %v1174_v36, %v590_v34 }
 0x125   :  { %v1894_v45 = vpop.f32.mrb[8].mxu1 }
 0x126   :  { %v1890_v48 = vpop.f32.mrb[0].mxu0  ;;  %v1909_v49 = vadd.f32 %v1908_v29, %v1894_v45  ;;  %v1317_v50 = vpop.f32.mrb[9].mxu1 }
 0x127   :  { %v1904_v54 = vadd.f32 %v1890_v48, %v1810_v18  ;;  %v1301_v55 = vpop.f32.mrb[1].mxu0  ;;  %v1911_v56 = vadd.f32 %v1910_v32, %v1317_v50  ;;  %v1895_v57 = vpop.f32.mrb[10].mxu1 }
 0x128   :  { %v1394_v60 = vadd.f32 %v1909_v49, %v1381_v43  ;;  %v1905_v61 = vadd.f32 %v1301_v55, %v571_v20  ;;  %v1891_v62 = vpop.f32.mrb[2].mxu0  ;;  %v1913_v63 = vadd.f32 %v1912_v35, %v1895_v57  ;;  %v1320_v0 = vpop.f32.mrb[11].mxu1 }
 0x129   :  { %v1390_v2 = vadd.f32 %v1904_v54, %v1361_v19  ;;  %v1392_v3 = vadd.f32 %v1911_v56, %v1371_v25  ;;  %v1906_v4 = vadd.f32 %v1891_v62, %v1811_v22  ;;  %v1304_v5 = vpop.f32.mrb[3].mxu0  ;;  %v1915_v6 = vadd.f32 %v1914_v37, %v1320_v0 }
 0x12a   :  { %v1418_v7 = vadd.f32 %v1675_v46, %v1394_v60  ;;  %v1388_v8 = vadd.f32 %v1905_v61, %v1351_v17  ;;  %v1395_v9 = vadd.f32 %v1913_v63, %v1386_v1  ;;  %v1907_v10 = vadd.f32 %v1304_v5, %v574_v23 }
 0x12b   :  { %v1414_v11 = vadd.f32 %v1667_v44, %v1390_v2  ;;  %v1416_v12 = vadd.f32 %v1671_v51, %v1392_v3  ;;  %v1391_v13 = vadd.f32 %v1906_v4, %v1366_v24  ;;  %v1393_v14 = vadd.f32 %v1915_v6, %v1376_v41 }
 0x12c   :  { %v1426_v15 = vmax.f32 %v1418_v7, 0.0  ;;  %v1412_v16 = vadd.f32 %v1663_v47, %v1388_v8  ;;  %v1419_v18 = vadd.f32 %v1676_v53, %v1395_v9  ;;  %v1389_v20 = vadd.f32 %v1907_v10, %v2385_v21 }
 0x12d   :  { %v1422_v26 = vmax.f32 %v1414_v11, 0.0  ;;  %v1424_v27 = vmax.f32 %v1416_v12, 0.0  ;;  %v1415_v19 = vadd.f32 %v1668_v52, %v1391_v13  ;;  %v1417_v25 = vadd.f32 %v1672_v59, %v1393_v14 }
 0x12e   :  { %v1659_v22 = vpack.c.bf16 %v1426_v15, %v1426_v15  ;;  %v1420_v28 = vmax.f32 %v1412_v16, 0.0  ;;  %v1427_v29 = vmax.f32 %v1419_v18, 0.0  ;;  %v1413_v30 = vadd.f32 %v1664_v58, %v1389_v20 }
 0x12f   :  { %v1655_v17 = vpack.c.bf16 %v1422_v26, %v1422_v26  ;;  %v1657_v31 = vpack.c.bf16 %v1424_v27, %v1424_v27  ;;  %v1423_v23 = vmax.f32 %v1415_v19, 0.0  ;;  %v1425_v32 = vmax.f32 %v1417_v25, 0.0 }
 0x130   :  { %1467 = vst.msk [vmem:[%s2444_s12 + $0x18] sm:$0xf] %vm1460_vm1, %v1659_v22  ;;  %v1653_v24 = vpack.c.bf16 %v1420_v28, %v1420_v28  ;;  %v1660_v33 = vpack.c.bf16 %v1427_v29, %v1427_v29  ;;  %v1421_v21 = vmax.f32 %v1413_v30, 0.0 }
 0x131   :  { %1463 = vst.msk [vmem:[%s2444_s12 + $0x8] sm:$0xf] %vm1460_vm1, %v1655_v17  ;;  %1465 = vst.msk [vmem:[%s2444_s12 + $0x10] sm:$0xf] %vm1460_vm1, %v1657_v31  ;;  %v1656_v34 = vpack.c.bf16 %v1423_v23, %v1423_v23  ;;  %v1658_v35 = vpack.c.bf16 %v1425_v32, %v1425_v32 }
 0x132   :  { %1461 = vst.msk [vmem:[%s2444_s12] sm:$0xf] %vm1460_vm1, %v1653_v24  ;;  %1468 = vst.msk [vmem:[%s2444_s12 + $0x1c] sm:$0xf] %vm1460_vm1, %v1660_v33  ;;  %v1654_v36 = vpack.c.bf16 %v1421_v21, %v1421_v21 }
 0x133   :  { %1464 = vst.msk [vmem:[%s2444_s12 + $0xc] sm:$0xf] %vm1460_vm1, %v1656_v34  ;;  %1466 = vst.msk [vmem:[%s2444_s12 + $0x14] sm:$0xf] %vm1460_vm1, %v1658_v35 }
 0x134   :  { %1462 = vst.msk [vmem:[%s2444_s12 + $0x4] sm:$0xf] %vm1460_vm1, %v1654_v36 }

// kernel: _lambda_.35
= control target key start
LH: loop header
LB: loop body
LE: loop exit
PB: predicated region body
PF: predicated region fallthrough
CT: control target
= control target key end

     0   :  { %v1997_v1 = vmov 0   ;;  %vm116_vm0 = vcmask 523264   ;;  %vm1433_vm1 = vcmask 60416   ;;  %s2366_s3 = inlined_call_operand.vmem [shape: bf16[64,8], index: 3, kind: input, shape index: {}]   ;;  %s2367_s6 = inlined_call_operand.vmem [shape: bf16[64,8], index: 6, kind: input, shape index: {}]   ;;  %s2368_s0 = inlined_call_operand.vmem [shape: bf16[9,64,64], index: 0, kind: input, shape index: {}]   ;;  %s2369_s2 = inlined_call_operand.vmem [shape: bf16[64,8], index: 2, kind: input, shape index: {}]   ;;  %s2370_s7 = inlined_call_operand.vmem [shape: bf16[64,8], index: 7, kind: input, shape index: {}]   ;;  %s2371_s4 = inlined_call_operand.vmem [shape: bf16[64,8], index: 4, kind: input, shape index: {}]   ;;  %s2372_s8 = inlined_call_operand.vmem [shape: bf16[64,8], index: 8, kind: input, shape index: {}]   ;;  %s2373_s5 = inlined_call_operand.vmem [shape: bf16[64,8], index: 5, kind: input, shape index: {}]   ;;  %s2374_s9 = inlined_call_operand.vmem [shape: bf16[64,8], index: 9, kind: input, shape index: {}]   ;;  %s2375_s10 = inlined_call_operand.vmem [shape: bf16[64,8], index: 10, kind: input, shape index: {}]   ;;  %s2376_s1 = inlined_call_operand.vmem [shape: f32[64,1], index: 1, kind: input, shape index: {}]   ;;  %s2377_s11 = inlined_call_operand.vmem [shape: bf16[64,8], index: 11, kind: output, shape index: {}]  }
   0x1   :  { %v1925_v0 = vld [vmem:[%s2366_s3] sm:$0xff]   ;;  %1924 = vset.pattern.permute.xlu1 %v1997_v1  ;;  %1923 = vset.pattern.permute.xlu0 %v1997_v1  ;;  %v1927_v3 = vld [vmem:[%s2366_s3 + $0x8] sm:$0xff]   ;;  %v1929_v5 = vld [vmem:[%s2366_s3 + $0x10] sm:$0xff]  }
   0x2   :  { %v1926_v2 = vld [vmem:[%s2367_s6] sm:$0xff]   ;;  %1706 = vmatprep.subr.bf16.mxu1 %v1925_v0  ;;  %v1928_v4 = vld [vmem:[%s2367_s6 + $0x8] sm:$0xff]   ;;  %v1930_v6 = vld [vmem:[%s2367_s6 + $0x10] sm:$0xff]  }
   0x3   :  { %1770 = vmatprep.subr.bf16.mxu0 %v1926_v2  ;;  %1707 = vmatpush3.bf16.msra.mxu1 %v1925_v0  ;;  %v1931_v7 = vld [vmem:[%s2366_s3 + $0x18] sm:$0xff]   ;;  %v1933_v9 = vld [vmem:[%s2368_s0 + $0x20] sm:$0xff]   ;;  %v1935_v11 = vld [vmem:[%s2368_s0 + $0x28] sm:$0xff]  }
   0x4   :  { %1771 = vmatpush3.bf16.msra.mxu0 %v1926_v2  ;;  %1708 = vmatprep.subr.bf16.mxu1 %v1927_v3  ;;  %v1932_v8 = vld [vmem:[%s2367_s6 + $0x18] sm:$0xff]   ;;  %v1934_v10 = vld [vmem:[%s2368_s0 + $0x80] sm:$0xff]   ;;  %v1937_v14 = vld [vmem:[%s2368_s0 + $0x88] sm:$0xff]  }
   0x5   :  { %1772 = vmatprep.subr.bf16.mxu0 %v1928_v4  ;;  %1714 = vmatprep.mubr.msk.bf16.mxu1 %vm116_vm0, %v1933_v9  ;;  %v1936_v12 = vld [vmem:[%s2369_s2] sm:$0xff]   ;;  %v1939_v15 = vld [vmem:[%s2369_s2 + $0x8] sm:$0xff]   ;;  %v1941_v17 = vld [vmem:[%s2368_s0 + $0x30] sm:$0xff]  }
   0x6   :  { %1778 = vmatprep.mubr.msk.bf16.mxu0 %vm116_vm0, %v1934_v10  ;;  %v1938_v13 = vld [vmem:[%s2370_s7] sm:$0xff]   ;;  %v1940_v16 = vld [vmem:[%s2370_s7 + $0x8] sm:$0xff]   ;;  %v1942_v18 = vld [vmem:[%s2368_s0 + $0x90] sm:$0xff]  }
   0x7   :  { %1709 = vmatpush3.bf16.msra.mxu1 %v1927_v3  ;;  %v1943_v19 = vld [vmem:[%s2368_s0 + $0x38] sm:$0xff]   ;;  %v1944_v20 = vld [vmem:[%s2369_s2 + $0x10] sm:$0xff]   ;;  %v1949_v25 = vld [vmem:[%s2368_s0] sm:$0xff]  }
   0x8   :  { %1773 = vmatpush3.bf16.msra.mxu0 %v1928_v4  ;;  %1710 = vmatprep.subr.bf16.mxu1 %v1929_v5  ;;  %v1946_v21 = vld [vmem:[%s2370_s7 + $0x10] sm:$0xff]   ;;  %v1945_v22 = vld [vmem:[%s2368_s0 + $0x98] sm:$0xff]   ;;  %v1950_v26 = vld [vmem:[%s2368_s0 + $0xa0] sm:$0xff]  }
   0x9   :  { %1774 = vmatprep.subr.bf16.mxu0 %v1930_v6  ;;  %v1947_v23 = vld [vmem:[%s2369_s2 + $0x18] sm:$0xff]   ;;  %v1951_v27 = vld [vmem:[%s2368_s0 + $0x8] sm:$0xff]   ;;  %v1952_v28 = vld [vmem:[%s2371_s4] sm:$0xff]  }
   0xa   :  { %v1948_v24 = vld [vmem:[%s2370_s7 + $0x18] sm:$0xff]   ;;  %v1954_v29 = vld [vmem:[%s2372_s8] sm:$0xff]   ;;  %v1953_v30 = vld [vmem:[%s2368_s0 + $0xa8] sm:$0xff]  }
   0xb   :  { %1711 = vmatpush3.bf16.msra.mxu1 %v1929_v5  ;;  %v1955_v31 = vld [vmem:[%s2371_s4 + $0x8] sm:$0xff]   ;;  %v1957_v33 = vld [vmem:[%s2368_s0 + $0x10] sm:$0xff]   ;;  %v1959_v35 = vld [vmem:[%s2368_s0 + $0x18] sm:$0xff]  }
   0xc   :  { %1775 = vmatpush3.bf16.msra.mxu0 %v1930_v6  ;;  %1712 = vmatprep.subr.bf16.mxu1 %v1931_v7  ;;  %v1956_v32 = vld [vmem:[%s2372_s8 + $0x8] sm:$0xff]   ;;  %v1958_v34 = vld [vmem:[%s2368_s0 + $0xb0] sm:$0xff]   ;;  %v1961_v38 = vld [vmem:[%s2368_s0 + $0xb8] sm:$0xff]  }
   0xd   :  { %1776 = vmatprep.subr.bf16.mxu0 %v1932_v8  ;;  %v1960_v36 = vld [vmem:[%s2371_s4 + $0x10] sm:$0xff]   ;;  %v1963_v39 = vld [vmem:[%s2371_s4 + $0x18] sm:$0xff]   ;;  %v1965_v41 = vld [vmem:[%s2368_s0 + $0x40] sm:$0xff]  }
   0xe   :  { %v1962_v37 = vld [vmem:[%s2372_s8 + $0x10] sm:$0xff]   ;;  %v1964_v40 = vld [vmem:[%s2372_s8 + $0x18] sm:$0xff]   ;;  %v1966_v42 = vld [vmem:[%s2368_s0 + $0xc0] sm:$0xff]  }
   0xf   :  { %1713 = vmatpush3.bf16.msra.mxu1 %v1931_v7  ;;  %v1967_v43 = vld [vmem:[%s2368_s0 + $0x48] sm:$0xff]   ;;  %v1968_v44 = vld [vmem:[%s2373_s5] sm:$0xff]   ;;  %v1973_v49 = vld [vmem:[%s2368_s0 + $0x50] sm:$0xff]  }
  0x10   :  { %1777 = vmatpush3.bf16.msra.mxu0 %v1932_v8  ;;  %1722 = vmatprep.subr.bf16.mxu1 %v1936_v12  ;;  %v1970_v45 = vld [vmem:[%s2374_s9] sm:$0xff]   ;;  %v1969_v46 = vld [vmem:[%s2368_s0 + $0xc8] sm:$0xff]   ;;  %v1974_v50 = vld [vmem:[%s2368_s0 + $0xd0] sm:$0xff]  }
  0x11   :  { %1786 = vmatprep.subr.bf16.mxu0 %v1938_v13  ;;  %v1971_v47 = vld [vmem:[%s2373_s5 + $0x8] sm:$0xff]   ;;  %v1975_v51 = vld [vmem:[%s2368_s0 + $0x58] sm:$0xff]   ;;  %v1976_v52 = vld [vmem:[%s2373_s5 + $0x10] sm:$0xff]  }
  0x12   :  { %1715 = vmatmul.mubr.msk.bf16.vlgmr.msra.gmra.mrb[0].mxu1 %vm116_vm0, %v1935_v11  ;;  %v1972_v48 = vld [vmem:[%s2374_s9 + $0x8] sm:$0xff]   ;;  %v1978_v53 = vld [vmem:[%s2374_s9 + $0x10] sm:$0xff]   ;;  %v1977_v54 = vld [vmem:[%s2368_s0 + $0xd8] sm:$0xff]  }
  0x13   :  { %1779 = vmatmul.mubr.msk.bf16.vlgmr.msra.gmra.mrb[0].mxu0 %vm116_vm0, %v1937_v14  ;;  %1723 = vmatpush3.bf16.msra.mxu1 %v1936_v12  ;;  %v1979_v55 = vld [vmem:[%s2373_s5 + $0x18] sm:$0xff]   ;;  %v1981_v57 = vld [vmem:[%s2368_s0 + $0x60] sm:$0xff]   ;;  %v1983_v60 = vld [vmem:[%s2368_s0 + $0x68] sm:$0xff]  }
  0x14   :  { %1787 = vmatpush3.bf16.msra.mxu0 %v1938_v13  ;;  %1724 = vmatprep.subr.bf16.mxu1 %v1939_v15  ;;  %v1980_v56 = vld [vmem:[%s2374_s9 + $0x18] sm:$0xff]   ;;  %v1982_v58 = vld [vmem:[%s2368_s0 + $0xe0] sm:$0xff]   ;;  %v1984_v61 = vld [vmem:[%s2368_s0 + $0xe8] sm:$0xff]  }
  0x15   :  { %1788 = vmatprep.subr.bf16.mxu0 %v1940_v16  ;;  %1718 = vmatprep.mubr.msk.bf16.mxu1 %vm116_vm0, %v1941_v17  ;;  %v1985_v59 = vld [vmem:[%s2375_s10] sm:$0xff]   ;;  %v1986_v62 = vld [vmem:[%s2375_s10 + $0x8] sm:$0xff]   ;;  %v1987_v63 = vld [vmem:[%s2368_s0 + $0x70] sm:$0xff]  }
  0x16   :  { %1782 = vmatprep.mubr.msk.bf16.mxu0 %vm116_vm0, %v1942_v18  ;;  %v1988_v0 = vld [vmem:[%s2368_s0 + $0xf0] sm:$0xff]   ;;  %v1989_v2 = vld [vmem:[%s2368_s0 + $0x78] sm:$0xff]   ;;  %v1337_v6 = vld [vmem:[%s2376_s1] sm:$0xff] }
  0x17   :  { %1725 = vmatpush3.bf16.msra.mxu1 %v1939_v15  ;;  %v1991_v1 = vld [vmem:[%s2375_s10 + $0x10] sm:$0xff]   ;;  %v1990_v3 = vld [vmem:[%s2368_s0 + $0xf8] sm:$0xff]   ;;  %v1993_v7 = vld [vmem:[%s2368_s0 + $0x100] sm:$0xff]   ;;  %1347 = vperm.xlu0 %1923, %v1337_v6  }
  0x18   :  { %1789 = vmatpush3.bf16.msra.mxu0 %v1940_v16  ;;  %1726 = vmatprep.subr.bf16.mxu1 %v1944_v20  ;;  %v1992_v4 = vld [vmem:[%s2375_s10 + $0x18] sm:$0xff]   ;;  %v1339_v5 = vld [vmem:[%s2376_s1 + $0x10] sm:$0xff]  ;;  %v1338_v10 = vld [vmem:[%s2376_s1 + $0x8] sm:$0xff] }
  0x19   :  { %1790 = vmatprep.subr.bf16.mxu0 %v1946_v21  ;;  %1357 = vperm.xlu1 %1924, %v1339_v5   ;;  %v1994_v8 = vld [vmem:[%s2368_s0 + $0x110] sm:$0xff]   ;;  %v1340_v9 = vld [vmem:[%s2376_s1 + $0x18] sm:$0xff]  ;;  %v1995_v12 = vld [vmem:[%s2368_s0 + $0x108] sm:$0xff]  }
  0x1a   :  { %1719 = vmatmul.mubr.msk.bf16.gmra.mrb[4].mxu1 %vm116_vm0, %v1943_v19  ;;  %v1996_v11 = vld [vmem:[%s2368_s0 + $0x118] sm:$0xff]   ;;  %v1342_v13 = vld [vmem:[%s2376_s1 + $0x28] sm:$0xff]  ;;  %v1341_v14 = vld [vmem:[%s2376_s1 + $0x20] sm:$0xff] }
  0x1b   :  { %1783 = vmatmul.mubr.msk.bf16.gmra.mrb[4].mxu0 %vm116_vm0, %v1945_v22  ;;  %1727 = vmatpush3.bf16.msra.mxu1 %v1944_v20  ;;  %v1344_v15 = vld [vmem:[%s2376_s1 + $0x38] sm:$0xff]  ;;  %v1343_v16 = vld [vmem:[%s2376_s1 + $0x30] sm:$0xff] }
  0x1c   :  { %1791 = vmatpush3.bf16.msra.mxu0 %v1946_v21  ;;  %1728 = vmatprep.subr.bf16.mxu1 %v1947_v23 }
  0x1d   :  { %1792 = vmatprep.subr.bf16.mxu0 %v1948_v24  ;;  %1730 = vmatprep.mubr.msk.bf16.mxu1 %vm116_vm0, %v1949_v25 }
  0x1e   :  { %1794 = vmatprep.mubr.msk.bf16.mxu0 %vm116_vm0, %v1950_v26  ;;  %1362 = vperm.xlu1 %1924, %v1340_v9  }
  0x1f   :  { %1729 = vmatpush3.bf16.msra.mxu1 %v1947_v23  ;;  %1352 = vperm.xlu0 %1923, %v1338_v10  }
  0x20   :  { %1793 = vmatpush3.bf16.msra.mxu0 %v1948_v24  ;;  %1738 = vmatprep.subr.bf16.mxu1 %v1952_v28 }
  0x21   :  { %1802 = vmatprep.subr.bf16.mxu0 %v1954_v29 }
  0x22   :  { %1731 = vmatmul.mubr.msk.bf16.vlgmr.msra.gmra.mrb[0].mxu1 %vm116_vm0, %v1951_v27  ;;  %1372 = vperm.xlu1 %1924, %v1342_v13  }
  0x23   :  { %1795 = vmatmul.mubr.msk.bf16.vlgmr.msra.gmra.mrb[0].mxu0 %vm116_vm0, %v1953_v30  ;;  %1739 = vmatpush3.bf16.msra.mxu1 %v1952_v28 }
  0x24   :  { %1803 = vmatpush3.bf16.msra.mxu0 %v1954_v29  ;;  %1740 = vmatprep.subr.bf16.mxu1 %v1955_v31 }
  0x25   :  { %1804 = vmatprep.subr.bf16.mxu0 %v1956_v32  ;;  %1734 = vmatprep.mubr.msk.bf16.mxu1 %vm116_vm0, %v1957_v33 }
  0x26   :  { %1798 = vmatprep.mubr.msk.bf16.mxu0 %vm116_vm0, %v1958_v34  ;;  %1367 = vperm.xlu0 %1923, %v1341_v14  }
  0x27   :  { %1741 = vmatpush3.bf16.msra.mxu1 %v1955_v31  ;;  %1382 = vperm.xlu1 %1924, %v1344_v15  }
  0x28   :  { %1805 = vmatpush3.bf16.msra.mxu0 %v1956_v32  ;;  %1742 = vmatprep.subr.bf16.mxu1 %v1960_v36 }
  0x29   :  { %1806 = vmatprep.subr.bf16.mxu0 %v1962_v37 }
  0x2a   :  { %1735 = vmatmul.mubr.msk.bf16.gmra.mrb[4].mxu1 %vm116_vm0, %v1959_v35  ;;  %1377 = vperm.xlu0 %1923, %v1343_v16  }
  0x2b   :  { %1799 = vmatmul.mubr.msk.bf16.gmra.mrb[4].mxu0 %vm116_vm0, %v1961_v38  ;;  %1743 = vmatpush3.bf16.msra.mxu1 %v1960_v36 }
  0x2c   :  { %1807 = vmatpush3.bf16.msra.mxu0 %v1962_v37  ;;  %1744 = vmatprep.subr.bf16.mxu1 %v1963_v39 }
  0x2d   :  { %1808 = vmatprep.subr.bf16.mxu0 %v1964_v40  ;;  %1746 = vmatprep.mubr.msk.bf16.mxu1 %vm116_vm0, %v1965_v41 }
  0x2e   :  { %1810 = vmatprep.mubr.msk.bf16.mxu0 %vm116_vm0, %v1966_v42 }
  0x2f   :  { %1745 = vmatpush3.bf16.msra.mxu1 %v1963_v39 }
  0x30   :  { %1809 = vmatpush3.bf16.msra.mxu0 %v1964_v40  ;;  %1754 = vmatprep.subr.bf16.mxu1 %v1968_v44 }
  0x31   :  { %1818 = vmatprep.subr.bf16.mxu0 %v1970_v45 }
  0x32   :  { %1747 = vmatmul.mubr.msk.bf16.vlgmr.msra.gmra.mrb[0].mxu1 %vm116_vm0, %v1967_v43 }
  0x33   :  { %1811 = vmatmul.mubr.msk.bf16.vlgmr.msra.gmra.mrb[0].mxu0 %vm116_vm0, %v1969_v46  ;;  %1755 = vmatpush3.bf16.msra.mxu1 %v1968_v44 }
  0x34   :  { %1819 = vmatpush3.bf16.msra.mxu0 %v1970_v45  ;;  %1756 = vmatprep.subr.bf16.mxu1 %v1971_v47 }
  0x35   :  { %1820 = vmatprep.subr.bf16.mxu0 %v1972_v48  ;;  %1750 = vmatprep.mubr.msk.bf16.mxu1 %vm116_vm0, %v1973_v49 }
  0x36   :  { %1814 = vmatprep.mubr.msk.bf16.mxu0 %vm116_vm0, %v1974_v50 }
  0x37   :  { %1757 = vmatpush3.bf16.msra.mxu1 %v1971_v47 }
  0x38   :  { %1821 = vmatpush3.bf16.msra.mxu0 %v1972_v48  ;;  %1758 = vmatprep.subr.bf16.mxu1 %v1976_v52 }
  0x39   :  { %1822 = vmatprep.subr.bf16.mxu0 %v1978_v53 }
  0x3a   :  { %1751 = vmatmul.mubr.msk.bf16.gmra.mrb[4].mxu1 %vm116_vm0, %v1975_v51 }
  0x3b   :  { %1815 = vmatmul.mubr.msk.bf16.gmra.mrb[4].mxu0 %vm116_vm0, %v1977_v54  ;;  %1759 = vmatpush3.bf16.msra.mxu1 %v1976_v52 }
  0x3c   :  { %1823 = vmatpush3.bf16.msra.mxu0 %v1978_v53  ;;  %1760 = vmatprep.subr.bf16.mxu1 %v1979_v55 }
  0x3d   :  { %1824 = vmatprep.subr.bf16.mxu0 %v1980_v56  ;;  %1762 = vmatprep.mubr.msk.bf16.mxu1 %vm116_vm0, %v1981_v57 }
  0x3e   :  { %1826 = vmatprep.mubr.msk.bf16.mxu0 %vm116_vm0, %v1982_v58 }
  0x3f   :  { %1761 = vmatpush3.bf16.msra.mxu1 %v1979_v55 }
  0x40   :  { %1825 = vmatpush3.bf16.msra.mxu0 %v1980_v56  ;;  %1850 = vmatprep.subr.bf16.mxu1 %v1985_v59 }
  0x41   :  { %1834 = vmatprep.subr.bf16.mxu0 %v1985_v59 }
  0x42   :  { %1763 = vmatmul.mubr.msk.bf16.vlgmr.msra.gmra.mrb[0].mxu1 %vm116_vm0, %v1983_v60 }
  0x43   :  { %1827 = vmatmul.mubr.msk.bf16.vlgmr.msra.gmra.mrb[0].mxu0 %vm116_vm0, %v1984_v61  ;;  %1854 = vmatpush3.bf16.msra.mxu1 %v1985_v59 }
  0x44   :  { %1835 = vmatpush3.bf16.msra.mxu0 %v1985_v59  ;;  %1851 = vmatprep.subr.bf16.mxu1 %v1986_v62 }
  0x45   :  { %1836 = vmatprep.subr.bf16.mxu0 %v1986_v62  ;;  %1766 = vmatprep.mubr.msk.bf16.mxu1 %vm116_vm0, %v1987_v63 }
  0x46   :  { %1830 = vmatprep.mubr.msk.bf16.mxu0 %vm116_vm0, %v1988_v0 }
  0x47   :  { %1855 = vmatpush3.bf16.msra.mxu1 %v1986_v62 }
  0x48   :  { %1837 = vmatpush3.bf16.msra.mxu0 %v1986_v62  ;;  %1852 = vmatprep.subr.bf16.mxu1 %v1991_v1 }
  0x49   :  { %1838 = vmatprep.subr.bf16.mxu0 %v1991_v1 }
  0x4a   :  { %1767 = vmatmul.mubr.msk.bf16.gmra.mrb[4].mxu1 %vm116_vm0, %v1989_v2 }
  0x4b   :  { %1831 = vmatmul.mubr.msk.bf16.gmra.mrb[4].mxu0 %vm116_vm0, %v1990_v3  ;;  %1856 = vmatpush3.bf16.msra.mxu1 %v1991_v1 }
  0x4c   :  { %1839 = vmatpush3.bf16.msra.mxu0 %v1991_v1  ;;  %1853 = vmatprep.subr.bf16.mxu1 %v1992_v4 }
  0x4d   :  { %1840 = vmatprep.subr.bf16.mxu0 %v1992_v4  ;;  %1842 = vmatprep.mubr.msk.bf16.mxu0 %vm116_vm0, %v1993_v7 }
  0x4e   :  { %1846 = vmatprep.mubr.msk.bf16.mxu1 %vm116_vm0, %v1994_v8 }
  0x4f   :  { %1857 = vmatpush3.bf16.msra.mxu1 %v1992_v4 }
  0x50   :  { %1841 = vmatpush3.bf16.msra.mxu0 %v1992_v4 }
  0x52   :  { %1847 = vmatmul.mubr.msk.bf16.vlgmr.msra.gmra.mrb[8].mxu1 %vm116_vm0, %v1996_v11 }
  0x53   :  { %1843 = vmatmul.mubr.msk.bf16.vlgmr.msra.gmra.mrb[0].mxu0 %vm116_vm0, %v1995_v12 }
  0x96   :  { %v1348_v17 = vpop.permute.xlu0 %1347 }
  0x98   :  { %v1358_v19 = vpop.permute.xlu1 %1357 }
  0x9d   :  { %v1363_v24 = vpop.permute.xlu1 %1362 }
  0x9e   :  { %v1353_v21 = vpop.permute.xlu0 %1352 }
  0xa1   :  { %v1373_v38 = vpop.permute.xlu1 %1372 }
  0xa5   :  { %v1368_v25 = vpop.permute.xlu0 %1367 }
  0xa6   :  { %v1383_v53 = vpop.permute.xlu1 %1382 }
  0xa9   :  { %v1378_v39 = vpop.permute.xlu0 %1377 }
 0x115   :  { %v1764_v18 = vpop.f32.mrb[0].mxu1 }
 0x116   :  { %v568_v20 = vpop.f32.mrb[1].mxu1 }
 0x117   :  { %v1765_v22 = vpop.f32.mrb[2].mxu1 }
 0x118   :  { %v571_v23 = vpop.f32.mrb[3].mxu1 }
 0x11d   :  { %v1768_v26 = vpop.f32.mrb[4].mxu1 }
 0x11e   :  { %v1832_v27 = vpop.f32.mrb[4].mxu0  ;;  %v584_v28 = vpop.f32.mrb[5].mxu1 }
 0x11f   :  { %v1862_v29 = vadd.f32 %v1832_v27, %v1768_v26  ;;  %v1168_v30 = vpop.f32.mrb[5].mxu0  ;;  %v1769_v31 = vpop.f32.mrb[6].mxu1 }
 0x120   :  { %v1864_v32 = vadd.f32 %v1168_v30, %v584_v28  ;;  %v1833_v33 = vpop.f32.mrb[6].mxu0  ;;  %v587_v34 = vpop.f32.mrb[7].mxu1 }
 0x121   :  { %v1866_v35 = vadd.f32 %v1833_v33, %v1769_v31  ;;  %v1171_v36 = vpop.f32.mrb[7].mxu0 }
 0x122   :  { %v1868_v37 = vadd.f32 %v1171_v36, %v587_v34 }
 0x125   :  { %v1848_v40 = vpop.f32.mrb[8].mxu1 }
 0x126   :  { %v1844_v41 = vpop.f32.mrb[0].mxu0  ;;  %v1863_v42 = vadd.f32 %v1862_v29, %v1848_v40  ;;  %v1314_v43 = vpop.f32.mrb[9].mxu1 }
 0x127   :  { %v1858_v44 = vadd.f32 %v1844_v41, %v1764_v18  ;;  %v1298_v45 = vpop.f32.mrb[1].mxu0  ;;  %v1865_v46 = vadd.f32 %v1864_v32, %v1314_v43  ;;  %v1849_v47 = vpop.f32.mrb[10].mxu1 }
 0x128   :  { %v1391_v48 = vadd.f32 %v1863_v42, %v1378_v39  ;;  %v1859_v49 = vadd.f32 %v1298_v45, %v568_v20  ;;  %v1845_v50 = vpop.f32.mrb[2].mxu0  ;;  %v1867_v51 = vadd.f32 %v1866_v35, %v1849_v47  ;;  %v1317_v52 = vpop.f32.mrb[11].mxu1 }
 0x129   :  { %v1387_v54 = vadd.f32 %v1858_v44, %v1358_v19  ;;  %v1389_v55 = vadd.f32 %v1865_v46, %v1368_v25  ;;  %v1860_v56 = vadd.f32 %v1845_v50, %v1765_v22  ;;  %v1301_v57 = vpop.f32.mrb[3].mxu0  ;;  %v1869_v58 = vadd.f32 %v1868_v37, %v1317_v52 }
 0x12a   :  { %v1399_v59 = vmax.f32 %v1391_v48, 0.0  ;;  %v1385_v60 = vadd.f32 %v1859_v49, %v1348_v17  ;;  %v1392_v61 = vadd.f32 %v1867_v51, %v1383_v53  ;;  %v1861_v62 = vadd.f32 %v1301_v57, %v571_v23 }
 0x12b   :  { %v1395_v63 = vmax.f32 %v1387_v54, 0.0  ;;  %v1397_v0 = vmax.f32 %v1389_v55, 0.0  ;;  %v1388_v1 = vadd.f32 %v1860_v56, %v1363_v24  ;;  %v1390_v2 = vadd.f32 %v1869_v58, %v1373_v38 }
 0x12c   :  { %v1632_v3 = vpack.c.bf16 %v1399_v59, %v1399_v59  ;;  %v1393_v4 = vmax.f32 %v1385_v60, 0.0  ;;  %v1400_v5 = vmax.f32 %v1392_v61, 0.0  ;;  %v1386_v6 = vadd.f32 %v1861_v62, %v1353_v21 }
 0x12d   :  { %v1628_v7 = vpack.c.bf16 %v1395_v63, %v1395_v63  ;;  %v1630_v8 = vpack.c.bf16 %v1397_v0, %v1397_v0  ;;  %v1396_v9 = vmax.f32 %v1388_v1, 0.0  ;;  %v1398_v10 = vmax.f32 %v1390_v2, 0.0 }
 0x12e   :  { %1440 = vst.msk [vmem:[%s2377_s11 + $0x18] sm:$0xf] %vm1433_vm1, %v1632_v3  ;;  %v1626_v11 = vpack.c.bf16 %v1393_v4, %v1393_v4  ;;  %v1633_v12 = vpack.c.bf16 %v1400_v5, %v1400_v5  ;;  %v1394_v13 = vmax.f32 %v1386_v6, 0.0 }
 0x12f   :  { %1436 = vst.msk [vmem:[%s2377_s11 + $0x8] sm:$0xf] %vm1433_vm1, %v1628_v7  ;;  %1438 = vst.msk [vmem:[%s2377_s11 + $0x10] sm:$0xf] %vm1433_vm1, %v1630_v8  ;;  %v1629_v14 = vpack.c.bf16 %v1396_v9, %v1396_v9  ;;  %v1631_v15 = vpack.c.bf16 %v1398_v10, %v1398_v10 }
 0x130   :  { %1434 = vst.msk [vmem:[%s2377_s11] sm:$0xf] %vm1433_vm1, %v1626_v11  ;;  %1441 = vst.msk [vmem:[%s2377_s11 + $0x1c] sm:$0xf] %vm1433_vm1, %v1633_v12  ;;  %v1627_v16 = vpack.c.bf16 %v1394_v13, %v1394_v13 }
 0x131   :  { %1437 = vst.msk [vmem:[%s2377_s11 + $0xc] sm:$0xf] %vm1433_vm1, %v1629_v14  ;;  %1439 = vst.msk [vmem:[%s2377_s11 + $0x14] sm:$0xf] %vm1433_vm1, %v1631_v15 }
 0x132   :  { %1435 = vst.msk [vmem:[%s2377_s11 + $0x4] sm:$0xf] %vm1433_vm1, %v1627_v16 }

// kernel: _lambda_.38
= control target key start
LH: loop header
LB: loop body
LE: loop exit
PB: predicated region body
PF: predicated region fallthrough
CT: control target
= control target key end

     0   :  { %v517_v1 = vmov 0   ;;  %vm199_vm0 = vcmask 523264   ;;  %vm385_vm1 = vcmask 11264   ;;  %s697_s2 = inlined_call_operand.vmem [shape: bf16[64,2], index: 2, kind: input, shape index: {}]   ;;  %s698_s0 = inlined_call_operand.vmem [shape: bf16[1,128,64], index: 0, kind: input, shape index: {}]   ;;  %s699_s1 = inlined_call_operand.vmem [shape: f32[128,1], index: 1, kind: input, shape index: {}]   ;;  %s700_s3 = inlined_call_operand.vmem [shape: bf16[128,2], index: 3, kind: output, shape index: {}]  }
   0x1   :  { %v505_v0 = vld [vmem:[%s697_s2] sm:$0xff]   ;;  %504 = vset.pattern.permute.xlu1 %v517_v1  ;;  %503 = vset.pattern.permute.xlu0 %v517_v1  ;;  %v506_v2 = vld [vmem:[%s697_s2 + $0x8] sm:$0xff]   ;;  %v507_v3 = vld [vmem:[%s697_s2 + $0x10] sm:$0xff]  }
   0x2   :  { %470 = vmatprep.subr.bf16.mxu0 %v505_v0  ;;  %494 = vmatprep.subr.bf16.mxu1 %v505_v0  ;;  %v509_v4 = vld [vmem:[%s698_s0] sm:$0xff]   ;;  %v508_v6 = vld [vmem:[%s697_s2 + $0x18] sm:$0xff]   ;;  %v41_v7 = vld [vmem:[%s699_s1 + $0x10] sm:$0xff] }
   0x3   :  { %471 = vmatpush3.bf16.msra.mxu0 %v505_v0  ;;  %498 = vmatpush3.bf16.msra.mxu1 %v505_v0  ;;  %v510_v5 = vld [vmem:[%s698_s0 + $0x20] sm:$0xff]   ;;  %v511_v9 = vld [vmem:[%s698_s0 + $0x8] sm:$0xff]   ;;  %v42_v11 = vld [vmem:[%s699_s1 + $0x18] sm:$0xff] }
   0x4   :  { %472 = vmatprep.subr.bf16.mxu0 %v506_v2  ;;  %495 = vmatprep.subr.bf16.mxu1 %v506_v2  ;;  %v39_v8 = vld [vmem:[%s699_s1] sm:$0xff]  ;;  %v512_v10 = vld [vmem:[%s698_s0 + $0x28] sm:$0xff]   ;;  %v513_v13 = vld [vmem:[%s698_s0 + $0x10] sm:$0xff]  }
   0x5   :  { %478 = vmatprep.mubr.msk.bf16.mxu0 %vm199_vm0, %v509_v4  ;;  %486 = vmatprep.mubr.msk.bf16.mxu1 %vm199_vm0, %v510_v5  ;;  %v40_v12 = vld [vmem:[%s699_s1 + $0x8] sm:$0xff]  ;;  %v514_v14 = vld [vmem:[%s698_s0 + $0x30] sm:$0xff]   ;;  %v43_v16 = vld [vmem:[%s699_s1 + $0x20] sm:$0xff] }
   0x6   :  { %67 = vperm.xlu1 %504, %v41_v7   ;;  %57 = vperm.xlu0 %503, %v39_v8   ;;  %v44_v15 = vld [vmem:[%s699_s1 + $0x28] sm:$0xff]  ;;  %v515_v17 = vld [vmem:[%s698_s0 + $0x18] sm:$0xff]   ;;  %v45_v20 = vld [vmem:[%s699_s1 + $0x30] sm:$0xff] }
   0x7   :  { %473 = vmatpush3.bf16.msra.mxu0 %v506_v2  ;;  %499 = vmatpush3.bf16.msra.mxu1 %v506_v2  ;;  %v516_v18 = vld [vmem:[%s698_s0 + $0x38] sm:$0xff]   ;;  %v48_v21 = vld [vmem:[%s699_s1 + $0x48] sm:$0xff]  ;;  %v47_v22 = vld [vmem:[%s699_s1 + $0x40] sm:$0xff] }
   0x8   :  { %474 = vmatprep.subr.bf16.mxu0 %v507_v3  ;;  %496 = vmatprep.subr.bf16.mxu1 %v507_v3  ;;  %v46_v19 = vld [vmem:[%s699_s1 + $0x38] sm:$0xff]  ;;  %v49_v24 = vld [vmem:[%s699_s1 + $0x50] sm:$0xff]  ;;  %v52_v25 = vld [vmem:[%s699_s1 + $0x68] sm:$0xff] }
   0x9   :  { %v50_v23 = vld [vmem:[%s699_s1 + $0x58] sm:$0xff]  ;;  %v51_v26 = vld [vmem:[%s699_s1 + $0x60] sm:$0xff]  ;;  %v53_v28 = vld [vmem:[%s699_s1 + $0x70] sm:$0xff] }
   0xa   :  { %72 = vperm.xlu1 %504, %v42_v11   ;;  %62 = vperm.xlu0 %503, %v40_v12   ;;  %v54_v27 = vld [vmem:[%s699_s1 + $0x78] sm:$0xff] }
   0xb   :  { %475 = vmatpush3.bf16.msra.mxu0 %v507_v3  ;;  %500 = vmatpush3.bf16.msra.mxu1 %v507_v3 }
   0xc   :  { %476 = vmatprep.subr.bf16.mxu0 %v508_v6  ;;  %497 = vmatprep.subr.bf16.mxu1 %v508_v6 }
   0xe   :  { %82 = vperm.xlu1 %504, %v44_v15   ;;  %77 = vperm.xlu0 %503, %v43_v16  }
   0xf   :  { %477 = vmatpush3.bf16.msra.mxu0 %v508_v6  ;;  %501 = vmatpush3.bf16.msra.mxu1 %v508_v6 }
  0x12   :  { %479 = vmatmul.mubr.msk.bf16.vlgmr.msra.gmra.mrb[0].mxu0 %vm199_vm0, %v511_v9  ;;  %487 = vmatmul.mubr.msk.bf16.vlgmr.msra.gmra.mrb[0].mxu1 %vm199_vm0, %v512_v10 }
  0x13   :  { %482 = vmatprep.mubr.msk.bf16.mxu0 %vm199_vm0, %v513_v13  ;;  %490 = vmatprep.mubr.msk.bf16.mxu1 %vm199_vm0, %v514_v14 }
  0x14   :  { %92 = vperm.xlu1 %504, %v46_v19   ;;  %87 = vperm.xlu0 %503, %v45_v20  }
  0x18   :  { %102 = vperm.xlu1 %504, %v48_v21   ;;  %97 = vperm.xlu0 %503, %v47_v22  }
  0x1a   :  { %483 = vmatmul.mubr.msk.bf16.gmra.mrb[4].mxu0 %vm199_vm0, %v515_v17  ;;  %491 = vmatmul.mubr.msk.bf16.gmra.mrb[4].mxu1 %vm199_vm0, %v516_v18 }
  0x1c   :  { %112 = vperm.xlu1 %504, %v50_v23   ;;  %107 = vperm.xlu0 %503, %v49_v24  }
  0x20   :  { %122 = vperm.xlu1 %504, %v52_v25   ;;  %117 = vperm.xlu0 %503, %v51_v26  }
  0x24   :  { %132 = vperm.xlu1 %504, %v54_v27   ;;  %127 = vperm.xlu0 %503, %v53_v28  }
  0x85   :  { %v68_v29 = vpop.permute.xlu1 %67  ;;  %v58_v30 = vpop.permute.xlu0 %57 }
  0x89   :  { %v73_v31 = vpop.permute.xlu1 %72  ;;  %v63_v32 = vpop.permute.xlu0 %62 }
  0x8d   :  { %v630_v33 = vpop.permute.xlu1 %82  ;;  %v78_v34 = vpop.permute.xlu0 %77 }
  0x93   :  { %v93_v35 = vpop.permute.xlu1 %92  ;;  %v88_v36 = vpop.permute.xlu0 %87 }
  0x97   :  { %v103_v37 = vpop.permute.xlu1 %102  ;;  %v98_v38 = vpop.permute.xlu0 %97 }
  0x9b   :  { %v113_v39 = vpop.permute.xlu1 %112  ;;  %v108_v40 = vpop.permute.xlu0 %107 }
  0x9f   :  { %v123_v41 = vpop.permute.xlu1 %122  ;;  %v118_v42 = vpop.permute.xlu0 %117 }
  0xa3   :  { %v133_v3 = vpop.permute.xlu1 %132  ;;  %v128_v4 = vpop.permute.xlu0 %127 }
  0xe5   :  { %v480_v43 = vpop.f32.mrb[0].mxu0  ;;  %v488_v44 = vpop.f32.mrb[0].mxu1 }
  0xe6   :  { %v267_v45 = vadd.f32 %v480_v43, %v68_v29  ;;  %v299_v46 = vadd.f32 %v488_v44, %v108_v40  ;;  %v258_v47 = vpop.f32.mrb[1].mxu0  ;;  %v290_v48 = vpop.f32.mrb[1].mxu1 }
  0xe7   :  { %v259_v49 = vadd.f32 %v258_v47, %v58_v30  ;;  %v291_v50 = vadd.f32 %v290_v48, %v98_v38  ;;  %v481_v51 = vpop.f32.mrb[2].mxu0  ;;  %v489_v52 = vpop.f32.mrb[2].mxu1 }
  0xe8   :  { %v444_v53 = vpack.c.bf16 %v267_v45, %v267_v45  ;;  %v452_v54 = vpack.c.bf16 %v299_v46, %v299_v46  ;;  %v270_v55 = vadd.f32 %v481_v51, %v73_v31  ;;  %v302_v56 = vadd.f32 %v489_v52, %v113_v39  ;;  %v261_v57 = vpop.f32.mrb[3].mxu0  ;;  %v293_v58 = vpop.f32.mrb[3].mxu1 }
  0xe9   :  { %v442_v59 = vpack.c.bf16 %v259_v49, %v259_v49  ;;  %v450_v60 = vpack.c.bf16 %v291_v50, %v291_v50  ;;  %v262_v61 = vadd.f32 %v261_v57, %v63_v32  ;;  %v294_v62 = vadd.f32 %v293_v58, %v103_v37 }
  0xea   :  { %388 = vst.msk [vmem:[%s700_s3 + $0x8] sm:$0xf] %vm385_vm1, %v444_v53  ;;  %396 = vst.msk [vmem:[%s700_s3 + $0x28] sm:$0xf] %vm385_vm1, %v452_v54  ;;  %v445_v63 = vpack.c.bf16 %v270_v55, %v270_v55  ;;  %v453_v0 = vpack.c.bf16 %v302_v56, %v302_v56 }
  0xeb   :  { %386 = vst.msk [vmem:[%s700_s3] sm:$0xf] %vm385_vm1, %v442_v59  ;;  %394 = vst.msk [vmem:[%s700_s3 + $0x20] sm:$0xf] %vm385_vm1, %v450_v60  ;;  %v443_v1 = vpack.c.bf16 %v262_v61, %v262_v61  ;;  %v451_v2 = vpack.c.bf16 %v294_v62, %v294_v62 }
  0xec   :  { %389 = vst.msk [vmem:[%s700_s3 + $0xc] sm:$0xf] %vm385_vm1, %v445_v63  ;;  %397 = vst.msk [vmem:[%s700_s3 + $0x2c] sm:$0xf] %vm385_vm1, %v453_v0 }
  0xed   :  { %387 = vst.msk [vmem:[%s700_s3 + $0x4] sm:$0xf] %vm385_vm1, %v443_v1  ;;  %395 = vst.msk [vmem:[%s700_s3 + $0x24] sm:$0xf] %vm385_vm1, %v451_v2  ;;  %v484_v5 = vpop.f32.mrb[4].mxu0  ;;  %v492_v6 = vpop.f32.mrb[4].mxu1 }
  0xee   :  { %v283_v7 = vadd.f32 %v484_v5, %v88_v36  ;;  %v315_v8 = vadd.f32 %v492_v6, %v128_v4  ;;  %v274_v9 = vpop.f32.mrb[5].mxu0  ;;  %v306_v10 = vpop.f32.mrb[5].mxu1 }
  0xef   :  { %v275_v11 = vadd.f32 %v274_v9, %v78_v34  ;;  %v307_v12 = vadd.f32 %v306_v10, %v118_v42  ;;  %v485_v13 = vpop.f32.mrb[6].mxu0  ;;  %v493_v14 = vpop.f32.mrb[6].mxu1 }
  0xf0   :  { %v448_v15 = vpack.c.bf16 %v283_v7, %v283_v7  ;;  %v456_v16 = vpack.c.bf16 %v315_v8, %v315_v8  ;;  %v286_v17 = vadd.f32 %v485_v13, %v93_v35  ;;  %v318_v18 = vadd.f32 %v493_v14, %v133_v3  ;;  %v277_v19 = vpop.f32.mrb[7].mxu0  ;;  %v309_v20 = vpop.f32.mrb[7].mxu1 }
  0xf1   :  { %v446_v21 = vpack.c.bf16 %v275_v11, %v275_v11  ;;  %v454_v22 = vpack.c.bf16 %v307_v12, %v307_v12  ;;  %v278_v23 = vadd.f32 %v277_v19, %v630_v33  ;;  %v310_v24 = vadd.f32 %v309_v20, %v123_v41 }
  0xf2   :  { %392 = vst.msk [vmem:[%s700_s3 + $0x18] sm:$0xf] %vm385_vm1, %v448_v15  ;;  %400 = vst.msk [vmem:[%s700_s3 + $0x38] sm:$0xf] %vm385_vm1, %v456_v16  ;;  %v449_v25 = vpack.c.bf16 %v286_v17, %v286_v17  ;;  %v457_v26 = vpack.c.bf16 %v318_v18, %v318_v18 }
  0xf3   :  { %390 = vst.msk [vmem:[%s700_s3 + $0x10] sm:$0xf] %vm385_vm1, %v446_v21  ;;  %398 = vst.msk [vmem:[%s700_s3 + $0x30] sm:$0xf] %vm385_vm1, %v454_v22  ;;  %v447_v27 = vpack.c.bf16 %v278_v23, %v278_v23  ;;  %v455_v28 = vpack.c.bf16 %v310_v24, %v310_v24 }
  0xf4   :  { %393 = vst.msk [vmem:[%s700_s3 + $0x1c] sm:$0xf] %vm385_vm1, %v449_v25  ;;  %401 = vst.msk [vmem:[%s700_s3 + $0x3c] sm:$0xf] %vm385_vm1, %v457_v26 }
  0xf5   :  { %391 = vst.msk [vmem:[%s700_s3 + $0x14] sm:$0xf] %vm385_vm1, %v447_v27  ;;  %399 = vst.msk [vmem:[%s700_s3 + $0x34] sm:$0xf] %vm385_vm1, %v455_v28 }

// kernel: _lambda_.37
= control target key start
LH: loop header
LB: loop body
LE: loop exit
PB: predicated region body
PF: predicated region fallthrough
CT: control target
= control target key end

     0   :  { %vm152_vm0 = vcmask 523264   ;;  %v3165_v29 = vmov 0   ;;  %vm2233_vm1 = vcmask 11264   ;;  %s3758_s3 = inlined_call_operand.vmem [shape: bf16[64,2], index: 3, kind: input, shape index: {}, may-alias: {2,3,4,5,8}]   ;;  %s3759_s6 = inlined_call_operand.vmem [shape: bf16[64,2], index: 6, kind: input, shape index: {}]   ;;  %s3760_s0 = inlined_call_operand.vmem [shape: bf16[9,128,64], index: 0, kind: input, shape index: {}]   ;;  %s3761_s2 = inlined_call_operand.vmem [shape: bf16[64,2], index: 2, kind: input, shape index: {}, may-alias: {2,3,4,5,8}]   ;;  %s3762_s7 = inlined_call_operand.vmem [shape: bf16[64,2], index: 7, kind: input, shape index: {}]   ;;  %s3763_s8 = inlined_call_operand.vmem [shape: bf16[64,2], index: 8, kind: input, shape index: {}, may-alias: {2,3,4,5,8}]   ;;  %s3764_s4 = inlined_call_operand.vmem [shape: bf16[64,2], index: 4, kind: input, shape index: {}, may-alias: {2,3,4,5,8}]   ;;  %s3765_s9 = inlined_call_operand.vmem [shape: bf16[64,2], index: 9, kind: input, shape index: {}]   ;;  %s3766_s5 = inlined_call_operand.vmem [shape: bf16[64,2], index: 5, kind: input, shape index: {}, may-alias: {2,3,4,5,8}]   ;;  %s3767_s10 = inlined_call_operand.vmem [shape: bf16[64,2], index: 10, kind: input, shape index: {}]   ;;  %s3768_s1 = inlined_call_operand.vmem [shape: f32[128,1], index: 1, kind: input, shape index: {}]   ;;  %s3769_s11 = inlined_call_operand.vmem [shape: bf16[128,2], index: 11, kind: output, shape index: {}]  }
   0x1   :  { %v3057_v0 = vld [vmem:[%s3758_s3] sm:$0xff]   ;;  %v3059_v2 = vld [vmem:[%s3758_s3 + $0x8] sm:$0xff]   ;;  %v3061_v4 = vld [vmem:[%s3758_s3 + $0x10] sm:$0xff]   ;;  %3056 = vset.pattern.permute.xlu1 %v3165_v29  ;;  %3055 = vset.pattern.permute.xlu0 %v3165_v29 }
   0x2   :  { %v3232_v1 = vld [vmem:[%s3759_s6] sm:$0xff]   ;;  %2702 = vmatprep.subr.bf16.mxu1 %v3057_v0  ;;  %v3241_v3 = vld [vmem:[%s3759_s6 + $0x8] sm:$0xff]   ;;  %v3251_v5 = vld [vmem:[%s3759_s6 + $0x10] sm:$0xff]  }
   0x3   :  { %2798 = vmatprep.subr.bf16.mxu0 %v3232_v1  ;;  %2703 = vmatpush3.bf16.msra.mxu1 %v3057_v0  ;;  %v3063_v6 = vld [vmem:[%s3758_s3 + $0x18] sm:$0xff]   ;;  %v3065_v8 = vld [vmem:[%s3760_s0 + $0x40] sm:$0xff]   ;;  %v3067_v10 = vld [vmem:[%s3760_s0 + $0x48] sm:$0xff]  }
   0x4   :  { %2799 = vmatpush3.bf16.msra.mxu0 %v3232_v1  ;;  %2704 = vmatprep.subr.bf16.mxu1 %v3059_v2  ;;  %v3259_v7 = vld [vmem:[%s3759_s6 + $0x18] sm:$0xff]   ;;  %v3066_v9 = vld [vmem:[%s3760_s0 + $0x100] sm:$0xff]   ;;  %v3069_v13 = vld [vmem:[%s3760_s0 + $0x108] sm:$0xff]  }
   0x5   :  { %2800 = vmatprep.subr.bf16.mxu0 %v3241_v3  ;;  %2710 = vmatprep.mubr.msk.bf16.mxu1 %vm152_vm0, %v3065_v8  ;;  %v3068_v11 = vld [vmem:[%s3761_s2] sm:$0xff]   ;;  %v3071_v14 = vld [vmem:[%s3762_s7 + $0x8] sm:$0xff]   ;;  %v3072_v15 = vld [vmem:[%s3760_s0 + $0x50] sm:$0xff]  }
   0x6   :  { %2806 = vmatprep.mubr.msk.bf16.mxu0 %vm152_vm0, %v3066_v9  ;;  %v3070_v12 = vld [vmem:[%s3762_s7] sm:$0xff]   ;;  %v3073_v16 = vld [vmem:[%s3760_s0 + $0x110] sm:$0xff]   ;;  %v3075_v17 = vld [vmem:[%s3761_s2 + $0x8] sm:$0xff]  }
   0x7   :  { %2705 = vmatpush3.bf16.msra.mxu1 %v3059_v2  ;;  %v3074_v18 = vld [vmem:[%s3760_s0 + $0x58] sm:$0xff]   ;;  %v3077_v19 = vld [vmem:[%s3762_s7 + $0x10] sm:$0xff]   ;;  %v3079_v22 = vld [vmem:[%s3760_s0 + $0x60] sm:$0xff]  }
   0x8   :  { %2801 = vmatpush3.bf16.msra.mxu0 %v3241_v3  ;;  %2706 = vmatprep.subr.bf16.mxu1 %v3061_v4  ;;  %v3076_v20 = vld [vmem:[%s3760_s0 + $0x118] sm:$0xff]   ;;  %v3080_v23 = vld [vmem:[%s3760_s0 + $0x140] sm:$0xff]   ;;  %v3082_v24 = vld [vmem:[%s3761_s2 + $0x10] sm:$0xff]  }
   0x9   :  { %2802 = vmatprep.subr.bf16.mxu0 %v3251_v5  ;;  %v3078_v21 = vld [vmem:[%s3762_s7 + $0x18] sm:$0xff]   ;;  %v3081_v25 = vld [vmem:[%s3760_s0 + $0x68] sm:$0xff]   ;;  %v3084_v27 = vld [vmem:[%s3763_s8] sm:$0xff]  }
   0xa   :  { %v3083_v26 = vld [vmem:[%s3760_s0 + $0x148] sm:$0xff]   ;;  %v3085_v28 = vld [vmem:[%s3760_s0 + $0x70] sm:$0xff]   ;;  %v3088_v30 = vld [vmem:[%s3761_s2 + $0x18] sm:$0xff]  }
   0xb   :  { %2707 = vmatpush3.bf16.msra.mxu1 %v3061_v4  ;;  %v3086_v31 = vld [vmem:[%s3760_s0 + $0x150] sm:$0xff]   ;;  %v3090_v32 = vld [vmem:[%s3763_s8 + $0x8] sm:$0xff]   ;;  %v3087_v33 = vld [vmem:[%s3760_s0 + $0x78] sm:$0xff]  }
   0xc   :  { %2803 = vmatpush3.bf16.msra.mxu0 %v3251_v5  ;;  %2708 = vmatprep.subr.bf16.mxu1 %v3063_v6  ;;  %v3089_v34 = vld [vmem:[%s3760_s0 + $0x158] sm:$0xff]   ;;  %v3094_v35 = vld [vmem:[%s3764_s4] sm:$0xff]   ;;  %v3096_v37 = vld [vmem:[%s3763_s8 + $0x10] sm:$0xff]  }
   0xd   :  { %2804 = vmatprep.subr.bf16.mxu0 %v3259_v7  ;;  %v3091_v36 = vld [vmem:[%s3760_s0] sm:$0xff]   ;;  %v3093_v39 = vld [vmem:[%s3760_s0 + $0x8] sm:$0xff]   ;;  %v3102_v40 = vld [vmem:[%s3763_s8 + $0x18] sm:$0xff]  }
   0xe   :  { %v3092_v38 = vld [vmem:[%s3760_s0 + $0x160] sm:$0xff]   ;;  %v3095_v41 = vld [vmem:[%s3760_s0 + $0x168] sm:$0xff]   ;;  %v3097_v42 = vld [vmem:[%s3760_s0 + $0x10] sm:$0xff]  }
   0xf   :  { %2709 = vmatpush3.bf16.msra.mxu1 %v3063_v6  ;;  %v3098_v43 = vld [vmem:[%s3760_s0 + $0x170] sm:$0xff]   ;;  %v3100_v44 = vld [vmem:[%s3764_s4 + $0x8] sm:$0xff]   ;;  %v3108_v45 = vld [vmem:[%s3765_s9] sm:$0xff]  }
  0x10   :  { %2805 = vmatpush3.bf16.msra.mxu0 %v3259_v7  ;;  %2726 = vmatprep.subr.bf16.mxu1 %v3068_v11  ;;  %v3106_v46 = vld [vmem:[%s3764_s4 + $0x10] sm:$0xff]   ;;  %v3099_v47 = vld [vmem:[%s3760_s0 + $0x18] sm:$0xff]   ;;  %v3103_v49 = vld [vmem:[%s3760_s0 + $0x20] sm:$0xff]  }
  0x11   :  { %2822 = vmatprep.subr.bf16.mxu0 %v3070_v12  ;;  %v3101_v48 = vld [vmem:[%s3760_s0 + $0x178] sm:$0xff]   ;;  %v3104_v50 = vld [vmem:[%s3760_s0 + $0x180] sm:$0xff]   ;;  %v3105_v52 = vld [vmem:[%s3760_s0 + $0x28] sm:$0xff]  }
  0x12   :  { %2711 = vmatmul.mubr.msk.bf16.vlgmr.msra.gmra.mrb[0].mxu1 %vm152_vm0, %v3067_v10  ;;  %v3112_v51 = vld [vmem:[%s3764_s4 + $0x18] sm:$0xff]   ;;  %v3118_v53 = vld [vmem:[%s3766_s5] sm:$0xff]   ;;  %v3107_v54 = vld [vmem:[%s3760_s0 + $0x188] sm:$0xff]  }
  0x13   :  { %2807 = vmatmul.mubr.msk.bf16.vlgmr.msra.gmra.mrb[0].mxu0 %vm152_vm0, %v3069_v13  ;;  %2727 = vmatpush3.bf16.msra.mxu1 %v3068_v11  ;;  %v3109_v55 = vld [vmem:[%s3760_s0 + $0x30] sm:$0xff]   ;;  %v3114_v57 = vld [vmem:[%s3765_s9 + $0x8] sm:$0xff]   ;;  %v3111_v58 = vld [vmem:[%s3760_s0 + $0x38] sm:$0xff]  }
  0x14   :  { %2823 = vmatpush3.bf16.msra.mxu0 %v3070_v12  ;;  %2714 = vmatprep.mubr.msk.bf16.mxu1 %vm152_vm0, %v3072_v15  ;;  %v3110_v56 = vld [vmem:[%s3760_s0 + $0x190] sm:$0xff]   ;;  %v3113_v60 = vld [vmem:[%s3760_s0 + $0x198] sm:$0xff]   ;;  %v3115_v61 = vld [vmem:[%s3760_s0 + $0x80] sm:$0xff]  }
  0x15   :  { %2824 = vmatprep.subr.bf16.mxu0 %v3071_v14  ;;  %2810 = vmatprep.mubr.msk.bf16.mxu0 %vm152_vm0, %v3073_v16  ;;  %v3120_v59 = vld [vmem:[%s3765_s9 + $0x10] sm:$0xff]   ;;  %v3116_v62 = vld [vmem:[%s3760_s0 + $0x1a0] sm:$0xff]   ;;  %v3126_v63 = vld [vmem:[%s3765_s9 + $0x18] sm:$0xff]  }
  0x16   :  { %2728 = vmatprep.subr.bf16.mxu1 %v3075_v17  ;;  %v3117_v0 = vld [vmem:[%s3760_s0 + $0x88] sm:$0xff]   ;;  %v3132_v2 = vld [vmem:[%s3767_s10] sm:$0xff]   ;;  %v3121_v6 = vld [vmem:[%s3760_s0 + $0x90] sm:$0xff]  }
  0x17   :  { %2729 = vmatpush3.bf16.msra.mxu1 %v3075_v17  ;;  %v3119_v4 = vld [vmem:[%s3760_s0 + $0x1a8] sm:$0xff]   ;;  %v3122_v8 = vld [vmem:[%s3760_s0 + $0x1b0] sm:$0xff]   ;;  %v3123_v11 = vld [vmem:[%s3760_s0 + $0x98] sm:$0xff]  }
  0x18   :  { %2825 = vmatpush3.bf16.msra.mxu0 %v3071_v14  ;;  %2730 = vmatprep.subr.bf16.mxu1 %v3082_v24  ;;  %v3124_v9 = vld [vmem:[%s3766_s5 + $0x8] sm:$0xff]   ;;  %v3130_v10 = vld [vmem:[%s3766_s5 + $0x10] sm:$0xff]   ;;  %v3125_v12 = vld [vmem:[%s3760_s0 + $0x1b8] sm:$0xff]  }
  0x19   :  { %2826 = vmatprep.subr.bf16.mxu0 %v3077_v19  ;;  %v3127_v13 = vld [vmem:[%s3760_s0 + $0xa0] sm:$0xff]   ;;  %v3136_v15 = vld [vmem:[%s3766_s5 + $0x18] sm:$0xff]   ;;  %v3129_v16 = vld [vmem:[%s3760_s0 + $0xa8] sm:$0xff]  }
  0x1a   :  { %2715 = vmatmul.mubr.msk.bf16.gmra.mrb[4].mxu1 %vm152_vm0, %v3074_v18  ;;  %v3128_v14 = vld [vmem:[%s3760_s0 + $0x1c0] sm:$0xff]   ;;  %v3131_v17 = vld [vmem:[%s3760_s0 + $0x1c8] sm:$0xff]   ;;  %v3133_v18 = vld [vmem:[%s3760_s0 + $0xb0] sm:$0xff]  }
  0x1b   :  { %2811 = vmatmul.mubr.msk.bf16.gmra.mrb[4].mxu0 %vm152_vm0, %v3076_v20  ;;  %2718 = vmatprep.mubr.msk.bf16.mxu1 %vm152_vm0, %v3079_v22  ;;  %v3138_v20 = vld [vmem:[%s3767_s10 + $0x8] sm:$0xff]   ;;  %v3143_v22 = vld [vmem:[%s3767_s10 + $0x10] sm:$0xff]  }
  0x1c   :  { %2827 = vmatpush3.bf16.msra.mxu0 %v3077_v19  ;;  %2830 = vmatprep.mubr.msk.bf16.mxu0 %vm152_vm0, %v3080_v23  ;;  %v3134_v19 = vld [vmem:[%s3760_s0 + $0x1d0] sm:$0xff]   ;;  %v3137_v23 = vld [vmem:[%s3760_s0 + $0x1d8] sm:$0xff]   ;;  %v3141_v29 = vld [vmem:[%s3760_s0 + $0xc8] sm:$0xff]  }
  0x1d   :  { %2828 = vmatprep.subr.bf16.mxu0 %v3078_v21  ;;  %2731 = vmatpush3.bf16.msra.mxu1 %v3082_v24  ;;  %v3139_v24 = vld [vmem:[%s3760_s0 + $0xc0] sm:$0xff]  }
  0x1e   :  { %2732 = vmatprep.subr.bf16.mxu1 %v3088_v30 }
  0x20   :  { %2829 = vmatpush3.bf16.msra.mxu0 %v3078_v21  ;;  %v3135_v21 = vld [vmem:[%s3760_s0 + $0xb8] sm:$0xff]  }
  0x21   :  { %2846 = vmatprep.subr.bf16.mxu0 %v3084_v27  ;;  %2733 = vmatpush3.bf16.msra.mxu1 %v3088_v30  ;;  %v2044_v30 = vld [vmem:[%s3768_s1 + $0x18] sm:$0xff] }
  0x22   :  { %2719 = vmatmul.mubr.msk.bf16.gmra.mrb[8].mxu1 %vm152_vm0, %v3081_v25  ;;  %2750 = vmatprep.subr.bf16.mxu1 %v3094_v35  ;;  %v3140_v25 = vld [vmem:[%s3760_s0 + $0x1e0] sm:$0xff]  }
  0x23   :  { %2831 = vmatmul.mubr.msk.bf16.vlgmr.msra.gmra.mrb[0].mxu0 %vm152_vm0, %v3083_v26  ;;  %2722 = vmatprep.mubr.msk.bf16.mxu1 %vm152_vm0, %v3085_v28  ;;  %v3148_v26 = vld [vmem:[%s3767_s10 + $0x18] sm:$0xff]   ;;  %v2041_v28 = vld [vmem:[%s3768_s1] sm:$0xff] }
  0x24   :  { %2847 = vmatpush3.bf16.msra.mxu0 %v3084_v27  ;;  %2834 = vmatprep.mubr.msk.bf16.mxu0 %vm152_vm0, %v3086_v31  ;;  %v2043_v27 = vld [vmem:[%s3768_s1 + $0x10] sm:$0xff]  ;;  %v3142_v31 = vld [vmem:[%s3760_s0 + $0x1e8] sm:$0xff]  }
  0x25   :  { %2848 = vmatprep.subr.bf16.mxu0 %v3090_v32  ;;  %2069 = vperm.xlu1 %3056, %v2043_v27  }
  0x26   :  { %2059 = vperm.xlu0 %3055, %v2041_v28  }
  0x28   :  { %2849 = vmatpush3.bf16.msra.mxu0 %v3090_v32  ;;  %v2042_v32 = vld [vmem:[%s3768_s1 + $0x8] sm:$0xff] }
  0x29   :  { %2850 = vmatprep.subr.bf16.mxu0 %v3096_v37  ;;  %2074 = vperm.xlu1 %3056, %v2044_v30  }
  0x2a   :  { %2723 = vmatmul.mubr.msk.bf16.gmra.mrb[12].mxu1 %vm152_vm0, %v3087_v33  ;;  %v3144_v33 = vld [vmem:[%s3760_s0 + $0xd0] sm:$0xff]   ;;  %2064 = vperm.xlu0 %3055, %v2042_v32  }
  0x2b   :  { %2835 = vmatmul.mubr.msk.bf16.gmra.mrb[4].mxu0 %vm152_vm0, %v3089_v34  ;;  %2734 = vmatprep.mubr.msk.bf16.mxu1 %vm152_vm0, %v3091_v36  ;;  %v3145_v34 = vld [vmem:[%s3760_s0 + $0x1f0] sm:$0xff]   ;;  %v2045_v36 = vld [vmem:[%s3768_s1 + $0x20] sm:$0xff] }
  0x2c   :  { %2838 = vmatprep.mubr.msk.bf16.mxu0 %vm152_vm0, %v3092_v38  ;;  %2851 = vmatpush3.bf16.msra.mxu0 %v3096_v37  ;;  %v3146_v37 = vld [vmem:[%s3760_s0 + $0xd8] sm:$0xff]  }
  0x2d   :  { %2852 = vmatprep.subr.bf16.mxu0 %v3102_v40  ;;  %v3147_v38 = vld [vmem:[%s3760_s0 + $0x1f8] sm:$0xff]  }
  0x2e   :  { %2079 = vperm.xlu0 %3055, %v2045_v36  }
  0x30   :  { %2853 = vmatpush3.bf16.msra.mxu0 %v3102_v40  ;;  %v2047_v40 = vld [vmem:[%s3768_s1 + $0x30] sm:$0xff] }
  0x31   :  { %2870 = vmatprep.subr.bf16.mxu0 %v3108_v45 }
  0x32   :  { %2735 = vmatmul.mubr.msk.bf16.vlgmr.msra.gmra.mrb[0].mxu1 %vm152_vm0, %v3093_v39  ;;  %v3149_v39 = vld [vmem:[%s3760_s0 + $0xe0] sm:$0xff]   ;;  %2089 = vperm.xlu0 %3055, %v2047_v40  }
  0x33   :  { %2839 = vmatmul.mubr.msk.bf16.gmra.mrb[8].mxu0 %vm152_vm0, %v3095_v41  ;;  %2751 = vmatpush3.bf16.msra.mxu1 %v3094_v35  ;;  %v2046_v35 = vld [vmem:[%s3768_s1 + $0x28] sm:$0xff]  ;;  %v3150_v41 = vld [vmem:[%s3760_s0 + $0x200] sm:$0xff]  }
  0x34   :  { %2738 = vmatprep.mubr.msk.bf16.mxu1 %vm152_vm0, %v3097_v42  ;;  %2842 = vmatprep.mubr.msk.bf16.mxu0 %vm152_vm0, %v3098_v43  ;;  %v2049_v42 = vld [vmem:[%s3768_s1 + $0x40] sm:$0xff]  ;;  %v3151_v43 = vld [vmem:[%s3760_s0 + $0xe8] sm:$0xff]  }
  0x35   :  { %2752 = vmatprep.subr.bf16.mxu1 %v3100_v44  ;;  %2084 = vperm.xlu1 %3056, %v2046_v35  }
  0x36   :  { %2099 = vperm.xlu0 %3055, %v2049_v42  }
  0x37   :  { %2753 = vmatpush3.bf16.msra.mxu1 %v3100_v44  ;;  %v2052_v44 = vld [vmem:[%s3768_s1 + $0x58] sm:$0xff] }
  0x38   :  { %2754 = vmatprep.subr.bf16.mxu1 %v3106_v46 }
  0x3a   :  { %2739 = vmatmul.mubr.msk.bf16.gmra.mrb[4].mxu1 %vm152_vm0, %v3099_v47  ;;  %v3154_v47 = vld [vmem:[%s3760_s0 + $0x210] sm:$0xff]  }
  0x3b   :  { %2843 = vmatmul.mubr.msk.bf16.gmra.mrb[12].mxu0 %vm152_vm0, %v3101_v48  ;;  %2742 = vmatprep.mubr.msk.bf16.mxu1 %vm152_vm0, %v3103_v49  ;;  %v2054_v48 = vld [vmem:[%s3768_s1 + $0x68] sm:$0xff]  ;;  %v2053_v49 = vld [vmem:[%s3768_s1 + $0x60] sm:$0xff] }
  0x3c   :  { %2854 = vmatprep.mubr.msk.bf16.mxu0 %vm152_vm0, %v3104_v50  ;;  %2755 = vmatpush3.bf16.msra.mxu1 %v3106_v46  ;;  %v2051_v46 = vld [vmem:[%s3768_s1 + $0x50] sm:$0xff]  ;;  %v2056_v50 = vld [vmem:[%s3768_s1 + $0x78] sm:$0xff] }
  0x3d   :  { %2756 = vmatprep.subr.bf16.mxu1 %v3112_v51  ;;  %2109 = vperm.xlu0 %3055, %v2051_v46  }
  0x40   :  { %2757 = vmatpush3.bf16.msra.mxu1 %v3112_v51  ;;  %v3156_v51 = vld [vmem:[%s3760_s0 + $0x218] sm:$0xff]  }
  0x41   :  { %2774 = vmatprep.subr.bf16.mxu1 %v3118_v53  ;;  %2119 = vperm.xlu0 %3055, %v2053_v49  }
  0x42   :  { %2743 = vmatmul.mubr.msk.bf16.gmra.mrb[8].mxu1 %vm152_vm0, %v3105_v52  ;;  %v3157_v52 = vld [vmem:[%s3760_s0 + $0x120] sm:$0xff]  }
  0x43   :  { %2855 = vmatmul.mubr.msk.bf16.vlgmr.msra.gmra.mrb[0].mxu0 %vm152_vm0, %v3107_v54  ;;  %2746 = vmatprep.mubr.msk.bf16.mxu1 %vm152_vm0, %v3109_v55  ;;  %v3158_v54 = vld [vmem:[%s3760_s0 + $0x220] sm:$0xff]   ;;  %v3159_v55 = vld [vmem:[%s3760_s0 + $0x128] sm:$0xff]  }
  0x44   :  { %2871 = vmatpush3.bf16.msra.mxu0 %v3108_v45  ;;  %2858 = vmatprep.mubr.msk.bf16.mxu0 %vm152_vm0, %v3110_v56  ;;  %v3152_v45 = vld [vmem:[%s3760_s0 + $0x208] sm:$0xff]  }
  0x45   :  { %2872 = vmatprep.subr.bf16.mxu0 %v3114_v57  ;;  %v3160_v56 = vld [vmem:[%s3760_s0 + $0x228] sm:$0xff]  }
  0x48   :  { %2873 = vmatpush3.bf16.msra.mxu0 %v3114_v57  ;;  %v3161_v57 = vld [vmem:[%s3760_s0 + $0x130] sm:$0xff]  }
  0x49   :  { %2874 = vmatprep.subr.bf16.mxu0 %v3120_v59 }
  0x4a   :  { %2747 = vmatmul.mubr.msk.bf16.gmra.mrb[12].mxu1 %vm152_vm0, %v3111_v58  ;;  %v3162_v58 = vld [vmem:[%s3760_s0 + $0x230] sm:$0xff]  }
  0x4b   :  { %2859 = vmatmul.mubr.msk.bf16.gmra.mrb[4].mxu0 %vm152_vm0, %v3113_v60  ;;  %2758 = vmatprep.mubr.msk.bf16.mxu1 %vm152_vm0, %v3115_v61  ;;  %v3164_v60 = vld [vmem:[%s3760_s0 + $0x238] sm:$0xff]  }
  0x4c   :  { %2862 = vmatprep.mubr.msk.bf16.mxu0 %vm152_vm0, %v3116_v62  ;;  %2875 = vmatpush3.bf16.msra.mxu0 %v3120_v59  ;;  %v3163_v59 = vld [vmem:[%s3760_s0 + $0x138] sm:$0xff]  }
  0x4d   :  { %2876 = vmatprep.subr.bf16.mxu0 %v3126_v63 }
  0x50   :  { %2877 = vmatpush3.bf16.msra.mxu0 %v3126_v63 }
  0x51   :  { %2894 = vmatprep.subr.bf16.mxu0 %v3132_v2 }
  0x52   :  { %2759 = vmatmul.mubr.msk.bf16.vlgmr.msra.gmra.mrb[0].mxu1 %vm152_vm0, %v3117_v0 }
  0x53   :  { %2863 = vmatmul.mubr.msk.bf16.gmra.mrb[8].mxu0 %vm152_vm0, %v3119_v4  ;;  %2775 = vmatpush3.bf16.msra.mxu1 %v3118_v53  ;;  %v2055_v53 = vld [vmem:[%s3768_s1 + $0x70] sm:$0xff] }
  0x54   :  { %2762 = vmatprep.mubr.msk.bf16.mxu1 %vm152_vm0, %v3121_v6  ;;  %2866 = vmatprep.mubr.msk.bf16.mxu0 %vm152_vm0, %v3122_v8 }
  0x55   :  { %2776 = vmatprep.subr.bf16.mxu1 %v3124_v9  ;;  %2129 = vperm.xlu0 %3055, %v2055_v53  }
  0x57   :  { %2777 = vmatpush3.bf16.msra.mxu1 %v3124_v9 }
  0x58   :  { %2778 = vmatprep.subr.bf16.mxu1 %v3130_v10 }
  0x5a   :  { %2763 = vmatmul.mubr.msk.bf16.gmra.mrb[4].mxu1 %vm152_vm0, %v3123_v11 }
  0x5b   :  { %2867 = vmatmul.mubr.msk.bf16.gmra.mrb[12].mxu0 %vm152_vm0, %v3125_v12  ;;  %2766 = vmatprep.mubr.msk.bf16.mxu1 %vm152_vm0, %v3127_v13 }
  0x5c   :  { %2878 = vmatprep.mubr.msk.bf16.mxu0 %vm152_vm0, %v3128_v14  ;;  %2779 = vmatpush3.bf16.msra.mxu1 %v3130_v10 }
  0x5d   :  { %2780 = vmatprep.subr.bf16.mxu1 %v3136_v15 }
  0x60   :  { %2781 = vmatpush3.bf16.msra.mxu1 %v3136_v15 }
  0x61   :  { %2918 = vmatprep.subr.bf16.mxu1 %v3232_v1 }
  0x62   :  { %2767 = vmatmul.mubr.msk.bf16.gmra.mrb[8].mxu1 %vm152_vm0, %v3129_v16 }
  0x63   :  { %2879 = vmatmul.mubr.msk.bf16.vlgmr.msra.gmra.mrb[0].mxu0 %vm152_vm0, %v3131_v17  ;;  %2770 = vmatprep.mubr.msk.bf16.mxu1 %vm152_vm0, %v3133_v18 }
  0x64   :  { %2895 = vmatpush3.bf16.msra.mxu0 %v3132_v2  ;;  %2882 = vmatprep.mubr.msk.bf16.mxu0 %vm152_vm0, %v3134_v19 }
  0x65   :  { %2896 = vmatprep.subr.bf16.mxu0 %v3138_v20 }
  0x68   :  { %2897 = vmatpush3.bf16.msra.mxu0 %v3138_v20 }
  0x69   :  { %2898 = vmatprep.subr.bf16.mxu0 %v3143_v22 }
  0x6a   :  { %2771 = vmatmul.mubr.msk.bf16.gmra.mrb[12].mxu1 %vm152_vm0, %v3135_v21 }
  0x6b   :  { %2883 = vmatmul.mubr.msk.bf16.gmra.mrb[4].mxu0 %vm152_vm0, %v3137_v23  ;;  %2782 = vmatprep.mubr.msk.bf16.mxu1 %vm152_vm0, %v3139_v24 }
  0x6c   :  { %2886 = vmatprep.mubr.msk.bf16.mxu0 %vm152_vm0, %v3140_v25  ;;  %2899 = vmatpush3.bf16.msra.mxu0 %v3143_v22 }
  0x6d   :  { %2900 = vmatprep.subr.bf16.mxu0 %v3148_v26 }
  0x70   :  { %2901 = vmatpush3.bf16.msra.mxu0 %v3148_v26 }
  0x72   :  { %2783 = vmatmul.mubr.msk.bf16.vlgmr.msra.gmra.mrb[0].mxu1 %vm152_vm0, %v3141_v29 }
  0x73   :  { %2887 = vmatmul.mubr.msk.bf16.gmra.mrb[8].mxu0 %vm152_vm0, %v3142_v31  ;;  %2922 = vmatpush3.bf16.msra.mxu1 %v3232_v1  ;;  %v2048_v1 = vld [vmem:[%s3768_s1 + $0x38] sm:$0xff] }
  0x74   :  { %2786 = vmatprep.mubr.msk.bf16.mxu1 %vm152_vm0, %v3144_v33  ;;  %2890 = vmatprep.mubr.msk.bf16.mxu0 %vm152_vm0, %v3145_v34 }
  0x75   :  { %2919 = vmatprep.subr.bf16.mxu1 %v3241_v3  ;;  %2094 = vperm.xlu1 %3056, %v2048_v1  }
  0x77   :  { %2923 = vmatpush3.bf16.msra.mxu1 %v3241_v3  ;;  %v2050_v3 = vld [vmem:[%s3768_s1 + $0x48] sm:$0xff] }
  0x78   :  { %2920 = vmatprep.subr.bf16.mxu1 %v3251_v5 }
  0x79   :  { %2104 = vperm.xlu1 %3056, %v2050_v3  }
  0x7a   :  { %2787 = vmatmul.mubr.msk.bf16.gmra.mrb[4].mxu1 %vm152_vm0, %v3146_v37 }
  0x7b   :  { %2891 = vmatmul.mubr.msk.bf16.gmra.mrb[12].mxu0 %vm152_vm0, %v3147_v38  ;;  %2790 = vmatprep.mubr.msk.bf16.mxu1 %vm152_vm0, %v3149_v39 }
  0x7c   :  { %2902 = vmatprep.mubr.msk.bf16.mxu0 %vm152_vm0, %v3150_v41  ;;  %2924 = vmatpush3.bf16.msra.mxu1 %v3251_v5  ;;  %v3153_v5 = vld [vmem:[%s3760_s0 + $0xf0] sm:$0xff]  }
  0x7d   :  { %2921 = vmatprep.subr.bf16.mxu1 %v3259_v7  ;;  %2114 = vperm.xlu1 %3056, %v2052_v44  }
  0x80   :  { %2925 = vmatpush3.bf16.msra.mxu1 %v3259_v7  ;;  %v3155_v7 = vld [vmem:[%s3760_s0 + $0xf8] sm:$0xff]  }
  0x81   :  { %2124 = vperm.xlu1 %3056, %v2054_v48  }
  0x82   :  { %2791 = vmatmul.mubr.msk.bf16.gmra.mrb[8].mxu1 %vm152_vm0, %v3151_v43 }
  0x83   :  { %2903 = vmatmul.mubr.msk.bf16.vlgmr.msra.gmra.mrb[0].mxu0 %vm152_vm0, %v3152_v45  ;;  %2794 = vmatprep.mubr.msk.bf16.mxu1 %vm152_vm0, %v3153_v5 }
  0x84   :  { %2906 = vmatprep.mubr.msk.bf16.mxu0 %vm152_vm0, %v3154_v47 }
  0x85   :  { %2134 = vperm.xlu1 %3056, %v2056_v50  }
  0x8a   :  { %2795 = vmatmul.mubr.msk.bf16.gmra.mrb[12].mxu1 %vm152_vm0, %v3155_v7 }
  0x8b   :  { %2907 = vmatmul.mubr.msk.bf16.gmra.mrb[4].mxu0 %vm152_vm0, %v3156_v51  ;;  %2814 = vmatprep.mubr.msk.bf16.mxu1 %vm152_vm0, %v3157_v52 }
  0x8c   :  { %2910 = vmatprep.mubr.msk.bf16.mxu0 %vm152_vm0, %v3158_v54 }
  0x92   :  { %2815 = vmatmul.mubr.msk.bf16.vlgmr.msra.gmra.mrb[8].mxu1 %vm152_vm0, %v3159_v55 }
  0x93   :  { %2911 = vmatmul.mubr.msk.bf16.gmra.mrb[8].mxu0 %vm152_vm0, %v3160_v56  ;;  %2818 = vmatprep.mubr.msk.bf16.mxu1 %vm152_vm0, %v3161_v57 }
  0x94   :  { %2914 = vmatprep.mubr.msk.bf16.mxu0 %vm152_vm0, %v3162_v58 }
  0x9a   :  { %2819 = vmatmul.mubr.msk.bf16.gmra.mrb[12].mxu1 %vm152_vm0, %v3163_v59 }
  0x9b   :  { %2915 = vmatmul.mubr.msk.bf16.gmra.mrb[12].mxu0 %vm152_vm0, %v3164_v60 }
  0xa4   :  { %v2070_v63 = vpop.permute.xlu1 %2069 }
  0xa5   :  { %v2060_v61 = vpop.permute.xlu0 %2059 }
  0xa8   :  { %v2075_v8 = vpop.permute.xlu1 %2074 }
  0xa9   :  { %v2065_v2 = vpop.permute.xlu0 %2064 }
  0xad   :  { %v2080_v9 = vpop.permute.xlu0 %2079 }
  0xb1   :  { %v2090_v15 = vpop.permute.xlu0 %2089 }
  0xb4   :  { %v2085_v14 = vpop.permute.xlu1 %2084 }
  0xb5   :  { %v2100_v22 = vpop.permute.xlu0 %2099 }
  0xbc   :  { %v2110_v1 = vpop.permute.xlu0 %2109 }
  0xc0   :  { %v2120_v51 = vpop.permute.xlu0 %2119 }
  0xf4   :  { %v2095_v19 = vpop.permute.xlu1 %2094 }
  0xf8   :  { %v2105_v34 = vpop.permute.xlu1 %2104 }
  0xfc   :  { %v2115_v49 = vpop.permute.xlu1 %2114 }
 0x145   :  { %v2784_v62 = vpop.f32.mrb[0].mxu1 }
 0x146   :  { %v832_v0 = vpop.f32.mrb[1].mxu1 }
 0x147   :  { %v2785_v4 = vpop.f32.mrb[2].mxu1 }
 0x148   :  { %v835_v6 = vpop.f32.mrb[3].mxu1 }
 0x14d   :  { %v2788_v10 = vpop.f32.mrb[4].mxu1 }
 0x14e   :  { %v848_v11 = vpop.f32.mrb[5].mxu1 }
 0x14f   :  { %v2789_v12 = vpop.f32.mrb[6].mxu1 }
 0x150   :  { %v851_v13 = vpop.f32.mrb[7].mxu1 }
 0x156   :  { %v2904_v16 = vpop.f32.mrb[0].mxu0 }
 0x157   :  { %v2926_v17 = vadd.f32 %v2904_v16, %v2784_v62  ;;  %v1962_v18 = vpop.f32.mrb[1].mxu0 }
 0x158   :  { %v2927_v20 = vadd.f32 %v1962_v18, %v832_v0  ;;  %v2905_v21 = vpop.f32.mrb[2].mxu0 }
 0x159   :  { %v2139_v23 = vadd.f32 %v2926_v17, %v2070_v63  ;;  %v2928_v24 = vadd.f32 %v2905_v21, %v2785_v4  ;;  %v1965_v25 = vpop.f32.mrb[3].mxu0  ;;  %v2130_v17 = vpop.permute.xlu0 %2129 }
 0x15a   :  { %v2137_v26 = vadd.f32 %v2927_v20, %v2060_v61  ;;  %v2929_v27 = vadd.f32 %v1965_v25, %v835_v6 }
 0x15b   :  { %v2155_v28 = vmax.f32 %v2139_v23, 0.0  ;;  %v2140_v29 = vadd.f32 %v2928_v24, %v2075_v8 }
 0x15c   :  { %v2153_v30 = vmax.f32 %v2137_v26, 0.0  ;;  %v2138_v31 = vadd.f32 %v2929_v27, %v2065_v2 }
 0x15d   :  { %v2580_v32 = vpack.c.bf16 %v2155_v28, %v2155_v28  ;;  %v2156_v33 = vmax.f32 %v2140_v29, 0.0 }
 0x15e   :  { %v2578_v35 = vpack.c.bf16 %v2153_v30, %v2153_v30  ;;  %v2154_v36 = vmax.f32 %v2138_v31, 0.0  ;;  %v2908_v37 = vpop.f32.mrb[4].mxu0 }
 0x15f   :  { %2236 = vst.msk [vmem:[%s3769_s11 + $0x8] sm:$0xf] %vm2233_vm1, %v2580_v32  ;;  %v2581_v38 = vpack.c.bf16 %v2156_v33, %v2156_v33  ;;  %v2930_v39 = vadd.f32 %v2908_v37, %v2788_v10  ;;  %v1978_v40 = vpop.f32.mrb[5].mxu0 }
 0x160   :  { %2234 = vst.msk [vmem:[%s3769_s11] sm:$0xf] %vm2233_vm1, %v2578_v35  ;;  %v2579_v41 = vpack.c.bf16 %v2154_v36, %v2154_v36  ;;  %v2931_v3 = vadd.f32 %v1978_v40, %v848_v11  ;;  %v2909_v42 = vpop.f32.mrb[6].mxu0 }
 0x161   :  { %2237 = vst.msk [vmem:[%s3769_s11 + $0xc] sm:$0xf] %vm2233_vm1, %v2581_v38  ;;  %v2143_v43 = vadd.f32 %v2930_v39, %v2090_v15  ;;  %v2932_v44 = vadd.f32 %v2909_v42, %v2789_v12  ;;  %v1981_v45 = vpop.f32.mrb[7].mxu0 }
 0x162   :  { %2235 = vst.msk [vmem:[%s3769_s11 + $0x4] sm:$0xf] %vm2233_vm1, %v2579_v41  ;;  %v2141_v5 = vadd.f32 %v2931_v3, %v2080_v9  ;;  %v2933_v46 = vadd.f32 %v1981_v45, %v851_v13 }
 0x163   :  { %v2159_v47 = vmax.f32 %v2143_v43, 0.0  ;;  %v2144_v48 = vadd.f32 %v2932_v44, %v2095_v19 }
 0x164   :  { %v2157_v7 = vmax.f32 %v2141_v5, 0.0  ;;  %v2142_v50 = vadd.f32 %v2933_v46, %v2085_v14  ;;  %v2125_v14 = vpop.permute.xlu1 %2124 }
 0x165   :  { %v2584_v52 = vpack.c.bf16 %v2159_v47, %v2159_v47  ;;  %v2160_v53 = vmax.f32 %v2144_v48, 0.0  ;;  %v2816_v54 = vpop.f32.mrb[8].mxu1 }
 0x166   :  { %v2582_v55 = vpack.c.bf16 %v2157_v7, %v2157_v7  ;;  %v2158_v56 = vmax.f32 %v2142_v50, 0.0  ;;  %v2912_v57 = vpop.f32.mrb[8].mxu0  ;;  %v1090_v58 = vpop.f32.mrb[9].mxu1 }
 0x167   :  { %2240 = vst.msk [vmem:[%s3769_s11 + $0x18] sm:$0xf] %vm2233_vm1, %v2584_v52  ;;  %v2585_v59 = vpack.c.bf16 %v2160_v53, %v2160_v53  ;;  %v2934_v60 = vadd.f32 %v2912_v57, %v2816_v54  ;;  %v1994_v61 = vpop.f32.mrb[9].mxu0  ;;  %v2817_v62 = vpop.f32.mrb[10].mxu1 }
 0x168   :  { %2238 = vst.msk [vmem:[%s3769_s11 + $0x10] sm:$0xf] %vm2233_vm1, %v2582_v55  ;;  %v2583_v63 = vpack.c.bf16 %v2158_v56, %v2158_v56  ;;  %v2935_v0 = vadd.f32 %v1994_v61, %v1090_v58  ;;  %v2913_v2 = vpop.f32.mrb[10].mxu0  ;;  %v1093_v4 = vpop.f32.mrb[11].mxu1 }
 0x169   :  { %2241 = vst.msk [vmem:[%s3769_s11 + $0x1c] sm:$0xf] %vm2233_vm1, %v2585_v59  ;;  %v2147_v6 = vadd.f32 %v2934_v60, %v2110_v1  ;;  %v2936_v8 = vadd.f32 %v2913_v2, %v2817_v62  ;;  %v1997_v9 = vpop.f32.mrb[11].mxu0  ;;  %v2135_v36 = vpop.permute.xlu1 %2134 }
 0x16a   :  { %2239 = vst.msk [vmem:[%s3769_s11 + $0x14] sm:$0xf] %vm2233_vm1, %v2583_v63  ;;  %v2145_v10 = vadd.f32 %v2935_v0, %v2100_v22  ;;  %v2937_v11 = vadd.f32 %v1997_v9, %v1093_v4 }
 0x16b   :  { %v2163_v12 = vmax.f32 %v2147_v6, 0.0  ;;  %v2148_v13 = vadd.f32 %v2936_v8, %v2115_v49 }
 0x16c   :  { %v2161_v15 = vmax.f32 %v2145_v10, 0.0  ;;  %v2146_v16 = vadd.f32 %v2937_v11, %v2105_v34 }
 0x16d   :  { %v2588_v18 = vpack.c.bf16 %v2163_v12, %v2163_v12  ;;  %v2164_v19 = vmax.f32 %v2148_v13, 0.0  ;;  %v2820_v20 = vpop.f32.mrb[12].mxu1 }
 0x16e   :  { %v2586_v21 = vpack.c.bf16 %v2161_v15, %v2161_v15  ;;  %v2162_v23 = vmax.f32 %v2146_v16, 0.0  ;;  %v2916_v24 = vpop.f32.mrb[12].mxu0  ;;  %v1106_v25 = vpop.f32.mrb[13].mxu1 }
 0x16f   :  { %2244 = vst.msk [vmem:[%s3769_s11 + $0x28] sm:$0xf] %vm2233_vm1, %v2588_v18  ;;  %v2589_v22 = vpack.c.bf16 %v2164_v19, %v2164_v19  ;;  %v2938_v26 = vadd.f32 %v2916_v24, %v2820_v20  ;;  %v2010_v27 = vpop.f32.mrb[13].mxu0  ;;  %v2821_v28 = vpop.f32.mrb[14].mxu1 }
 0x170   :  { %2242 = vst.msk [vmem:[%s3769_s11 + $0x20] sm:$0xf] %vm2233_vm1, %v2586_v21  ;;  %v2587_v29 = vpack.c.bf16 %v2162_v23, %v2162_v23  ;;  %v2939_v30 = vadd.f32 %v2010_v27, %v1106_v25  ;;  %v2917_v31 = vpop.f32.mrb[14].mxu0  ;;  %v1109_v32 = vpop.f32.mrb[15].mxu1 }
 0x171   :  { %2245 = vst.msk [vmem:[%s3769_s11 + $0x2c] sm:$0xf] %vm2233_vm1, %v2589_v22  ;;  %v2151_v33 = vadd.f32 %v2938_v26, %v2130_v17  ;;  %v2940_v34 = vadd.f32 %v2917_v31, %v2821_v28  ;;  %v2013_v35 = vpop.f32.mrb[15].mxu0 }
 0x172   :  { %2243 = vst.msk [vmem:[%s3769_s11 + $0x24] sm:$0xf] %vm2233_vm1, %v2587_v29  ;;  %v2149_v37 = vadd.f32 %v2939_v30, %v2120_v51  ;;  %v2941_v1 = vadd.f32 %v2013_v35, %v1109_v32 }
 0x173   :  { %v2167_v38 = vmax.f32 %v2151_v33, 0.0  ;;  %v2152_v39 = vadd.f32 %v2940_v34, %v2135_v36 }
 0x174   :  { %v2165_v40 = vmax.f32 %v2149_v37, 0.0  ;;  %v2150_v41 = vadd.f32 %v2941_v1, %v2125_v14 }
 0x175   :  { %v2592_v3 = vpack.c.bf16 %v2167_v38, %v2167_v38  ;;  %v2168_v42 = vmax.f32 %v2152_v39, 0.0 }
 0x176   :  { %v2590_v43 = vpack.c.bf16 %v2165_v40, %v2165_v40  ;;  %v2166_v44 = vmax.f32 %v2150_v41, 0.0 }
 0x177   :  { %2248 = vst.msk [vmem:[%s3769_s11 + $0x38] sm:$0xf] %vm2233_vm1, %v2592_v3  ;;  %v2593_v45 = vpack.c.bf16 %v2168_v42, %v2168_v42 }
 0x178   :  { %2246 = vst.msk [vmem:[%s3769_s11 + $0x30] sm:$0xf] %vm2233_vm1, %v2590_v43  ;;  %v2591_v5 = vpack.c.bf16 %v2166_v44, %v2166_v44 }
 0x179   :  { %2249 = vst.msk [vmem:[%s3769_s11 + $0x3c] sm:$0xf] %vm2233_vm1, %v2593_v45 }
 0x17a   :  { %2247 = vst.msk [vmem:[%s3769_s11 + $0x34] sm:$0xf] %vm2233_vm1, %v2591_v5 }

// kernel: _lambda_.39
= control target key start
LH: loop header
LB: loop body
LE: loop exit
PB: predicated region body
PF: predicated region fallthrough
CT: control target
= control target key end

     0   :  { %v3514_v38 = vmov 0   ;;  %vm2427_vm0 = vcmask 11264   ;;  %s4251_s4 = inlined_call_operand.vmem [shape: bf16[128,2], index: 4, kind: input, shape index: {}, may-alias: {3,4,5,6,8,9,10,11}]   ;;  %s4252_s7 = inlined_call_operand.vmem [shape: bf16[128,2], index: 7, kind: input, shape index: {}]   ;;  %s4253_s0 = inlined_call_operand.vmem [shape: bf16[9,128,128], index: 0, kind: input, shape index: {}]   ;;  %s4254_s3 = inlined_call_operand.vmem [shape: bf16[128,2], index: 3, kind: input, shape index: {}, may-alias: {3,4,5,6,8,9,10,11}]   ;;  %s4255_s8 = inlined_call_operand.vmem [shape: bf16[128,2], index: 8, kind: input, shape index: {}, may-alias: {3,4,5,6,8,9,10,11}]   ;;  %s4256_s5 = inlined_call_operand.vmem [shape: bf16[128,2], index: 5, kind: input, shape index: {}, may-alias: {3,4,5,6,8,9,10,11}]   ;;  %s4257_s9 = inlined_call_operand.vmem [shape: bf16[128,2], index: 9, kind: input, shape index: {}, may-alias: {3,4,5,6,8,9,10,11}]   ;;  %s4258_s6 = inlined_call_operand.vmem [shape: bf16[128,2], index: 6, kind: input, shape index: {}, may-alias: {3,4,5,6,8,9,10,11}]   ;;  %s4259_s10 = inlined_call_operand.vmem [shape: bf16[128,2], index: 10, kind: input, shape index: {}, may-alias: {3,4,5,6,8,9,10,11}]   ;;  %s4260_s11 = inlined_call_operand.vmem [shape: bf16[128,2], index: 11, kind: input, shape index: {}, may-alias: {3,4,5,6,8,9,10,11}]   ;;  %s4261_s1 = inlined_call_operand.vmem [shape: f32[128,1], index: 1, kind: input, shape index: {}]   ;;  %s4262_s2 = inlined_call_operand.vmem [shape: bf16[128,2], index: 2, kind: input, shape index: {}]   ;;  %s4263_s12 = inlined_call_operand.vmem [shape: bf16[128,2], index: 12, kind: output, shape index: {}]  }
   0x1   :  { %v3370_v0 = vld [vmem:[%s4251_s4] sm:$0xff]   ;;  %v3372_v2 = vld [vmem:[%s4251_s4 + $0x8] sm:$0xff]   ;;  %v3374_v4 = vld [vmem:[%s4251_s4 + $0x10] sm:$0xff]   ;;  %3369 = vset.pattern.permute.xlu1 %v3514_v38  ;;  %3368 = vset.pattern.permute.xlu0 %v3514_v38 }
   0x2   :  { %v3371_v1 = vld [vmem:[%s4252_s7] sm:$0xff]   ;;  %2935 = vmatprep.subr.bf16.mxu1 %v3370_v0  ;;  %v3373_v3 = vld [vmem:[%s4252_s7 + $0x8] sm:$0xff]   ;;  %v3375_v5 = vld [vmem:[%s4252_s7 + $0x10] sm:$0xff]  }
   0x3   :  { %3063 = vmatprep.subr.bf16.mxu0 %v3371_v1  ;;  %2936 = vmatpush3.bf16.msra.mxu1 %v3370_v0  ;;  %v3376_v6 = vld [vmem:[%s4251_s4 + $0x18] sm:$0xff]   ;;  %v3378_v8 = vld [vmem:[%s4251_s4 + $0x20] sm:$0xff]   ;;  %v3380_v10 = vld [vmem:[%s4251_s4 + $0x28] sm:$0xff]  }
   0x4   :  { %3064 = vmatpush3.bf16.msra.mxu0 %v3371_v1  ;;  %2937 = vmatprep.subr.bf16.mxu1 %v3372_v2  ;;  %v3377_v7 = vld [vmem:[%s4252_s7 + $0x18] sm:$0xff]   ;;  %v3379_v9 = vld [vmem:[%s4252_s7 + $0x20] sm:$0xff]   ;;  %v3381_v11 = vld [vmem:[%s4252_s7 + $0x28] sm:$0xff]  }
   0x5   :  { %3065 = vmatprep.subr.bf16.mxu0 %v3373_v3  ;;  %v3386_v12 = vld [vmem:[%s4253_s0 + $0x40] sm:$0xff]   ;;  %v3382_v14 = vld [vmem:[%s4251_s4 + $0x30] sm:$0xff]   ;;  %v3384_v16 = vld [vmem:[%s4251_s4 + $0x38] sm:$0xff]  }
   0x6   :  { %v3387_v13 = vld [vmem:[%s4253_s0 + $0x100] sm:$0xff]   ;;  %2951 = vmatprep.mubr.bf16.mxu1 %v3386_v12  ;;  %v3383_v15 = vld [vmem:[%s4252_s7 + $0x30] sm:$0xff]   ;;  %v3385_v17 = vld [vmem:[%s4252_s7 + $0x38] sm:$0xff]  }
   0x7   :  { %2938 = vmatpush3.bf16.msra.mxu1 %v3372_v2  ;;  %3079 = vmatprep.mubr.bf16.mxu0 %v3387_v13  ;;  %v3388_v18 = vld [vmem:[%s4253_s0 + $0x48] sm:$0xff]   ;;  %v3389_v19 = vld [vmem:[%s4254_s3] sm:$0xff]   ;;  %v3394_v24 = vld [vmem:[%s4253_s0 + $0x50] sm:$0xff]  }
   0x8   :  { %3066 = vmatpush3.bf16.msra.mxu0 %v3373_v3  ;;  %2939 = vmatprep.subr.bf16.mxu1 %v3374_v4  ;;  %v3391_v20 = vld [vmem:[%s4255_s8] sm:$0xff]   ;;  %v3390_v21 = vld [vmem:[%s4253_s0 + $0x108] sm:$0xff]   ;;  %v3395_v25 = vld [vmem:[%s4253_s0 + $0x110] sm:$0xff]  }
   0x9   :  { %3067 = vmatprep.subr.bf16.mxu0 %v3375_v5  ;;  %v3392_v22 = vld [vmem:[%s4254_s3 + $0x8] sm:$0xff]   ;;  %v3396_v26 = vld [vmem:[%s4253_s0 + $0x58] sm:$0xff]   ;;  %v3397_v27 = vld [vmem:[%s4254_s3 + $0x10] sm:$0xff]  }
   0xa   :  { %v3393_v23 = vld [vmem:[%s4255_s8 + $0x8] sm:$0xff]   ;;  %v3399_v28 = vld [vmem:[%s4255_s8 + $0x10] sm:$0xff]   ;;  %v3398_v29 = vld [vmem:[%s4253_s0 + $0x118] sm:$0xff]  }
   0xb   :  { %2940 = vmatpush3.bf16.msra.mxu1 %v3374_v4  ;;  %v3400_v30 = vld [vmem:[%s4254_s3 + $0x18] sm:$0xff]   ;;  %v3402_v32 = vld [vmem:[%s4253_s0 + $0x60] sm:$0xff]   ;;  %v3404_v34 = vld [vmem:[%s4253_s0 + $0x68] sm:$0xff]  }
   0xc   :  { %3068 = vmatpush3.bf16.msra.mxu0 %v3375_v5  ;;  %2941 = vmatprep.subr.bf16.mxu1 %v3376_v6  ;;  %v3401_v31 = vld [vmem:[%s4255_s8 + $0x18] sm:$0xff]   ;;  %v3403_v33 = vld [vmem:[%s4253_s0 + $0x120] sm:$0xff]   ;;  %v3406_v37 = vld [vmem:[%s4253_s0 + $0x128] sm:$0xff]  }
   0xd   :  { %3069 = vmatprep.subr.bf16.mxu0 %v3377_v7  ;;  %v3405_v35 = vld [vmem:[%s4254_s3 + $0x20] sm:$0xff]   ;;  %v3408_v39 = vld [vmem:[%s4254_s3 + $0x28] sm:$0xff]   ;;  %v3410_v41 = vld [vmem:[%s4253_s0 + $0x70] sm:$0xff]  }
   0xe   :  { %v3407_v36 = vld [vmem:[%s4255_s8 + $0x20] sm:$0xff]   ;;  %v3409_v40 = vld [vmem:[%s4255_s8 + $0x28] sm:$0xff]   ;;  %v3411_v42 = vld [vmem:[%s4253_s0 + $0x130] sm:$0xff]  }
   0xf   :  { %2942 = vmatpush3.bf16.msra.mxu1 %v3376_v6  ;;  %v3412_v43 = vld [vmem:[%s4253_s0 + $0x78] sm:$0xff]   ;;  %v3413_v44 = vld [vmem:[%s4254_s3 + $0x30] sm:$0xff]   ;;  %v3418_v49 = vld [vmem:[%s4253_s0] sm:$0xff]  }
  0x10   :  { %3070 = vmatpush3.bf16.msra.mxu0 %v3377_v7  ;;  %2943 = vmatprep.subr.bf16.mxu1 %v3378_v8  ;;  %v3415_v45 = vld [vmem:[%s4255_s8 + $0x30] sm:$0xff]   ;;  %v3414_v46 = vld [vmem:[%s4253_s0 + $0x138] sm:$0xff]   ;;  %v3419_v50 = vld [vmem:[%s4253_s0 + $0x140] sm:$0xff]  }
  0x11   :  { %3071 = vmatprep.subr.bf16.mxu0 %v3379_v9  ;;  %v3416_v47 = vld [vmem:[%s4254_s3 + $0x38] sm:$0xff]   ;;  %v3420_v51 = vld [vmem:[%s4253_s0 + $0x8] sm:$0xff]   ;;  %v3421_v52 = vld [vmem:[%s4256_s5] sm:$0xff]  }
  0x12   :  { %v3417_v48 = vld [vmem:[%s4255_s8 + $0x38] sm:$0xff]   ;;  %v3423_v53 = vld [vmem:[%s4257_s9] sm:$0xff]   ;;  %v3422_v54 = vld [vmem:[%s4253_s0 + $0x148] sm:$0xff]  }
  0x13   :  { %2944 = vmatpush3.bf16.msra.mxu1 %v3378_v8  ;;  %v3424_v55 = vld [vmem:[%s4256_s5 + $0x8] sm:$0xff]   ;;  %v3426_v57 = vld [vmem:[%s4253_s0 + $0x10] sm:$0xff]   ;;  %v3428_v59 = vld [vmem:[%s4253_s0 + $0x18] sm:$0xff]  }
  0x14   :  { %3072 = vmatpush3.bf16.msra.mxu0 %v3379_v9  ;;  %2945 = vmatprep.subr.bf16.mxu1 %v3380_v10  ;;  %v3425_v56 = vld [vmem:[%s4257_s9 + $0x8] sm:$0xff]   ;;  %v3427_v58 = vld [vmem:[%s4253_s0 + $0x150] sm:$0xff]   ;;  %v3430_v62 = vld [vmem:[%s4253_s0 + $0x158] sm:$0xff]  }
  0x15   :  { %3073 = vmatprep.subr.bf16.mxu0 %v3381_v11  ;;  %v3429_v60 = vld [vmem:[%s4256_s5 + $0x10] sm:$0xff]   ;;  %v3432_v63 = vld [vmem:[%s4256_s5 + $0x18] sm:$0xff]   ;;  %v3434_v1 = vld [vmem:[%s4253_s0 + $0x20] sm:$0xff]  }
  0x16   :  { %v3431_v61 = vld [vmem:[%s4257_s9 + $0x10] sm:$0xff]   ;;  %v3433_v0 = vld [vmem:[%s4257_s9 + $0x18] sm:$0xff]   ;;  %v3435_v2 = vld [vmem:[%s4253_s0 + $0x160] sm:$0xff]  }
  0x17   :  { %2946 = vmatpush3.bf16.msra.mxu1 %v3380_v10  ;;  %v3436_v3 = vld [vmem:[%s4253_s0 + $0x28] sm:$0xff]   ;;  %v3437_v4 = vld [vmem:[%s4256_s5 + $0x20] sm:$0xff]   ;;  %v3442_v9 = vld [vmem:[%s4253_s0 + $0x30] sm:$0xff]  }
  0x18   :  { %3074 = vmatpush3.bf16.msra.mxu0 %v3381_v11  ;;  %2947 = vmatprep.subr.bf16.mxu1 %v3382_v14  ;;  %v3439_v5 = vld [vmem:[%s4257_s9 + $0x20] sm:$0xff]   ;;  %v3438_v6 = vld [vmem:[%s4253_s0 + $0x168] sm:$0xff]   ;;  %v3443_v10 = vld [vmem:[%s4253_s0 + $0x170] sm:$0xff]  }
  0x19   :  { %3075 = vmatprep.subr.bf16.mxu0 %v3383_v15  ;;  %v3440_v7 = vld [vmem:[%s4256_s5 + $0x28] sm:$0xff]   ;;  %v3444_v11 = vld [vmem:[%s4253_s0 + $0x38] sm:$0xff]   ;;  %v3445_v12 = vld [vmem:[%s4256_s5 + $0x30] sm:$0xff]  }
  0x1a   :  { %v3441_v8 = vld [vmem:[%s4257_s9 + $0x28] sm:$0xff]   ;;  %v3447_v13 = vld [vmem:[%s4257_s9 + $0x30] sm:$0xff]  }
  0x1b   :  { %2948 = vmatpush3.bf16.msra.mxu1 %v3382_v14  ;;  %v3446_v14 = vld [vmem:[%s4253_s0 + $0x178] sm:$0xff]   ;;  %v3470_v38 = vld [vmem:[%s4253_s0 + $0x1a8] sm:$0xff]  }
  0x1c   :  { %3076 = vmatpush3.bf16.msra.mxu0 %v3383_v15  ;;  %2949 = vmatprep.subr.bf16.mxu1 %v3384_v16  ;;  %v3448_v15 = vld [vmem:[%s4256_s5 + $0x38] sm:$0xff]  }
  0x1d   :  { %3077 = vmatprep.subr.bf16.mxu0 %v3385_v17 }
  0x1f   :  { %2950 = vmatpush3.bf16.msra.mxu1 %v3384_v16  ;;  %v3449_v16 = vld [vmem:[%s4257_s9 + $0x38] sm:$0xff]  }
  0x20   :  { %3078 = vmatpush3.bf16.msra.mxu0 %v3385_v17  ;;  %2967 = vmatprep.subr.bf16.mxu1 %v3389_v19  ;;  %v3450_v17 = vld [vmem:[%s4253_s0 + $0x80] sm:$0xff]  }
  0x21   :  { %3095 = vmatprep.subr.bf16.mxu0 %v3391_v20 }
  0x22   :  { %2952 = vmatmul.mubr.bf16.vlgmr.msra.gmra.mrb[0].mxu1 %v3388_v18  ;;  %v3451_v18 = vld [vmem:[%s4253_s0 + $0x180] sm:$0xff]  }
  0x23   :  { %3080 = vmatmul.mubr.bf16.vlgmr.msra.gmra.mrb[0].mxu0 %v3390_v21  ;;  %2968 = vmatpush3.bf16.msra.mxu1 %v3389_v19  ;;  %v3452_v19 = vld [vmem:[%s4253_s0 + $0x88] sm:$0xff]   ;;  %v3455_v21 = vld [vmem:[%s4259_s10] sm:$0xff]  }
  0x24   :  { %3096 = vmatpush3.bf16.msra.mxu0 %v3391_v20  ;;  %2969 = vmatprep.subr.bf16.mxu1 %v3392_v22  ;;  %v3453_v20 = vld [vmem:[%s4258_s6] sm:$0xff]  }
  0x25   :  { %3097 = vmatprep.subr.bf16.mxu0 %v3393_v23  ;;  %2955 = vmatprep.mubr.bf16.mxu1 %v3394_v24  ;;  %v3457_v24 = vld [vmem:[%s4259_s10 + $0x8] sm:$0xff]  }
  0x26   :  { %3083 = vmatprep.mubr.bf16.mxu0 %v3395_v25  ;;  %v3458_v25 = vld [vmem:[%s4253_s0 + $0x90] sm:$0xff]  }
  0x27   :  { %2970 = vmatpush3.bf16.msra.mxu1 %v3392_v22  ;;  %v3454_v22 = vld [vmem:[%s4253_s0 + $0x188] sm:$0xff]  }
  0x28   :  { %3098 = vmatpush3.bf16.msra.mxu0 %v3393_v23  ;;  %2971 = vmatprep.subr.bf16.mxu1 %v3397_v27  ;;  %v3456_v23 = vld [vmem:[%s4258_s6 + $0x8] sm:$0xff]  }
  0x29   :  { %3099 = vmatprep.subr.bf16.mxu0 %v3399_v28 }
  0x2a   :  { %2956 = vmatmul.mubr.bf16.gmra.mrb[4].mxu1 %v3396_v26  ;;  %v3459_v26 = vld [vmem:[%s4253_s0 + $0x190] sm:$0xff]  }
  0x2b   :  { %3084 = vmatmul.mubr.bf16.gmra.mrb[4].mxu0 %v3398_v29  ;;  %2972 = vmatpush3.bf16.msra.mxu1 %v3397_v27  ;;  %v3460_v27 = vld [vmem:[%s4253_s0 + $0x98] sm:$0xff]   ;;  %v3463_v29 = vld [vmem:[%s4259_s10 + $0x10] sm:$0xff]  }
  0x2c   :  { %3100 = vmatpush3.bf16.msra.mxu0 %v3399_v28  ;;  %2973 = vmatprep.subr.bf16.mxu1 %v3400_v30  ;;  %v3461_v28 = vld [vmem:[%s4258_s6 + $0x10] sm:$0xff]  }
  0x2d   :  { %3101 = vmatprep.subr.bf16.mxu0 %v3401_v31  ;;  %2959 = vmatprep.mubr.bf16.mxu1 %v3402_v32  ;;  %v3465_v32 = vld [vmem:[%s4259_s10 + $0x18] sm:$0xff]  }
  0x2e   :  { %3087 = vmatprep.mubr.bf16.mxu0 %v3403_v33  ;;  %v3466_v33 = vld [vmem:[%s4253_s0 + $0xa0] sm:$0xff]  }
  0x2f   :  { %2974 = vmatpush3.bf16.msra.mxu1 %v3400_v30  ;;  %v3462_v30 = vld [vmem:[%s4253_s0 + $0x198] sm:$0xff]  }
  0x30   :  { %3102 = vmatpush3.bf16.msra.mxu0 %v3401_v31  ;;  %2975 = vmatprep.subr.bf16.mxu1 %v3405_v35  ;;  %v3464_v31 = vld [vmem:[%s4258_s6 + $0x18] sm:$0xff]  }
  0x31   :  { %3103 = vmatprep.subr.bf16.mxu0 %v3407_v36 }
  0x32   :  { %2960 = vmatmul.mubr.bf16.gmra.mrb[8].mxu1 %v3404_v34  ;;  %v3467_v34 = vld [vmem:[%s4253_s0 + $0x1a0] sm:$0xff]  }
  0x33   :  { %3088 = vmatmul.mubr.bf16.gmra.mrb[8].mxu0 %v3406_v37  ;;  %2976 = vmatpush3.bf16.msra.mxu1 %v3405_v35  ;;  %v3468_v35 = vld [vmem:[%s4253_s0 + $0xa8] sm:$0xff]   ;;  %v3471_v37 = vld [vmem:[%s4259_s10 + $0x20] sm:$0xff]  }
  0x34   :  { %3104 = vmatpush3.bf16.msra.mxu0 %v3407_v36  ;;  %2977 = vmatprep.subr.bf16.mxu1 %v3408_v39  ;;  %v3469_v36 = vld [vmem:[%s4258_s6 + $0x20] sm:$0xff]  }
  0x35   :  { %3105 = vmatprep.subr.bf16.mxu0 %v3409_v40  ;;  %2963 = vmatprep.mubr.bf16.mxu1 %v3410_v41  ;;  %v3474_v41 = vld [vmem:[%s4253_s0 + $0xb0] sm:$0xff]  }
  0x36   :  { %3091 = vmatprep.mubr.bf16.mxu0 %v3411_v42  ;;  %v3475_v42 = vld [vmem:[%s4253_s0 + $0x1b0] sm:$0xff]  }
  0x37   :  { %2978 = vmatpush3.bf16.msra.mxu1 %v3408_v39  ;;  %v3472_v39 = vld [vmem:[%s4258_s6 + $0x28] sm:$0xff]  }
  0x38   :  { %3106 = vmatpush3.bf16.msra.mxu0 %v3409_v40  ;;  %2979 = vmatprep.subr.bf16.mxu1 %v3413_v44  ;;  %v3473_v40 = vld [vmem:[%s4259_s10 + $0x28] sm:$0xff]  }
  0x39   :  { %3107 = vmatprep.subr.bf16.mxu0 %v3415_v45 }
  0x3a   :  { %2964 = vmatmul.mubr.bf16.gmra.mrb[12].mxu1 %v3412_v43  ;;  %v3476_v43 = vld [vmem:[%s4253_s0 + $0xb8] sm:$0xff]  }
  0x3b   :  { %3092 = vmatmul.mubr.bf16.gmra.mrb[12].mxu0 %v3414_v46  ;;  %2980 = vmatpush3.bf16.msra.mxu1 %v3413_v44  ;;  %v3477_v44 = vld [vmem:[%s4258_s6 + $0x30] sm:$0xff]   ;;  %v3478_v46 = vld [vmem:[%s4253_s0 + $0x1b8] sm:$0xff]  }
  0x3c   :  { %3108 = vmatpush3.bf16.msra.mxu0 %v3415_v45  ;;  %2981 = vmatprep.subr.bf16.mxu1 %v3416_v47  ;;  %v3479_v45 = vld [vmem:[%s4259_s10 + $0x30] sm:$0xff]  }
  0x3d   :  { %3109 = vmatprep.subr.bf16.mxu0 %v3417_v48  ;;  %2983 = vmatprep.mubr.bf16.mxu1 %v3418_v49  ;;  %v3482_v49 = vld [vmem:[%s4253_s0 + $0xc0] sm:$0xff]  }
  0x3e   :  { %3111 = vmatprep.mubr.bf16.mxu0 %v3419_v50  ;;  %v3483_v50 = vld [vmem:[%s4253_s0 + $0x1c0] sm:$0xff]  }
  0x3f   :  { %2982 = vmatpush3.bf16.msra.mxu1 %v3416_v47  ;;  %v3480_v47 = vld [vmem:[%s4258_s6 + $0x38] sm:$0xff]  }
  0x40   :  { %3110 = vmatpush3.bf16.msra.mxu0 %v3417_v48  ;;  %2999 = vmatprep.subr.bf16.mxu1 %v3421_v52  ;;  %v3481_v48 = vld [vmem:[%s4259_s10 + $0x38] sm:$0xff]  }
  0x41   :  { %3127 = vmatprep.subr.bf16.mxu0 %v3423_v53 }
  0x42   :  { %2984 = vmatmul.mubr.bf16.vlgmr.msra.gmra.mrb[0].mxu1 %v3420_v51  ;;  %v3486_v51 = vld [vmem:[%s4260_s11] sm:$0xff]  }
  0x43   :  { %3112 = vmatmul.mubr.bf16.vlgmr.msra.gmra.mrb[0].mxu0 %v3422_v54  ;;  %3000 = vmatpush3.bf16.msra.mxu1 %v3421_v52  ;;  %v3484_v52 = vld [vmem:[%s4253_s0 + $0xc8] sm:$0xff]  }
  0x44   :  { %3128 = vmatpush3.bf16.msra.mxu0 %v3423_v53  ;;  %3001 = vmatprep.subr.bf16.mxu1 %v3424_v55  ;;  %v3485_v53 = vld [vmem:[%s4253_s0 + $0x1c8] sm:$0xff]  }
  0x45   :  { %3129 = vmatprep.subr.bf16.mxu0 %v3425_v56  ;;  %2987 = vmatprep.mubr.bf16.mxu1 %v3426_v57  ;;  %v3487_v54 = vld [vmem:[%s4260_s11 + $0x8] sm:$0xff]   ;;  %v3492_v57 = vld [vmem:[%s4260_s11 + $0x10] sm:$0xff]  }
  0x46   :  { %3115 = vmatprep.mubr.bf16.mxu0 %v3427_v58  ;;  %v3490_v58 = vld [vmem:[%s4253_s0 + $0xd8] sm:$0xff]  }
  0x47   :  { %3002 = vmatpush3.bf16.msra.mxu1 %v3424_v55  ;;  %v3488_v55 = vld [vmem:[%s4253_s0 + $0xd0] sm:$0xff]  }
  0x48   :  { %3130 = vmatpush3.bf16.msra.mxu0 %v3425_v56  ;;  %3003 = vmatprep.subr.bf16.mxu1 %v3429_v60  ;;  %v3489_v56 = vld [vmem:[%s4253_s0 + $0x1d0] sm:$0xff]  }
  0x49   :  { %3131 = vmatprep.subr.bf16.mxu0 %v3431_v61 }
  0x4a   :  { %2988 = vmatmul.mubr.bf16.gmra.mrb[4].mxu1 %v3428_v59  ;;  %v3491_v59 = vld [vmem:[%s4253_s0 + $0x1d8] sm:$0xff]  }
  0x4b   :  { %3116 = vmatmul.mubr.bf16.gmra.mrb[4].mxu0 %v3430_v62  ;;  %3004 = vmatpush3.bf16.msra.mxu1 %v3429_v60  ;;  %v3493_v60 = vld [vmem:[%s4260_s11 + $0x18] sm:$0xff]   ;;  %v3495_v62 = vld [vmem:[%s4253_s0 + $0x1e0] sm:$0xff]  }
  0x4c   :  { %3132 = vmatpush3.bf16.msra.mxu0 %v3431_v61  ;;  %3005 = vmatprep.subr.bf16.mxu1 %v3432_v63  ;;  %v3494_v61 = vld [vmem:[%s4253_s0 + $0xe0] sm:$0xff]  }
  0x4d   :  { %3133 = vmatprep.subr.bf16.mxu0 %v3433_v0  ;;  %2991 = vmatprep.mubr.bf16.mxu1 %v3434_v1  ;;  %v3497_v1 = vld [vmem:[%s4253_s0 + $0x1e8] sm:$0xff]  }
  0x4e   :  { %3119 = vmatprep.mubr.bf16.mxu0 %v3435_v2  ;;  %v3499_v2 = vld [vmem:[%s4260_s11 + $0x28] sm:$0xff]  }
  0x4f   :  { %3006 = vmatpush3.bf16.msra.mxu1 %v3432_v63  ;;  %v3498_v63 = vld [vmem:[%s4260_s11 + $0x20] sm:$0xff]  }
  0x50   :  { %3134 = vmatpush3.bf16.msra.mxu0 %v3433_v0  ;;  %3007 = vmatprep.subr.bf16.mxu1 %v3437_v4  ;;  %v3496_v0 = vld [vmem:[%s4253_s0 + $0xe8] sm:$0xff]  }
  0x51   :  { %3135 = vmatprep.subr.bf16.mxu0 %v3439_v5 }
  0x52   :  { %2992 = vmatmul.mubr.bf16.gmra.mrb[8].mxu1 %v3436_v3  ;;  %v2189_v3 = vld [vmem:[%s4261_s1 + $0x10] sm:$0xff] }
  0x53   :  { %3120 = vmatmul.mubr.bf16.gmra.mrb[8].mxu0 %v3438_v6  ;;  %3008 = vmatpush3.bf16.msra.mxu1 %v3437_v4  ;;  %v2187_v4 = vld [vmem:[%s4261_s1] sm:$0xff]  ;;  %v3501_v6 = vld [vmem:[%s4253_s0 + $0x1f0] sm:$0xff]  }
  0x54   :  { %3136 = vmatpush3.bf16.msra.mxu0 %v3439_v5  ;;  %3009 = vmatprep.subr.bf16.mxu1 %v3440_v7  ;;  %v3500_v5 = vld [vmem:[%s4253_s0 + $0xf0] sm:$0xff]  }
  0x55   :  { %3137 = vmatprep.subr.bf16.mxu0 %v3441_v8  ;;  %2995 = vmatprep.mubr.bf16.mxu1 %v3442_v9  ;;  %v2188_v9 = vld [vmem:[%s4261_s1 + $0x8] sm:$0xff] }
  0x56   :  { %3123 = vmatprep.mubr.bf16.mxu0 %v3443_v10  ;;  %2215 = vperm.xlu1 %3369, %v2189_v3   ;;  %v3502_v10 = vld [vmem:[%s4253_s0 + $0xf8] sm:$0xff]  }
  0x57   :  { %3010 = vmatpush3.bf16.msra.mxu1 %v3440_v7  ;;  %2205 = vperm.xlu0 %3368, %v2187_v4   ;;  %v2190_v7 = vld [vmem:[%s4261_s1 + $0x18] sm:$0xff] }
  0x58   :  { %3138 = vmatpush3.bf16.msra.mxu0 %v3441_v8  ;;  %3011 = vmatprep.subr.bf16.mxu1 %v3445_v12  ;;  %v3504_v8 = vld [vmem:[%s4260_s11 + $0x30] sm:$0xff]  }
  0x59   :  { %3139 = vmatprep.subr.bf16.mxu0 %v3447_v13 }
  0x5a   :  { %2996 = vmatmul.mubr.bf16.gmra.mrb[12].mxu1 %v3444_v11  ;;  %2220 = vperm.xlu1 %3369, %v2190_v7   ;;  %v3503_v11 = vld [vmem:[%s4253_s0 + $0x1f8] sm:$0xff]  }
  0x5b   :  { %3124 = vmatmul.mubr.bf16.gmra.mrb[12].mxu0 %v3446_v14  ;;  %3012 = vmatpush3.bf16.msra.mxu1 %v3445_v12  ;;  %v2192_v12 = vld [vmem:[%s4261_s1 + $0x28] sm:$0xff]  ;;  %v3506_v14 = vld [vmem:[%s4253_s0 + $0x200] sm:$0xff]  }
  0x5c   :  { %3140 = vmatpush3.bf16.msra.mxu0 %v3447_v13  ;;  %3013 = vmatprep.subr.bf16.mxu1 %v3448_v15  ;;  %v3505_v13 = vld [vmem:[%s4260_s11 + $0x38] sm:$0xff]  }
  0x5d   :  { %3141 = vmatprep.subr.bf16.mxu0 %v3449_v16  ;;  %3015 = vmatprep.mubr.bf16.mxu1 %v3450_v17  ;;  %v2194_v17 = vld [vmem:[%s4261_s1 + $0x38] sm:$0xff] }
  0x5e   :  { %3143 = vmatprep.mubr.bf16.mxu0 %v3451_v18  ;;  %2210 = vperm.xlu0 %3368, %v2188_v9   ;;  %v3509_v18 = vld [vmem:[%s4253_s0 + $0x228] sm:$0xff]  }
  0x5f   :  { %3014 = vmatpush3.bf16.msra.mxu1 %v3448_v15  ;;  %v3507_v15 = vld [vmem:[%s4253_s0 + $0x220] sm:$0xff]   ;;  %2230 = vperm.xlu1 %3369, %v2192_v12   ;;  %v2788_v9 = vld [vmem:[%s4262_s2 + $0x28] sm:$0xff]  }
  0x60   :  { %3142 = vmatpush3.bf16.msra.mxu0 %v3449_v16  ;;  %3031 = vmatprep.subr.bf16.mxu1 %v3453_v20  ;;  %v2191_v16 = vld [vmem:[%s4261_s1 + $0x20] sm:$0xff] }
  0x61   :  { %3159 = vmatprep.subr.bf16.mxu0 %v3455_v21 }
  0x62   :  { %3016 = vmatmul.mubr.bf16.vlgmr.msra.gmra.mrb[0].mxu1 %v3452_v19  ;;  %2225 = vperm.xlu0 %3368, %v2191_v16   ;;  %v3508_v19 = vld [vmem:[%s4253_s0 + $0x208] sm:$0xff]   ;;  %v4126_v16 = vld [vmem:[%s4262_s2 + $0x38] sm:$0xff]  }
  0x63   :  { %3144 = vmatmul.mubr.bf16.vlgmr.msra.gmra.mrb[0].mxu0 %v3454_v22  ;;  %3032 = vmatpush3.bf16.msra.mxu1 %v3453_v20  ;;  %v3511_v20 = vld [vmem:[%s4253_s0 + $0x230] sm:$0xff]  }
  0x64   :  { %3160 = vmatpush3.bf16.msra.mxu0 %v3455_v21  ;;  %3033 = vmatprep.subr.bf16.mxu1 %v3456_v23  ;;  %v2193_v21 = vld [vmem:[%s4261_s1 + $0x30] sm:$0xff] }
  0x65   :  { %3161 = vmatprep.subr.bf16.mxu0 %v3457_v24  ;;  %3019 = vmatprep.mubr.bf16.mxu1 %v3458_v25  ;;  %v3510_v22 = vld [vmem:[%s4253_s0 + $0x210] sm:$0xff]   ;;  %v2198_v25 = vld [vmem:[%s4261_s1 + $0x58] sm:$0xff] }
  0x66   :  { %3147 = vmatprep.mubr.bf16.mxu0 %v3459_v26  ;;  %2240 = vperm.xlu1 %3369, %v2194_v17   ;;  %v3513_v26 = vld [vmem:[%s4253_s0 + $0x238] sm:$0xff]  }
  0x67   :  { %3034 = vmatpush3.bf16.msra.mxu1 %v3456_v23  ;;  %v2196_v23 = vld [vmem:[%s4261_s1 + $0x48] sm:$0xff]  ;;  %2235 = vperm.xlu0 %3368, %v2193_v21   ;;  %v4138_v21 = vld [vmem:[%s4262_s2 + $0x30] sm:$0xff]  }
  0x68   :  { %3162 = vmatpush3.bf16.msra.mxu0 %v3457_v24  ;;  %3035 = vmatprep.subr.bf16.mxu1 %v3461_v28  ;;  %v2195_v24 = vld [vmem:[%s4261_s1 + $0x40] sm:$0xff] }
  0x69   :  { %3163 = vmatprep.subr.bf16.mxu0 %v3463_v29 }
  0x6a   :  { %3020 = vmatmul.mubr.bf16.gmra.mrb[4].mxu1 %v3460_v27  ;;  %2250 = vperm.xlu1 %3369, %v2196_v23   ;;  %v3512_v27 = vld [vmem:[%s4253_s0 + $0x218] sm:$0xff]  }
  0x6b   :  { %3148 = vmatmul.mubr.bf16.gmra.mrb[4].mxu0 %v3462_v30  ;;  %3036 = vmatpush3.bf16.msra.mxu1 %v3461_v28  ;;  %v2197_v28 = vld [vmem:[%s4261_s1 + $0x50] sm:$0xff]  ;;  %v2199_v30 = vld [vmem:[%s4261_s1 + $0x60] sm:$0xff] }
  0x6c   :  { %3164 = vmatpush3.bf16.msra.mxu0 %v3463_v29  ;;  %3037 = vmatprep.subr.bf16.mxu1 %v3464_v31  ;;  %v2200_v29 = vld [vmem:[%s4261_s1 + $0x68] sm:$0xff] }
  0x6d   :  { %3165 = vmatprep.subr.bf16.mxu0 %v3465_v32  ;;  %3023 = vmatprep.mubr.bf16.mxu1 %v3466_v33 }
  0x6e   :  { %3151 = vmatprep.mubr.bf16.mxu0 %v3467_v34  ;;  %2245 = vperm.xlu0 %3368, %v2195_v24  }
  0x6f   :  { %3038 = vmatpush3.bf16.msra.mxu1 %v3464_v31  ;;  %2260 = vperm.xlu1 %3369, %v2198_v25   ;;  %v2202_v31 = vld [vmem:[%s4261_s1 + $0x78] sm:$0xff]  ;;  %v2775_v25 = vunpack.c.h.bf16 %v2788_v9 }
  0x70   :  { %3166 = vmatpush3.bf16.msra.mxu0 %v3465_v32  ;;  %3039 = vmatprep.subr.bf16.mxu1 %v3469_v36  ;;  %v2201_v32 = vld [vmem:[%s4261_s1 + $0x70] sm:$0xff] }
  0x71   :  { %3167 = vmatprep.subr.bf16.mxu0 %v3471_v37 }
  0x72   :  { %3024 = vmatmul.mubr.bf16.gmra.mrb[8].mxu1 %v3468_v35  ;;  %2255 = vperm.xlu0 %3368, %v2197_v28  }
  0x73   :  { %3152 = vmatmul.mubr.bf16.gmra.mrb[8].mxu0 %v3470_v38  ;;  %3040 = vmatpush3.bf16.msra.mxu1 %v3469_v36 }
  0x74   :  { %3168 = vmatpush3.bf16.msra.mxu0 %v3471_v37  ;;  %3041 = vmatprep.subr.bf16.mxu1 %v3472_v39 }
  0x75   :  { %3169 = vmatprep.subr.bf16.mxu0 %v3473_v40  ;;  %3027 = vmatprep.mubr.bf16.mxu1 %v3474_v41 }
  0x76   :  { %3155 = vmatprep.mubr.bf16.mxu0 %v3475_v42  ;;  %2270 = vperm.xlu1 %3369, %v2200_v29  }
  0x77   :  { %3042 = vmatpush3.bf16.msra.mxu1 %v3472_v39  ;;  %2265 = vperm.xlu0 %3368, %v2199_v30  }
  0x78   :  { %3170 = vmatpush3.bf16.msra.mxu0 %v3473_v40  ;;  %3043 = vmatprep.subr.bf16.mxu1 %v3477_v44 }
  0x79   :  { %3171 = vmatprep.subr.bf16.mxu0 %v3479_v45 }
  0x7a   :  { %3028 = vmatmul.mubr.bf16.gmra.mrb[12].mxu1 %v3476_v43  ;;  %2280 = vperm.xlu1 %3369, %v2202_v31   ;;  %v2782_v31 = vunpack.c.l.bf16 %v4126_v16 }
  0x7b   :  { %3156 = vmatmul.mubr.bf16.gmra.mrb[12].mxu0 %v3478_v46  ;;  %3044 = vmatpush3.bf16.msra.mxu1 %v3477_v44 }
  0x7c   :  { %3172 = vmatpush3.bf16.msra.mxu0 %v3479_v45  ;;  %3045 = vmatprep.subr.bf16.mxu1 %v3480_v47 }
  0x7d   :  { %3173 = vmatprep.subr.bf16.mxu0 %v3481_v48  ;;  %3047 = vmatprep.mubr.bf16.mxu1 %v3482_v49 }
  0x7e   :  { %3175 = vmatprep.mubr.bf16.mxu0 %v3483_v50  ;;  %2275 = vperm.xlu0 %3368, %v2201_v32  }
  0x7f   :  { %3046 = vmatpush3.bf16.msra.mxu1 %v3480_v47 }
  0x80   :  { %3174 = vmatpush3.bf16.msra.mxu0 %v3481_v48  ;;  %3223 = vmatprep.subr.bf16.mxu1 %v3486_v51 }
  0x81   :  { %3191 = vmatprep.subr.bf16.mxu0 %v3486_v51 }
  0x82   :  { %3048 = vmatmul.mubr.bf16.vlgmr.msra.gmra.mrb[0].mxu1 %v3484_v52 }
  0x83   :  { %3176 = vmatmul.mubr.bf16.vlgmr.msra.gmra.mrb[0].mxu0 %v3485_v53  ;;  %3231 = vmatpush3.bf16.msra.mxu1 %v3486_v51 }
  0x84   :  { %3192 = vmatpush3.bf16.msra.mxu0 %v3486_v51  ;;  %3224 = vmatprep.subr.bf16.mxu1 %v3487_v54 }
  0x85   :  { %3193 = vmatprep.subr.bf16.mxu0 %v3487_v54  ;;  %3051 = vmatprep.mubr.bf16.mxu1 %v3488_v55 }
  0x86   :  { %3179 = vmatprep.mubr.bf16.mxu0 %v3489_v56 }
  0x87   :  { %3232 = vmatpush3.bf16.msra.mxu1 %v3487_v54 }
  0x88   :  { %3194 = vmatpush3.bf16.msra.mxu0 %v3487_v54  ;;  %3225 = vmatprep.subr.bf16.mxu1 %v3492_v57 }
  0x89   :  { %3195 = vmatprep.subr.bf16.mxu0 %v3492_v57 }
  0x8a   :  { %3052 = vmatmul.mubr.bf16.gmra.mrb[4].mxu1 %v3490_v58 }
  0x8b   :  { %3180 = vmatmul.mubr.bf16.gmra.mrb[4].mxu0 %v3491_v59  ;;  %3233 = vmatpush3.bf16.msra.mxu1 %v3492_v57 }
  0x8c   :  { %3196 = vmatpush3.bf16.msra.mxu0 %v3492_v57  ;;  %3226 = vmatprep.subr.bf16.mxu1 %v3493_v60 }
  0x8d   :  { %3197 = vmatprep.subr.bf16.mxu0 %v3493_v60  ;;  %3055 = vmatprep.mubr.bf16.mxu1 %v3494_v61 }
  0x8e   :  { %3183 = vmatprep.mubr.bf16.mxu0 %v3495_v62 }
  0x8f   :  { %3234 = vmatpush3.bf16.msra.mxu1 %v3493_v60 }
  0x90   :  { %3198 = vmatpush3.bf16.msra.mxu0 %v3493_v60  ;;  %3227 = vmatprep.subr.bf16.mxu1 %v3498_v63 }
  0x91   :  { %3199 = vmatprep.subr.bf16.mxu0 %v3498_v63 }
  0x92   :  { %3056 = vmatmul.mubr.bf16.gmra.mrb[8].mxu1 %v3496_v0 }
  0x93   :  { %3184 = vmatmul.mubr.bf16.gmra.mrb[8].mxu0 %v3497_v1  ;;  %3235 = vmatpush3.bf16.msra.mxu1 %v3498_v63 }
  0x94   :  { %3200 = vmatpush3.bf16.msra.mxu0 %v3498_v63  ;;  %3228 = vmatprep.subr.bf16.mxu1 %v3499_v2 }
  0x95   :  { %3201 = vmatprep.subr.bf16.mxu0 %v3499_v2  ;;  %3059 = vmatprep.mubr.bf16.mxu1 %v3500_v5 }
  0x96   :  { %3187 = vmatprep.mubr.bf16.mxu0 %v3501_v6 }
  0x97   :  { %3236 = vmatpush3.bf16.msra.mxu1 %v3499_v2 }
  0x98   :  { %3202 = vmatpush3.bf16.msra.mxu0 %v3499_v2  ;;  %3229 = vmatprep.subr.bf16.mxu1 %v3504_v8 }
  0x99   :  { %3203 = vmatprep.subr.bf16.mxu0 %v3504_v8 }
  0x9a   :  { %3060 = vmatmul.mubr.bf16.gmra.mrb[12].mxu1 %v3502_v10  ;;  %v4109_v10 = vld [vmem:[%s4262_s2] sm:$0xff]  }
  0x9b   :  { %3188 = vmatmul.mubr.bf16.gmra.mrb[12].mxu0 %v3503_v11  ;;  %3237 = vmatpush3.bf16.msra.mxu1 %v3504_v8 }
  0x9c   :  { %3204 = vmatpush3.bf16.msra.mxu0 %v3504_v8  ;;  %3230 = vmatprep.subr.bf16.mxu1 %v3505_v13  ;;  %v4101_v8 = vld [vmem:[%s4262_s2 + $0x8] sm:$0xff]  }
  0x9d   :  { %3205 = vmatprep.subr.bf16.mxu0 %v3505_v13  ;;  %3207 = vmatprep.mubr.bf16.mxu0 %v3506_v14  ;;  %v2758_v17 = vunpack.c.l.bf16 %v4101_v8  ;;  %v2759_v24 = vunpack.c.h.bf16 %v4101_v8  ;;  %v2779_v8 = vunpack.c.h.bf16 %v4138_v21 }
  0x9e   :  { %3215 = vmatprep.mubr.bf16.mxu1 %v3507_v15  ;;  %v4121_v15 = vld [vmem:[%s4262_s2 + $0x18] sm:$0xff]  }
  0x9f   :  { %3238 = vmatpush3.bf16.msra.mxu1 %v3505_v13  ;;  %v2766_v30 = vunpack.c.l.bf16 %v4121_v15 }
  0xa0   :  { %3206 = vmatpush3.bf16.msra.mxu0 %v3505_v13  ;;  %v2787_v13 = vld [vmem:[%s4262_s2 + $0x20] sm:$0xff]  }
  0xa1   :  { %v2770_v23 = vunpack.c.l.bf16 %v2787_v13  ;;  %v2771_v29 = vunpack.c.h.bf16 %v2787_v13 }
  0xa2   :  { %3216 = vmatmul.mubr.bf16.vlgmr.msra.gmra.mrb[16].mxu1 %v3509_v18  ;;  %v2774_v18 = vunpack.c.l.bf16 %v2788_v9 }
  0xa3   :  { %3208 = vmatmul.mubr.bf16.vlgmr.msra.gmra.mrb[0].mxu0 %v3508_v19  ;;  %3219 = vmatprep.mubr.bf16.mxu1 %v3511_v20  ;;  %v2754_v19 = vunpack.c.l.bf16 %v4109_v10  ;;  %v4133_v20 = vld [vmem:[%s4262_s2 + $0x10] sm:$0xff]  }
  0xa4   :  { %3211 = vmatprep.mubr.bf16.mxu0 %v3510_v22 }
  0xaa   :  { %3220 = vmatmul.mubr.bf16.gmra.mrb[20].mxu1 %v3513_v26  ;;  %v2755_v26 = vunpack.c.h.bf16 %v4109_v10 }
  0xab   :  { %3212 = vmatmul.mubr.bf16.gmra.mrb[4].mxu0 %v3512_v27 }
  0xd5   :  { %v4060_v33 = vpop.permute.xlu1 %2215 }
  0xd6   :  { %v4062_v34 = vpop.permute.xlu0 %2205 }
  0xd9   :  { %v4070_v38 = vpop.permute.xlu1 %2220 }
  0xdd   :  { %v4074_v40 = vpop.permute.xlu0 %2210 }
  0xde   :  { %v4078_v42 = vpop.permute.xlu1 %2230 }
  0xe1   :  { %v4082_v44 = vpop.permute.xlu0 %2225 }
  0xe5   :  { %v4088_v47 = vpop.permute.xlu1 %2240 }
  0xe6   :  { %v4090_v48 = vpop.permute.xlu0 %2235 }
  0xe9   :  { %v4092_v61 = vpop.permute.xlu1 %2250 }
  0xed   :  { %v2246_v62 = vpop.permute.xlu0 %2245 }
  0xee   :  { %v2261_v22 = vpop.permute.xlu1 %2260 }
  0xf1   :  { %v2256_v27 = vpop.permute.xlu0 %2255 }
 0x155   :  { %v4064_v35 = vpop.f32.mrb[0].mxu1 }
 0x156   :  { %v4066_v36 = vpop.f32.mrb[1].mxu1 }
 0x157   :  { %v4068_v37 = vpop.f32.mrb[2].mxu1 }
 0x158   :  { %v4072_v39 = vpop.f32.mrb[3].mxu1 }
 0x15d   :  { %v4076_v41 = vpop.f32.mrb[4].mxu1 }
 0x15e   :  { %v4080_v43 = vpop.f32.mrb[5].mxu1 }
 0x15f   :  { %v4084_v45 = vpop.f32.mrb[6].mxu1 }
 0x160   :  { %v4086_v46 = vpop.f32.mrb[7].mxu1 }
 0x165   :  { %v3057_v49 = vpop.f32.mrb[8].mxu1 }
 0x166   :  { %v3185_v50 = vpop.f32.mrb[8].mxu0  ;;  %v930_v51 = vpop.f32.mrb[9].mxu1 }
 0x167   :  { %v3247_v52 = vadd.f32 %v3185_v50, %v3057_v49  ;;  %v1898_v53 = vpop.f32.mrb[9].mxu0  ;;  %v3058_v54 = vpop.f32.mrb[10].mxu1 }
 0x168   :  { %v3249_v55 = vadd.f32 %v1898_v53, %v930_v51  ;;  %v3186_v56 = vpop.f32.mrb[10].mxu0  ;;  %v933_v57 = vpop.f32.mrb[11].mxu1  ;;  %v2762_v51 = vunpack.c.l.bf16 %v4133_v20  ;;  %v2778_v53 = vunpack.c.l.bf16 %v4138_v21 }
 0x169   :  { %v3251_v58 = vadd.f32 %v3186_v56, %v3058_v54  ;;  %v1901_v59 = vpop.f32.mrb[11].mxu0  ;;  %v2767_v54 = vunpack.c.h.bf16 %v4121_v15 }
 0x16a   :  { %v3253_v60 = vadd.f32 %v1901_v59, %v933_v57 }
 0x16d   :  { %v3061_v63 = vpop.f32.mrb[12].mxu1 }
 0x16e   :  { %v3189_v0 = vpop.f32.mrb[12].mxu0  ;;  %v946_v1 = vpop.f32.mrb[13].mxu1 }
 0x16f   :  { %v4094_v2 = vadd.f32 %v3189_v0, %v3061_v63  ;;  %v1914_v3 = vpop.f32.mrb[13].mxu0  ;;  %v3062_v4 = vpop.f32.mrb[14].mxu1  ;;  %v2783_v0 = vunpack.c.h.bf16 %v4126_v16 }
 0x170   :  { %v4096_v5 = vadd.f32 %v1914_v3, %v946_v1  ;;  %v3190_v6 = vpop.f32.mrb[14].mxu0  ;;  %v949_v7 = vpop.f32.mrb[15].mxu1  ;;  %v2763_v1 = vunpack.c.h.bf16 %v4133_v20 }
 0x171   :  { %v4111_v11 = vadd.f32 %v3190_v6, %v3062_v4  ;;  %v1917_v12 = vpop.f32.mrb[15].mxu0 }
 0x172   :  { %v4116_v14 = vadd.f32 %v1917_v12, %v949_v7 }
 0x175   :  { %v3217_v28 = vpop.f32.mrb[16].mxu1 }
 0x176   :  { %v3209_v32 = vpop.f32.mrb[0].mxu0  ;;  %v3248_v49 = vadd.f32 %v3247_v52, %v3217_v28  ;;  %v2140_v50 = vpop.f32.mrb[17].mxu1 }
 0x177   :  { %v3239_v56 = vadd.f32 %v3209_v32, %v4064_v35  ;;  %v2108_v57 = vpop.f32.mrb[1].mxu0  ;;  %v3250_v59 = vadd.f32 %v3249_v55, %v2140_v50  ;;  %v3218_v63 = vpop.f32.mrb[18].mxu1 }
 0x178   :  { %v2293_v3 = vadd.f32 %v3248_v49, %v2256_v27  ;;  %v3240_v4 = vadd.f32 %v2108_v57, %v4066_v36  ;;  %v3210_v52 = vpop.f32.mrb[2].mxu0  ;;  %v3252_v6 = vadd.f32 %v3251_v58, %v3218_v63  ;;  %v2143_v7 = vpop.f32.mrb[19].mxu1 }
 0x179   :  { %v2285_v9 = vadd.f32 %v3239_v56, %v4060_v33  ;;  %v2291_v10 = vadd.f32 %v3250_v59, %v2246_v62  ;;  %v3241_v35 = vadd.f32 %v3210_v52, %v4068_v37  ;;  %v2111_v12 = vpop.f32.mrb[3].mxu0  ;;  %v3254_v55 = vadd.f32 %v3253_v60, %v2143_v7  ;;  %v2266_v57 = vpop.permute.xlu0 %2265 }
 0x17a   :  { %v2341_v13 = vadd.f32 %v2774_v18, %v2293_v3  ;;  %v2283_v28 = vadd.f32 %v3240_v4, %v4062_v34  ;;  %v2294_v32 = vadd.f32 %v3252_v6, %v2261_v22  ;;  %v3242_v27 = vadd.f32 %v2111_v12, %v4072_v39  ;;  %v2271_v56 = vpop.permute.xlu1 %2270 }
 0x17b   :  { %v2333_v49 = vadd.f32 %v2758_v17, %v2285_v9  ;;  %v2339_v36 = vadd.f32 %v2770_v23, %v2291_v10  ;;  %v2286_v58 = vadd.f32 %v3241_v35, %v4070_v38  ;;  %v2292_v50 = vadd.f32 %v3254_v55, %v4092_v61 }
 0x17c   :  { %v2357_v63 = vmax.f32 %v2341_v13, 0.0  ;;  %v2331_v33 = vadd.f32 %v2754_v19, %v2283_v28  ;;  %v2342_v62 = vadd.f32 %v2775_v25, %v2294_v32  ;;  %v2284_v37 = vadd.f32 %v3242_v27, %v4074_v40 }
 0x17d   :  { %v2349_v60 = vmax.f32 %v2333_v49, 0.0  ;;  %v2355_v18 = vmax.f32 %v2339_v36, 0.0  ;;  %v2334_v59 = vadd.f32 %v2759_v24, %v2286_v58  ;;  %v2340_v34 = vadd.f32 %v2771_v29, %v2292_v50  ;;  %v3221_v22 = vpop.f32.mrb[20].mxu1 }
 0x17e   :  { %v2746_v3 = vpack.c.bf16 %v2357_v63, %v2357_v63  ;;  %v2347_v39 = vmax.f32 %v2331_v33, 0.0  ;;  %v2358_v17 = vmax.f32 %v2342_v62, 0.0  ;;  %v2332_v23 = vadd.f32 %v2755_v26, %v2284_v37  ;;  %v3213_v4 = vpop.f32.mrb[4].mxu0  ;;  %v2156_v38 = vpop.f32.mrb[21].mxu1 }
 0x17f   :  { %v2738_v52 = vpack.c.bf16 %v2349_v60, %v2349_v60  ;;  %v2744_v61 = vpack.c.bf16 %v2355_v18, %v2355_v18  ;;  %v2350_v6 = vmax.f32 %v2334_v59, 0.0  ;;  %v2356_v7 = vmax.f32 %v2340_v34, 0.0  ;;  %v2124_v19 = vpop.f32.mrb[5].mxu0  ;;  %v3222_v25 = vpop.f32.mrb[22].mxu1 }
 0x180   :  { %2438 = vst.msk [vmem:[%s4263_s12 + $0x28] sm:$0xf] %vm2427_vm0, %v2746_v3  ;;  %v2736_v40 = vpack.c.bf16 %v2347_v39, %v2347_v39  ;;  %v2747_v24 = vpack.c.bf16 %v2358_v17, %v2358_v17  ;;  %v2348_v29 = vmax.f32 %v2332_v23, 0.0  ;;  %v3243_v9 = vadd.f32 %v3213_v4, %v4076_v41  ;;  %v3214_v10 = vpop.f32.mrb[6].mxu0  ;;  %v2159_v26 = vpop.f32.mrb[23].mxu1 }
 0x181   :  { %2430 = vst.msk [vmem:[%s4263_s12 + $0x8] sm:$0xf] %vm2427_vm0, %v2738_v52  ;;  %2436 = vst.msk [vmem:[%s4263_s12 + $0x20] sm:$0xf] %vm2427_vm0, %v2744_v61  ;;  %v2739_v35 = vpack.c.bf16 %v2350_v6, %v2350_v6  ;;  %v2745_v12 = vpack.c.bf16 %v2356_v7, %v2356_v7  ;;  %v3256_v55 = vadd.f32 %v4094_v2, %v3221_v22  ;;  %v2127_v28 = vpop.f32.mrb[7].mxu0  ;;  %v2276_v41 = vpop.permute.xlu0 %2275 }
 0x182   :  { %v3244_v13 = vadd.f32 %v2124_v19, %v4080_v43  ;;  %2428 = vst.msk [vmem:[%s4263_s12] sm:$0xf] %vm2427_vm0, %v2736_v40  ;;  %2439 = vst.msk [vmem:[%s4263_s12 + $0x2c] sm:$0xf] %vm2427_vm0, %v2747_v24  ;;  %v2737_v32 = vpack.c.bf16 %v2348_v29, %v2348_v29  ;;  %v2289_v27 = vadd.f32 %v3243_v9, %v4090_v48 }
 0x183   :  { %v3258_v49 = vadd.f32 %v4096_v5, %v2156_v38  ;;  %v3245_v2 = vadd.f32 %v3214_v10, %v4084_v45  ;;  %2431 = vst.msk [vmem:[%s4263_s12 + $0xc] sm:$0xf] %vm2427_vm0, %v2739_v35  ;;  %2437 = vst.msk [vmem:[%s4263_s12 + $0x24] sm:$0xf] %vm2427_vm0, %v2745_v12  ;;  %v2297_v43 = vadd.f32 %v3256_v55, %v2276_v41  ;;  %v2281_v5 = vpop.permute.xlu1 %2280 }
 0x184   :  { %v2287_v36 = vadd.f32 %v3244_v13, %v4082_v44  ;;  %v3260_v58 = vadd.f32 %v4111_v11, %v3222_v25  ;;  %v3246_v48 = vadd.f32 %v2127_v28, %v4086_v46  ;;  %2429 = vst.msk [vmem:[%s4263_s12 + $0x4] sm:$0xf] %vm2427_vm0, %v2737_v32  ;;  %v2337_v45 = vadd.f32 %v2766_v30, %v2289_v27 }
 0x185   :  { %v2295_v50 = vadd.f32 %v3258_v49, %v2266_v57  ;;  %v2290_v63 = vadd.f32 %v3245_v2, %v4088_v47  ;;  %v3262_v33 = vadd.f32 %v4116_v14, %v2159_v26  ;;  %v2345_v44 = vadd.f32 %v2782_v31, %v2297_v43 }
 0x186   :  { %v2335_v46 = vadd.f32 %v2762_v51, %v2287_v36  ;;  %v2298_v11 = vadd.f32 %v3260_v58, %v2281_v5  ;;  %v2288_v62 = vadd.f32 %v3246_v48, %v4078_v42  ;;  %v2353_v37 = vmax.f32 %v2337_v45, 0.0 }
 0x187   :  { %v2343_v60 = vadd.f32 %v2778_v53, %v2295_v50  ;;  %v2338_v30 = vadd.f32 %v2767_v54, %v2290_v63  ;;  %v2296_v57 = vadd.f32 %v3262_v33, %v2271_v56  ;;  %v2361_v47 = vmax.f32 %v2345_v44, 0.0 }
 0x188   :  { %v2351_v18 = vmax.f32 %v2335_v46, 0.0  ;;  %v2346_v14 = vadd.f32 %v2783_v0, %v2298_v11  ;;  %v2336_v31 = vadd.f32 %v2763_v1, %v2288_v62  ;;  %v2742_v51 = vpack.c.bf16 %v2353_v37, %v2353_v37 }
 0x189   :  { %v2359_v59 = vmax.f32 %v2343_v60, 0.0  ;;  %v2354_v34 = vmax.f32 %v2338_v30, 0.0  ;;  %v2344_v42 = vadd.f32 %v2779_v8, %v2296_v57  ;;  %v2750_v22 = vpack.c.bf16 %v2361_v47, %v2361_v47 }
 0x18a   :  { %v2740_v53 = vpack.c.bf16 %v2351_v18, %v2351_v18  ;;  %v2362_v3 = vmax.f32 %v2346_v14, 0.0  ;;  %v2352_v15 = vmax.f32 %v2336_v31, 0.0  ;;  %2434 = vst.msk [vmem:[%s4263_s12 + $0x18] sm:$0xf] %vm2427_vm0, %v2742_v51 }
 0x18b   :  { %v2748_v16 = vpack.c.bf16 %v2359_v59, %v2359_v59  ;;  %v2743_v54 = vpack.c.bf16 %v2354_v34, %v2354_v34  ;;  %v2360_v0 = vmax.f32 %v2344_v42, 0.0  ;;  %2442 = vst.msk [vmem:[%s4263_s12 + $0x38] sm:$0xf] %vm2427_vm0, %v2750_v22 }
 0x18c   :  { %2432 = vst.msk [vmem:[%s4263_s12 + $0x10] sm:$0xf] %vm2427_vm0, %v2740_v53  ;;  %v2751_v20 = vpack.c.bf16 %v2362_v3, %v2362_v3  ;;  %v2741_v21 = vpack.c.bf16 %v2352_v15, %v2352_v15 }
 0x18d   :  { %2440 = vst.msk [vmem:[%s4263_s12 + $0x30] sm:$0xf] %vm2427_vm0, %v2748_v16  ;;  %2435 = vst.msk [vmem:[%s4263_s12 + $0x1c] sm:$0xf] %vm2427_vm0, %v2743_v54  ;;  %v2749_v1 = vpack.c.bf16 %v2360_v0, %v2360_v0 }
 0x18e   :  { %2443 = vst.msk [vmem:[%s4263_s12 + $0x3c] sm:$0xf] %vm2427_vm0, %v2751_v20  ;;  %2433 = vst.msk [vmem:[%s4263_s12 + $0x14] sm:$0xf] %vm2427_vm0, %v2741_v21 }
 0x18f   :  { %2441 = vst.msk [vmem:[%s4263_s12 + $0x34] sm:$0xf] %vm2427_vm0, %v2749_v1 }

// kernel: _lambda_.40
= control target key start
LH: loop header
LB: loop body
LE: loop exit
PB: predicated region body
PF: predicated region fallthrough
CT: control target
= control target key end

     0   :  { %v3424_v38 = vmov 0   ;;  %vm2376_vm0 = vcmask 11264   ;;  %s4071_s3 = inlined_call_operand.vmem [shape: bf16[128,2], index: 3, kind: input, shape index: {}, may-alias: {2,3,4,5,7,8,9,10}]   ;;  %s4072_s6 = inlined_call_operand.vmem [shape: bf16[128,2], index: 6, kind: input, shape index: {}]   ;;  %s4073_s0 = inlined_call_operand.vmem [shape: bf16[9,128,128], index: 0, kind: input, shape index: {}]   ;;  %s4074_s2 = inlined_call_operand.vmem [shape: bf16[128,2], index: 2, kind: input, shape index: {}, may-alias: {2,3,4,5,7,8,9,10}]   ;;  %s4075_s7 = inlined_call_operand.vmem [shape: bf16[128,2], index: 7, kind: input, shape index: {}, may-alias: {2,3,4,5,7,8,9,10}]   ;;  %s4076_s4 = inlined_call_operand.vmem [shape: bf16[128,2], index: 4, kind: input, shape index: {}, may-alias: {2,3,4,5,7,8,9,10}]   ;;  %s4077_s8 = inlined_call_operand.vmem [shape: bf16[128,2], index: 8, kind: input, shape index: {}, may-alias: {2,3,4,5,7,8,9,10}]   ;;  %s4078_s5 = inlined_call_operand.vmem [shape: bf16[128,2], index: 5, kind: input, shape index: {}, may-alias: {2,3,4,5,7,8,9,10}]   ;;  %s4079_s9 = inlined_call_operand.vmem [shape: bf16[128,2], index: 9, kind: input, shape index: {}, may-alias: {2,3,4,5,7,8,9,10}]   ;;  %s4080_s10 = inlined_call_operand.vmem [shape: bf16[128,2], index: 10, kind: input, shape index: {}, may-alias: {2,3,4,5,7,8,9,10}]   ;;  %s4081_s1 = inlined_call_operand.vmem [shape: f32[128,1], index: 1, kind: input, shape index: {}]   ;;  %s4082_s11 = inlined_call_operand.vmem [shape: bf16[128,2], index: 11, kind: output, shape index: {}]  }
   0x1   :  { %v3280_v0 = vld [vmem:[%s4071_s3] sm:$0xff]   ;;  %v3282_v2 = vld [vmem:[%s4071_s3 + $0x8] sm:$0xff]   ;;  %v3284_v4 = vld [vmem:[%s4071_s3 + $0x10] sm:$0xff]   ;;  %3279 = vset.pattern.permute.xlu1 %v3424_v38  ;;  %3278 = vset.pattern.permute.xlu0 %v3424_v38 }
   0x2   :  { %v3281_v1 = vld [vmem:[%s4072_s6] sm:$0xff]   ;;  %2845 = vmatprep.subr.bf16.mxu1 %v3280_v0  ;;  %v3283_v3 = vld [vmem:[%s4072_s6 + $0x8] sm:$0xff]   ;;  %v3285_v5 = vld [vmem:[%s4072_s6 + $0x10] sm:$0xff]  }
   0x3   :  { %2973 = vmatprep.subr.bf16.mxu0 %v3281_v1  ;;  %2846 = vmatpush3.bf16.msra.mxu1 %v3280_v0  ;;  %v3286_v6 = vld [vmem:[%s4071_s3 + $0x18] sm:$0xff]   ;;  %v3288_v8 = vld [vmem:[%s4071_s3 + $0x20] sm:$0xff]   ;;  %v3290_v10 = vld [vmem:[%s4071_s3 + $0x28] sm:$0xff]  }
   0x4   :  { %2974 = vmatpush3.bf16.msra.mxu0 %v3281_v1  ;;  %2847 = vmatprep.subr.bf16.mxu1 %v3282_v2  ;;  %v3287_v7 = vld [vmem:[%s4072_s6 + $0x18] sm:$0xff]   ;;  %v3289_v9 = vld [vmem:[%s4072_s6 + $0x20] sm:$0xff]   ;;  %v3291_v11 = vld [vmem:[%s4072_s6 + $0x28] sm:$0xff]  }
   0x5   :  { %2975 = vmatprep.subr.bf16.mxu0 %v3283_v3  ;;  %v3296_v12 = vld [vmem:[%s4073_s0 + $0x40] sm:$0xff]   ;;  %v3292_v14 = vld [vmem:[%s4071_s3 + $0x30] sm:$0xff]   ;;  %v3294_v16 = vld [vmem:[%s4071_s3 + $0x38] sm:$0xff]  }
   0x6   :  { %v3297_v13 = vld [vmem:[%s4073_s0 + $0x100] sm:$0xff]   ;;  %2861 = vmatprep.mubr.bf16.mxu1 %v3296_v12  ;;  %v3293_v15 = vld [vmem:[%s4072_s6 + $0x30] sm:$0xff]   ;;  %v3295_v17 = vld [vmem:[%s4072_s6 + $0x38] sm:$0xff]  }
   0x7   :  { %2848 = vmatpush3.bf16.msra.mxu1 %v3282_v2  ;;  %2989 = vmatprep.mubr.bf16.mxu0 %v3297_v13  ;;  %v3298_v18 = vld [vmem:[%s4073_s0 + $0x48] sm:$0xff]   ;;  %v3299_v19 = vld [vmem:[%s4074_s2] sm:$0xff]   ;;  %v3304_v24 = vld [vmem:[%s4073_s0 + $0x50] sm:$0xff]  }
   0x8   :  { %2976 = vmatpush3.bf16.msra.mxu0 %v3283_v3  ;;  %2849 = vmatprep.subr.bf16.mxu1 %v3284_v4  ;;  %v3301_v20 = vld [vmem:[%s4075_s7] sm:$0xff]   ;;  %v3300_v21 = vld [vmem:[%s4073_s0 + $0x108] sm:$0xff]   ;;  %v3305_v25 = vld [vmem:[%s4073_s0 + $0x110] sm:$0xff]  }
   0x9   :  { %2977 = vmatprep.subr.bf16.mxu0 %v3285_v5  ;;  %v3302_v22 = vld [vmem:[%s4074_s2 + $0x8] sm:$0xff]   ;;  %v3306_v26 = vld [vmem:[%s4073_s0 + $0x58] sm:$0xff]   ;;  %v3307_v27 = vld [vmem:[%s4074_s2 + $0x10] sm:$0xff]  }
   0xa   :  { %v3303_v23 = vld [vmem:[%s4075_s7 + $0x8] sm:$0xff]   ;;  %v3309_v28 = vld [vmem:[%s4075_s7 + $0x10] sm:$0xff]   ;;  %v3308_v29 = vld [vmem:[%s4073_s0 + $0x118] sm:$0xff]  }
   0xb   :  { %2850 = vmatpush3.bf16.msra.mxu1 %v3284_v4  ;;  %v3310_v30 = vld [vmem:[%s4074_s2 + $0x18] sm:$0xff]   ;;  %v3312_v32 = vld [vmem:[%s4073_s0 + $0x60] sm:$0xff]   ;;  %v3314_v34 = vld [vmem:[%s4073_s0 + $0x68] sm:$0xff]  }
   0xc   :  { %2978 = vmatpush3.bf16.msra.mxu0 %v3285_v5  ;;  %2851 = vmatprep.subr.bf16.mxu1 %v3286_v6  ;;  %v3311_v31 = vld [vmem:[%s4075_s7 + $0x18] sm:$0xff]   ;;  %v3313_v33 = vld [vmem:[%s4073_s0 + $0x120] sm:$0xff]   ;;  %v3316_v37 = vld [vmem:[%s4073_s0 + $0x128] sm:$0xff]  }
   0xd   :  { %2979 = vmatprep.subr.bf16.mxu0 %v3287_v7  ;;  %v3315_v35 = vld [vmem:[%s4074_s2 + $0x20] sm:$0xff]   ;;  %v3318_v39 = vld [vmem:[%s4074_s2 + $0x28] sm:$0xff]   ;;  %v3320_v41 = vld [vmem:[%s4073_s0 + $0x70] sm:$0xff]  }
   0xe   :  { %v3317_v36 = vld [vmem:[%s4075_s7 + $0x20] sm:$0xff]   ;;  %v3319_v40 = vld [vmem:[%s4075_s7 + $0x28] sm:$0xff]   ;;  %v3321_v42 = vld [vmem:[%s4073_s0 + $0x130] sm:$0xff]  }
   0xf   :  { %2852 = vmatpush3.bf16.msra.mxu1 %v3286_v6  ;;  %v3322_v43 = vld [vmem:[%s4073_s0 + $0x78] sm:$0xff]   ;;  %v3323_v44 = vld [vmem:[%s4074_s2 + $0x30] sm:$0xff]   ;;  %v3328_v49 = vld [vmem:[%s4073_s0] sm:$0xff]  }
  0x10   :  { %2980 = vmatpush3.bf16.msra.mxu0 %v3287_v7  ;;  %2853 = vmatprep.subr.bf16.mxu1 %v3288_v8  ;;  %v3325_v45 = vld [vmem:[%s4075_s7 + $0x30] sm:$0xff]   ;;  %v3324_v46 = vld [vmem:[%s4073_s0 + $0x138] sm:$0xff]   ;;  %v3329_v50 = vld [vmem:[%s4073_s0 + $0x140] sm:$0xff]  }
  0x11   :  { %2981 = vmatprep.subr.bf16.mxu0 %v3289_v9  ;;  %v3326_v47 = vld [vmem:[%s4074_s2 + $0x38] sm:$0xff]   ;;  %v3330_v51 = vld [vmem:[%s4073_s0 + $0x8] sm:$0xff]   ;;  %v3331_v52 = vld [vmem:[%s4076_s4] sm:$0xff]  }
  0x12   :  { %v3327_v48 = vld [vmem:[%s4075_s7 + $0x38] sm:$0xff]   ;;  %v3333_v53 = vld [vmem:[%s4077_s8] sm:$0xff]   ;;  %v3332_v54 = vld [vmem:[%s4073_s0 + $0x148] sm:$0xff]  }
  0x13   :  { %2854 = vmatpush3.bf16.msra.mxu1 %v3288_v8  ;;  %v3334_v55 = vld [vmem:[%s4076_s4 + $0x8] sm:$0xff]   ;;  %v3336_v57 = vld [vmem:[%s4073_s0 + $0x10] sm:$0xff]   ;;  %v3338_v59 = vld [vmem:[%s4073_s0 + $0x18] sm:$0xff]  }
  0x14   :  { %2982 = vmatpush3.bf16.msra.mxu0 %v3289_v9  ;;  %2855 = vmatprep.subr.bf16.mxu1 %v3290_v10  ;;  %v3335_v56 = vld [vmem:[%s4077_s8 + $0x8] sm:$0xff]   ;;  %v3337_v58 = vld [vmem:[%s4073_s0 + $0x150] sm:$0xff]   ;;  %v3340_v62 = vld [vmem:[%s4073_s0 + $0x158] sm:$0xff]  }
  0x15   :  { %2983 = vmatprep.subr.bf16.mxu0 %v3291_v11  ;;  %v3339_v60 = vld [vmem:[%s4076_s4 + $0x10] sm:$0xff]   ;;  %v3342_v63 = vld [vmem:[%s4076_s4 + $0x18] sm:$0xff]   ;;  %v3344_v1 = vld [vmem:[%s4073_s0 + $0x20] sm:$0xff]  }
  0x16   :  { %v3341_v61 = vld [vmem:[%s4077_s8 + $0x10] sm:$0xff]   ;;  %v3343_v0 = vld [vmem:[%s4077_s8 + $0x18] sm:$0xff]   ;;  %v3345_v2 = vld [vmem:[%s4073_s0 + $0x160] sm:$0xff]  }
  0x17   :  { %2856 = vmatpush3.bf16.msra.mxu1 %v3290_v10  ;;  %v3346_v3 = vld [vmem:[%s4073_s0 + $0x28] sm:$0xff]   ;;  %v3347_v4 = vld [vmem:[%s4076_s4 + $0x20] sm:$0xff]   ;;  %v3352_v9 = vld [vmem:[%s4073_s0 + $0x30] sm:$0xff]  }
  0x18   :  { %2984 = vmatpush3.bf16.msra.mxu0 %v3291_v11  ;;  %2857 = vmatprep.subr.bf16.mxu1 %v3292_v14  ;;  %v3349_v5 = vld [vmem:[%s4077_s8 + $0x20] sm:$0xff]   ;;  %v3348_v6 = vld [vmem:[%s4073_s0 + $0x168] sm:$0xff]   ;;  %v3353_v10 = vld [vmem:[%s4073_s0 + $0x170] sm:$0xff]  }
  0x19   :  { %2985 = vmatprep.subr.bf16.mxu0 %v3293_v15  ;;  %v3350_v7 = vld [vmem:[%s4076_s4 + $0x28] sm:$0xff]   ;;  %v3354_v11 = vld [vmem:[%s4073_s0 + $0x38] sm:$0xff]   ;;  %v3355_v12 = vld [vmem:[%s4076_s4 + $0x30] sm:$0xff]  }
  0x1a   :  { %v3351_v8 = vld [vmem:[%s4077_s8 + $0x28] sm:$0xff]   ;;  %v3357_v13 = vld [vmem:[%s4077_s8 + $0x30] sm:$0xff]  }
  0x1b   :  { %2858 = vmatpush3.bf16.msra.mxu1 %v3292_v14  ;;  %v3356_v14 = vld [vmem:[%s4073_s0 + $0x178] sm:$0xff]   ;;  %v3380_v38 = vld [vmem:[%s4073_s0 + $0x1a8] sm:$0xff]  }
  0x1c   :  { %2986 = vmatpush3.bf16.msra.mxu0 %v3293_v15  ;;  %2859 = vmatprep.subr.bf16.mxu1 %v3294_v16  ;;  %v3358_v15 = vld [vmem:[%s4076_s4 + $0x38] sm:$0xff]  }
  0x1d   :  { %2987 = vmatprep.subr.bf16.mxu0 %v3295_v17 }
  0x1f   :  { %2860 = vmatpush3.bf16.msra.mxu1 %v3294_v16  ;;  %v3359_v16 = vld [vmem:[%s4077_s8 + $0x38] sm:$0xff]  }
  0x20   :  { %2988 = vmatpush3.bf16.msra.mxu0 %v3295_v17  ;;  %2877 = vmatprep.subr.bf16.mxu1 %v3299_v19  ;;  %v3360_v17 = vld [vmem:[%s4073_s0 + $0x80] sm:$0xff]  }
  0x21   :  { %3005 = vmatprep.subr.bf16.mxu0 %v3301_v20 }
  0x22   :  { %2862 = vmatmul.mubr.bf16.vlgmr.msra.gmra.mrb[0].mxu1 %v3298_v18  ;;  %v3361_v18 = vld [vmem:[%s4073_s0 + $0x180] sm:$0xff]  }
  0x23   :  { %2990 = vmatmul.mubr.bf16.vlgmr.msra.gmra.mrb[0].mxu0 %v3300_v21  ;;  %2878 = vmatpush3.bf16.msra.mxu1 %v3299_v19  ;;  %v3362_v19 = vld [vmem:[%s4073_s0 + $0x88] sm:$0xff]   ;;  %v3365_v21 = vld [vmem:[%s4079_s9] sm:$0xff]  }
  0x24   :  { %3006 = vmatpush3.bf16.msra.mxu0 %v3301_v20  ;;  %2879 = vmatprep.subr.bf16.mxu1 %v3302_v22  ;;  %v3363_v20 = vld [vmem:[%s4078_s5] sm:$0xff]  }
  0x25   :  { %3007 = vmatprep.subr.bf16.mxu0 %v3303_v23  ;;  %2865 = vmatprep.mubr.bf16.mxu1 %v3304_v24  ;;  %v3367_v24 = vld [vmem:[%s4079_s9 + $0x8] sm:$0xff]  }
  0x26   :  { %2993 = vmatprep.mubr.bf16.mxu0 %v3305_v25  ;;  %v3368_v25 = vld [vmem:[%s4073_s0 + $0x90] sm:$0xff]  }
  0x27   :  { %2880 = vmatpush3.bf16.msra.mxu1 %v3302_v22  ;;  %v3364_v22 = vld [vmem:[%s4073_s0 + $0x188] sm:$0xff]  }
  0x28   :  { %3008 = vmatpush3.bf16.msra.mxu0 %v3303_v23  ;;  %2881 = vmatprep.subr.bf16.mxu1 %v3307_v27  ;;  %v3366_v23 = vld [vmem:[%s4078_s5 + $0x8] sm:$0xff]  }
  0x29   :  { %3009 = vmatprep.subr.bf16.mxu0 %v3309_v28 }
  0x2a   :  { %2866 = vmatmul.mubr.bf16.gmra.mrb[4].mxu1 %v3306_v26  ;;  %v3369_v26 = vld [vmem:[%s4073_s0 + $0x190] sm:$0xff]  }
  0x2b   :  { %2994 = vmatmul.mubr.bf16.gmra.mrb[4].mxu0 %v3308_v29  ;;  %2882 = vmatpush3.bf16.msra.mxu1 %v3307_v27  ;;  %v3370_v27 = vld [vmem:[%s4073_s0 + $0x98] sm:$0xff]   ;;  %v3373_v29 = vld [vmem:[%s4079_s9 + $0x10] sm:$0xff]  }
  0x2c   :  { %3010 = vmatpush3.bf16.msra.mxu0 %v3309_v28  ;;  %2883 = vmatprep.subr.bf16.mxu1 %v3310_v30  ;;  %v3371_v28 = vld [vmem:[%s4078_s5 + $0x10] sm:$0xff]  }
  0x2d   :  { %3011 = vmatprep.subr.bf16.mxu0 %v3311_v31  ;;  %2869 = vmatprep.mubr.bf16.mxu1 %v3312_v32  ;;  %v3375_v32 = vld [vmem:[%s4079_s9 + $0x18] sm:$0xff]  }
  0x2e   :  { %2997 = vmatprep.mubr.bf16.mxu0 %v3313_v33  ;;  %v3376_v33 = vld [vmem:[%s4073_s0 + $0xa0] sm:$0xff]  }
  0x2f   :  { %2884 = vmatpush3.bf16.msra.mxu1 %v3310_v30  ;;  %v3372_v30 = vld [vmem:[%s4073_s0 + $0x198] sm:$0xff]  }
  0x30   :  { %3012 = vmatpush3.bf16.msra.mxu0 %v3311_v31  ;;  %2885 = vmatprep.subr.bf16.mxu1 %v3315_v35  ;;  %v3374_v31 = vld [vmem:[%s4078_s5 + $0x18] sm:$0xff]  }
  0x31   :  { %3013 = vmatprep.subr.bf16.mxu0 %v3317_v36 }
  0x32   :  { %2870 = vmatmul.mubr.bf16.gmra.mrb[8].mxu1 %v3314_v34  ;;  %v3377_v34 = vld [vmem:[%s4073_s0 + $0x1a0] sm:$0xff]  }
  0x33   :  { %2998 = vmatmul.mubr.bf16.gmra.mrb[8].mxu0 %v3316_v37  ;;  %2886 = vmatpush3.bf16.msra.mxu1 %v3315_v35  ;;  %v3378_v35 = vld [vmem:[%s4073_s0 + $0xa8] sm:$0xff]   ;;  %v3381_v37 = vld [vmem:[%s4079_s9 + $0x20] sm:$0xff]  }
  0x34   :  { %3014 = vmatpush3.bf16.msra.mxu0 %v3317_v36  ;;  %2887 = vmatprep.subr.bf16.mxu1 %v3318_v39  ;;  %v3379_v36 = vld [vmem:[%s4078_s5 + $0x20] sm:$0xff]  }
  0x35   :  { %3015 = vmatprep.subr.bf16.mxu0 %v3319_v40  ;;  %2873 = vmatprep.mubr.bf16.mxu1 %v3320_v41  ;;  %v3384_v41 = vld [vmem:[%s4073_s0 + $0xb0] sm:$0xff]  }
  0x36   :  { %3001 = vmatprep.mubr.bf16.mxu0 %v3321_v42  ;;  %v3385_v42 = vld [vmem:[%s4073_s0 + $0x1b0] sm:$0xff]  }
  0x37   :  { %2888 = vmatpush3.bf16.msra.mxu1 %v3318_v39  ;;  %v3382_v39 = vld [vmem:[%s4078_s5 + $0x28] sm:$0xff]  }
  0x38   :  { %3016 = vmatpush3.bf16.msra.mxu0 %v3319_v40  ;;  %2889 = vmatprep.subr.bf16.mxu1 %v3323_v44  ;;  %v3383_v40 = vld [vmem:[%s4079_s9 + $0x28] sm:$0xff]  }
  0x39   :  { %3017 = vmatprep.subr.bf16.mxu0 %v3325_v45 }
  0x3a   :  { %2874 = vmatmul.mubr.bf16.gmra.mrb[12].mxu1 %v3322_v43  ;;  %v3386_v43 = vld [vmem:[%s4073_s0 + $0xb8] sm:$0xff]  }
  0x3b   :  { %3002 = vmatmul.mubr.bf16.gmra.mrb[12].mxu0 %v3324_v46  ;;  %2890 = vmatpush3.bf16.msra.mxu1 %v3323_v44  ;;  %v3387_v44 = vld [vmem:[%s4078_s5 + $0x30] sm:$0xff]   ;;  %v3388_v46 = vld [vmem:[%s4073_s0 + $0x1b8] sm:$0xff]  }
  0x3c   :  { %3018 = vmatpush3.bf16.msra.mxu0 %v3325_v45  ;;  %2891 = vmatprep.subr.bf16.mxu1 %v3326_v47  ;;  %v3389_v45 = vld [vmem:[%s4079_s9 + $0x30] sm:$0xff]  }
  0x3d   :  { %3019 = vmatprep.subr.bf16.mxu0 %v3327_v48  ;;  %2893 = vmatprep.mubr.bf16.mxu1 %v3328_v49  ;;  %v3392_v49 = vld [vmem:[%s4073_s0 + $0xc0] sm:$0xff]  }
  0x3e   :  { %3021 = vmatprep.mubr.bf16.mxu0 %v3329_v50  ;;  %v3393_v50 = vld [vmem:[%s4073_s0 + $0x1c0] sm:$0xff]  }
  0x3f   :  { %2892 = vmatpush3.bf16.msra.mxu1 %v3326_v47  ;;  %v3390_v47 = vld [vmem:[%s4078_s5 + $0x38] sm:$0xff]  }
  0x40   :  { %3020 = vmatpush3.bf16.msra.mxu0 %v3327_v48  ;;  %2909 = vmatprep.subr.bf16.mxu1 %v3331_v52  ;;  %v3391_v48 = vld [vmem:[%s4079_s9 + $0x38] sm:$0xff]  }
  0x41   :  { %3037 = vmatprep.subr.bf16.mxu0 %v3333_v53 }
  0x42   :  { %2894 = vmatmul.mubr.bf16.vlgmr.msra.gmra.mrb[0].mxu1 %v3330_v51  ;;  %v3396_v51 = vld [vmem:[%s4080_s10] sm:$0xff]  }
  0x43   :  { %3022 = vmatmul.mubr.bf16.vlgmr.msra.gmra.mrb[0].mxu0 %v3332_v54  ;;  %2910 = vmatpush3.bf16.msra.mxu1 %v3331_v52  ;;  %v3394_v52 = vld [vmem:[%s4073_s0 + $0xc8] sm:$0xff]  }
  0x44   :  { %3038 = vmatpush3.bf16.msra.mxu0 %v3333_v53  ;;  %2911 = vmatprep.subr.bf16.mxu1 %v3334_v55  ;;  %v3395_v53 = vld [vmem:[%s4073_s0 + $0x1c8] sm:$0xff]  }
  0x45   :  { %3039 = vmatprep.subr.bf16.mxu0 %v3335_v56  ;;  %2897 = vmatprep.mubr.bf16.mxu1 %v3336_v57  ;;  %v3397_v54 = vld [vmem:[%s4080_s10 + $0x8] sm:$0xff]   ;;  %v3402_v57 = vld [vmem:[%s4080_s10 + $0x10] sm:$0xff]  }
  0x46   :  { %3025 = vmatprep.mubr.bf16.mxu0 %v3337_v58  ;;  %v3400_v58 = vld [vmem:[%s4073_s0 + $0xd8] sm:$0xff]  }
  0x47   :  { %2912 = vmatpush3.bf16.msra.mxu1 %v3334_v55  ;;  %v3398_v55 = vld [vmem:[%s4073_s0 + $0xd0] sm:$0xff]  }
  0x48   :  { %3040 = vmatpush3.bf16.msra.mxu0 %v3335_v56  ;;  %2913 = vmatprep.subr.bf16.mxu1 %v3339_v60  ;;  %v3399_v56 = vld [vmem:[%s4073_s0 + $0x1d0] sm:$0xff]  }
  0x49   :  { %3041 = vmatprep.subr.bf16.mxu0 %v3341_v61 }
  0x4a   :  { %2898 = vmatmul.mubr.bf16.gmra.mrb[4].mxu1 %v3338_v59  ;;  %v3401_v59 = vld [vmem:[%s4073_s0 + $0x1d8] sm:$0xff]  }
  0x4b   :  { %3026 = vmatmul.mubr.bf16.gmra.mrb[4].mxu0 %v3340_v62  ;;  %2914 = vmatpush3.bf16.msra.mxu1 %v3339_v60  ;;  %v3403_v60 = vld [vmem:[%s4080_s10 + $0x18] sm:$0xff]   ;;  %v3405_v62 = vld [vmem:[%s4073_s0 + $0x1e0] sm:$0xff]  }
  0x4c   :  { %3042 = vmatpush3.bf16.msra.mxu0 %v3341_v61  ;;  %2915 = vmatprep.subr.bf16.mxu1 %v3342_v63  ;;  %v3404_v61 = vld [vmem:[%s4073_s0 + $0xe0] sm:$0xff]  }
  0x4d   :  { %3043 = vmatprep.subr.bf16.mxu0 %v3343_v0  ;;  %2901 = vmatprep.mubr.bf16.mxu1 %v3344_v1  ;;  %v3407_v1 = vld [vmem:[%s4073_s0 + $0x1e8] sm:$0xff]  }
  0x4e   :  { %3029 = vmatprep.mubr.bf16.mxu0 %v3345_v2  ;;  %v3409_v2 = vld [vmem:[%s4080_s10 + $0x28] sm:$0xff]  }
  0x4f   :  { %2916 = vmatpush3.bf16.msra.mxu1 %v3342_v63  ;;  %v3408_v63 = vld [vmem:[%s4080_s10 + $0x20] sm:$0xff]  }
  0x50   :  { %3044 = vmatpush3.bf16.msra.mxu0 %v3343_v0  ;;  %2917 = vmatprep.subr.bf16.mxu1 %v3347_v4  ;;  %v3406_v0 = vld [vmem:[%s4073_s0 + $0xe8] sm:$0xff]  }
  0x51   :  { %3045 = vmatprep.subr.bf16.mxu0 %v3349_v5 }
  0x52   :  { %2902 = vmatmul.mubr.bf16.gmra.mrb[8].mxu1 %v3346_v3  ;;  %v2186_v3 = vld [vmem:[%s4081_s1 + $0x10] sm:$0xff] }
  0x53   :  { %3030 = vmatmul.mubr.bf16.gmra.mrb[8].mxu0 %v3348_v6  ;;  %2918 = vmatpush3.bf16.msra.mxu1 %v3347_v4  ;;  %v2184_v4 = vld [vmem:[%s4081_s1] sm:$0xff]  ;;  %v3411_v6 = vld [vmem:[%s4073_s0 + $0x1f0] sm:$0xff]  }
  0x54   :  { %3046 = vmatpush3.bf16.msra.mxu0 %v3349_v5  ;;  %2919 = vmatprep.subr.bf16.mxu1 %v3350_v7  ;;  %v3410_v5 = vld [vmem:[%s4073_s0 + $0xf0] sm:$0xff]  }
  0x55   :  { %3047 = vmatprep.subr.bf16.mxu0 %v3351_v8  ;;  %2905 = vmatprep.mubr.bf16.mxu1 %v3352_v9  ;;  %v2185_v9 = vld [vmem:[%s4081_s1 + $0x8] sm:$0xff] }
  0x56   :  { %3033 = vmatprep.mubr.bf16.mxu0 %v3353_v10  ;;  %2212 = vperm.xlu1 %3279, %v2186_v3   ;;  %v3412_v10 = vld [vmem:[%s4073_s0 + $0xf8] sm:$0xff]  }
  0x57   :  { %2920 = vmatpush3.bf16.msra.mxu1 %v3350_v7  ;;  %2202 = vperm.xlu0 %3278, %v2184_v4   ;;  %v2187_v7 = vld [vmem:[%s4081_s1 + $0x18] sm:$0xff] }
  0x58   :  { %3048 = vmatpush3.bf16.msra.mxu0 %v3351_v8  ;;  %2921 = vmatprep.subr.bf16.mxu1 %v3355_v12  ;;  %v3414_v8 = vld [vmem:[%s4080_s10 + $0x30] sm:$0xff]  }
  0x59   :  { %3049 = vmatprep.subr.bf16.mxu0 %v3357_v13 }
  0x5a   :  { %2906 = vmatmul.mubr.bf16.gmra.mrb[12].mxu1 %v3354_v11  ;;  %2217 = vperm.xlu1 %3279, %v2187_v7   ;;  %v3413_v11 = vld [vmem:[%s4073_s0 + $0x1f8] sm:$0xff]  }
  0x5b   :  { %3034 = vmatmul.mubr.bf16.gmra.mrb[12].mxu0 %v3356_v14  ;;  %2922 = vmatpush3.bf16.msra.mxu1 %v3355_v12  ;;  %v2189_v12 = vld [vmem:[%s4081_s1 + $0x28] sm:$0xff]  ;;  %v3416_v14 = vld [vmem:[%s4073_s0 + $0x200] sm:$0xff]  }
  0x5c   :  { %3050 = vmatpush3.bf16.msra.mxu0 %v3357_v13  ;;  %2923 = vmatprep.subr.bf16.mxu1 %v3358_v15  ;;  %v3415_v13 = vld [vmem:[%s4080_s10 + $0x38] sm:$0xff]  }
  0x5d   :  { %3051 = vmatprep.subr.bf16.mxu0 %v3359_v16  ;;  %2925 = vmatprep.mubr.bf16.mxu1 %v3360_v17  ;;  %v2191_v17 = vld [vmem:[%s4081_s1 + $0x38] sm:$0xff] }
  0x5e   :  { %3053 = vmatprep.mubr.bf16.mxu0 %v3361_v18  ;;  %2207 = vperm.xlu0 %3278, %v2185_v9   ;;  %v3419_v18 = vld [vmem:[%s4073_s0 + $0x228] sm:$0xff]  }
  0x5f   :  { %2924 = vmatpush3.bf16.msra.mxu1 %v3358_v15  ;;  %v3417_v15 = vld [vmem:[%s4073_s0 + $0x220] sm:$0xff]   ;;  %2227 = vperm.xlu1 %3279, %v2189_v12  }
  0x60   :  { %3052 = vmatpush3.bf16.msra.mxu0 %v3359_v16  ;;  %2941 = vmatprep.subr.bf16.mxu1 %v3363_v20  ;;  %v2188_v16 = vld [vmem:[%s4081_s1 + $0x20] sm:$0xff] }
  0x61   :  { %3069 = vmatprep.subr.bf16.mxu0 %v3365_v21 }
  0x62   :  { %2926 = vmatmul.mubr.bf16.vlgmr.msra.gmra.mrb[0].mxu1 %v3362_v19  ;;  %2222 = vperm.xlu0 %3278, %v2188_v16   ;;  %v3418_v19 = vld [vmem:[%s4073_s0 + $0x208] sm:$0xff]  }
  0x63   :  { %3054 = vmatmul.mubr.bf16.vlgmr.msra.gmra.mrb[0].mxu0 %v3364_v22  ;;  %2942 = vmatpush3.bf16.msra.mxu1 %v3363_v20  ;;  %v3421_v20 = vld [vmem:[%s4073_s0 + $0x230] sm:$0xff]  }
  0x64   :  { %3070 = vmatpush3.bf16.msra.mxu0 %v3365_v21  ;;  %2943 = vmatprep.subr.bf16.mxu1 %v3366_v23  ;;  %v2190_v21 = vld [vmem:[%s4081_s1 + $0x30] sm:$0xff] }
  0x65   :  { %3071 = vmatprep.subr.bf16.mxu0 %v3367_v24  ;;  %2929 = vmatprep.mubr.bf16.mxu1 %v3368_v25  ;;  %v3420_v22 = vld [vmem:[%s4073_s0 + $0x210] sm:$0xff]   ;;  %v2195_v25 = vld [vmem:[%s4081_s1 + $0x58] sm:$0xff] }
  0x66   :  { %3057 = vmatprep.mubr.bf16.mxu0 %v3369_v26  ;;  %2237 = vperm.xlu1 %3279, %v2191_v17   ;;  %v3423_v26 = vld [vmem:[%s4073_s0 + $0x238] sm:$0xff]  }
  0x67   :  { %2944 = vmatpush3.bf16.msra.mxu1 %v3366_v23  ;;  %v2193_v23 = vld [vmem:[%s4081_s1 + $0x48] sm:$0xff]  ;;  %2232 = vperm.xlu0 %3278, %v2190_v21  }
  0x68   :  { %3072 = vmatpush3.bf16.msra.mxu0 %v3367_v24  ;;  %2945 = vmatprep.subr.bf16.mxu1 %v3371_v28  ;;  %v2192_v24 = vld [vmem:[%s4081_s1 + $0x40] sm:$0xff] }
  0x69   :  { %3073 = vmatprep.subr.bf16.mxu0 %v3373_v29 }
  0x6a   :  { %2930 = vmatmul.mubr.bf16.gmra.mrb[4].mxu1 %v3370_v27  ;;  %2247 = vperm.xlu1 %3279, %v2193_v23   ;;  %v3422_v27 = vld [vmem:[%s4073_s0 + $0x218] sm:$0xff]  }
  0x6b   :  { %3058 = vmatmul.mubr.bf16.gmra.mrb[4].mxu0 %v3372_v30  ;;  %2946 = vmatpush3.bf16.msra.mxu1 %v3371_v28  ;;  %v2194_v28 = vld [vmem:[%s4081_s1 + $0x50] sm:$0xff]  ;;  %v2196_v30 = vld [vmem:[%s4081_s1 + $0x60] sm:$0xff] }
  0x6c   :  { %3074 = vmatpush3.bf16.msra.mxu0 %v3373_v29  ;;  %2947 = vmatprep.subr.bf16.mxu1 %v3374_v31  ;;  %v2197_v29 = vld [vmem:[%s4081_s1 + $0x68] sm:$0xff] }
  0x6d   :  { %3075 = vmatprep.subr.bf16.mxu0 %v3375_v32  ;;  %2933 = vmatprep.mubr.bf16.mxu1 %v3376_v33 }
  0x6e   :  { %3061 = vmatprep.mubr.bf16.mxu0 %v3377_v34  ;;  %2242 = vperm.xlu0 %3278, %v2192_v24  }
  0x6f   :  { %2948 = vmatpush3.bf16.msra.mxu1 %v3374_v31  ;;  %2257 = vperm.xlu1 %3279, %v2195_v25   ;;  %v2199_v31 = vld [vmem:[%s4081_s1 + $0x78] sm:$0xff] }
  0x70   :  { %3076 = vmatpush3.bf16.msra.mxu0 %v3375_v32  ;;  %2949 = vmatprep.subr.bf16.mxu1 %v3379_v36  ;;  %v2198_v32 = vld [vmem:[%s4081_s1 + $0x70] sm:$0xff] }
  0x71   :  { %3077 = vmatprep.subr.bf16.mxu0 %v3381_v37 }
  0x72   :  { %2934 = vmatmul.mubr.bf16.gmra.mrb[8].mxu1 %v3378_v35  ;;  %2252 = vperm.xlu0 %3278, %v2194_v28  }
  0x73   :  { %3062 = vmatmul.mubr.bf16.gmra.mrb[8].mxu0 %v3380_v38  ;;  %2950 = vmatpush3.bf16.msra.mxu1 %v3379_v36 }
  0x74   :  { %3078 = vmatpush3.bf16.msra.mxu0 %v3381_v37  ;;  %2951 = vmatprep.subr.bf16.mxu1 %v3382_v39 }
  0x75   :  { %3079 = vmatprep.subr.bf16.mxu0 %v3383_v40  ;;  %2937 = vmatprep.mubr.bf16.mxu1 %v3384_v41 }
  0x76   :  { %3065 = vmatprep.mubr.bf16.mxu0 %v3385_v42  ;;  %2267 = vperm.xlu1 %3279, %v2197_v29  }
  0x77   :  { %2952 = vmatpush3.bf16.msra.mxu1 %v3382_v39  ;;  %2262 = vperm.xlu0 %3278, %v2196_v30  }
  0x78   :  { %3080 = vmatpush3.bf16.msra.mxu0 %v3383_v40  ;;  %2953 = vmatprep.subr.bf16.mxu1 %v3387_v44 }
  0x79   :  { %3081 = vmatprep.subr.bf16.mxu0 %v3389_v45 }
  0x7a   :  { %2938 = vmatmul.mubr.bf16.gmra.mrb[12].mxu1 %v3386_v43  ;;  %2277 = vperm.xlu1 %3279, %v2199_v31  }
  0x7b   :  { %3066 = vmatmul.mubr.bf16.gmra.mrb[12].mxu0 %v3388_v46  ;;  %2954 = vmatpush3.bf16.msra.mxu1 %v3387_v44 }
  0x7c   :  { %3082 = vmatpush3.bf16.msra.mxu0 %v3389_v45  ;;  %2955 = vmatprep.subr.bf16.mxu1 %v3390_v47 }
  0x7d   :  { %3083 = vmatprep.subr.bf16.mxu0 %v3391_v48  ;;  %2957 = vmatprep.mubr.bf16.mxu1 %v3392_v49 }
  0x7e   :  { %3085 = vmatprep.mubr.bf16.mxu0 %v3393_v50  ;;  %2272 = vperm.xlu0 %3278, %v2198_v32  }
  0x7f   :  { %2956 = vmatpush3.bf16.msra.mxu1 %v3390_v47 }
  0x80   :  { %3084 = vmatpush3.bf16.msra.mxu0 %v3391_v48  ;;  %3133 = vmatprep.subr.bf16.mxu1 %v3396_v51 }
  0x81   :  { %3101 = vmatprep.subr.bf16.mxu0 %v3396_v51 }
  0x82   :  { %2958 = vmatmul.mubr.bf16.vlgmr.msra.gmra.mrb[0].mxu1 %v3394_v52 }
  0x83   :  { %3086 = vmatmul.mubr.bf16.vlgmr.msra.gmra.mrb[0].mxu0 %v3395_v53  ;;  %3141 = vmatpush3.bf16.msra.mxu1 %v3396_v51 }
  0x84   :  { %3102 = vmatpush3.bf16.msra.mxu0 %v3396_v51  ;;  %3134 = vmatprep.subr.bf16.mxu1 %v3397_v54 }
  0x85   :  { %3103 = vmatprep.subr.bf16.mxu0 %v3397_v54  ;;  %2961 = vmatprep.mubr.bf16.mxu1 %v3398_v55 }
  0x86   :  { %3089 = vmatprep.mubr.bf16.mxu0 %v3399_v56 }
  0x87   :  { %3142 = vmatpush3.bf16.msra.mxu1 %v3397_v54 }
  0x88   :  { %3104 = vmatpush3.bf16.msra.mxu0 %v3397_v54  ;;  %3135 = vmatprep.subr.bf16.mxu1 %v3402_v57 }
  0x89   :  { %3105 = vmatprep.subr.bf16.mxu0 %v3402_v57 }
  0x8a   :  { %2962 = vmatmul.mubr.bf16.gmra.mrb[4].mxu1 %v3400_v58 }
  0x8b   :  { %3090 = vmatmul.mubr.bf16.gmra.mrb[4].mxu0 %v3401_v59  ;;  %3143 = vmatpush3.bf16.msra.mxu1 %v3402_v57 }
  0x8c   :  { %3106 = vmatpush3.bf16.msra.mxu0 %v3402_v57  ;;  %3136 = vmatprep.subr.bf16.mxu1 %v3403_v60 }
  0x8d   :  { %3107 = vmatprep.subr.bf16.mxu0 %v3403_v60  ;;  %2965 = vmatprep.mubr.bf16.mxu1 %v3404_v61 }
  0x8e   :  { %3093 = vmatprep.mubr.bf16.mxu0 %v3405_v62 }
  0x8f   :  { %3144 = vmatpush3.bf16.msra.mxu1 %v3403_v60 }
  0x90   :  { %3108 = vmatpush3.bf16.msra.mxu0 %v3403_v60  ;;  %3137 = vmatprep.subr.bf16.mxu1 %v3408_v63 }
  0x91   :  { %3109 = vmatprep.subr.bf16.mxu0 %v3408_v63 }
  0x92   :  { %2966 = vmatmul.mubr.bf16.gmra.mrb[8].mxu1 %v3406_v0 }
  0x93   :  { %3094 = vmatmul.mubr.bf16.gmra.mrb[8].mxu0 %v3407_v1  ;;  %3145 = vmatpush3.bf16.msra.mxu1 %v3408_v63 }
  0x94   :  { %3110 = vmatpush3.bf16.msra.mxu0 %v3408_v63  ;;  %3138 = vmatprep.subr.bf16.mxu1 %v3409_v2 }
  0x95   :  { %3111 = vmatprep.subr.bf16.mxu0 %v3409_v2  ;;  %2969 = vmatprep.mubr.bf16.mxu1 %v3410_v5 }
  0x96   :  { %3097 = vmatprep.mubr.bf16.mxu0 %v3411_v6 }
  0x97   :  { %3146 = vmatpush3.bf16.msra.mxu1 %v3409_v2 }
  0x98   :  { %3112 = vmatpush3.bf16.msra.mxu0 %v3409_v2  ;;  %3139 = vmatprep.subr.bf16.mxu1 %v3414_v8 }
  0x99   :  { %3113 = vmatprep.subr.bf16.mxu0 %v3414_v8 }
  0x9a   :  { %2970 = vmatmul.mubr.bf16.gmra.mrb[12].mxu1 %v3412_v10 }
  0x9b   :  { %3098 = vmatmul.mubr.bf16.gmra.mrb[12].mxu0 %v3413_v11  ;;  %3147 = vmatpush3.bf16.msra.mxu1 %v3414_v8 }
  0x9c   :  { %3114 = vmatpush3.bf16.msra.mxu0 %v3414_v8  ;;  %3140 = vmatprep.subr.bf16.mxu1 %v3415_v13 }
  0x9d   :  { %3115 = vmatprep.subr.bf16.mxu0 %v3415_v13  ;;  %3117 = vmatprep.mubr.bf16.mxu0 %v3416_v14 }
  0x9e   :  { %3125 = vmatprep.mubr.bf16.mxu1 %v3417_v15 }
  0x9f   :  { %3148 = vmatpush3.bf16.msra.mxu1 %v3415_v13 }
  0xa0   :  { %3116 = vmatpush3.bf16.msra.mxu0 %v3415_v13 }
  0xa2   :  { %3126 = vmatmul.mubr.bf16.vlgmr.msra.gmra.mrb[16].mxu1 %v3419_v18 }
  0xa3   :  { %3118 = vmatmul.mubr.bf16.vlgmr.msra.gmra.mrb[0].mxu0 %v3418_v19  ;;  %3129 = vmatprep.mubr.bf16.mxu1 %v3421_v20 }
  0xa4   :  { %3121 = vmatprep.mubr.bf16.mxu0 %v3420_v22 }
  0xaa   :  { %3130 = vmatmul.mubr.bf16.gmra.mrb[20].mxu1 %v3423_v26 }
  0xab   :  { %3122 = vmatmul.mubr.bf16.gmra.mrb[4].mxu0 %v3422_v27 }
  0xd5   :  { %v2213_v34 = vpop.permute.xlu1 %2212 }
  0xd6   :  { %v3965_v33 = vpop.permute.xlu0 %2202 }
  0xd9   :  { %v3969_v39 = vpop.permute.xlu1 %2217 }
  0xdd   :  { %v3967_v35 = vpop.permute.xlu0 %2207 }
  0xde   :  { %v3975_v43 = vpop.permute.xlu1 %2227 }
  0xe1   :  { %v3971_v41 = vpop.permute.xlu0 %2222 }
  0xe5   :  { %v3985_v48 = vpop.permute.xlu1 %2237 }
  0xe6   :  { %v3979_v45 = vpop.permute.xlu0 %2232 }
  0xe9   :  { %v2248_v62 = vpop.permute.xlu1 %2247 }
  0xed   :  { %v2243_v49 = vpop.permute.xlu0 %2242 }
  0xee   :  { %v2258_v12 = vpop.permute.xlu1 %2257 }
  0xf1   :  { %v2253_v63 = vpop.permute.xlu0 %2252 }
  0xf6   :  { %v3991_v13 = vpop.permute.xlu0 %2262 }
 0x155   :  { %v2959_v36 = vpop.f32.mrb[0].mxu1 }
 0x156   :  { %v895_v37 = vpop.f32.mrb[1].mxu1 }
 0x157   :  { %v2960_v38 = vpop.f32.mrb[2].mxu1 }
 0x158   :  { %v898_v40 = vpop.f32.mrb[3].mxu1 }
 0x15d   :  { %v3973_v42 = vpop.f32.mrb[4].mxu1 }
 0x15e   :  { %v3977_v44 = vpop.f32.mrb[5].mxu1 }
 0x15f   :  { %v3981_v46 = vpop.f32.mrb[6].mxu1 }
 0x160   :  { %v3983_v47 = vpop.f32.mrb[7].mxu1 }
 0x165   :  { %v2967_v50 = vpop.f32.mrb[8].mxu1 }
 0x166   :  { %v3095_v51 = vpop.f32.mrb[8].mxu0  ;;  %v927_v52 = vpop.f32.mrb[9].mxu1 }
 0x167   :  { %v3157_v53 = vadd.f32 %v3095_v51, %v2967_v50  ;;  %v1895_v54 = vpop.f32.mrb[9].mxu0  ;;  %v2968_v55 = vpop.f32.mrb[10].mxu1 }
 0x168   :  { %v3159_v56 = vadd.f32 %v1895_v54, %v927_v52  ;;  %v3096_v57 = vpop.f32.mrb[10].mxu0  ;;  %v930_v58 = vpop.f32.mrb[11].mxu1 }
 0x169   :  { %v3161_v59 = vadd.f32 %v3096_v57, %v2968_v55  ;;  %v1898_v60 = vpop.f32.mrb[11].mxu0 }
 0x16a   :  { %v3163_v61 = vadd.f32 %v1898_v60, %v930_v58 }
 0x16d   :  { %v2971_v0 = vpop.f32.mrb[12].mxu1 }
 0x16e   :  { %v3099_v1 = vpop.f32.mrb[12].mxu0  ;;  %v943_v2 = vpop.f32.mrb[13].mxu1 }
 0x16f   :  { %v3165_v3 = vadd.f32 %v3099_v1, %v2971_v0  ;;  %v1911_v4 = vpop.f32.mrb[13].mxu0  ;;  %v2972_v5 = vpop.f32.mrb[14].mxu1 }
 0x170   :  { %v3167_v6 = vadd.f32 %v1911_v4, %v943_v2  ;;  %v3100_v7 = vpop.f32.mrb[14].mxu0  ;;  %v946_v8 = vpop.f32.mrb[15].mxu1 }
 0x171   :  { %v3987_v9 = vadd.f32 %v3100_v7, %v2972_v5  ;;  %v1914_v10 = vpop.f32.mrb[15].mxu0 }
 0x172   :  { %v3989_v11 = vadd.f32 %v1914_v10, %v946_v8 }
 0x175   :  { %v3127_v14 = vpop.f32.mrb[16].mxu1 }
 0x176   :  { %v3119_v15 = vpop.f32.mrb[0].mxu0  ;;  %v3158_v16 = vadd.f32 %v3157_v53, %v3127_v14  ;;  %v2137_v17 = vpop.f32.mrb[17].mxu1 }
 0x177   :  { %v3149_v18 = vadd.f32 %v3119_v15, %v2959_v36  ;;  %v2105_v19 = vpop.f32.mrb[1].mxu0  ;;  %v3160_v20 = vadd.f32 %v3159_v56, %v2137_v17  ;;  %v3128_v21 = vpop.f32.mrb[18].mxu1 }
 0x178   :  { %v2290_v22 = vadd.f32 %v3158_v16, %v2253_v63  ;;  %v3150_v23 = vadd.f32 %v2105_v19, %v895_v37  ;;  %v3120_v24 = vpop.f32.mrb[2].mxu0  ;;  %v3162_v25 = vadd.f32 %v3161_v59, %v3128_v21  ;;  %v2140_v26 = vpop.f32.mrb[19].mxu1 }
 0x179   :  { %v2282_v27 = vadd.f32 %v3149_v18, %v2213_v34  ;;  %v2288_v28 = vadd.f32 %v3160_v20, %v2243_v49  ;;  %v3151_v29 = vadd.f32 %v3120_v24, %v2960_v38  ;;  %v2108_v30 = vpop.f32.mrb[3].mxu0  ;;  %v3164_v31 = vadd.f32 %v3163_v61, %v2140_v26  ;;  %v2268_v36 = vpop.permute.xlu1 %2267 }
 0x17a   :  { %v2306_v32 = vmax.f32 %v2290_v22, 0.0  ;;  %v2280_v50 = vadd.f32 %v3150_v23, %v3965_v33  ;;  %v2291_v51 = vadd.f32 %v3162_v25, %v2258_v12  ;;  %v3152_v52 = vadd.f32 %v2108_v30, %v898_v40  ;;  %v2273_v49 = vpop.permute.xlu0 %2272 }
 0x17b   :  { %v2298_v53 = vmax.f32 %v2282_v27, 0.0  ;;  %v2304_v54 = vmax.f32 %v2288_v28, 0.0  ;;  %v2283_v55 = vadd.f32 %v3151_v29, %v3969_v39  ;;  %v2289_v56 = vadd.f32 %v3164_v31, %v2248_v62 }
 0x17c   :  { %v2695_v37 = vpack.c.bf16 %v2306_v32, %v2306_v32  ;;  %v2296_v57 = vmax.f32 %v2280_v50, 0.0  ;;  %v2307_v58 = vmax.f32 %v2291_v51, 0.0  ;;  %v2281_v34 = vadd.f32 %v3152_v52, %v3967_v35 }
 0x17d   :  { %v2687_v38 = vpack.c.bf16 %v2298_v53, %v2298_v53  ;;  %v2693_v59 = vpack.c.bf16 %v2304_v54, %v2304_v54  ;;  %v2299_v60 = vmax.f32 %v2283_v55, 0.0  ;;  %v2305_v61 = vmax.f32 %v2289_v56, 0.0  ;;  %v3131_v63 = vpop.f32.mrb[20].mxu1 }
 0x17e   :  { %2387 = vst.msk [vmem:[%s4082_s11 + $0x28] sm:$0xf] %vm2376_vm0, %v2695_v37  ;;  %v2685_v33 = vpack.c.bf16 %v2296_v57, %v2296_v57  ;;  %v2696_v40 = vpack.c.bf16 %v2307_v58, %v2307_v58  ;;  %v2297_v39 = vmax.f32 %v2281_v34, 0.0  ;;  %v3123_v62 = vpop.f32.mrb[4].mxu0  ;;  %v3166_v0 = vadd.f32 %v3165_v3, %v3131_v63  ;;  %v2153_v1 = vpop.f32.mrb[21].mxu1 }
 0x17f   :  { %2379 = vst.msk [vmem:[%s4082_s11 + $0x8] sm:$0xf] %vm2376_vm0, %v2687_v38  ;;  %2385 = vst.msk [vmem:[%s4082_s11 + $0x20] sm:$0xf] %vm2376_vm0, %v2693_v59  ;;  %v2688_v35 = vpack.c.bf16 %v2299_v60, %v2299_v60  ;;  %v2694_v2 = vpack.c.bf16 %v2305_v61, %v2305_v61  ;;  %v3153_v4 = vadd.f32 %v3123_v62, %v3973_v42  ;;  %v2121_v5 = vpop.f32.mrb[5].mxu0  ;;  %v3132_v8 = vpop.f32.mrb[22].mxu1 }
 0x180   :  { %v3168_v7 = vadd.f32 %v3167_v6, %v2153_v1  ;;  %2377 = vst.msk [vmem:[%s4082_s11] sm:$0xf] %vm2376_vm0, %v2685_v33  ;;  %2388 = vst.msk [vmem:[%s4082_s11 + $0x2c] sm:$0xf] %vm2376_vm0, %v2696_v40  ;;  %v2686_v3 = vpack.c.bf16 %v2297_v39, %v2297_v39  ;;  %v2294_v10 = vadd.f32 %v3166_v0, %v2273_v49  ;;  %v3124_v14 = vpop.f32.mrb[6].mxu0  ;;  %v2156_v15 = vpop.f32.mrb[23].mxu1 }
 0x181   :  { %v3154_v12 = vadd.f32 %v2121_v5, %v3977_v44  ;;  %v3170_v42 = vadd.f32 %v3987_v9, %v3132_v8  ;;  %v2278_v6 = vpop.permute.xlu1 %2277  ;;  %2380 = vst.msk [vmem:[%s4082_s11 + $0xc] sm:$0xf] %vm2376_vm0, %v2688_v35  ;;  %2386 = vst.msk [vmem:[%s4082_s11 + $0x24] sm:$0xf] %vm2376_vm0, %v2694_v2  ;;  %v2286_v16 = vadd.f32 %v3153_v4, %v3979_v45  ;;  %v2124_v18 = vpop.f32.mrb[7].mxu0 }
 0x182   :  { %v2292_v17 = vadd.f32 %v3168_v7, %v3991_v13  ;;  %v3155_v44 = vadd.f32 %v3124_v14, %v3981_v46  ;;  %v3172_v9 = vadd.f32 %v3989_v11, %v2156_v15  ;;  %2378 = vst.msk [vmem:[%s4082_s11 + $0x4] sm:$0xf] %vm2376_vm0, %v2686_v3  ;;  %v2310_v19 = vmax.f32 %v2294_v10, 0.0 }
 0x183   :  { %v2284_v20 = vadd.f32 %v3154_v12, %v3971_v41  ;;  %v2295_v21 = vadd.f32 %v3170_v42, %v2278_v6  ;;  %v3156_v22 = vadd.f32 %v2124_v18, %v3983_v47  ;;  %v2302_v23 = vmax.f32 %v2286_v16, 0.0 }
 0x184   :  { %v2308_v45 = vmax.f32 %v2292_v17, 0.0  ;;  %v2287_v13 = vadd.f32 %v3155_v44, %v3985_v48  ;;  %v2293_v24 = vadd.f32 %v3172_v9, %v2268_v36  ;;  %v2699_v46 = vpack.c.bf16 %v2310_v19, %v2310_v19 }
 0x185   :  { %v2300_v25 = vmax.f32 %v2284_v20, 0.0  ;;  %v2311_v26 = vmax.f32 %v2295_v21, 0.0  ;;  %v2285_v11 = vadd.f32 %v3156_v22, %v3975_v43  ;;  %v2691_v27 = vpack.c.bf16 %v2302_v23, %v2302_v23 }
 0x186   :  { %v2697_v28 = vpack.c.bf16 %v2308_v45, %v2308_v45  ;;  %v2303_v29 = vmax.f32 %v2287_v13, 0.0  ;;  %v2309_v30 = vmax.f32 %v2293_v24, 0.0  ;;  %2391 = vst.msk [vmem:[%s4082_s11 + $0x38] sm:$0xf] %vm2376_vm0, %v2699_v46 }
 0x187   :  { %v2689_v41 = vpack.c.bf16 %v2300_v25, %v2300_v25  ;;  %v2700_v47 = vpack.c.bf16 %v2311_v26, %v2311_v26  ;;  %v2301_v31 = vmax.f32 %v2285_v11, 0.0  ;;  %2383 = vst.msk [vmem:[%s4082_s11 + $0x18] sm:$0xf] %vm2376_vm0, %v2691_v27 }
 0x188   :  { %2389 = vst.msk [vmem:[%s4082_s11 + $0x30] sm:$0xf] %vm2376_vm0, %v2697_v28  ;;  %v2692_v43 = vpack.c.bf16 %v2303_v29, %v2303_v29  ;;  %v2698_v48 = vpack.c.bf16 %v2309_v30, %v2309_v30 }
 0x189   :  { %2381 = vst.msk [vmem:[%s4082_s11 + $0x10] sm:$0xf] %vm2376_vm0, %v2689_v41  ;;  %2392 = vst.msk [vmem:[%s4082_s11 + $0x3c] sm:$0xf] %vm2376_vm0, %v2700_v47  ;;  %v2690_v32 = vpack.c.bf16 %v2301_v31, %v2301_v31 }
 0x18a   :  { %2384 = vst.msk [vmem:[%s4082_s11 + $0x1c] sm:$0xf] %vm2376_vm0, %v2692_v43  ;;  %2390 = vst.msk [vmem:[%s4082_s11 + $0x34] sm:$0xf] %vm2376_vm0, %v2698_v48 }
 0x18b   :  { %2382 = vst.msk [vmem:[%s4082_s11 + $0x14] sm:$0xf] %vm2376_vm0, %v2690_v32 }

</bundles_post_ra>
